<compile_context>
chip_gen: v6e
topology: v6e:2x2x1
jax: 0.10.0
libtpu: 0.0.40
codegen_flags: <defaults>
</compile_context>

<pallas_src>
import functools

import jax
import jax.numpy as jnp
from jax.experimental import pallas as pl
from jax.experimental.pallas import tpu as pltpu

_BF16 = jnp.bfloat16
_VMEM_LIMIT = 48 * 1024 * 1024  # < 64 MiB physical on v7x, fine on v5e/v6e


def _round_up(x, m):
    return (x + m - 1) // m * m


# ----------------------------------------------------------------------------
# Pallas conv kernel: valid kxk stride-1 conv as k*k shifted matmuls over the
# flattened spatial dim, fused bias + PReLU + optional residual add.
# ----------------------------------------------------------------------------
def _conv_kernel_factory(offsets, s_out, act, has_slope, has_res):
    def kern(*refs):
        x_ref, w_ref, b_ref = refs[0], refs[1], refs[2]
        nxt = 3
        a_ref = None
        if has_slope:
            a_ref = refs[nxt]
            nxt += 1
        r_ref = None
        if has_res:
            r_ref = refs[nxt]
            nxt += 1
        o_ref = refs[nxt]

        cout = o_ref.shape[1]
        acc = jnp.zeros((cout, s_out), jnp.float32)
        # Tap accumulation entirely in VMEM; x is read from HBM exactly once.
        for t, off in enumerate(offsets):
            xt = x_ref[0, :, off:off + s_out]           # (Cin, s_out) bf16
            acc = acc + jnp.dot(w_ref[t], xt,
                                preferred_element_type=jnp.float32)
        acc = acc + b_ref[...]                          # (Cout, 1) broadcast
        if act == "prelu":
            acc = jnp.where(acc >= 0.0, acc, a_ref[...] * acc)
        if has_res:
            acc = acc + r_ref[0].astype(jnp.float32)
        o_ref[0] = acc.astype(o_ref.dtype)
    return kern


def conv_valid(xp, w_taps, bias, k, *, act="none", slope=None, res=None,
               out_dtype=_BF16):
    """Valid kxk stride-1 conv on a pre-padded NCHW input.

    xp:     (N, Cin, Hp, Wp)  (halo already included)
    w_taps: (k*k, Cout, Cin)  tap-major weights
    bias:   (Cout,)
    res:    optional (N, Cout, OH, OW) residual added in the epilogue.
    """
    n, cin, hp, wp = xp.shape
    t, cout, cin_w = w_taps.shape
    assert t == k * k and cin_w == cin
    oh, ow = hp - k + 1, wp - k + 1
    s_out = oh * wp                                     # includes k-1 garbage cols/row

    x_flat = xp.reshape(n, cin, hp * wp).astype(_BF16)
    if k > 1:
        x_flat = jnp.pad(x_flat, ((0, 0), (0, 0), (0, k - 1)))
    s_in = x_flat.shape[-1]
    offsets = tuple(dy * wp + dx for dy in range(k) for dx in range(k))

    has_slope = act == "prelu"
    if has_slope and slope is None:
        slope = 0.25
    has_res = res is not None

    inputs = [x_flat,
              w_taps.astype(_BF16),
              bias.reshape(cout, 1).astype(jnp.float32)]
    in_specs = [
        pl.BlockSpec((1, cin, s_in), lambda b: (b, 0, 0)),
        pl.BlockSpec((t, cout, cin), lambda b: (0, 0, 0)),
        pl.BlockSpec((cout, 1), lambda b: (0, 0)),
    ]
    if has_slope:
        inputs.append(jnp.asarray(slope, jnp.float32).reshape(1, 1))
        in_specs.append(pl.BlockSpec((1, 1), lambda b: (0, 0)))
    if has_res:
        assert res.shape == (n, cout, oh, ow), (res.shape, (n, cout, oh, ow))
        r = res
        if ow != wp:
            r = jnp.pad(r, ((0, 0), (0, 0), (0, 0), (0, wp - ow)))
        inputs.append(r.reshape(n, cout, s_out).astype(_BF16))
        in_specs.append(pl.BlockSpec((1, cout, s_out), lambda b: (b, 0, 0)))

    kern = _conv_kernel_factory(offsets, s_out, act, has_slope, has_res)
    out = pl.pallas_call(
        kern,
        out_shape=jax.ShapeDtypeStruct((n, cout, s_out), out_dtype),
        grid=(n,),
        in_specs=in_specs,
        out_specs=pl.BlockSpec((1, cout, s_out), lambda b: (b, 0, 0)),
        compiler_params=pltpu.CompilerParams(
            dimension_semantics=("parallel",),
            vmem_limit_bytes=_VMEM_LIMIT),
    )(*inputs)

    out = out.reshape(n, cout, oh, wp)
    if ow != wp:
        out = out[:, :, :, :ow]
    return out


def conv_same(x, w_taps, bias, k, **kw):
    pad = (k - 1) // 2
    if pad:
        x = jnp.pad(x, ((0, 0), (0, 0), (pad, pad), (pad, pad)))
    return conv_valid(x, w_taps, bias, k, **kw)


def conv_down2(x, w_s2d, bias, **kw):
    """Conv2d(C, Cout, 6, stride=2, padding=2) via space-to-depth + 3x3 valid."""
    xp = jnp.pad(x, ((0, 0), (0, 0), (2, 2), (2, 2)))
    phases = jnp.concatenate(
        [xp[:, :, p::2, q::2] for p in (0, 1) for q in (0, 1)], axis=1)
    return conv_valid(phases, w_s2d, bias, 3, **kw)


def deconv_up2(x, w_sub, bias_sub, **kw):
    """ConvTranspose2d(C, Cout, 6, stride=2, padding=2) via sub-pixel convs."""
    n, c, h, w = x.shape
    xp = jnp.pad(x, ((0, 0), (0, 0), (1, 1), (1, 1)))
    y = conv_valid(xp, w_sub, bias_sub, 3, **kw)        # (n, 4*Cout, h, w)
    cout = y.shape[1] // 4
    y = y.reshape(n, 2, 2, cout, h, w)
    y = jnp.transpose(y, (0, 3, 4, 1, 5, 2))            # (n, cout, h, 2, w, 2)
    return y.reshape(n, cout, 2 * h, 2 * w)


# ----------------------------------------------------------------------------
# Flash-tiled non-local attention (SRNL core)
# ----------------------------------------------------------------------------
def _attn_kernel(q_ref, k_ref, v_ref, o_ref, m_sc, l_sc, acc_sc, *,
                 kv_len, kv_tile):
    kv_i = pl.program_id(1)

    @pl.when(kv_i == 0)
    def _():
        m_sc[...] = jnp.full(m_sc.shape, -1e30, jnp.float32)
        l_sc[...] = jnp.zeros(l_sc.shape, jnp.float32)
        acc_sc[...] = jnp.zeros(acc_sc.shape, jnp.float32)

    q = q_ref[0]                                        # (Sq, ck) bf16
    k = k_ref[0]                                        # (Tk, ck) bf16
    v = v_ref[0]                                        # (Tk, ck) bf16

    s = jax.lax.dot_general(q, k, (((1,), (1,)), ((), ())),
                            preferred_element_type=jnp.float32)   # (Sq, Tk)
    col = jax.lax.broadcasted_iota(jnp.int32, s.shape, 1) + kv_i * kv_tile
    s = jnp.where(col < kv_len, s, -1e30)               # mask padded keys

    m_new = jnp.maximum(m_sc[...], jnp.max(s, axis=-1, keepdims=True))
    alpha = jnp.exp(m_sc[...] - m_new)
    p = jnp.exp(s - m_new)
    l_sc[...] = alpha * l_sc[...] + jnp.sum(p, axis=-1, keepdims=True)
    acc_sc[...] = alpha * acc_sc[...] + jnp.dot(
        p.astype(v.dtype), v, preferred_element_type=jnp.float32)
    m_sc[...] = m_new

    @pl.when(kv_i == pl.num_programs(1) - 1)
    def _():
        inv_l = pl.reciprocal(l_sc[...], approx=True)
        o_ref[0] = (acc_sc[...] * inv_l).astype(o_ref.dtype)


def flash_attention(theta, phi, g):
    """theta/phi/g: (N, S, ck) -> softmax(theta phi^T) g, kv-tiled per batch."""
    n, sq, ck = theta.shape
    skv = phi.shape[1]
    sq_p = _round_up(max(sq, 8), 8)
    if skv <= 512:
        kv_tile = _round_up(max(skv, 8), 8)
        skv_p = kv_tile
    else:
        kv_tile = 512
        skv_p = _round_up(skv, 512)
    n_kv = skv_p // kv_tile

    qp = jnp.pad(theta, ((0, 0), (0, sq_p - sq), (0, 0))).astype(_BF16)
    kp = jnp.pad(phi, ((0, 0), (0, skv_p - skv), (0, 0))).astype(_BF16)
    vp = jnp.pad(g, ((0, 0), (0, skv_p - skv), (0, 0))).astype(_BF16)

    kern = functools.partial(_attn_kernel, kv_len=skv, kv_tile=kv_tile)
    out = pl.pallas_call(
        kern,
        out_shape=jax.ShapeDtypeStruct((n, sq_p, ck), _BF16),
        grid=(n, n_kv),
        in_specs=[
            pl.BlockSpec((1, sq_p, ck), lambda b, kv: (b, 0, 0)),
            pl.BlockSpec((1, kv_tile, ck), lambda b, kv: (b, kv, 0)),
            pl.BlockSpec((1, kv_tile, ck), lambda b, kv: (b, kv, 0)),
        ],
        out_specs=pl.BlockSpec((1, sq_p, ck), lambda b, kv: (b, 0, 0)),
        scratch_shapes=[
            pltpu.VMEM((sq_p, 1), jnp.float32),
            pltpu.VMEM((sq_p, 1), jnp.float32),
            pltpu.VMEM((sq_p, ck), jnp.float32),
        ],
        compiler_params=pltpu.CompilerParams(
            dimension_semantics=("parallel", "arbitrary"),
            vmem_limit_bytes=_VMEM_LIMIT),
    )(qp, kp, vp)
    return out[:, :sq, :]


# ----------------------------------------------------------------------------
# TFMAN sub-modules (NCHW activations, bf16)
# ----------------------------------------------------------------------------
def mean_shift(x, sign, rgb_range, rgb_mean):
    # MeanShift with std=(1,1,1) is a per-channel constant add -> plain XLA.
    b = sign * rgb_range * jnp.asarray(rgb_mean, jnp.float32)
    return x + b.reshape(1, -1, 1, 1).astype(x.dtype)


def channel_attention(x, p):
    # Tiny (N, C) MLP: cheaper in plain XLA than a pallas_call.
    z = jnp.mean(x.astype(jnp.float32), axis=(2, 3))
    z = jax.nn.relu(z @ p["w_down"] + p["b_down"])
    s = jax.nn.sigmoid(z @ p["w_up"] + p["b_up"])
    return x * s[:, :, None, None].astype(x.dtype)


def srnl(x, p):
    # Embedded-Gaussian non-local block (assumed SRNL structure).
    n, f, h, w = x.shape
    ck = p["w_o"].shape[2]
    tpg = conv_same(x, p["w_tpg"], p["b_tpg"], 1)              # fused q/k/v GEMM
    tpg = jnp.transpose(tpg.reshape(n, 3 * ck, h * w), (0, 2, 1))
    theta, phi, g = tpg[..., :ck], tpg[..., ck:2 * ck], tpg[..., 2 * ck:]
    y = flash_attention(theta, phi, g)                          # (n, hw, ck)
    y = jnp.transpose(y, (0, 2, 1)).reshape(n, ck, h, w)
    return conv_same(y, p["w_o"], p["b_o"], 1, res=x)           # "+ x" fused


def tfm(x, i, p):
    # TODO(synk): reference TFM (trainable feature matching) source was not
    # provided; approximated as a per-iteration learned 1x1 mix + PReLU
    # followed by a shared 6x6/stride-2 transposed-conv upsample.
    y = conv_same(x, p["mix_w"][i], p["mix_b"][i], 1,
                  act="prelu", slope=p["mix_a"][i])
    return deconv_up2(y, p["up_w"], p["up_b"])


def fusion1(x, i, p):
    b1 = channel_attention(tfm(x, i, p["tfm"]), p["ca"])
    b2 = deconv_up2(srnl(x, p["srnl"]), p["up_w"], p["up_b"],
                    act="prelu", slope=p["up_a"])
    h = conv_same(b1 - b2, p["enc_w1"], p["enc_b1"], 3,
                  act="prelu", slope=p["enc_a"])
    h = conv_same(h, p["enc_w2"], p["enc_b2"], 3, res=b1)       # "+ b1" fused
    return h


def fmf(x, i, p):
    x_fuse = fusion1(x, i, p["fusion1"])
    down = conv_down2(x_fuse, p["down_w"], p["down_b"],
                      act="prelu", slope=p["down_a"])
    up = deconv_up2(x - down, p["enc_up_w"], p["enc_up_b"],
                    act="prelu", slope=p["enc_up_a"])
    x_up = x_fuse + up
    h = conv_down2(x_up, p["pb_down_w"], p["pb_down_b"],
                   act="prelu", slope=p["pb_down_a"])
    x_next = conv_same(h, p["pb_conv_w"], p["pb_conv_b"], 3,
                       act="prelu", slope=p["pb_conv_a"])
    return x_next, x_up


def tfman_forward(x, params, depth, rgb_range=1.0):
    rgb_mean = (0.4488, 0.4371, 0.404)
    x = x.astype(_BF16)
    x = mean_shift(x, -1.0, rgb_range, rgb_mean)                # sub_mean
    x = conv_same(x, params["head_w1"], params["head_b1"], 3,
                  act="prelu", slope=params["head_a1"])
    x = conv_same(x, params["head_w2"], params["head_b2"], 3,
                  act="prelu", slope=params["head_a2"])
    bag = []
    for i in range(depth):
        x, x_up = fmf(x, i, params["fmf"])
        bag.append(x_up)
    y = jnp.concatenate(bag, axis=1)                            # channel concat
    y = conv_same(y, params["tail_w"], params["tail_b"], 3,
                  out_dtype=jnp.float32)                        # tail
    y = mean_shift(y, +1.0, rgb_range, rgb_mean)                # add_mean
    return y


# ----------------------------------------------------------------------------
# Weight-layout converters (PyTorch layouts -> kernel tap layouts)
# ----------------------------------------------------------------------------
def _conv_taps_from_torch(w):
    """Conv2d (Cout, Cin, k, k) -> (k*k, Cout, Cin)."""
    co, ci, kh, kw = w.shape
    return jnp.transpose(w, (2, 3, 0, 1)).reshape(kh * kw, co, ci)


def _down2_taps_from_torch(w6):
    """Conv2d(6x6, stride 2, pad 2) (Cout, Cin, 6, 6) -> (9, Cout, 4*Cin)."""
    taps = []
    for a in range(3):
        for b in range(3):
            taps.append(jnp.concatenate(
                [w6[:, :, 2 * a + p, 2 * b + q] for p in (0, 1) for q in (0, 1)],
                axis=1))
    return jnp.stack(taps, 0)


def _up2_taps_from_torch(wt):
    """ConvTranspose2d(6x6, stride 2, pad 2) (Cin, Cout, 6, 6) -> (9, 4*Cout, Cin).

    Handles the 180-degree flip / axis swap required to express the transposed
    conv as 4 sub-pixel forward 3x3 convs.
    """
    taps = []
    for a in range(3):
        for b in range(3):
            blocks = [jnp.transpose(wt[:, :, p + 4 - 2 * a, q + 4 - 2 * b])
                      for p in (0, 1) for q in (0, 1)]
            taps.append(jnp.concatenate(blocks, axis=0))
    return jnp.stack(taps, 0)


# ----------------------------------------------------------------------------
# Deterministic parameter init (random weights, PReLU slopes = 0.25)
# ----------------------------------------------------------------------------
def init_params(key, n_colors, n_feats, depth, scale):
    assert scale == 2, "this build decomposes the 6x6/stride-2 (de)convs for scale=2"
    keys = iter(jax.random.split(key, 256))

    def w(shape, std=0.05):
        return jax.random.normal(next(keys), shape, jnp.float32) * std

    def zb(c):
        return jnp.zeros((c,), jnp.float32)

    def a():
        return jnp.full((), 0.25, jnp.float32)   # nn.PReLU() default init

    F = n_feats

    def conv_p(k, cin, cout):
        return _conv_taps_from_torch(w((cout, cin, k, k))), zb(cout)

    def down6_p(cin, cout):
        return _down2_taps_from_torch(w((cout, cin, 6, 6))), zb(cout)

    def up6_p(cin, cout):
        wt = w((cin, cout, 6, 6))
        return _up2_taps_from_torch(wt), jnp.tile(zb(cout), 4)

    head_w1, head_b1 = conv_p(3, n_colors, F)
    head_w2, head_b2 = conv_p(3, F, F)

    tfm_up_w, tfm_up_b = up6_p(F, F)
    tfm_p = {"mix_w": jnp.stack([_conv_taps_from_torch(w((F, F, 1, 1)))
                                 for _ in range(depth)], 0),
             "mix_b": jnp.zeros((depth, F), jnp.float32),
             "mix_a": jnp.full((depth,), 0.25, jnp.float32),
             "up_w": tfm_up_w, "up_b": tfm_up_b}

    red = max(F // 4, 1)
    ca_p = {"w_down": w((F, red)), "b_down": zb(red),
            "w_up": w((red, F)), "b_up": zb(F)}

    ck = max(F // 2, 1)
    wt_, bt_ = conv_p(1, F, ck)
    wp_, bp_ = conv_p(1, F, ck)
    wg_, bg_ = conv_p(1, F, ck)
    wo_, bo_ = conv_p(1, ck, F)
    srnl_p = {"w_tpg": jnp.concatenate([wt_, wp_, wg_], axis=1),
              "b_tpg": jnp.concatenate([bt_, bp_, bg_], axis=0),
              "w_o": wo_, "b_o": bo_}

    up_w, up_b = up6_p(F, F)
    enc_w1, enc_b1 = conv_p(3, F, F)
    enc_w2, enc_b2 = conv_p(3, F, F)
    fusion1_p = {"tfm": tfm_p, "ca": ca_p, "srnl": srnl_p,
                 "up_w": up_w, "up_b": up_b, "up_a": a(),
                 "enc_w1": enc_w1, "enc_b1": enc_b1, "enc_a": a(),
                 "enc_w2": enc_w2, "enc_b2": enc_b2}

    down_w, down_b = down6_p(F, F)
    enc_up_w, enc_up_b = up6_p(F, F)
    pb_down_w, pb_down_b = down6_p(F, F)
    pb_conv_w, pb_conv_b = conv_p(3, F, F)
    fmf_p = {"fusion1": fusion1_p,
             "down_w": down_w, "down_b": down_b, "down_a": a(),
             "enc_up_w": enc_up_w, "enc_up_b": enc_up_b, "enc_up_a": a(),
             "pb_down_w": pb_down_w, "pb_down_b": pb_down_b, "pb_down_a": a(),
             "pb_conv_w": pb_conv_w, "pb_conv_b": pb_conv_b, "pb_conv_a": a()}

    tail_w, tail_b = conv_p(3, F * depth, n_colors)
    return {"head_w1": head_w1, "head_b1": head_b1, "head_a1": a(),
            "head_w2": head_w2, "head_b2": head_b2, "head_a2": a(),
            "fmf": fmf_p, "tail_w": tail_w, "tail_b": tail_b}


# ----------------------------------------------------------------------------
if __name__ == "__main__":
    N_COLORS, N_FEATS, DEPTH, SCALE, RGB_RANGE = 3, 8, 2, 2, 1.0
    key = jax.random.PRNGKey(0)
    pkey, xkey = jax.random.split(key)
    params = init_params(pkey, N_COLORS, N_FEATS, DEPTH, SCALE)

    # LR input, NCHW like the PyTorch module; output is NCHW at scale x2.
    x = jax.random.uniform(xkey, (2, N_COLORS, 8, 8), jnp.float32) * RGB_RANGE

    fwd = jax.jit(lambda inp: tfman_forward(inp, params, depth=DEPTH,
                                            rgb_range=RGB_RANGE))
    out = fwd(x)
    jax.block_until_ready(out)
    assert out.shape == (2, N_COLORS, 16, 16), out.shape
    assert bool(jnp.all(jnp.isfinite(out)))
    print("KERNEL_OK")
</pallas_src>

<mosaic_0001>
module attributes {stable_mosaic.version = 11 : i64} {
  func.func @kern(%arg0: i32, %arg1: memref<1x3x102xbf16, #tpu.memory_space<vmem>>, %arg2: memref<9x8x3xbf16, #tpu.memory_space<vmem>>, %arg3: memref<8x1xf32, #tpu.memory_space<vmem>>, %arg4: memref<1x1xf32, #tpu.memory_space<vmem>>, %arg5: memref<1x8x80xbf16, #tpu.memory_space<vmem>>) attributes {dimension_semantics = [#tpu.dimension_semantics<parallel>], iteration_bounds = array<i64: 2>, scalar_prefetch = 0 : i64, scratch_operands = 0 : i64, tpu.core_type = #tpu.core_type<tc>, window_params = [{transform_indices = @transform_0, window_bounds = array<i64: 1, 3, 102>}, {pipeline_mode = #tpu.pipeline_mode<synchronous>, transform_indices = @transform_1, window_bounds = array<i64: 9, 8, 3>}, {pipeline_mode = #tpu.pipeline_mode<synchronous>, transform_indices = @transform_2, window_bounds = array<i64: 8, 1>}, {pipeline_mode = #tpu.pipeline_mode<synchronous>, transform_indices = @transform_3, window_bounds = array<i64: 1, 1>}, {transform_indices = @transform_4, window_bounds = array<i64: 1, 8, 80>}]} {
    %cst = arith.constant 0.000000e+00 : f32
    %0 = vector.broadcast %cst : f32 to vector<8x80xf32>
    %c0 = arith.constant 0 : index
    %c0_0 = arith.constant 0 : index
    %c0_1 = arith.constant 0 : index
    %1 = vector.load %arg1[%c0, %c0_0, %c0_1] : memref<1x3x102xbf16, #tpu.memory_space<vmem>>, vector<1x3x80xbf16>
    %2 = vector.shape_cast %1 : vector<1x3x80xbf16> to vector<3x80xbf16>
    %c0_2 = arith.constant 0 : index
    %c0_3 = arith.constant 0 : index
    %c0_4 = arith.constant 0 : index
    %3 = vector.load %arg2[%c0_2, %c0_3, %c0_4] : memref<9x8x3xbf16, #tpu.memory_space<vmem>>, vector<1x8x3xbf16>
    %4 = vector.shape_cast %3 : vector<1x8x3xbf16> to vector<8x3xbf16>
    %cst_5 = arith.constant dense<0.000000e+00> : vector<8x80xf32>
    %5 = tpu.matmul %4, %2, %cst_5 {dimension_numbers = #tpu.dot_dimension_numbers<[1], [0], [0], [1], [0, 0, 1, 1], [], []>} : vector<8x3xbf16>, vector<3x80xbf16>, vector<8x80xf32> -> vector<8x80xf32>
    %6 = arith.addf %0, %5 : vector<8x80xf32>
    %c0_6 = arith.constant 0 : index
    %c0_7 = arith.constant 0 : index
    %c1 = arith.constant 1 : index
    %7 = vector.load %arg1[%c0_6, %c0_7, %c1] : memref<1x3x102xbf16, #tpu.memory_space<vmem>>, vector<1x3x80xbf16>
    %8 = vector.shape_cast %7 : vector<1x3x80xbf16> to vector<3x80xbf16>
    %c1_8 = arith.constant 1 : index
    %c0_9 = arith.constant 0 : index
    %c0_10 = arith.constant 0 : index
    %9 = vector.load %arg2[%c1_8, %c0_9, %c0_10] : memref<9x8x3xbf16, #tpu.memory_space<vmem>>, vector<1x8x3xbf16>
    %10 = vector.shape_cast %9 : vector<1x8x3xbf16> to vector<8x3xbf16>
    %cst_11 = arith.constant dense<0.000000e+00> : vector<8x80xf32>
    %11 = tpu.matmul %10, %8, %cst_11 {dimension_numbers = #tpu.dot_dimension_numbers<[1], [0], [0], [1], [0, 0, 1, 1], [], []>} : vector<8x3xbf16>, vector<3x80xbf16>, vector<8x80xf32> -> vector<8x80xf32>
    %12 = arith.addf %6, %11 : vector<8x80xf32>
    %c0_12 = arith.constant 0 : index
    %c0_13 = arith.constant 0 : index
    %c2 = arith.constant 2 : index
    %13 = vector.load %arg1[%c0_12, %c0_13, %c2] : memref<1x3x102xbf16, #tpu.memory_space<vmem>>, vector<1x3x80xbf16>
    %14 = vector.shape_cast %13 : vector<1x3x80xbf16> to vector<3x80xbf16>
    %c2_14 = arith.constant 2 : index
    %c0_15 = arith.constant 0 : index
    %c0_16 = arith.constant 0 : index
    %15 = vector.load %arg2[%c2_14, %c0_15, %c0_16] : memref<9x8x3xbf16, #tpu.memory_space<vmem>>, vector<1x8x3xbf16>
    %16 = vector.shape_cast %15 : vector<1x8x3xbf16> to vector<8x3xbf16>
    %cst_17 = arith.constant dense<0.000000e+00> : vector<8x80xf32>
    %17 = tpu.matmul %16, %14, %cst_17 {dimension_numbers = #tpu.dot_dimension_numbers<[1], [0], [0], [1], [0, 0, 1, 1], [], []>} : vector<8x3xbf16>, vector<3x80xbf16>, vector<8x80xf32> -> vector<8x80xf32>
    %18 = arith.addf %12, %17 : vector<8x80xf32>
    %c0_18 = arith.constant 0 : index
    %c0_19 = arith.constant 0 : index
    %c10 = arith.constant 10 : index
    %19 = vector.load %arg1[%c0_18, %c0_19, %c10] : memref<1x3x102xbf16, #tpu.memory_space<vmem>>, vector<1x3x80xbf16>
    %20 = vector.shape_cast %19 : vector<1x3x80xbf16> to vector<3x80xbf16>
    %c3 = arith.constant 3 : index
    %c0_20 = arith.constant 0 : index
    %c0_21 = arith.constant 0 : index
    %21 = vector.load %arg2[%c3, %c0_20, %c0_21] : memref<9x8x3xbf16, #tpu.memory_space<vmem>>, vector<1x8x3xbf16>
    %22 = vector.shape_cast %21 : vector<1x8x3xbf16> to vector<8x3xbf16>
    %cst_22 = arith.constant dense<0.000000e+00> : vector<8x80xf32>
    %23 = tpu.matmul %22, %20, %cst_22 {dimension_numbers = #tpu.dot_dimension_numbers<[1], [0], [0], [1], [0, 0, 1, 1], [], []>} : vector<8x3xbf16>, vector<3x80xbf16>, vector<8x80xf32> -> vector<8x80xf32>
    %24 = arith.addf %18, %23 : vector<8x80xf32>
    %c0_23 = arith.constant 0 : index
    %c0_24 = arith.constant 0 : index
    %c11 = arith.constant 11 : index
    %25 = vector.load %arg1[%c0_23, %c0_24, %c11] : memref<1x3x102xbf16, #tpu.memory_space<vmem>>, vector<1x3x80xbf16>
    %26 = vector.shape_cast %25 : vector<1x3x80xbf16> to vector<3x80xbf16>
    %c4 = arith.constant 4 : index
    %c0_25 = arith.constant 0 : index
    %c0_26 = arith.constant 0 : index
    %27 = vector.load %arg2[%c4, %c0_25, %c0_26] : memref<9x8x3xbf16, #tpu.memory_space<vmem>>, vector<1x8x3xbf16>
    %28 = vector.shape_cast %27 : vector<1x8x3xbf16> to vector<8x3xbf16>
    %cst_27 = arith.constant dense<0.000000e+00> : vector<8x80xf32>
    %29 = tpu.matmul %28, %26, %cst_27 {dimension_numbers = #tpu.dot_dimension_numbers<[1], [0], [0], [1], [0, 0, 1, 1], [], []>} : vector<8x3xbf16>, vector<3x80xbf16>, vector<8x80xf32> -> vector<8x80xf32>
    %30 = arith.addf %24, %29 : vector<8x80xf32>
    %c0_28 = arith.constant 0 : index
    %c0_29 = arith.constant 0 : index
    %c12 = arith.constant 12 : index
    %31 = vector.load %arg1[%c0_28, %c0_29, %c12] : memref<1x3x102xbf16, #tpu.memory_space<vmem>>, vector<1x3x80xbf16>
    %32 = vector.shape_cast %31 : vector<1x3x80xbf16> to vector<3x80xbf16>
    %c5 = arith.constant 5 : index
    %c0_30 = arith.constant 0 : index
    %c0_31 = arith.constant 0 : index
    %33 = vector.load %arg2[%c5, %c0_30, %c0_31] : memref<9x8x3xbf16, #tpu.memory_space<vmem>>, vector<1x8x3xbf16>
    %34 = vector.shape_cast %33 : vector<1x8x3xbf16> to vector<8x3xbf16>
    %cst_32 = arith.constant dense<0.000000e+00> : vector<8x80xf32>
    %35 = tpu.matmul %34, %32, %cst_32 {dimension_numbers = #tpu.dot_dimension_numbers<[1], [0], [0], [1], [0, 0, 1, 1], [], []>} : vector<8x3xbf16>, vector<3x80xbf16>, vector<8x80xf32> -> vector<8x80xf32>
    %36 = arith.addf %30, %35 : vector<8x80xf32>
    %c0_33 = arith.constant 0 : index
    %c0_34 = arith.constant 0 : index
    %c20 = arith.constant 20 : index
    %37 = vector.load %arg1[%c0_33, %c0_34, %c20] : memref<1x3x102xbf16, #tpu.memory_space<vmem>>, vector<1x3x80xbf16>
    %38 = vector.shape_cast %37 : vector<1x3x80xbf16> to vector<3x80xbf16>
    %c6 = arith.constant 6 : index
    %c0_35 = arith.constant 0 : index
    %c0_36 = arith.constant 0 : index
    %39 = vector.load %arg2[%c6, %c0_35, %c0_36] : memref<9x8x3xbf16, #tpu.memory_space<vmem>>, vector<1x8x3xbf16>
    %40 = vector.shape_cast %39 : vector<1x8x3xbf16> to vector<8x3xbf16>
    %cst_37 = arith.constant dense<0.000000e+00> : vector<8x80xf32>
    %41 = tpu.matmul %40, %38, %cst_37 {dimension_numbers = #tpu.dot_dimension_numbers<[1], [0], [0], [1], [0, 0, 1, 1], [], []>} : vector<8x3xbf16>, vector<3x80xbf16>, vector<8x80xf32> -> vector<8x80xf32>
    %42 = arith.addf %36, %41 : vector<8x80xf32>
    %c0_38 = arith.constant 0 : index
    %c0_39 = arith.constant 0 : index
    %c21 = arith.constant 21 : index
    %43 = vector.load %arg1[%c0_38, %c0_39, %c21] : memref<1x3x102xbf16, #tpu.memory_space<vmem>>, vector<1x3x80xbf16>
    %44 = vector.shape_cast %43 : vector<1x3x80xbf16> to vector<3x80xbf16>
    %c7 = arith.constant 7 : index
    %c0_40 = arith.constant 0 : index
    %c0_41 = arith.constant 0 : index
    %45 = vector.load %arg2[%c7, %c0_40, %c0_41] : memref<9x8x3xbf16, #tpu.memory_space<vmem>>, vector<1x8x3xbf16>
    %46 = vector.shape_cast %45 : vector<1x8x3xbf16> to vector<8x3xbf16>
    %cst_42 = arith.constant dense<0.000000e+00> : vector<8x80xf32>
    %47 = tpu.matmul %46, %44, %cst_42 {dimension_numbers = #tpu.dot_dimension_numbers<[1], [0], [0], [1], [0, 0, 1, 1], [], []>} : vector<8x3xbf16>, vector<3x80xbf16>, vector<8x80xf32> -> vector<8x80xf32>
    %48 = arith.addf %42, %47 : vector<8x80xf32>
    %c0_43 = arith.constant 0 : index
    %c0_44 = arith.constant 0 : index
    %c22 = arith.constant 22 : index
    %49 = vector.load %arg1[%c0_43, %c0_44, %c22] : memref<1x3x102xbf16, #tpu.memory_space<vmem>>, vector<1x3x80xbf16>
    %50 = vector.shape_cast %49 : vector<1x3x80xbf16> to vector<3x80xbf16>
    %c8 = arith.constant 8 : index
    %c0_45 = arith.constant 0 : index
    %c0_46 = arith.constant 0 : index
    %51 = vector.load %arg2[%c8, %c0_45, %c0_46] : memref<9x8x3xbf16, #tpu.memory_space<vmem>>, vector<1x8x3xbf16>
    %52 = vector.shape_cast %51 : vector<1x8x3xbf16> to vector<8x3xbf16>
    %cst_47 = arith.constant dense<0.000000e+00> : vector<8x80xf32>
    %53 = tpu.matmul %52, %50, %cst_47 {dimension_numbers = #tpu.dot_dimension_numbers<[1], [0], [0], [1], [0, 0, 1, 1], [], []>} : vector<8x3xbf16>, vector<3x80xbf16>, vector<8x80xf32> -> vector<8x80xf32>
    %54 = arith.addf %48, %53 : vector<8x80xf32>
    %c0_48 = arith.constant 0 : index
    %c0_49 = arith.constant 0 : index
    %55 = vector.load %arg3[%c0_48, %c0_49] : memref<8x1xf32, #tpu.memory_space<vmem>>, vector<8x1xf32>
    %56 = vector.broadcast %55 : vector<8x1xf32> to vector<8x80xf32>
    %57 = arith.addf %54, %56 : vector<8x80xf32>
    %cst_50 = arith.constant 0.000000e+00 : f32
    %58 = vector.broadcast %cst_50 : f32 to vector<8x80xf32>
    %59 = arith.cmpf oge, %57, %58 : vector<8x80xf32>
    %c0_51 = arith.constant 0 : index
    %c0_52 = arith.constant 0 : index
    %60 = vector.load %arg4[%c0_51, %c0_52] : memref<1x1xf32, #tpu.memory_space<vmem>>, vector<1x1xf32>
    %61 = vector.broadcast %60 : vector<1x1xf32> to vector<8x80xf32>
    %62 = arith.mulf %61, %57 : vector<8x80xf32>
    %63 = arith.select %59, %57, %62 : vector<8x80xi1>, vector<8x80xf32>
    %64 = arith.truncf %63 : vector<8x80xf32> to vector<8x80xbf16>
    %c0_53 = arith.constant 0 : index
    %c0_54 = arith.constant 0 : index
    %c0_55 = arith.constant 0 : index
    %65 = vector.load %arg5[%c0_53, %c0_54, %c0_55] : memref<1x8x80xbf16, #tpu.memory_space<vmem>>, vector<1x8x80xbf16>
    %66 = vector.shape_cast %65 : vector<1x8x80xbf16> to vector<8x80xbf16>
    %67 = vector.shape_cast %64 : vector<8x80xbf16> to vector<1x8x80xbf16>
    tpu.vector_store %arg5[%c0_53, %c0_54, %c0_55], %67 {strides = array<i32>} : memref<1x8x80xbf16, #tpu.memory_space<vmem>>, vector<1x8x80xbf16>,
    return
  }
  func.func @transform_0(%arg0: i32) -> (i32, i32, i32) {
    %c0_i32 = arith.constant 0 : i32
    %c0_i32_0 = arith.constant 0 : i32
    %c0_i32_1 = arith.constant 0 : i32
    return %arg0, %c0_i32, %c0_i32_0 : i32, i32, i32
  }
  func.func @transform_1(%arg0: i32) -> (i32, i32, i32) {
    %c0_i32 = arith.constant 0 : i32
    %c0_i32_0 = arith.constant 0 : i32
    %c0_i32_1 = arith.constant 0 : i32
    %c0_i32_2 = arith.constant 0 : i32
    return %c0_i32, %c0_i32_0, %c0_i32_1 : i32, i32, i32
  }
  func.func @transform_2(%arg0: i32) -> (i32, i32) {
    %c0_i32 = arith.constant 0 : i32
    %c0_i32_0 = arith.constant 0 : i32
    %c0_i32_1 = arith.constant 0 : i32
    return %c0_i32, %c0_i32_0 : i32, i32
  }
  func.func @transform_3(%arg0: i32) -> (i32, i32) {
    %c0_i32 = arith.constant 0 : i32
    %c0_i32_0 = arith.constant 0 : i32
    %c0_i32_1 = arith.constant 0 : i32
    return %c0_i32, %c0_i32_0 : i32, i32
  }
  func.func @transform_4(%arg0: i32) -> (i32, i32, i32) {
    %c0_i32 = arith.constant 0 : i32
    %c0_i32_0 = arith.constant 0 : i32
    %c0_i32_1 = arith.constant 0 : i32
    return %arg0, %c0_i32, %c0_i32_0 : i32, i32, i32
  }
}

module attributes {stable_mosaic.version = 11 : i64} {
  func.func @kern(%arg0: i32, %arg1: memref<1x8x102xbf16, #tpu.memory_space<vmem>>, %arg2: memref<9x8x8xbf16, #tpu.memory_space<vmem>>, %arg3: memref<8x1xf32, #tpu.memory_space<vmem>>, %arg4: memref<1x1xf32, #tpu.memory_space<vmem>>, %arg5: memref<1x8x80xbf16, #tpu.memory_space<vmem>>) attributes {dimension_semantics = [#tpu.dimension_semantics<parallel>], iteration_bounds = array<i64: 2>, scalar_prefetch = 0 : i64, scratch_operands = 0 : i64, tpu.core_type = #tpu.core_type<tc>, window_params = [{transform_indices = @transform_0, window_bounds = array<i64: 1, 8, 102>}, {pipeline_mode = #tpu.pipeline_mode<synchronous>, transform_indices = @transform_1, window_bounds = array<i64: 9, 8, 8>}, {pipeline_mode = #tpu.pipeline_mode<synchronous>, transform_indices = @transform_2, window_bounds = array<i64: 8, 1>}, {pipeline_mode = #tpu.pipeline_mode<synchronous>, transform_indices = @transform_3, window_bounds = array<i64: 1, 1>}, {transform_indices = @transform_4, window_bounds = array<i64: 1, 8, 80>}]} {
    %cst = arith.constant 0.000000e+00 : f32
    %0 = vector.broadcast %cst : f32 to vector<8x80xf32>
    %c0 = arith.constant 0 : index
    %c0_0 = arith.constant 0 : index
    %c0_1 = arith.constant 0 : index
    %1 = vector.load %arg1[%c0, %c0_0, %c0_1] : memref<1x8x102xbf16, #tpu.memory_space<vmem>>, vector<1x8x80xbf16>
    %2 = vector.shape_cast %1 : vector<1x8x80xbf16> to vector<8x80xbf16>
    %c0_2 = arith.constant 0 : index
    %c0_3 = arith.constant 0 : index
    %c0_4 = arith.constant 0 : index
    %3 = vector.load %arg2[%c0_2, %c0_3, %c0_4] : memref<9x8x8xbf16, #tpu.memory_space<vmem>>, vector<1x8x8xbf16>
    %4 = vector.shape_cast %3 : vector<1x8x8xbf16> to vector<8x8xbf16>
    %cst_5 = arith.constant dense<0.000000e+00> : vector<8x80xf32>
    %5 = tpu.matmul %4, %2, %cst_5 {dimension_numbers = #tpu.dot_dimension_numbers<[1], [0], [0], [1], [0, 0, 1, 1], [], []>} : vector<8x8xbf16>, vector<8x80xbf16>, vector<8x80xf32> -> vector<8x80xf32>
    %6 = arith.addf %0, %5 : vector<8x80xf32>
    %c0_6 = arith.constant 0 : index
    %c0_7 = arith.constant 0 : index
    %c1 = arith.constant 1 : index
    %7 = vector.load %arg1[%c0_6, %c0_7, %c1] : memref<1x8x102xbf16, #tpu.memory_space<vmem>>, vector<1x8x80xbf16>
    %8 = vector.shape_cast %7 : vector<1x8x80xbf16> to vector<8x80xbf16>
    %c1_8 = arith.constant 1 : index
    %c0_9 = arith.constant 0 : index
    %c0_10 = arith.constant 0 : index
    %9 = vector.load %arg2[%c1_8, %c0_9, %c0_10] : memref<9x8x8xbf16, #tpu.memory_space<vmem>>, vector<1x8x8xbf16>
    %10 = vector.shape_cast %9 : vector<1x8x8xbf16> to vector<8x8xbf16>
    %cst_11 = arith.constant dense<0.000000e+00> : vector<8x80xf32>
    %11 = tpu.matmul %10, %8, %cst_11 {dimension_numbers = #tpu.dot_dimension_numbers<[1], [0], [0], [1], [0, 0, 1, 1], [], []>} : vector<8x8xbf16>, vector<8x80xbf16>, vector<8x80xf32> -> vector<8x80xf32>
    %12 = arith.addf %6, %11 : vector<8x80xf32>
    %c0_12 = arith.constant 0 : index
    %c0_13 = arith.constant 0 : index
    %c2 = arith.constant 2 : index
    %13 = vector.load %arg1[%c0_12, %c0_13, %c2] : memref<1x8x102xbf16, #tpu.memory_space<vmem>>, vector<1x8x80xbf16>
    %14 = vector.shape_cast %13 : vector<1x8x80xbf16> to vector<8x80xbf16>
    %c2_14 = arith.constant 2 : index
    %c0_15 = arith.constant 0 : index
    %c0_16 = arith.constant 0 : index
    %15 = vector.load %arg2[%c2_14, %c0_15, %c0_16] : memref<9x8x8xbf16, #tpu.memory_space<vmem>>, vector<1x8x8xbf16>
    %16 = vector.shape_cast %15 : vector<1x8x8xbf16> to vector<8x8xbf16>
    %cst_17 = arith.constant dense<0.000000e+00> : vector<8x80xf32>
    %17 = tpu.matmul %16, %14, %cst_17 {dimension_numbers = #tpu.dot_dimension_numbers<[1], [0], [0], [1], [0, 0, 1, 1], [], []>} : vector<8x8xbf16>, vector<8x80xbf16>, vector<8x80xf32> -> vector<8x80xf32>
    %18 = arith.addf %12, %17 : vector<8x80xf32>
    %c0_18 = arith.constant 0 : index
    %c0_19 = arith.constant 0 : index
    %c10 = arith.constant 10 : index
    %19 = vector.load %arg1[%c0_18, %c0_19, %c10] : memref<1x8x102xbf16, #tpu.memory_space<vmem>>, vector<1x8x80xbf16>
    %20 = vector.shape_cast %19 : vector<1x8x80xbf16> to vector<8x80xbf16>
    %c3 = arith.constant 3 : index
    %c0_20 = arith.constant 0 : index
    %c0_21 = arith.constant 0 : index
    %21 = vector.load %arg2[%c3, %c0_20, %c0_21] : memref<9x8x8xbf16, #tpu.memory_space<vmem>>, vector<1x8x8xbf16>
    %22 = vector.shape_cast %21 : vector<1x8x8xbf16> to vector<8x8xbf16>
    %cst_22 = arith.constant dense<0.000000e+00> : vector<8x80xf32>
    %23 = tpu.matmul %22, %20, %cst_22 {dimension_numbers = #tpu.dot_dimension_numbers<[1], [0], [0], [1], [0, 0, 1, 1], [], []>} : vector<8x8xbf16>, vector<8x80xbf16>, vector<8x80xf32> -> vector<8x80xf32>
    %24 = arith.addf %18, %23 : vector<8x80xf32>
    %c0_23 = arith.constant 0 : index
    %c0_24 = arith.constant 0 : index
    %c11 = arith.constant 11 : index
    %25 = vector.load %arg1[%c0_23, %c0_24, %c11] : memref<1x8x102xbf16, #tpu.memory_space<vmem>>, vector<1x8x80xbf16>
    %26 = vector.shape_cast %25 : vector<1x8x80xbf16> to vector<8x80xbf16>
    %c4 = arith.constant 4 : index
    %c0_25 = arith.constant 0 : index
    %c0_26 = arith.constant 0 : index
    %27 = vector.load %arg2[%c4, %c0_25, %c0_26] : memref<9x8x8xbf16, #tpu.memory_space<vmem>>, vector<1x8x8xbf16>
    %28 = vector.shape_cast %27 : vector<1x8x8xbf16> to vector<8x8xbf16>
    %cst_27 = arith.constant dense<0.000000e+00> : vector<8x80xf32>
    %29 = tpu.matmul %28, %26, %cst_27 {dimension_numbers = #tpu.dot_dimension_numbers<[1], [0], [0], [1], [0, 0, 1, 1], [], []>} : vector<8x8xbf16>, vector<8x80xbf16>, vector<8x80xf32> -> vector<8x80xf32>
    %30 = arith.addf %24, %29 : vector<8x80xf32>
    %c0_28 = arith.constant 0 : index
    %c0_29 = arith.constant 0 : index
    %c12 = arith.constant 12 : index
    %31 = vector.load %arg1[%c0_28, %c0_29, %c12] : memref<1x8x102xbf16, #tpu.memory_space<vmem>>, vector<1x8x80xbf16>
    %32 = vector.shape_cast %31 : vector<1x8x80xbf16> to vector<8x80xbf16>
    %c5 = arith.constant 5 : index
    %c0_30 = arith.constant 0 : index
    %c0_31 = arith.constant 0 : index
    %33 = vector.load %arg2[%c5, %c0_30, %c0_31] : memref<9x8x8xbf16, #tpu.memory_space<vmem>>, vector<1x8x8xbf16>
    %34 = vector.shape_cast %33 : vector<1x8x8xbf16> to vector<8x8xbf16>
    %cst_32 = arith.constant dense<0.000000e+00> : vector<8x80xf32>
    %35 = tpu.matmul %34, %32, %cst_32 {dimension_numbers = #tpu.dot_dimension_numbers<[1], [0], [0], [1], [0, 0, 1, 1], [], []>} : vector<8x8xbf16>, vector<8x80xbf16>, vector<8x80xf32> -> vector<8x80xf32>
    %36 = arith.addf %30, %35 : vector<8x80xf32>
    %c0_33 = arith.constant 0 : index
    %c0_34 = arith.constant 0 : index
    %c20 = arith.constant 20 : index
    %37 = vector.load %arg1[%c0_33, %c0_34, %c20] : memref<1x8x102xbf16, #tpu.memory_space<vmem>>, vector<1x8x80xbf16>
    %38 = vector.shape_cast %37 : vector<1x8x80xbf16> to vector<8x80xbf16>
    %c6 = arith.constant 6 : index
    %c0_35 = arith.constant 0 : index
    %c0_36 = arith.constant 0 : index
    %39 = vector.load %arg2[%c6, %c0_35, %c0_36] : memref<9x8x8xbf16, #tpu.memory_space<vmem>>, vector<1x8x8xbf16>
    %40 = vector.shape_cast %39 : vector<1x8x8xbf16> to vector<8x8xbf16>
    %cst_37 = arith.constant dense<0.000000e+00> : vector<8x80xf32>
    %41 = tpu.matmul %40, %38, %cst_37 {dimension_numbers = #tpu.dot_dimension_numbers<[1], [0], [0], [1], [0, 0, 1, 1], [], []>} : vector<8x8xbf16>, vector<8x80xbf16>, vector<8x80xf32> -> vector<8x80xf32>
    %42 = arith.addf %36, %41 : vector<8x80xf32>
    %c0_38 = arith.constant 0 : index
    %c0_39 = arith.constant 0 : index
    %c21 = arith.constant 21 : index
    %43 = vector.load %arg1[%c0_38, %c0_39, %c21] : memref<1x8x102xbf16, #tpu.memory_space<vmem>>, vector<1x8x80xbf16>
    %44 = vector.shape_cast %43 : vector<1x8x80xbf16> to vector<8x80xbf16>
    %c7 = arith.constant 7 : index
    %c0_40 = arith.constant 0 : index
    %c0_41 = arith.constant 0 : index
    %45 = vector.load %arg2[%c7, %c0_40, %c0_41] : memref<9x8x8xbf16, #tpu.memory_space<vmem>>, vector<1x8x8xbf16>
    %46 = vector.shape_cast %45 : vector<1x8x8xbf16> to vector<8x8xbf16>
    %cst_42 = arith.constant dense<0.000000e+00> : vector<8x80xf32>
    %47 = tpu.matmul %46, %44, %cst_42 {dimension_numbers = #tpu.dot_dimension_numbers<[1], [0], [0], [1], [0, 0, 1, 1], [], []>} : vector<8x8xbf16>, vector<8x80xbf16>, vector<8x80xf32> -> vector<8x80xf32>
    %48 = arith.addf %42, %47 : vector<8x80xf32>
    %c0_43 = arith.constant 0 : index
    %c0_44 = arith.constant 0 : index
    %c22 = arith.constant 22 : index
    %49 = vector.load %arg1[%c0_43, %c0_44, %c22] : memref<1x8x102xbf16, #tpu.memory_space<vmem>>, vector<1x8x80xbf16>
    %50 = vector.shape_cast %49 : vector<1x8x80xbf16> to vector<8x80xbf16>
    %c8 = arith.constant 8 : index
    %c0_45 = arith.constant 0 : index
    %c0_46 = arith.constant 0 : index
    %51 = vector.load %arg2[%c8, %c0_45, %c0_46] : memref<9x8x8xbf16, #tpu.memory_space<vmem>>, vector<1x8x8xbf16>
    %52 = vector.shape_cast %51 : vector<1x8x8xbf16> to vector<8x8xbf16>
    %cst_47 = arith.constant dense<0.000000e+00> : vector<8x80xf32>
    %53 = tpu.matmul %52, %50, %cst_47 {dimension_numbers = #tpu.dot_dimension_numbers<[1], [0], [0], [1], [0, 0, 1, 1], [], []>} : vector<8x8xbf16>, vector<8x80xbf16>, vector<8x80xf32> -> vector<8x80xf32>
    %54 = arith.addf %48, %53 : vector<8x80xf32>
    %c0_48 = arith.constant 0 : index
    %c0_49 = arith.constant 0 : index
    %55 = vector.load %arg3[%c0_48, %c0_49] : memref<8x1xf32, #tpu.memory_space<vmem>>, vector<8x1xf32>
    %56 = vector.broadcast %55 : vector<8x1xf32> to vector<8x80xf32>
    %57 = arith.addf %54, %56 : vector<8x80xf32>
    %cst_50 = arith.constant 0.000000e+00 : f32
    %58 = vector.broadcast %cst_50 : f32 to vector<8x80xf32>
    %59 = arith.cmpf oge, %57, %58 : vector<8x80xf32>
    %c0_51 = arith.constant 0 : index
    %c0_52 = arith.constant 0 : index
    %60 = vector.load %arg4[%c0_51, %c0_52] : memref<1x1xf32, #tpu.memory_space<vmem>>, vector<1x1xf32>
    %61 = vector.broadcast %60 : vector<1x1xf32> to vector<8x80xf32>
    %62 = arith.mulf %61, %57 : vector<8x80xf32>
    %63 = arith.select %59, %57, %62 : vector<8x80xi1>, vector<8x80xf32>
    %64 = arith.truncf %63 : vector<8x80xf32> to vector<8x80xbf16>
    %c0_53 = arith.constant 0 : index
    %c0_54 = arith.constant 0 : index
    %c0_55 = arith.constant 0 : index
    %65 = vector.load %arg5[%c0_53, %c0_54, %c0_55] : memref<1x8x80xbf16, #tpu.memory_space<vmem>>, vector<1x8x80xbf16>
    %66 = vector.shape_cast %65 : vector<1x8x80xbf16> to vector<8x80xbf16>
    %67 = vector.shape_cast %64 : vector<8x80xbf16> to vector<1x8x80xbf16>
    tpu.vector_store %arg5[%c0_53, %c0_54, %c0_55], %67 {strides = array<i32>} : memref<1x8x80xbf16, #tpu.memory_space<vmem>>, vector<1x8x80xbf16>,
    return
  }
  func.func @transform_0(%arg0: i32) -> (i32, i32, i32) {
    %c0_i32 = arith.constant 0 : i32
    %c0_i32_0 = arith.constant 0 : i32
    %c0_i32_1 = arith.constant 0 : i32
    return %arg0, %c0_i32, %c0_i32_0 : i32, i32, i32
  }
  func.func @transform_1(%arg0: i32) -> (i32, i32, i32) {
    %c0_i32 = arith.constant 0 : i32
    %c0_i32_0 = arith.constant 0 : i32
    %c0_i32_1 = arith.constant 0 : i32
    %c0_i32_2 = arith.constant 0 : i32
    return %c0_i32, %c0_i32_0, %c0_i32_1 : i32, i32, i32
  }
  func.func @transform_2(%arg0: i32) -> (i32, i32) {
    %c0_i32 = arith.constant 0 : i32
    %c0_i32_0 = arith.constant 0 : i32
    %c0_i32_1 = arith.constant 0 : i32
    return %c0_i32, %c0_i32_0 : i32, i32
  }
  func.func @transform_3(%arg0: i32) -> (i32, i32) {
    %c0_i32 = arith.constant 0 : i32
    %c0_i32_0 = arith.constant 0 : i32
    %c0_i32_1 = arith.constant 0 : i32
    return %c0_i32, %c0_i32_0 : i32, i32
  }
  func.func @transform_4(%arg0: i32) -> (i32, i32, i32) {
    %c0_i32 = arith.constant 0 : i32
    %c0_i32_0 = arith.constant 0 : i32
    %c0_i32_1 = arith.constant 0 : i32
    return %arg0, %c0_i32, %c0_i32_0 : i32, i32, i32
  }
}

module attributes {stable_mosaic.version = 11 : i64} {
  func.func @kern(%arg0: i32, %arg1: memref<1x8x64xbf16, #tpu.memory_space<vmem>>, %arg2: memref<1x12x8xbf16, #tpu.memory_space<vmem>>, %arg3: memref<12x1xf32, #tpu.memory_space<vmem>>, %arg4: memref<1x12x64xbf16, #tpu.memory_space<vmem>>) attributes {dimension_semantics = [#tpu.dimension_semantics<parallel>], iteration_bounds = array<i64: 2>, scalar_prefetch = 0 : i64, scratch_operands = 0 : i64, tpu.core_type = #tpu.core_type<tc>, window_params = [{transform_indices = @transform_0, window_bounds = array<i64: 1, 8, 64>}, {pipeline_mode = #tpu.pipeline_mode<synchronous>, transform_indices = @transform_1, window_bounds = array<i64: 1, 12, 8>}, {pipeline_mode = #tpu.pipeline_mode<synchronous>, transform_indices = @transform_2, window_bounds = array<i64: 12, 1>}, {transform_indices = @transform_3, window_bounds = array<i64: 1, 12, 64>}]} {
    %cst = arith.constant 0.000000e+00 : f32
    %0 = vector.broadcast %cst : f32 to vector<12x64xf32>
    %c0 = arith.constant 0 : index
    %c0_0 = arith.constant 0 : index
    %c0_1 = arith.constant 0 : index
    %1 = vector.load %arg1[%c0, %c0_0, %c0_1] : memref<1x8x64xbf16, #tpu.memory_space<vmem>>, vector<1x8x64xbf16>
    %2 = vector.shape_cast %1 : vector<1x8x64xbf16> to vector<8x64xbf16>
    %c0_2 = arith.constant 0 : index
    %c0_3 = arith.constant 0 : index
    %c0_4 = arith.constant 0 : index
    %3 = vector.load %arg2[%c0_2, %c0_3, %c0_4] : memref<1x12x8xbf16, #tpu.memory_space<vmem>>, vector<1x12x8xbf16>
    %4 = vector.shape_cast %3 : vector<1x12x8xbf16> to vector<12x8xbf16>
    %cst_5 = arith.constant dense<0.000000e+00> : vector<12x64xf32>
    %5 = tpu.matmul %4, %2, %cst_5 {dimension_numbers = #tpu.dot_dimension_numbers<[1], [0], [0], [1], [0, 0, 1, 1], [], []>} : vector<12x8xbf16>, vector<8x64xbf16>, vector<12x64xf32> -> vector<12x64xf32>
    %6 = arith.addf %0, %5 : vector<12x64xf32>
    %c0_6 = arith.constant 0 : index
    %c0_7 = arith.constant 0 : index
    %7 = vector.load %arg3[%c0_6, %c0_7] : memref<12x1xf32, #tpu.memory_space<vmem>>, vector<12x1xf32>
    %8 = vector.broadcast %7 : vector<12x1xf32> to vector<12x64xf32>
    %9 = arith.addf %6, %8 : vector<12x64xf32>
    %10 = arith.truncf %9 : vector<12x64xf32> to vector<12x64xbf16>
    %c0_8 = arith.constant 0 : index
    %c0_9 = arith.constant 0 : index
    %c0_10 = arith.constant 0 : index
    %11 = vector.load %arg4[%c0_8, %c0_9, %c0_10] : memref<1x12x64xbf16, #tpu.memory_space<vmem>>, vector<1x12x64xbf16>
    %12 = vector.shape_cast %11 : vector<1x12x64xbf16> to vector<12x64xbf16>
    %13 = vector.shape_cast %10 : vector<12x64xbf16> to vector<1x12x64xbf16>
    tpu.vector_store %arg4[%c0_8, %c0_9, %c0_10], %13 {strides = array<i32>} : memref<1x12x64xbf16, #tpu.memory_space<vmem>>, vector<1x12x64xbf16>,
    return
  }
  func.func @transform_0(%arg0: i32) -> (i32, i32, i32) {
    %c0_i32 = arith.constant 0 : i32
    %c0_i32_0 = arith.constant 0 : i32
    %c0_i32_1 = arith.constant 0 : i32
    return %arg0, %c0_i32, %c0_i32_0 : i32, i32, i32
  }
  func.func @transform_1(%arg0: i32) -> (i32, i32, i32) {
    %c0_i32 = arith.constant 0 : i32
    %c0_i32_0 = arith.constant 0 : i32
    %c0_i32_1 = arith.constant 0 : i32
    %c0_i32_2 = arith.constant 0 : i32
    return %c0_i32, %c0_i32_0, %c0_i32_1 : i32, i32, i32
  }
  func.func @transform_2(%arg0: i32) -> (i32, i32) {
    %c0_i32 = arith.constant 0 : i32
    %c0_i32_0 = arith.constant 0 : i32
    %c0_i32_1 = arith.constant 0 : i32
    return %c0_i32, %c0_i32_0 : i32, i32
  }
  func.func @transform_3(%arg0: i32) -> (i32, i32, i32) {
    %c0_i32 = arith.constant 0 : i32
    %c0_i32_0 = arith.constant 0 : i32
    %c0_i32_1 = arith.constant 0 : i32
    return %arg0, %c0_i32, %c0_i32_0 : i32, i32, i32
  }
}

module attributes {stable_mosaic.version = 11 : i64} {
  func.func @_attn_kernel(%arg0: i32, %arg1: i32, %arg2: memref<1x64x4xbf16, #tpu.memory_space<vmem>>, %arg3: memref<1x64x4xbf16, #tpu.memory_space<vmem>>, %arg4: memref<1x64x4xbf16, #tpu.memory_space<vmem>>, %arg5: memref<1x64x4xbf16, #tpu.memory_space<vmem>>, %arg6: memref<64x1xf32, #tpu.memory_space<vmem>>, %arg7: memref<64x1xf32, #tpu.memory_space<vmem>>, %arg8: memref<64x4xf32, #tpu.memory_space<vmem>>) attributes {dimension_semantics = [#tpu.dimension_semantics<parallel>, #tpu.dimension_semantics<arbitrary>], iteration_bounds = array<i64: 2, 1>, scalar_prefetch = 0 : i64, scratch_operands = 3 : i64, tpu.core_type = #tpu.core_type<tc>, window_params = [{transform_indices = @transform_0, window_bounds = array<i64: 1, 64, 4>}, {transform_indices = @transform_1, window_bounds = array<i64: 1, 64, 4>}, {transform_indices = @transform_2, window_bounds = array<i64: 1, 64, 4>}, {transform_indices = @transform_3, window_bounds = array<i64: 1, 64, 4>}]} {
    %c0_i32 = arith.constant 0 : i32
    %0 = arith.cmpi eq, %arg1, %c0_i32 : i32
    %1 = arith.extui %0 : i1 to i32
    %c0_i32_0 = arith.constant 0 : i32
    %2 = arith.cmpi ne, %1, %c0_i32_0 : i32
    scf.if %2 {
      %cst_30 = arith.constant -1.000000e+30 : f32
      %45 = vector.broadcast %cst_30 : f32 to vector<64x1xf32>
      %c0_31 = arith.constant 0 : index
      %c0_32 = arith.constant 0 : index
      %46 = vector.load %arg6[%c0_31, %c0_32] : memref<64x1xf32, #tpu.memory_space<vmem>>, vector<64x1xf32>
      tpu.vector_store %arg6[%c0_31, %c0_32], %45 {strides = array<i32>} : memref<64x1xf32, #tpu.memory_space<vmem>>, vector<64x1xf32>,
      %cst_33 = arith.constant 0.000000e+00 : f32
      %47 = vector.broadcast %cst_33 : f32 to vector<64x1xf32>
      %c0_34 = arith.constant 0 : index
      %c0_35 = arith.constant 0 : index
      %48 = vector.load %arg7[%c0_34, %c0_35] : memref<64x1xf32, #tpu.memory_space<vmem>>, vector<64x1xf32>
      tpu.vector_store %arg7[%c0_34, %c0_35], %47 {strides = array<i32>} : memref<64x1xf32, #tpu.memory_space<vmem>>, vector<64x1xf32>,
      %cst_36 = arith.constant 0.000000e+00 : f32
      %49 = vector.broadcast %cst_36 : f32 to vector<64x4xf32>
      %c0_37 = arith.constant 0 : index
      %c0_38 = arith.constant 0 : index
      %50 = vector.load %arg8[%c0_37, %c0_38] : memref<64x4xf32, #tpu.memory_space<vmem>>, vector<64x4xf32>
      tpu.vector_store %arg8[%c0_37, %c0_38], %49 {strides = array<i32>} : memref<64x4xf32, #tpu.memory_space<vmem>>, vector<64x4xf32>,
    } else {
    }
    %c0 = arith.constant 0 : index
    %c0_1 = arith.constant 0 : index
    %c0_2 = arith.constant 0 : index
    %3 = vector.load %arg2[%c0, %c0_1, %c0_2] : memref<1x64x4xbf16, #tpu.memory_space<vmem>>, vector<1x64x4xbf16>
    %4 = vector.shape_cast %3 : vector<1x64x4xbf16> to vector<64x4xbf16>
    %c0_3 = arith.constant 0 : index
    %c0_4 = arith.constant 0 : index
    %c0_5 = arith.constant 0 : index
    %5 = vector.load %arg3[%c0_3, %c0_4, %c0_5] : memref<1x64x4xbf16, #tpu.memory_space<vmem>>, vector<1x64x4xbf16>
    %6 = vector.shape_cast %5 : vector<1x64x4xbf16> to vector<64x4xbf16>
    %c0_6 = arith.constant 0 : index
    %c0_7 = arith.constant 0 : index
    %c0_8 = arith.constant 0 : index
    %7 = vector.load %arg4[%c0_6, %c0_7, %c0_8] : memref<1x64x4xbf16, #tpu.memory_space<vmem>>, vector<1x64x4xbf16>
    %8 = vector.shape_cast %7 : vector<1x64x4xbf16> to vector<64x4xbf16>
    %cst = arith.constant dense<0.000000e+00> : vector<64x64xf32>
    %9 = tpu.matmul %4, %6, %cst {dimension_numbers = #tpu.dot_dimension_numbers<[1], [1], [0], [0], [0, 0, 1, 0], [], []>} : vector<64x4xbf16>, vector<64x4xbf16>, vector<64x64xf32> -> vector<64x64xf32>
    %10 = tpu.iota {dimensions = array<i32: 1>} : vector<64x64xi32>
    %c64_i32 = arith.constant 64 : i32
    %11 = arith.muli %arg1, %c64_i32 : i32
    %12 = vector.broadcast %11 : i32 to vector<64x64xi32>
    %13 = arith.addi %10, %12 : vector<64x64xi32>
    %c64_i32_9 = arith.constant 64 : i32
    %14 = vector.broadcast %c64_i32_9 : i32 to vector<64x64xi32>
    %15 = arith.cmpi slt, %13, %14 : vector<64x64xi32>
    %cst_10 = arith.constant -1.000000e+30 : f32
    %16 = vector.broadcast %cst_10 : f32 to vector<64x64xf32>
    %17 = arith.select %15, %9, %16 : vector<64x64xi1>, vector<64x64xf32>
    %c0_11 = arith.constant 0 : index
    %c0_12 = arith.constant 0 : index
    %18 = vector.load %arg6[%c0_11, %c0_12] : memref<64x1xf32, #tpu.memory_space<vmem>>, vector<64x1xf32>
    %cst_13 = arith.constant dense<0xFF800000> : vector<64xf32>
    %19 = vector.multi_reduction <maximumf>, %17, %cst_13 [1] : vector<64x64xf32> to vector<64xf32>
    %20 = vector.shape_cast %19 : vector<64xf32> to vector<64x1xf32>
    %21 = arith.maximumf %18, %20 : vector<64x1xf32>
    %c0_14 = arith.constant 0 : index
    %c0_15 = arith.constant 0 : index
    %22 = vector.load %arg6[%c0_14, %c0_15] : memref<64x1xf32, #tpu.memory_space<vmem>>, vector<64x1xf32>
    %23 = arith.subf %22, %21 : vector<64x1xf32>
    %24 = math.exp %23 : vector<64x1xf32>
    %25 = vector.broadcast %21 : vector<64x1xf32> to vector<64x64xf32>
    %26 = arith.subf %17, %25 : vector<64x64xf32>
    %27 = math.exp %26 : vector<64x64xf32>
    %c0_16 = arith.constant 0 : index
    %c0_17 = arith.constant 0 : index
    %28 = vector.load %arg7[%c0_16, %c0_17] : memref<64x1xf32, #tpu.memory_space<vmem>>, vector<64x1xf32>
    %29 = arith.mulf %24, %28 : vector<64x1xf32>
    %cst_18 = arith.constant dense<0.000000e+00> : vector<64xf32>
    %30 = vector.multi_reduction <add>, %27, %cst_18 [1] : vector<64x64xf32> to vector<64xf32>
    %31 = vector.shape_cast %30 : vector<64xf32> to vector<64x1xf32>
    %32 = arith.addf %29, %31 : vector<64x1xf32>
    %c0_19 = arith.constant 0 : index
    %c0_20 = arith.constant 0 : index
    %33 = vector.load %arg7[%c0_19, %c0_20] : memref<64x1xf32, #tpu.memory_space<vmem>>, vector<64x1xf32>
    tpu.vector_store %arg7[%c0_19, %c0_20], %32 {strides = array<i32>} : memref<64x1xf32, #tpu.memory_space<vmem>>, vector<64x1xf32>,
    %c0_21 = arith.constant 0 : index
    %c0_22 = arith.constant 0 : index
    %34 = vector.load %arg8[%c0_21, %c0_22] : memref<64x4xf32, #tpu.memory_space<vmem>>, vector<64x4xf32>
    %35 = vector.broadcast %24 : vector<64x1xf32> to vector<64x4xf32>
    %36 = arith.mulf %35, %34 : vector<64x4xf32>
    %37 = arith.truncf %27 : vector<64x64xf32> to vector<64x64xbf16>
    %cst_23 = arith.constant dense<0.000000e+00> : vector<64x4xf32>
    %38 = tpu.matmul %37, %8, %cst_23 {dimension_numbers = #tpu.dot_dimension_numbers<[1], [0], [0], [1], [0, 0, 1, 1], [], []>} : vector<64x64xbf16>, vector<64x4xbf16>, vector<64x4xf32> -> vector<64x4xf32>
    %39 = arith.addf %36, %38 : vector<64x4xf32>
    %c0_24 = arith.constant 0 : index
    %c0_25 = arith.constant 0 : index
    %40 = vector.load %arg8[%c0_24, %c0_25] : memref<64x4xf32, #tpu.memory_space<vmem>>, vector<64x4xf32>
    tpu.vector_store %arg8[%c0_24, %c0_25], %39 {strides = array<i32>} : memref<64x4xf32, #tpu.memory_space<vmem>>, vector<64x4xf32>,
    %c0_26 = arith.constant 0 : index
    %c0_27 = arith.constant 0 : index
    %41 = vector.load %arg6[%c0_26, %c0_27] : memref<64x1xf32, #tpu.memory_space<vmem>>, vector<64x1xf32>
    tpu.vector_store %arg6[%c0_26, %c0_27], %21 {strides = array<i32>} : memref<64x1xf32, #tpu.memory_space<vmem>>, vector<64x1xf32>,
    %c0_i32_28 = arith.constant 0 : i32
    %42 = arith.cmpi eq, %arg1, %c0_i32_28 : i32
    %43 = arith.extui %42 : i1 to i32
    %c0_i32_29 = arith.constant 0 : i32
    %44 = arith.cmpi ne, %43, %c0_i32_29 : i32
    scf.if %44 {
      %c0_30 = arith.constant 0 : index
      %c0_31 = arith.constant 0 : index
      %45 = vector.load %arg7[%c0_30, %c0_31] : memref<64x1xf32, #tpu.memory_space<vmem>>, vector<64x1xf32>
      %46 = tpu.reciprocal %45 {approx = true} : vector<64x1xf32> -> vector<64x1xf32>
      %c0_32 = arith.constant 0 : index
      %c0_33 = arith.constant 0 : index
      %47 = vector.load %arg8[%c0_32, %c0_33] : memref<64x4xf32, #tpu.memory_space<vmem>>, vector<64x4xf32>
      %48 = vector.broadcast %46 : vector<64x1xf32> to vector<64x4xf32>
      %49 = arith.mulf %47, %48 : vector<64x4xf32>
      %50 = arith.truncf %49 : vector<64x4xf32> to vector<64x4xbf16>
      %c0_34 = arith.constant 0 : index
      %c0_35 = arith.constant 0 : index
      %c0_36 = arith.constant 0 : index
      %51 = vector.load %arg5[%c0_34, %c0_35, %c0_36] : memref<1x64x4xbf16, #tpu.memory_space<vmem>>, vector<1x64x4xbf16>
      %52 = vector.shape_cast %51 : vector<1x64x4xbf16> to vector<64x4xbf16>
      %53 = vector.shape_cast %50 : vector<64x4xbf16> to vector<1x64x4xbf16>
      tpu.vector_store %arg5[%c0_34, %c0_35, %c0_36], %53 {strides = array<i32>} : memref<1x64x4xbf16, #tpu.memory_space<vmem>>, vector<1x64x4xbf16>,
    } else {
    }
    return
  }
  func.func @transform_0(%arg0: i32, %arg1: i32) -> (i32, i32, i32) {
    %c0_i32 = arith.constant 0 : i32
    %c0_i32_0 = arith.constant 0 : i32
    %c0_i32_1 = arith.constant 0 : i32
    return %arg0, %c0_i32, %c0_i32_0 : i32, i32, i32
  }
  func.func @transform_1(%arg0: i32, %arg1: i32) -> (i32, i32, i32) {
    %c0_i32 = arith.constant 0 : i32
    %c0_i32_0 = arith.constant 0 : i32
    return %arg0, %arg1, %c0_i32 : i32, i32, i32
  }
  func.func @transform_2(%arg0: i32, %arg1: i32) -> (i32, i32, i32) {
    %c0_i32 = arith.constant 0 : i32
    %c0_i32_0 = arith.constant 0 : i32
    return %arg0, %arg1, %c0_i32 : i32, i32, i32
  }
  func.func @transform_3(%arg0: i32, %arg1: i32) -> (i32, i32, i32) {
    %c0_i32 = arith.constant 0 : i32
    %c0_i32_0 = arith.constant 0 : i32
    %c0_i32_1 = arith.constant 0 : i32
    return %arg0, %c0_i32, %c0_i32_0 : i32, i32, i32
  }
}

module attributes {stable_mosaic.version = 11 : i64} {
  func.func @kern(%arg0: i32, %arg1: memref<1x8x102xbf16, #tpu.memory_space<vmem>>, %arg2: memref<9x32x8xbf16, #tpu.memory_space<vmem>>, %arg3: memref<32x1xf32, #tpu.memory_space<vmem>>, %arg4: memref<1x1xf32, #tpu.memory_space<vmem>>, %arg5: memref<1x32x80xbf16, #tpu.memory_space<vmem>>) attributes {dimension_semantics = [#tpu.dimension_semantics<parallel>], iteration_bounds = array<i64: 2>, scalar_prefetch = 0 : i64, scratch_operands = 0 : i64, tpu.core_type = #tpu.core_type<tc>, window_params = [{transform_indices = @transform_0, window_bounds = array<i64: 1, 8, 102>}, {pipeline_mode = #tpu.pipeline_mode<synchronous>, transform_indices = @transform_1, window_bounds = array<i64: 9, 32, 8>}, {pipeline_mode = #tpu.pipeline_mode<synchronous>, transform_indices = @transform_2, window_bounds = array<i64: 32, 1>}, {pipeline_mode = #tpu.pipeline_mode<synchronous>, transform_indices = @transform_3, window_bounds = array<i64: 1, 1>}, {transform_indices = @transform_4, window_bounds = array<i64: 1, 32, 80>}]} {
    %cst = arith.constant 0.000000e+00 : f32
    %0 = vector.broadcast %cst : f32 to vector<32x80xf32>
    %c0 = arith.constant 0 : index
    %c0_0 = arith.constant 0 : index
    %c0_1 = arith.constant 0 : index
    %1 = vector.load %arg1[%c0, %c0_0, %c0_1] : memref<1x8x102xbf16, #tpu.memory_space<vmem>>, vector<1x8x80xbf16>
    %2 = vector.shape_cast %1 : vector<1x8x80xbf16> to vector<8x80xbf16>
    %c0_2 = arith.constant 0 : index
    %c0_3 = arith.constant 0 : index
    %c0_4 = arith.constant 0 : index
    %3 = vector.load %arg2[%c0_2, %c0_3, %c0_4] : memref<9x32x8xbf16, #tpu.memory_space<vmem>>, vector<1x32x8xbf16>
    %4 = vector.shape_cast %3 : vector<1x32x8xbf16> to vector<32x8xbf16>
    %cst_5 = arith.constant dense<0.000000e+00> : vector<32x80xf32>
    %5 = tpu.matmul %4, %2, %cst_5 {dimension_numbers = #tpu.dot_dimension_numbers<[1], [0], [0], [1], [0, 0, 1, 1], [], []>} : vector<32x8xbf16>, vector<8x80xbf16>, vector<32x80xf32> -> vector<32x80xf32>
    %6 = arith.addf %0, %5 : vector<32x80xf32>
    %c0_6 = arith.constant 0 : index
    %c0_7 = arith.constant 0 : index
    %c1 = arith.constant 1 : index
    %7 = vector.load %arg1[%c0_6, %c0_7, %c1] : memref<1x8x102xbf16, #tpu.memory_space<vmem>>, vector<1x8x80xbf16>
    %8 = vector.shape_cast %7 : vector<1x8x80xbf16> to vector<8x80xbf16>
    %c1_8 = arith.constant 1 : index
    %c0_9 = arith.constant 0 : index
    %c0_10 = arith.constant 0 : index
    %9 = vector.load %arg2[%c1_8, %c0_9, %c0_10] : memref<9x32x8xbf16, #tpu.memory_space<vmem>>, vector<1x32x8xbf16>
    %10 = vector.shape_cast %9 : vector<1x32x8xbf16> to vector<32x8xbf16>
    %cst_11 = arith.constant dense<0.000000e+00> : vector<32x80xf32>
    %11 = tpu.matmul %10, %8, %cst_11 {dimension_numbers = #tpu.dot_dimension_numbers<[1], [0], [0], [1], [0, 0, 1, 1], [], []>} : vector<32x8xbf16>, vector<8x80xbf16>, vector<32x80xf32> -> vector<32x80xf32>
    %12 = arith.addf %6, %11 : vector<32x80xf32>
    %c0_12 = arith.constant 0 : index
    %c0_13 = arith.constant 0 : index
    %c2 = arith.constant 2 : index
    %13 = vector.load %arg1[%c0_12, %c0_13, %c2] : memref<1x8x102xbf16, #tpu.memory_space<vmem>>, vector<1x8x80xbf16>
    %14 = vector.shape_cast %13 : vector<1x8x80xbf16> to vector<8x80xbf16>
    %c2_14 = arith.constant 2 : index
    %c0_15 = arith.constant 0 : index
    %c0_16 = arith.constant 0 : index
    %15 = vector.load %arg2[%c2_14, %c0_15, %c0_16] : memref<9x32x8xbf16, #tpu.memory_space<vmem>>, vector<1x32x8xbf16>
    %16 = vector.shape_cast %15 : vector<1x32x8xbf16> to vector<32x8xbf16>
    %cst_17 = arith.constant dense<0.000000e+00> : vector<32x80xf32>
    %17 = tpu.matmul %16, %14, %cst_17 {dimension_numbers = #tpu.dot_dimension_numbers<[1], [0], [0], [1], [0, 0, 1, 1], [], []>} : vector<32x8xbf16>, vector<8x80xbf16>, vector<32x80xf32> -> vector<32x80xf32>
    %18 = arith.addf %12, %17 : vector<32x80xf32>
    %c0_18 = arith.constant 0 : index
    %c0_19 = arith.constant 0 : index
    %c10 = arith.constant 10 : index
    %19 = vector.load %arg1[%c0_18, %c0_19, %c10] : memref<1x8x102xbf16, #tpu.memory_space<vmem>>, vector<1x8x80xbf16>
    %20 = vector.shape_cast %19 : vector<1x8x80xbf16> to vector<8x80xbf16>
    %c3 = arith.constant 3 : index
    %c0_20 = arith.constant 0 : index
    %c0_21 = arith.constant 0 : index
    %21 = vector.load %arg2[%c3, %c0_20, %c0_21] : memref<9x32x8xbf16, #tpu.memory_space<vmem>>, vector<1x32x8xbf16>
    %22 = vector.shape_cast %21 : vector<1x32x8xbf16> to vector<32x8xbf16>
    %cst_22 = arith.constant dense<0.000000e+00> : vector<32x80xf32>
    %23 = tpu.matmul %22, %20, %cst_22 {dimension_numbers = #tpu.dot_dimension_numbers<[1], [0], [0], [1], [0, 0, 1, 1], [], []>} : vector<32x8xbf16>, vector<8x80xbf16>, vector<32x80xf32> -> vector<32x80xf32>
    %24 = arith.addf %18, %23 : vector<32x80xf32>
    %c0_23 = arith.constant 0 : index
    %c0_24 = arith.constant 0 : index
    %c11 = arith.constant 11 : index
    %25 = vector.load %arg1[%c0_23, %c0_24, %c11] : memref<1x8x102xbf16, #tpu.memory_space<vmem>>, vector<1x8x80xbf16>
    %26 = vector.shape_cast %25 : vector<1x8x80xbf16> to vector<8x80xbf16>
    %c4 = arith.constant 4 : index
    %c0_25 = arith.constant 0 : index
    %c0_26 = arith.constant 0 : index
    %27 = vector.load %arg2[%c4, %c0_25, %c0_26] : memref<9x32x8xbf16, #tpu.memory_space<vmem>>, vector<1x32x8xbf16>
    %28 = vector.shape_cast %27 : vector<1x32x8xbf16> to vector<32x8xbf16>
    %cst_27 = arith.constant dense<0.000000e+00> : vector<32x80xf32>
    %29 = tpu.matmul %28, %26, %cst_27 {dimension_numbers = #tpu.dot_dimension_numbers<[1], [0], [0], [1], [0, 0, 1, 1], [], []>} : vector<32x8xbf16>, vector<8x80xbf16>, vector<32x80xf32> -> vector<32x80xf32>
    %30 = arith.addf %24, %29 : vector<32x80xf32>
    %c0_28 = arith.constant 0 : index
    %c0_29 = arith.constant 0 : index
    %c12 = arith.constant 12 : index
    %31 = vector.load %arg1[%c0_28, %c0_29, %c12] : memref<1x8x102xbf16, #tpu.memory_space<vmem>>, vector<1x8x80xbf16>
    %32 = vector.shape_cast %31 : vector<1x8x80xbf16> to vector<8x80xbf16>
    %c5 = arith.constant 5 : index
    %c0_30 = arith.constant 0 : index
    %c0_31 = arith.constant 0 : index
    %33 = vector.load %arg2[%c5, %c0_30, %c0_31] : memref<9x32x8xbf16, #tpu.memory_space<vmem>>, vector<1x32x8xbf16>
    %34 = vector.shape_cast %33 : vector<1x32x8xbf16> to vector<32x8xbf16>
    %cst_32 = arith.constant dense<0.000000e+00> : vector<32x80xf32>
    %35 = tpu.matmul %34, %32, %cst_32 {dimension_numbers = #tpu.dot_dimension_numbers<[1], [0], [0], [1], [0, 0, 1, 1], [], []>} : vector<32x8xbf16>, vector<8x80xbf16>, vector<32x80xf32> -> vector<32x80xf32>
    %36 = arith.addf %30, %35 : vector<32x80xf32>
    %c0_33 = arith.constant 0 : index
    %c0_34 = arith.constant 0 : index
    %c20 = arith.constant 20 : index
    %37 = vector.load %arg1[%c0_33, %c0_34, %c20] : memref<1x8x102xbf16, #tpu.memory_space<vmem>>, vector<1x8x80xbf16>
    %38 = vector.shape_cast %37 : vector<1x8x80xbf16> to vector<8x80xbf16>
    %c6 = arith.constant 6 : index
    %c0_35 = arith.constant 0 : index
    %c0_36 = arith.constant 0 : index
    %39 = vector.load %arg2[%c6, %c0_35, %c0_36] : memref<9x32x8xbf16, #tpu.memory_space<vmem>>, vector<1x32x8xbf16>
    %40 = vector.shape_cast %39 : vector<1x32x8xbf16> to vector<32x8xbf16>
    %cst_37 = arith.constant dense<0.000000e+00> : vector<32x80xf32>
    %41 = tpu.matmul %40, %38, %cst_37 {dimension_numbers = #tpu.dot_dimension_numbers<[1], [0], [0], [1], [0, 0, 1, 1], [], []>} : vector<32x8xbf16>, vector<8x80xbf16>, vector<32x80xf32> -> vector<32x80xf32>
    %42 = arith.addf %36, %41 : vector<32x80xf32>
    %c0_38 = arith.constant 0 : index
    %c0_39 = arith.constant 0 : index
    %c21 = arith.constant 21 : index
    %43 = vector.load %arg1[%c0_38, %c0_39, %c21] : memref<1x8x102xbf16, #tpu.memory_space<vmem>>, vector<1x8x80xbf16>
    %44 = vector.shape_cast %43 : vector<1x8x80xbf16> to vector<8x80xbf16>
    %c7 = arith.constant 7 : index
    %c0_40 = arith.constant 0 : index
    %c0_41 = arith.constant 0 : index
    %45 = vector.load %arg2[%c7, %c0_40, %c0_41] : memref<9x32x8xbf16, #tpu.memory_space<vmem>>, vector<1x32x8xbf16>
    %46 = vector.shape_cast %45 : vector<1x32x8xbf16> to vector<32x8xbf16>
    %cst_42 = arith.constant dense<0.000000e+00> : vector<32x80xf32>
    %47 = tpu.matmul %46, %44, %cst_42 {dimension_numbers = #tpu.dot_dimension_numbers<[1], [0], [0], [1], [0, 0, 1, 1], [], []>} : vector<32x8xbf16>, vector<8x80xbf16>, vector<32x80xf32> -> vector<32x80xf32>
    %48 = arith.addf %42, %47 : vector<32x80xf32>
    %c0_43 = arith.constant 0 : index
    %c0_44 = arith.constant 0 : index
    %c22 = arith.constant 22 : index
    %49 = vector.load %arg1[%c0_43, %c0_44, %c22] : memref<1x8x102xbf16, #tpu.memory_space<vmem>>, vector<1x8x80xbf16>
    %50 = vector.shape_cast %49 : vector<1x8x80xbf16> to vector<8x80xbf16>
    %c8 = arith.constant 8 : index
    %c0_45 = arith.constant 0 : index
    %c0_46 = arith.constant 0 : index
    %51 = vector.load %arg2[%c8, %c0_45, %c0_46] : memref<9x32x8xbf16, #tpu.memory_space<vmem>>, vector<1x32x8xbf16>
    %52 = vector.shape_cast %51 : vector<1x32x8xbf16> to vector<32x8xbf16>
    %cst_47 = arith.constant dense<0.000000e+00> : vector<32x80xf32>
    %53 = tpu.matmul %52, %50, %cst_47 {dimension_numbers = #tpu.dot_dimension_numbers<[1], [0], [0], [1], [0, 0, 1, 1], [], []>} : vector<32x8xbf16>, vector<8x80xbf16>, vector<32x80xf32> -> vector<32x80xf32>
    %54 = arith.addf %48, %53 : vector<32x80xf32>
    %c0_48 = arith.constant 0 : index
    %c0_49 = arith.constant 0 : index
    %55 = vector.load %arg3[%c0_48, %c0_49] : memref<32x1xf32, #tpu.memory_space<vmem>>, vector<32x1xf32>
    %56 = vector.broadcast %55 : vector<32x1xf32> to vector<32x80xf32>
    %57 = arith.addf %54, %56 : vector<32x80xf32>
    %cst_50 = arith.constant 0.000000e+00 : f32
    %58 = vector.broadcast %cst_50 : f32 to vector<32x80xf32>
    %59 = arith.cmpf oge, %57, %58 : vector<32x80xf32>
    %c0_51 = arith.constant 0 : index
    %c0_52 = arith.constant 0 : index
    %60 = vector.load %arg4[%c0_51, %c0_52] : memref<1x1xf32, #tpu.memory_space<vmem>>, vector<1x1xf32>
    %61 = vector.broadcast %60 : vector<1x1xf32> to vector<32x80xf32>
    %62 = arith.mulf %61, %57 : vector<32x80xf32>
    %63 = arith.select %59, %57, %62 : vector<32x80xi1>, vector<32x80xf32>
    %64 = arith.truncf %63 : vector<32x80xf32> to vector<32x80xbf16>
    %c0_53 = arith.constant 0 : index
    %c0_54 = arith.constant 0 : index
    %c0_55 = arith.constant 0 : index
    %65 = vector.load %arg5[%c0_53, %c0_54, %c0_55] : memref<1x32x80xbf16, #tpu.memory_space<vmem>>, vector<1x32x80xbf16>
    %66 = vector.shape_cast %65 : vector<1x32x80xbf16> to vector<32x80xbf16>
    %67 = vector.shape_cast %64 : vector<32x80xbf16> to vector<1x32x80xbf16>
    tpu.vector_store %arg5[%c0_53, %c0_54, %c0_55], %67 {strides = array<i32>} : memref<1x32x80xbf16, #tpu.memory_space<vmem>>, vector<1x32x80xbf16>,
    return
  }
  func.func @transform_0(%arg0: i32) -> (i32, i32, i32) {
    %c0_i32 = arith.constant 0 : i32
    %c0_i32_0 = arith.constant 0 : i32
    %c0_i32_1 = arith.constant 0 : i32
    return %arg0, %c0_i32, %c0_i32_0 : i32, i32, i32
  }
  func.func @transform_1(%arg0: i32) -> (i32, i32, i32) {
    %c0_i32 = arith.constant 0 : i32
    %c0_i32_0 = arith.constant 0 : i32
    %c0_i32_1 = arith.constant 0 : i32
    %c0_i32_2 = arith.constant 0 : i32
    return %c0_i32, %c0_i32_0, %c0_i32_1 : i32, i32, i32
  }
  func.func @transform_2(%arg0: i32) -> (i32, i32) {
    %c0_i32 = arith.constant 0 : i32
    %c0_i32_0 = arith.constant 0 : i32
    %c0_i32_1 = arith.constant 0 : i32
    return %c0_i32, %c0_i32_0 : i32, i32
  }
  func.func @transform_3(%arg0: i32) -> (i32, i32) {
    %c0_i32 = arith.constant 0 : i32
    %c0_i32_0 = arith.constant 0 : i32
    %c0_i32_1 = arith.constant 0 : i32
    return %c0_i32, %c0_i32_0 : i32, i32
  }
  func.func @transform_4(%arg0: i32) -> (i32, i32, i32) {
    %c0_i32 = arith.constant 0 : i32
    %c0_i32_0 = arith.constant 0 : i32
    %c0_i32_1 = arith.constant 0 : i32
    return %arg0, %c0_i32, %c0_i32_0 : i32, i32, i32
  }
}

module attributes {stable_mosaic.version = 11 : i64} {
  func.func @kern(%arg0: i32, %arg1: memref<1x4x64xbf16, #tpu.memory_space<vmem>>, %arg2: memref<1x8x4xbf16, #tpu.memory_space<vmem>>, %arg3: memref<8x1xf32, #tpu.memory_space<vmem>>, %arg4: memref<1x8x64xbf16, #tpu.memory_space<vmem>>, %arg5: memref<1x8x64xbf16, #tpu.memory_space<vmem>>) attributes {dimension_semantics = [#tpu.dimension_semantics<parallel>], iteration_bounds = array<i64: 2>, scalar_prefetch = 0 : i64, scratch_operands = 0 : i64, tpu.core_type = #tpu.core_type<tc>, window_params = [{transform_indices = @transform_0, window_bounds = array<i64: 1, 4, 64>}, {pipeline_mode = #tpu.pipeline_mode<synchronous>, transform_indices = @transform_1, window_bounds = array<i64: 1, 8, 4>}, {pipeline_mode = #tpu.pipeline_mode<synchronous>, transform_indices = @transform_2, window_bounds = array<i64: 8, 1>}, {transform_indices = @transform_3, window_bounds = array<i64: 1, 8, 64>}, {transform_indices = @transform_4, window_bounds = array<i64: 1, 8, 64>}]} {
    %cst = arith.constant 0.000000e+00 : f32
    %0 = vector.broadcast %cst : f32 to vector<8x64xf32>
    %c0 = arith.constant 0 : index
    %c0_0 = arith.constant 0 : index
    %c0_1 = arith.constant 0 : index
    %1 = vector.load %arg1[%c0, %c0_0, %c0_1] : memref<1x4x64xbf16, #tpu.memory_space<vmem>>, vector<1x4x64xbf16>
    %2 = vector.shape_cast %1 : vector<1x4x64xbf16> to vector<4x64xbf16>
    %c0_2 = arith.constant 0 : index
    %c0_3 = arith.constant 0 : index
    %c0_4 = arith.constant 0 : index
    %3 = vector.load %arg2[%c0_2, %c0_3, %c0_4] : memref<1x8x4xbf16, #tpu.memory_space<vmem>>, vector<1x8x4xbf16>
    %4 = vector.shape_cast %3 : vector<1x8x4xbf16> to vector<8x4xbf16>
    %cst_5 = arith.constant dense<0.000000e+00> : vector<8x64xf32>
    %5 = tpu.matmul %4, %2, %cst_5 {dimension_numbers = #tpu.dot_dimension_numbers<[1], [0], [0], [1], [0, 0, 1, 1], [], []>} : vector<8x4xbf16>, vector<4x64xbf16>, vector<8x64xf32> -> vector<8x64xf32>
    %6 = arith.addf %0, %5 : vector<8x64xf32>
    %c0_6 = arith.constant 0 : index
    %c0_7 = arith.constant 0 : index
    %7 = vector.load %arg3[%c0_6, %c0_7] : memref<8x1xf32, #tpu.memory_space<vmem>>, vector<8x1xf32>
    %8 = vector.broadcast %7 : vector<8x1xf32> to vector<8x64xf32>
    %9 = arith.addf %6, %8 : vector<8x64xf32>
    %c0_8 = arith.constant 0 : index
    %c0_9 = arith.constant 0 : index
    %c0_10 = arith.constant 0 : index
    %10 = vector.load %arg4[%c0_8, %c0_9, %c0_10] : memref<1x8x64xbf16, #tpu.memory_space<vmem>>, vector<1x8x64xbf16>
    %11 = vector.shape_cast %10 : vector<1x8x64xbf16> to vector<8x64xbf16>
    %12 = arith.extf %11 : vector<8x64xbf16> to vector<8x64xf32>
    %13 = arith.addf %9, %12 : vector<8x64xf32>
    %14 = arith.truncf %13 : vector<8x64xf32> to vector<8x64xbf16>
    %c0_11 = arith.constant 0 : index
    %c0_12 = arith.constant 0 : index
    %c0_13 = arith.constant 0 : index
    %15 = vector.load %arg5[%c0_11, %c0_12, %c0_13] : memref<1x8x64xbf16, #tpu.memory_space<vmem>>, vector<1x8x64xbf16>
    %16 = vector.shape_cast %15 : vector<1x8x64xbf16> to vector<8x64xbf16>
    %17 = vector.shape_cast %14 : vector<8x64xbf16> to vector<1x8x64xbf16>
    tpu.vector_store %arg5[%c0_11, %c0_12, %c0_13], %17 {strides = array<i32>} : memref<1x8x64xbf16, #tpu.memory_space<vmem>>, vector<1x8x64xbf16>,
    return
  }
  func.func @transform_0(%arg0: i32) -> (i32, i32, i32) {
    %c0_i32 = arith.constant 0 : i32
    %c0_i32_0 = arith.constant 0 : i32
    %c0_i32_1 = arith.constant 0 : i32
    return %arg0, %c0_i32, %c0_i32_0 : i32, i32, i32
  }
  func.func @transform_1(%arg0: i32) -> (i32, i32, i32) {
    %c0_i32 = arith.constant 0 : i32
    %c0_i32_0 = arith.constant 0 : i32
    %c0_i32_1 = arith.constant 0 : i32
    %c0_i32_2 = arith.constant 0 : i32
    return %c0_i32, %c0_i32_0, %c0_i32_1 : i32, i32, i32
  }
  func.func @transform_2(%arg0: i32) -> (i32, i32) {
    %c0_i32 = arith.constant 0 : i32
    %c0_i32_0 = arith.constant 0 : i32
    %c0_i32_1 = arith.constant 0 : i32
    return %c0_i32, %c0_i32_0 : i32, i32
  }
  func.func @transform_3(%arg0: i32) -> (i32, i32, i32) {
    %c0_i32 = arith.constant 0 : i32
    %c0_i32_0 = arith.constant 0 : i32
    %c0_i32_1 = arith.constant 0 : i32
    return %arg0, %c0_i32, %c0_i32_0 : i32, i32, i32
  }
  func.func @transform_4(%arg0: i32) -> (i32, i32, i32) {
    %c0_i32 = arith.constant 0 : i32
    %c0_i32_0 = arith.constant 0 : i32
    %c0_i32_1 = arith.constant 0 : i32
    return %arg0, %c0_i32, %c0_i32_0 : i32, i32, i32
  }
}

module attributes {stable_mosaic.version = 11 : i64} {
  func.func @kern(%arg0: i32, %arg1: memref<1x8x64xbf16, #tpu.memory_space<vmem>>, %arg2: memref<1x8x8xbf16, #tpu.memory_space<vmem>>, %arg3: memref<8x1xf32, #tpu.memory_space<vmem>>, %arg4: memref<1x1xf32, #tpu.memory_space<vmem>>, %arg5: memref<1x8x64xbf16, #tpu.memory_space<vmem>>) attributes {dimension_semantics = [#tpu.dimension_semantics<parallel>], iteration_bounds = array<i64: 2>, scalar_prefetch = 0 : i64, scratch_operands = 0 : i64, tpu.core_type = #tpu.core_type<tc>, window_params = [{transform_indices = @transform_0, window_bounds = array<i64: 1, 8, 64>}, {pipeline_mode = #tpu.pipeline_mode<synchronous>, transform_indices = @transform_1, window_bounds = array<i64: 1, 8, 8>}, {pipeline_mode = #tpu.pipeline_mode<synchronous>, transform_indices = @transform_2, window_bounds = array<i64: 8, 1>}, {pipeline_mode = #tpu.pipeline_mode<synchronous>, transform_indices = @transform_3, window_bounds = array<i64: 1, 1>}, {transform_indices = @transform_4, window_bounds = array<i64: 1, 8, 64>}]} {
    %cst = arith.constant 0.000000e+00 : f32
    %0 = vector.broadcast %cst : f32 to vector<8x64xf32>
    %c0 = arith.constant 0 : index
    %c0_0 = arith.constant 0 : index
    %c0_1 = arith.constant 0 : index
    %1 = vector.load %arg1[%c0, %c0_0, %c0_1] : memref<1x8x64xbf16, #tpu.memory_space<vmem>>, vector<1x8x64xbf16>
    %2 = vector.shape_cast %1 : vector<1x8x64xbf16> to vector<8x64xbf16>
    %c0_2 = arith.constant 0 : index
    %c0_3 = arith.constant 0 : index
    %c0_4 = arith.constant 0 : index
    %3 = vector.load %arg2[%c0_2, %c0_3, %c0_4] : memref<1x8x8xbf16, #tpu.memory_space<vmem>>, vector<1x8x8xbf16>
    %4 = vector.shape_cast %3 : vector<1x8x8xbf16> to vector<8x8xbf16>
    %cst_5 = arith.constant dense<0.000000e+00> : vector<8x64xf32>
    %5 = tpu.matmul %4, %2, %cst_5 {dimension_numbers = #tpu.dot_dimension_numbers<[1], [0], [0], [1], [0, 0, 1, 1], [], []>} : vector<8x8xbf16>, vector<8x64xbf16>, vector<8x64xf32> -> vector<8x64xf32>
    %6 = arith.addf %0, %5 : vector<8x64xf32>
    %c0_6 = arith.constant 0 : index
    %c0_7 = arith.constant 0 : index
    %7 = vector.load %arg3[%c0_6, %c0_7] : memref<8x1xf32, #tpu.memory_space<vmem>>, vector<8x1xf32>
    %8 = vector.broadcast %7 : vector<8x1xf32> to vector<8x64xf32>
    %9 = arith.addf %6, %8 : vector<8x64xf32>
    %cst_8 = arith.constant 0.000000e+00 : f32
    %10 = vector.broadcast %cst_8 : f32 to vector<8x64xf32>
    %11 = arith.cmpf oge, %9, %10 : vector<8x64xf32>
    %c0_9 = arith.constant 0 : index
    %c0_10 = arith.constant 0 : index
    %12 = vector.load %arg4[%c0_9, %c0_10] : memref<1x1xf32, #tpu.memory_space<vmem>>, vector<1x1xf32>
    %13 = vector.broadcast %12 : vector<1x1xf32> to vector<8x64xf32>
    %14 = arith.mulf %13, %9 : vector<8x64xf32>
    %15 = arith.select %11, %9, %14 : vector<8x64xi1>, vector<8x64xf32>
    %16 = arith.truncf %15 : vector<8x64xf32> to vector<8x64xbf16>
    %c0_11 = arith.constant 0 : index
    %c0_12 = arith.constant 0 : index
    %c0_13 = arith.constant 0 : index
    %17 = vector.load %arg5[%c0_11, %c0_12, %c0_13] : memref<1x8x64xbf16, #tpu.memory_space<vmem>>, vector<1x8x64xbf16>
    %18 = vector.shape_cast %17 : vector<1x8x64xbf16> to vector<8x64xbf16>
    %19 = vector.shape_cast %16 : vector<8x64xbf16> to vector<1x8x64xbf16>
    tpu.vector_store %arg5[%c0_11, %c0_12, %c0_13], %19 {strides = array<i32>} : memref<1x8x64xbf16, #tpu.memory_space<vmem>>, vector<1x8x64xbf16>,
    return
  }
  func.func @transform_0(%arg0: i32) -> (i32, i32, i32) {
    %c0_i32 = arith.constant 0 : i32
    %c0_i32_0 = arith.constant 0 : i32
    %c0_i32_1 = arith.constant 0 : i32
    return %arg0, %c0_i32, %c0_i32_0 : i32, i32, i32
  }
  func.func @transform_1(%arg0: i32) -> (i32, i32, i32) {
    %c0_i32 = arith.constant 0 : i32
    %c0_i32_0 = arith.constant 0 : i32
    %c0_i32_1 = arith.constant 0 : i32
    %c0_i32_2 = arith.constant 0 : i32
    return %c0_i32, %c0_i32_0, %c0_i32_1 : i32, i32, i32
  }
  func.func @transform_2(%arg0: i32) -> (i32, i32) {
    %c0_i32 = arith.constant 0 : i32
    %c0_i32_0 = arith.constant 0 : i32
    %c0_i32_1 = arith.constant 0 : i32
    return %c0_i32, %c0_i32_0 : i32, i32
  }
  func.func @transform_3(%arg0: i32) -> (i32, i32) {
    %c0_i32 = arith.constant 0 : i32
    %c0_i32_0 = arith.constant 0 : i32
    %c0_i32_1 = arith.constant 0 : i32
    return %c0_i32, %c0_i32_0 : i32, i32
  }
  func.func @transform_4(%arg0: i32) -> (i32, i32, i32) {
    %c0_i32 = arith.constant 0 : i32
    %c0_i32_0 = arith.constant 0 : i32
    %c0_i32_1 = arith.constant 0 : i32
    return %arg0, %c0_i32, %c0_i32_0 : i32, i32, i32
  }
}

module attributes {stable_mosaic.version = 11 : i64} {
  func.func @kern(%arg0: i32, %arg1: memref<1x8x102xbf16, #tpu.memory_space<vmem>>, %arg2: memref<9x32x8xbf16, #tpu.memory_space<vmem>>, %arg3: memref<32x1xf32, #tpu.memory_space<vmem>>, %arg4: memref<1x32x80xbf16, #tpu.memory_space<vmem>>) attributes {dimension_semantics = [#tpu.dimension_semantics<parallel>], iteration_bounds = array<i64: 2>, scalar_prefetch = 0 : i64, scratch_operands = 0 : i64, tpu.core_type = #tpu.core_type<tc>, window_params = [{transform_indices = @transform_0, window_bounds = array<i64: 1, 8, 102>}, {pipeline_mode = #tpu.pipeline_mode<synchronous>, transform_indices = @transform_1, window_bounds = array<i64: 9, 32, 8>}, {pipeline_mode = #tpu.pipeline_mode<synchronous>, transform_indices = @transform_2, window_bounds = array<i64: 32, 1>}, {transform_indices = @transform_3, window_bounds = array<i64: 1, 32, 80>}]} {
    %cst = arith.constant 0.000000e+00 : f32
    %0 = vector.broadcast %cst : f32 to vector<32x80xf32>
    %c0 = arith.constant 0 : index
    %c0_0 = arith.constant 0 : index
    %c0_1 = arith.constant 0 : index
    %1 = vector.load %arg1[%c0, %c0_0, %c0_1] : memref<1x8x102xbf16, #tpu.memory_space<vmem>>, vector<1x8x80xbf16>
    %2 = vector.shape_cast %1 : vector<1x8x80xbf16> to vector<8x80xbf16>
    %c0_2 = arith.constant 0 : index
    %c0_3 = arith.constant 0 : index
    %c0_4 = arith.constant 0 : index
    %3 = vector.load %arg2[%c0_2, %c0_3, %c0_4] : memref<9x32x8xbf16, #tpu.memory_space<vmem>>, vector<1x32x8xbf16>
    %4 = vector.shape_cast %3 : vector<1x32x8xbf16> to vector<32x8xbf16>
    %cst_5 = arith.constant dense<0.000000e+00> : vector<32x80xf32>
    %5 = tpu.matmul %4, %2, %cst_5 {dimension_numbers = #tpu.dot_dimension_numbers<[1], [0], [0], [1], [0, 0, 1, 1], [], []>} : vector<32x8xbf16>, vector<8x80xbf16>, vector<32x80xf32> -> vector<32x80xf32>
    %6 = arith.addf %0, %5 : vector<32x80xf32>
    %c0_6 = arith.constant 0 : index
    %c0_7 = arith.constant 0 : index
    %c1 = arith.constant 1 : index
    %7 = vector.load %arg1[%c0_6, %c0_7, %c1] : memref<1x8x102xbf16, #tpu.memory_space<vmem>>, vector<1x8x80xbf16>
    %8 = vector.shape_cast %7 : vector<1x8x80xbf16> to vector<8x80xbf16>
    %c1_8 = arith.constant 1 : index
    %c0_9 = arith.constant 0 : index
    %c0_10 = arith.constant 0 : index
    %9 = vector.load %arg2[%c1_8, %c0_9, %c0_10] : memref<9x32x8xbf16, #tpu.memory_space<vmem>>, vector<1x32x8xbf16>
    %10 = vector.shape_cast %9 : vector<1x32x8xbf16> to vector<32x8xbf16>
    %cst_11 = arith.constant dense<0.000000e+00> : vector<32x80xf32>
    %11 = tpu.matmul %10, %8, %cst_11 {dimension_numbers = #tpu.dot_dimension_numbers<[1], [0], [0], [1], [0, 0, 1, 1], [], []>} : vector<32x8xbf16>, vector<8x80xbf16>, vector<32x80xf32> -> vector<32x80xf32>
    %12 = arith.addf %6, %11 : vector<32x80xf32>
    %c0_12 = arith.constant 0 : index
    %c0_13 = arith.constant 0 : index
    %c2 = arith.constant 2 : index
    %13 = vector.load %arg1[%c0_12, %c0_13, %c2] : memref<1x8x102xbf16, #tpu.memory_space<vmem>>, vector<1x8x80xbf16>
    %14 = vector.shape_cast %13 : vector<1x8x80xbf16> to vector<8x80xbf16>
    %c2_14 = arith.constant 2 : index
    %c0_15 = arith.constant 0 : index
    %c0_16 = arith.constant 0 : index
    %15 = vector.load %arg2[%c2_14, %c0_15, %c0_16] : memref<9x32x8xbf16, #tpu.memory_space<vmem>>, vector<1x32x8xbf16>
    %16 = vector.shape_cast %15 : vector<1x32x8xbf16> to vector<32x8xbf16>
    %cst_17 = arith.constant dense<0.000000e+00> : vector<32x80xf32>
    %17 = tpu.matmul %16, %14, %cst_17 {dimension_numbers = #tpu.dot_dimension_numbers<[1], [0], [0], [1], [0, 0, 1, 1], [], []>} : vector<32x8xbf16>, vector<8x80xbf16>, vector<32x80xf32> -> vector<32x80xf32>
    %18 = arith.addf %12, %17 : vector<32x80xf32>
    %c0_18 = arith.constant 0 : index
    %c0_19 = arith.constant 0 : index
    %c10 = arith.constant 10 : index
    %19 = vector.load %arg1[%c0_18, %c0_19, %c10] : memref<1x8x102xbf16, #tpu.memory_space<vmem>>, vector<1x8x80xbf16>
    %20 = vector.shape_cast %19 : vector<1x8x80xbf16> to vector<8x80xbf16>
    %c3 = arith.constant 3 : index
    %c0_20 = arith.constant 0 : index
    %c0_21 = arith.constant 0 : index
    %21 = vector.load %arg2[%c3, %c0_20, %c0_21] : memref<9x32x8xbf16, #tpu.memory_space<vmem>>, vector<1x32x8xbf16>
    %22 = vector.shape_cast %21 : vector<1x32x8xbf16> to vector<32x8xbf16>
    %cst_22 = arith.constant dense<0.000000e+00> : vector<32x80xf32>
    %23 = tpu.matmul %22, %20, %cst_22 {dimension_numbers = #tpu.dot_dimension_numbers<[1], [0], [0], [1], [0, 0, 1, 1], [], []>} : vector<32x8xbf16>, vector<8x80xbf16>, vector<32x80xf32> -> vector<32x80xf32>
    %24 = arith.addf %18, %23 : vector<32x80xf32>
    %c0_23 = arith.constant 0 : index
    %c0_24 = arith.constant 0 : index
    %c11 = arith.constant 11 : index
    %25 = vector.load %arg1[%c0_23, %c0_24, %c11] : memref<1x8x102xbf16, #tpu.memory_space<vmem>>, vector<1x8x80xbf16>
    %26 = vector.shape_cast %25 : vector<1x8x80xbf16> to vector<8x80xbf16>
    %c4 = arith.constant 4 : index
    %c0_25 = arith.constant 0 : index
    %c0_26 = arith.constant 0 : index
    %27 = vector.load %arg2[%c4, %c0_25, %c0_26] : memref<9x32x8xbf16, #tpu.memory_space<vmem>>, vector<1x32x8xbf16>
    %28 = vector.shape_cast %27 : vector<1x32x8xbf16> to vector<32x8xbf16>
    %cst_27 = arith.constant dense<0.000000e+00> : vector<32x80xf32>
    %29 = tpu.matmul %28, %26, %cst_27 {dimension_numbers = #tpu.dot_dimension_numbers<[1], [0], [0], [1], [0, 0, 1, 1], [], []>} : vector<32x8xbf16>, vector<8x80xbf16>, vector<32x80xf32> -> vector<32x80xf32>
    %30 = arith.addf %24, %29 : vector<32x80xf32>
    %c0_28 = arith.constant 0 : index
    %c0_29 = arith.constant 0 : index
    %c12 = arith.constant 12 : index
    %31 = vector.load %arg1[%c0_28, %c0_29, %c12] : memref<1x8x102xbf16, #tpu.memory_space<vmem>>, vector<1x8x80xbf16>
    %32 = vector.shape_cast %31 : vector<1x8x80xbf16> to vector<8x80xbf16>
    %c5 = arith.constant 5 : index
    %c0_30 = arith.constant 0 : index
    %c0_31 = arith.constant 0 : index
    %33 = vector.load %arg2[%c5, %c0_30, %c0_31] : memref<9x32x8xbf16, #tpu.memory_space<vmem>>, vector<1x32x8xbf16>
    %34 = vector.shape_cast %33 : vector<1x32x8xbf16> to vector<32x8xbf16>
    %cst_32 = arith.constant dense<0.000000e+00> : vector<32x80xf32>
    %35 = tpu.matmul %34, %32, %cst_32 {dimension_numbers = #tpu.dot_dimension_numbers<[1], [0], [0], [1], [0, 0, 1, 1], [], []>} : vector<32x8xbf16>, vector<8x80xbf16>, vector<32x80xf32> -> vector<32x80xf32>
    %36 = arith.addf %30, %35 : vector<32x80xf32>
    %c0_33 = arith.constant 0 : index
    %c0_34 = arith.constant 0 : index
    %c20 = arith.constant 20 : index
    %37 = vector.load %arg1[%c0_33, %c0_34, %c20] : memref<1x8x102xbf16, #tpu.memory_space<vmem>>, vector<1x8x80xbf16>
    %38 = vector.shape_cast %37 : vector<1x8x80xbf16> to vector<8x80xbf16>
    %c6 = arith.constant 6 : index
    %c0_35 = arith.constant 0 : index
    %c0_36 = arith.constant 0 : index
    %39 = vector.load %arg2[%c6, %c0_35, %c0_36] : memref<9x32x8xbf16, #tpu.memory_space<vmem>>, vector<1x32x8xbf16>
    %40 = vector.shape_cast %39 : vector<1x32x8xbf16> to vector<32x8xbf16>
    %cst_37 = arith.constant dense<0.000000e+00> : vector<32x80xf32>
    %41 = tpu.matmul %40, %38, %cst_37 {dimension_numbers = #tpu.dot_dimension_numbers<[1], [0], [0], [1], [0, 0, 1, 1], [], []>} : vector<32x8xbf16>, vector<8x80xbf16>, vector<32x80xf32> -> vector<32x80xf32>
    %42 = arith.addf %36, %41 : vector<32x80xf32>
    %c0_38 = arith.constant 0 : index
    %c0_39 = arith.constant 0 : index
    %c21 = arith.constant 21 : index
    %43 = vector.load %arg1[%c0_38, %c0_39, %c21] : memref<1x8x102xbf16, #tpu.memory_space<vmem>>, vector<1x8x80xbf16>
    %44 = vector.shape_cast %43 : vector<1x8x80xbf16> to vector<8x80xbf16>
    %c7 = arith.constant 7 : index
    %c0_40 = arith.constant 0 : index
    %c0_41 = arith.constant 0 : index
    %45 = vector.load %arg2[%c7, %c0_40, %c0_41] : memref<9x32x8xbf16, #tpu.memory_space<vmem>>, vector<1x32x8xbf16>
    %46 = vector.shape_cast %45 : vector<1x32x8xbf16> to vector<32x8xbf16>
    %cst_42 = arith.constant dense<0.000000e+00> : vector<32x80xf32>
    %47 = tpu.matmul %46, %44, %cst_42 {dimension_numbers = #tpu.dot_dimension_numbers<[1], [0], [0], [1], [0, 0, 1, 1], [], []>} : vector<32x8xbf16>, vector<8x80xbf16>, vector<32x80xf32> -> vector<32x80xf32>
    %48 = arith.addf %42, %47 : vector<32x80xf32>
    %c0_43 = arith.constant 0 : index
    %c0_44 = arith.constant 0 : index
    %c22 = arith.constant 22 : index
    %49 = vector.load %arg1[%c0_43, %c0_44, %c22] : memref<1x8x102xbf16, #tpu.memory_space<vmem>>, vector<1x8x80xbf16>
    %50 = vector.shape_cast %49 : vector<1x8x80xbf16> to vector<8x80xbf16>
    %c8 = arith.constant 8 : index
    %c0_45 = arith.constant 0 : index
    %c0_46 = arith.constant 0 : index
    %51 = vector.load %arg2[%c8, %c0_45, %c0_46] : memref<9x32x8xbf16, #tpu.memory_space<vmem>>, vector<1x32x8xbf16>
    %52 = vector.shape_cast %51 : vector<1x32x8xbf16> to vector<32x8xbf16>
    %cst_47 = arith.constant dense<0.000000e+00> : vector<32x80xf32>
    %53 = tpu.matmul %52, %50, %cst_47 {dimension_numbers = #tpu.dot_dimension_numbers<[1], [0], [0], [1], [0, 0, 1, 1], [], []>} : vector<32x8xbf16>, vector<8x80xbf16>, vector<32x80xf32> -> vector<32x80xf32>
    %54 = arith.addf %48, %53 : vector<32x80xf32>
    %c0_48 = arith.constant 0 : index
    %c0_49 = arith.constant 0 : index
    %55 = vector.load %arg3[%c0_48, %c0_49] : memref<32x1xf32, #tpu.memory_space<vmem>>, vector<32x1xf32>
    %56 = vector.broadcast %55 : vector<32x1xf32> to vector<32x80xf32>
    %57 = arith.addf %54, %56 : vector<32x80xf32>
    %58 = arith.truncf %57 : vector<32x80xf32> to vector<32x80xbf16>
    %c0_50 = arith.constant 0 : index
    %c0_51 = arith.constant 0 : index
    %c0_52 = arith.constant 0 : index
    %59 = vector.load %arg4[%c0_50, %c0_51, %c0_52] : memref<1x32x80xbf16, #tpu.memory_space<vmem>>, vector<1x32x80xbf16>
    %60 = vector.shape_cast %59 : vector<1x32x80xbf16> to vector<32x80xbf16>
    %61 = vector.shape_cast %58 : vector<32x80xbf16> to vector<1x32x80xbf16>
    tpu.vector_store %arg4[%c0_50, %c0_51, %c0_52], %61 {strides = array<i32>} : memref<1x32x80xbf16, #tpu.memory_space<vmem>>, vector<1x32x80xbf16>,
    return
  }
  func.func @transform_0(%arg0: i32) -> (i32, i32, i32) {
    %c0_i32 = arith.constant 0 : i32
    %c0_i32_0 = arith.constant 0 : i32
    %c0_i32_1 = arith.constant 0 : i32
    return %arg0, %c0_i32, %c0_i32_0 : i32, i32, i32
  }
  func.func @transform_1(%arg0: i32) -> (i32, i32, i32) {
    %c0_i32 = arith.constant 0 : i32
    %c0_i32_0 = arith.constant 0 : i32
    %c0_i32_1 = arith.constant 0 : i32
    %c0_i32_2 = arith.constant 0 : i32
    return %c0_i32, %c0_i32_0, %c0_i32_1 : i32, i32, i32
  }
  func.func @transform_2(%arg0: i32) -> (i32, i32) {
    %c0_i32 = arith.constant 0 : i32
    %c0_i32_0 = arith.constant 0 : i32
    %c0_i32_1 = arith.constant 0 : i32
    return %c0_i32, %c0_i32_0 : i32, i32
  }
  func.func @transform_3(%arg0: i32) -> (i32, i32, i32) {
    %c0_i32 = arith.constant 0 : i32
    %c0_i32_0 = arith.constant 0 : i32
    %c0_i32_1 = arith.constant 0 : i32
    return %arg0, %c0_i32, %c0_i32_0 : i32, i32, i32
  }
}

module attributes {stable_mosaic.version = 11 : i64} {
  func.func @kern(%arg0: i32, %arg1: memref<1x8x326xbf16, #tpu.memory_space<vmem>>, %arg2: memref<9x8x8xbf16, #tpu.memory_space<vmem>>, %arg3: memref<8x1xf32, #tpu.memory_space<vmem>>, %arg4: memref<1x1xf32, #tpu.memory_space<vmem>>, %arg5: memref<1x8x288xbf16, #tpu.memory_space<vmem>>) attributes {dimension_semantics = [#tpu.dimension_semantics<parallel>], iteration_bounds = array<i64: 2>, scalar_prefetch = 0 : i64, scratch_operands = 0 : i64, tpu.core_type = #tpu.core_type<tc>, window_params = [{transform_indices = @transform_0, window_bounds = array<i64: 1, 8, 326>}, {pipeline_mode = #tpu.pipeline_mode<synchronous>, transform_indices = @transform_1, window_bounds = array<i64: 9, 8, 8>}, {pipeline_mode = #tpu.pipeline_mode<synchronous>, transform_indices = @transform_2, window_bounds = array<i64: 8, 1>}, {pipeline_mode = #tpu.pipeline_mode<synchronous>, transform_indices = @transform_3, window_bounds = array<i64: 1, 1>}, {transform_indices = @transform_4, window_bounds = array<i64: 1, 8, 288>}]} {
    %cst = arith.constant 0.000000e+00 : f32
    %0 = vector.broadcast %cst : f32 to vector<8x288xf32>
    %c0 = arith.constant 0 : index
    %c0_0 = arith.constant 0 : index
    %c0_1 = arith.constant 0 : index
    %1 = vector.load %arg1[%c0, %c0_0, %c0_1] : memref<1x8x326xbf16, #tpu.memory_space<vmem>>, vector<1x8x288xbf16>
    %2 = vector.shape_cast %1 : vector<1x8x288xbf16> to vector<8x288xbf16>
    %c0_2 = arith.constant 0 : index
    %c0_3 = arith.constant 0 : index
    %c0_4 = arith.constant 0 : index
    %3 = vector.load %arg2[%c0_2, %c0_3, %c0_4] : memref<9x8x8xbf16, #tpu.memory_space<vmem>>, vector<1x8x8xbf16>
    %4 = vector.shape_cast %3 : vector<1x8x8xbf16> to vector<8x8xbf16>
    %cst_5 = arith.constant dense<0.000000e+00> : vector<8x288xf32>
    %5 = tpu.matmul %4, %2, %cst_5 {dimension_numbers = #tpu.dot_dimension_numbers<[1], [0], [0], [1], [0, 0, 1, 1], [], []>} : vector<8x8xbf16>, vector<8x288xbf16>, vector<8x288xf32> -> vector<8x288xf32>
    %6 = arith.addf %0, %5 : vector<8x288xf32>
    %c0_6 = arith.constant 0 : index
    %c0_7 = arith.constant 0 : index
    %c1 = arith.constant 1 : index
    %7 = vector.load %arg1[%c0_6, %c0_7, %c1] : memref<1x8x326xbf16, #tpu.memory_space<vmem>>, vector<1x8x288xbf16>
    %8 = vector.shape_cast %7 : vector<1x8x288xbf16> to vector<8x288xbf16>
    %c1_8 = arith.constant 1 : index
    %c0_9 = arith.constant 0 : index
    %c0_10 = arith.constant 0 : index
    %9 = vector.load %arg2[%c1_8, %c0_9, %c0_10] : memref<9x8x8xbf16, #tpu.memory_space<vmem>>, vector<1x8x8xbf16>
    %10 = vector.shape_cast %9 : vector<1x8x8xbf16> to vector<8x8xbf16>
    %cst_11 = arith.constant dense<0.000000e+00> : vector<8x288xf32>
    %11 = tpu.matmul %10, %8, %cst_11 {dimension_numbers = #tpu.dot_dimension_numbers<[1], [0], [0], [1], [0, 0, 1, 1], [], []>} : vector<8x8xbf16>, vector<8x288xbf16>, vector<8x288xf32> -> vector<8x288xf32>
    %12 = arith.addf %6, %11 : vector<8x288xf32>
    %c0_12 = arith.constant 0 : index
    %c0_13 = arith.constant 0 : index
    %c2 = arith.constant 2 : index
    %13 = vector.load %arg1[%c0_12, %c0_13, %c2] : memref<1x8x326xbf16, #tpu.memory_space<vmem>>, vector<1x8x288xbf16>
    %14 = vector.shape_cast %13 : vector<1x8x288xbf16> to vector<8x288xbf16>
    %c2_14 = arith.constant 2 : index
    %c0_15 = arith.constant 0 : index
    %c0_16 = arith.constant 0 : index
    %15 = vector.load %arg2[%c2_14, %c0_15, %c0_16] : memref<9x8x8xbf16, #tpu.memory_space<vmem>>, vector<1x8x8xbf16>
    %16 = vector.shape_cast %15 : vector<1x8x8xbf16> to vector<8x8xbf16>
    %cst_17 = arith.constant dense<0.000000e+00> : vector<8x288xf32>
    %17 = tpu.matmul %16, %14, %cst_17 {dimension_numbers = #tpu.dot_dimension_numbers<[1], [0], [0], [1], [0, 0, 1, 1], [], []>} : vector<8x8xbf16>, vector<8x288xbf16>, vector<8x288xf32> -> vector<8x288xf32>
    %18 = arith.addf %12, %17 : vector<8x288xf32>
    %c0_18 = arith.constant 0 : index
    %c0_19 = arith.constant 0 : index
    %c18 = arith.constant 18 : index
    %19 = vector.load %arg1[%c0_18, %c0_19, %c18] : memref<1x8x326xbf16, #tpu.memory_space<vmem>>, vector<1x8x288xbf16>
    %20 = vector.shape_cast %19 : vector<1x8x288xbf16> to vector<8x288xbf16>
    %c3 = arith.constant 3 : index
    %c0_20 = arith.constant 0 : index
    %c0_21 = arith.constant 0 : index
    %21 = vector.load %arg2[%c3, %c0_20, %c0_21] : memref<9x8x8xbf16, #tpu.memory_space<vmem>>, vector<1x8x8xbf16>
    %22 = vector.shape_cast %21 : vector<1x8x8xbf16> to vector<8x8xbf16>
    %cst_22 = arith.constant dense<0.000000e+00> : vector<8x288xf32>
    %23 = tpu.matmul %22, %20, %cst_22 {dimension_numbers = #tpu.dot_dimension_numbers<[1], [0], [0], [1], [0, 0, 1, 1], [], []>} : vector<8x8xbf16>, vector<8x288xbf16>, vector<8x288xf32> -> vector<8x288xf32>
    %24 = arith.addf %18, %23 : vector<8x288xf32>
    %c0_23 = arith.constant 0 : index
    %c0_24 = arith.constant 0 : index
    %c19 = arith.constant 19 : index
    %25 = vector.load %arg1[%c0_23, %c0_24, %c19] : memref<1x8x326xbf16, #tpu.memory_space<vmem>>, vector<1x8x288xbf16>
    %26 = vector.shape_cast %25 : vector<1x8x288xbf16> to vector<8x288xbf16>
    %c4 = arith.constant 4 : index
    %c0_25 = arith.constant 0 : index
    %c0_26 = arith.constant 0 : index
    %27 = vector.load %arg2[%c4, %c0_25, %c0_26] : memref<9x8x8xbf16, #tpu.memory_space<vmem>>, vector<1x8x8xbf16>
    %28 = vector.shape_cast %27 : vector<1x8x8xbf16> to vector<8x8xbf16>
    %cst_27 = arith.constant dense<0.000000e+00> : vector<8x288xf32>
    %29 = tpu.matmul %28, %26, %cst_27 {dimension_numbers = #tpu.dot_dimension_numbers<[1], [0], [0], [1], [0, 0, 1, 1], [], []>} : vector<8x8xbf16>, vector<8x288xbf16>, vector<8x288xf32> -> vector<8x288xf32>
    %30 = arith.addf %24, %29 : vector<8x288xf32>
    %c0_28 = arith.constant 0 : index
    %c0_29 = arith.constant 0 : index
    %c20 = arith.constant 20 : index
    %31 = vector.load %arg1[%c0_28, %c0_29, %c20] : memref<1x8x326xbf16, #tpu.memory_space<vmem>>, vector<1x8x288xbf16>
    %32 = vector.shape_cast %31 : vector<1x8x288xbf16> to vector<8x288xbf16>
    %c5 = arith.constant 5 : index
    %c0_30 = arith.constant 0 : index
    %c0_31 = arith.constant 0 : index
    %33 = vector.load %arg2[%c5, %c0_30, %c0_31] : memref<9x8x8xbf16, #tpu.memory_space<vmem>>, vector<1x8x8xbf16>
    %34 = vector.shape_cast %33 : vector<1x8x8xbf16> to vector<8x8xbf16>
    %cst_32 = arith.constant dense<0.000000e+00> : vector<8x288xf32>
    %35 = tpu.matmul %34, %32, %cst_32 {dimension_numbers = #tpu.dot_dimension_numbers<[1], [0], [0], [1], [0, 0, 1, 1], [], []>} : vector<8x8xbf16>, vector<8x288xbf16>, vector<8x288xf32> -> vector<8x288xf32>
    %36 = arith.addf %30, %35 : vector<8x288xf32>
    %c0_33 = arith.constant 0 : index
    %c0_34 = arith.constant 0 : index
    %c36 = arith.constant 36 : index
    %37 = vector.load %arg1[%c0_33, %c0_34, %c36] : memref<1x8x326xbf16, #tpu.memory_space<vmem>>, vector<1x8x288xbf16>
    %38 = vector.shape_cast %37 : vector<1x8x288xbf16> to vector<8x288xbf16>
    %c6 = arith.constant 6 : index
    %c0_35 = arith.constant 0 : index
    %c0_36 = arith.constant 0 : index
    %39 = vector.load %arg2[%c6, %c0_35, %c0_36] : memref<9x8x8xbf16, #tpu.memory_space<vmem>>, vector<1x8x8xbf16>
    %40 = vector.shape_cast %39 : vector<1x8x8xbf16> to vector<8x8xbf16>
    %cst_37 = arith.constant dense<0.000000e+00> : vector<8x288xf32>
    %41 = tpu.matmul %40, %38, %cst_37 {dimension_numbers = #tpu.dot_dimension_numbers<[1], [0], [0], [1], [0, 0, 1, 1], [], []>} : vector<8x8xbf16>, vector<8x288xbf16>, vector<8x288xf32> -> vector<8x288xf32>
    %42 = arith.addf %36, %41 : vector<8x288xf32>
    %c0_38 = arith.constant 0 : index
    %c0_39 = arith.constant 0 : index
    %c37 = arith.constant 37 : index
    %43 = vector.load %arg1[%c0_38, %c0_39, %c37] : memref<1x8x326xbf16, #tpu.memory_space<vmem>>, vector<1x8x288xbf16>
    %44 = vector.shape_cast %43 : vector<1x8x288xbf16> to vector<8x288xbf16>
    %c7 = arith.constant 7 : index
    %c0_40 = arith.constant 0 : index
    %c0_41 = arith.constant 0 : index
    %45 = vector.load %arg2[%c7, %c0_40, %c0_41] : memref<9x8x8xbf16, #tpu.memory_space<vmem>>, vector<1x8x8xbf16>
    %46 = vector.shape_cast %45 : vector<1x8x8xbf16> to vector<8x8xbf16>
    %cst_42 = arith.constant dense<0.000000e+00> : vector<8x288xf32>
    %47 = tpu.matmul %46, %44, %cst_42 {dimension_numbers = #tpu.dot_dimension_numbers<[1], [0], [0], [1], [0, 0, 1, 1], [], []>} : vector<8x8xbf16>, vector<8x288xbf16>, vector<8x288xf32> -> vector<8x288xf32>
    %48 = arith.addf %42, %47 : vector<8x288xf32>
    %c0_43 = arith.constant 0 : index
    %c0_44 = arith.constant 0 : index
    %c38 = arith.constant 38 : index
    %49 = vector.load %arg1[%c0_43, %c0_44, %c38] : memref<1x8x326xbf16, #tpu.memory_space<vmem>>, vector<1x8x288xbf16>
    %50 = vector.shape_cast %49 : vector<1x8x288xbf16> to vector<8x288xbf16>
    %c8 = arith.constant 8 : index
    %c0_45 = arith.constant 0 : index
    %c0_46 = arith.constant 0 : index
    %51 = vector.load %arg2[%c8, %c0_45, %c0_46] : memref<9x8x8xbf16, #tpu.memory_space<vmem>>, vector<1x8x8xbf16>
    %52 = vector.shape_cast %51 : vector<1x8x8xbf16> to vector<8x8xbf16>
    %cst_47 = arith.constant dense<0.000000e+00> : vector<8x288xf32>
    %53 = tpu.matmul %52, %50, %cst_47 {dimension_numbers = #tpu.dot_dimension_numbers<[1], [0], [0], [1], [0, 0, 1, 1], [], []>} : vector<8x8xbf16>, vector<8x288xbf16>, vector<8x288xf32> -> vector<8x288xf32>
    %54 = arith.addf %48, %53 : vector<8x288xf32>
    %c0_48 = arith.constant 0 : index
    %c0_49 = arith.constant 0 : index
    %55 = vector.load %arg3[%c0_48, %c0_49] : memref<8x1xf32, #tpu.memory_space<vmem>>, vector<8x1xf32>
    %56 = vector.broadcast %55 : vector<8x1xf32> to vector<8x288xf32>
    %57 = arith.addf %54, %56 : vector<8x288xf32>
    %cst_50 = arith.constant 0.000000e+00 : f32
    %58 = vector.broadcast %cst_50 : f32 to vector<8x288xf32>
    %59 = arith.cmpf oge, %57, %58 : vector<8x288xf32>
    %c0_51 = arith.constant 0 : index
    %c0_52 = arith.constant 0 : index
    %60 = vector.load %arg4[%c0_51, %c0_52] : memref<1x1xf32, #tpu.memory_space<vmem>>, vector<1x1xf32>
    %61 = vector.broadcast %60 : vector<1x1xf32> to vector<8x288xf32>
    %62 = arith.mulf %61, %57 : vector<8x288xf32>
    %63 = arith.select %59, %57, %62 : vector<8x288xi1>, vector<8x288xf32>
    %64 = arith.truncf %63 : vector<8x288xf32> to vector<8x288xbf16>
    %c0_53 = arith.constant 0 : index
    %c0_54 = arith.constant 0 : index
    %c0_55 = arith.constant 0 : index
    %65 = vector.load %arg5[%c0_53, %c0_54, %c0_55] : memref<1x8x288xbf16, #tpu.memory_space<vmem>>, vector<1x8x288xbf16>
    %66 = vector.shape_cast %65 : vector<1x8x288xbf16> to vector<8x288xbf16>
    %67 = vector.shape_cast %64 : vector<8x288xbf16> to vector<1x8x288xbf16>
    tpu.vector_store %arg5[%c0_53, %c0_54, %c0_55], %67 {strides = array<i32>} : memref<1x8x288xbf16, #tpu.memory_space<vmem>>, vector<1x8x288xbf16>,
    return
  }
  func.func @transform_0(%arg0: i32) -> (i32, i32, i32) {
    %c0_i32 = arith.constant 0 : i32
    %c0_i32_0 = arith.constant 0 : i32
    %c0_i32_1 = arith.constant 0 : i32
    return %arg0, %c0_i32, %c0_i32_0 : i32, i32, i32
  }
  func.func @transform_1(%arg0: i32) -> (i32, i32, i32) {
    %c0_i32 = arith.constant 0 : i32
    %c0_i32_0 = arith.constant 0 : i32
    %c0_i32_1 = arith.constant 0 : i32
    %c0_i32_2 = arith.constant 0 : i32
    return %c0_i32, %c0_i32_0, %c0_i32_1 : i32, i32, i32
  }
  func.func @transform_2(%arg0: i32) -> (i32, i32) {
    %c0_i32 = arith.constant 0 : i32
    %c0_i32_0 = arith.constant 0 : i32
    %c0_i32_1 = arith.constant 0 : i32
    return %c0_i32, %c0_i32_0 : i32, i32
  }
  func.func @transform_3(%arg0: i32) -> (i32, i32) {
    %c0_i32 = arith.constant 0 : i32
    %c0_i32_0 = arith.constant 0 : i32
    %c0_i32_1 = arith.constant 0 : i32
    return %c0_i32, %c0_i32_0 : i32, i32
  }
  func.func @transform_4(%arg0: i32) -> (i32, i32, i32) {
    %c0_i32 = arith.constant 0 : i32
    %c0_i32_0 = arith.constant 0 : i32
    %c0_i32_1 = arith.constant 0 : i32
    return %arg0, %c0_i32, %c0_i32_0 : i32, i32, i32
  }
}

module attributes {stable_mosaic.version = 11 : i64} {
  func.func @kern(%arg0: i32, %arg1: memref<1x8x326xbf16, #tpu.memory_space<vmem>>, %arg2: memref<9x8x8xbf16, #tpu.memory_space<vmem>>, %arg3: memref<8x1xf32, #tpu.memory_space<vmem>>, %arg4: memref<1x8x288xbf16, #tpu.memory_space<vmem>>, %arg5: memref<1x8x288xbf16, #tpu.memory_space<vmem>>) attributes {dimension_semantics = [#tpu.dimension_semantics<parallel>], iteration_bounds = array<i64: 2>, scalar_prefetch = 0 : i64, scratch_operands = 0 : i64, tpu.core_type = #tpu.core_type<tc>, window_params = [{transform_indices = @transform_0, window_bounds = array<i64: 1, 8, 326>}, {pipeline_mode = #tpu.pipeline_mode<synchronous>, transform_indices = @transform_1, window_bounds = array<i64: 9, 8, 8>}, {pipeline_mode = #tpu.pipeline_mode<synchronous>, transform_indices = @transform_2, window_bounds = array<i64: 8, 1>}, {transform_indices = @transform_3, window_bounds = array<i64: 1, 8, 288>}, {transform_indices = @transform_4, window_bounds = array<i64: 1, 8, 288>}]} {
    %cst = arith.constant 0.000000e+00 : f32
    %0 = vector.broadcast %cst : f32 to vector<8x288xf32>
    %c0 = arith.constant 0 : index
    %c0_0 = arith.constant 0 : index
    %c0_1 = arith.constant 0 : index
    %1 = vector.load %arg1[%c0, %c0_0, %c0_1] : memref<1x8x326xbf16, #tpu.memory_space<vmem>>, vector<1x8x288xbf16>
    %2 = vector.shape_cast %1 : vector<1x8x288xbf16> to vector<8x288xbf16>
    %c0_2 = arith.constant 0 : index
    %c0_3 = arith.constant 0 : index
    %c0_4 = arith.constant 0 : index
    %3 = vector.load %arg2[%c0_2, %c0_3, %c0_4] : memref<9x8x8xbf16, #tpu.memory_space<vmem>>, vector<1x8x8xbf16>
    %4 = vector.shape_cast %3 : vector<1x8x8xbf16> to vector<8x8xbf16>
    %cst_5 = arith.constant dense<0.000000e+00> : vector<8x288xf32>
    %5 = tpu.matmul %4, %2, %cst_5 {dimension_numbers = #tpu.dot_dimension_numbers<[1], [0], [0], [1], [0, 0, 1, 1], [], []>} : vector<8x8xbf16>, vector<8x288xbf16>, vector<8x288xf32> -> vector<8x288xf32>
    %6 = arith.addf %0, %5 : vector<8x288xf32>
    %c0_6 = arith.constant 0 : index
    %c0_7 = arith.constant 0 : index
    %c1 = arith.constant 1 : index
    %7 = vector.load %arg1[%c0_6, %c0_7, %c1] : memref<1x8x326xbf16, #tpu.memory_space<vmem>>, vector<1x8x288xbf16>
    %8 = vector.shape_cast %7 : vector<1x8x288xbf16> to vector<8x288xbf16>
    %c1_8 = arith.constant 1 : index
    %c0_9 = arith.constant 0 : index
    %c0_10 = arith.constant 0 : index
    %9 = vector.load %arg2[%c1_8, %c0_9, %c0_10] : memref<9x8x8xbf16, #tpu.memory_space<vmem>>, vector<1x8x8xbf16>
    %10 = vector.shape_cast %9 : vector<1x8x8xbf16> to vector<8x8xbf16>
    %cst_11 = arith.constant dense<0.000000e+00> : vector<8x288xf32>
    %11 = tpu.matmul %10, %8, %cst_11 {dimension_numbers = #tpu.dot_dimension_numbers<[1], [0], [0], [1], [0, 0, 1, 1], [], []>} : vector<8x8xbf16>, vector<8x288xbf16>, vector<8x288xf32> -> vector<8x288xf32>
    %12 = arith.addf %6, %11 : vector<8x288xf32>
    %c0_12 = arith.constant 0 : index
    %c0_13 = arith.constant 0 : index
    %c2 = arith.constant 2 : index
    %13 = vector.load %arg1[%c0_12, %c0_13, %c2] : memref<1x8x326xbf16, #tpu.memory_space<vmem>>, vector<1x8x288xbf16>
    %14 = vector.shape_cast %13 : vector<1x8x288xbf16> to vector<8x288xbf16>
    %c2_14 = arith.constant 2 : index
    %c0_15 = arith.constant 0 : index
    %c0_16 = arith.constant 0 : index
    %15 = vector.load %arg2[%c2_14, %c0_15, %c0_16] : memref<9x8x8xbf16, #tpu.memory_space<vmem>>, vector<1x8x8xbf16>
    %16 = vector.shape_cast %15 : vector<1x8x8xbf16> to vector<8x8xbf16>
    %cst_17 = arith.constant dense<0.000000e+00> : vector<8x288xf32>
    %17 = tpu.matmul %16, %14, %cst_17 {dimension_numbers = #tpu.dot_dimension_numbers<[1], [0], [0], [1], [0, 0, 1, 1], [], []>} : vector<8x8xbf16>, vector<8x288xbf16>, vector<8x288xf32> -> vector<8x288xf32>
    %18 = arith.addf %12, %17 : vector<8x288xf32>
    %c0_18 = arith.constant 0 : index
    %c0_19 = arith.constant 0 : index
    %c18 = arith.constant 18 : index
    %19 = vector.load %arg1[%c0_18, %c0_19, %c18] : memref<1x8x326xbf16, #tpu.memory_space<vmem>>, vector<1x8x288xbf16>
    %20 = vector.shape_cast %19 : vector<1x8x288xbf16> to vector<8x288xbf16>
    %c3 = arith.constant 3 : index
    %c0_20 = arith.constant 0 : index
    %c0_21 = arith.constant 0 : index
    %21 = vector.load %arg2[%c3, %c0_20, %c0_21] : memref<9x8x8xbf16, #tpu.memory_space<vmem>>, vector<1x8x8xbf16>
    %22 = vector.shape_cast %21 : vector<1x8x8xbf16> to vector<8x8xbf16>
    %cst_22 = arith.constant dense<0.000000e+00> : vector<8x288xf32>
    %23 = tpu.matmul %22, %20, %cst_22 {dimension_numbers = #tpu.dot_dimension_numbers<[1], [0], [0], [1], [0, 0, 1, 1], [], []>} : vector<8x8xbf16>, vector<8x288xbf16>, vector<8x288xf32> -> vector<8x288xf32>
    %24 = arith.addf %18, %23 : vector<8x288xf32>
    %c0_23 = arith.constant 0 : index
    %c0_24 = arith.constant 0 : index
    %c19 = arith.constant 19 : index
    %25 = vector.load %arg1[%c0_23, %c0_24, %c19] : memref<1x8x326xbf16, #tpu.memory_space<vmem>>, vector<1x8x288xbf16>
    %26 = vector.shape_cast %25 : vector<1x8x288xbf16> to vector<8x288xbf16>
    %c4 = arith.constant 4 : index
    %c0_25 = arith.constant 0 : index
    %c0_26 = arith.constant 0 : index
    %27 = vector.load %arg2[%c4, %c0_25, %c0_26] : memref<9x8x8xbf16, #tpu.memory_space<vmem>>, vector<1x8x8xbf16>
    %28 = vector.shape_cast %27 : vector<1x8x8xbf16> to vector<8x8xbf16>
    %cst_27 = arith.constant dense<0.000000e+00> : vector<8x288xf32>
    %29 = tpu.matmul %28, %26, %cst_27 {dimension_numbers = #tpu.dot_dimension_numbers<[1], [0], [0], [1], [0, 0, 1, 1], [], []>} : vector<8x8xbf16>, vector<8x288xbf16>, vector<8x288xf32> -> vector<8x288xf32>
    %30 = arith.addf %24, %29 : vector<8x288xf32>
    %c0_28 = arith.constant 0 : index
    %c0_29 = arith.constant 0 : index
    %c20 = arith.constant 20 : index
    %31 = vector.load %arg1[%c0_28, %c0_29, %c20] : memref<1x8x326xbf16, #tpu.memory_space<vmem>>, vector<1x8x288xbf16>
    %32 = vector.shape_cast %31 : vector<1x8x288xbf16> to vector<8x288xbf16>
    %c5 = arith.constant 5 : index
    %c0_30 = arith.constant 0 : index
    %c0_31 = arith.constant 0 : index
    %33 = vector.load %arg2[%c5, %c0_30, %c0_31] : memref<9x8x8xbf16, #tpu.memory_space<vmem>>, vector<1x8x8xbf16>
    %34 = vector.shape_cast %33 : vector<1x8x8xbf16> to vector<8x8xbf16>
    %cst_32 = arith.constant dense<0.000000e+00> : vector<8x288xf32>
    %35 = tpu.matmul %34, %32, %cst_32 {dimension_numbers = #tpu.dot_dimension_numbers<[1], [0], [0], [1], [0, 0, 1, 1], [], []>} : vector<8x8xbf16>, vector<8x288xbf16>, vector<8x288xf32> -> vector<8x288xf32>
    %36 = arith.addf %30, %35 : vector<8x288xf32>
    %c0_33 = arith.constant 0 : index
    %c0_34 = arith.constant 0 : index
    %c36 = arith.constant 36 : index
    %37 = vector.load %arg1[%c0_33, %c0_34, %c36] : memref<1x8x326xbf16, #tpu.memory_space<vmem>>, vector<1x8x288xbf16>
    %38 = vector.shape_cast %37 : vector<1x8x288xbf16> to vector<8x288xbf16>
    %c6 = arith.constant 6 : index
    %c0_35 = arith.constant 0 : index
    %c0_36 = arith.constant 0 : index
    %39 = vector.load %arg2[%c6, %c0_35, %c0_36] : memref<9x8x8xbf16, #tpu.memory_space<vmem>>, vector<1x8x8xbf16>
    %40 = vector.shape_cast %39 : vector<1x8x8xbf16> to vector<8x8xbf16>
    %cst_37 = arith.constant dense<0.000000e+00> : vector<8x288xf32>
    %41 = tpu.matmul %40, %38, %cst_37 {dimension_numbers = #tpu.dot_dimension_numbers<[1], [0], [0], [1], [0, 0, 1, 1], [], []>} : vector<8x8xbf16>, vector<8x288xbf16>, vector<8x288xf32> -> vector<8x288xf32>
    %42 = arith.addf %36, %41 : vector<8x288xf32>
    %c0_38 = arith.constant 0 : index
    %c0_39 = arith.constant 0 : index
    %c37 = arith.constant 37 : index
    %43 = vector.load %arg1[%c0_38, %c0_39, %c37] : memref<1x8x326xbf16, #tpu.memory_space<vmem>>, vector<1x8x288xbf16>
    %44 = vector.shape_cast %43 : vector<1x8x288xbf16> to vector<8x288xbf16>
    %c7 = arith.constant 7 : index
    %c0_40 = arith.constant 0 : index
    %c0_41 = arith.constant 0 : index
    %45 = vector.load %arg2[%c7, %c0_40, %c0_41] : memref<9x8x8xbf16, #tpu.memory_space<vmem>>, vector<1x8x8xbf16>
    %46 = vector.shape_cast %45 : vector<1x8x8xbf16> to vector<8x8xbf16>
    %cst_42 = arith.constant dense<0.000000e+00> : vector<8x288xf32>
    %47 = tpu.matmul %46, %44, %cst_42 {dimension_numbers = #tpu.dot_dimension_numbers<[1], [0], [0], [1], [0, 0, 1, 1], [], []>} : vector<8x8xbf16>, vector<8x288xbf16>, vector<8x288xf32> -> vector<8x288xf32>
    %48 = arith.addf %42, %47 : vector<8x288xf32>
    %c0_43 = arith.constant 0 : index
    %c0_44 = arith.constant 0 : index
    %c38 = arith.constant 38 : index
    %49 = vector.load %arg1[%c0_43, %c0_44, %c38] : memref<1x8x326xbf16, #tpu.memory_space<vmem>>, vector<1x8x288xbf16>
    %50 = vector.shape_cast %49 : vector<1x8x288xbf16> to vector<8x288xbf16>
    %c8 = arith.constant 8 : index
    %c0_45 = arith.constant 0 : index
    %c0_46 = arith.constant 0 : index
    %51 = vector.load %arg2[%c8, %c0_45, %c0_46] : memref<9x8x8xbf16, #tpu.memory_space<vmem>>, vector<1x8x8xbf16>
    %52 = vector.shape_cast %51 : vector<1x8x8xbf16> to vector<8x8xbf16>
    %cst_47 = arith.constant dense<0.000000e+00> : vector<8x288xf32>
    %53 = tpu.matmul %52, %50, %cst_47 {dimension_numbers = #tpu.dot_dimension_numbers<[1], [0], [0], [1], [0, 0, 1, 1], [], []>} : vector<8x8xbf16>, vector<8x288xbf16>, vector<8x288xf32> -> vector<8x288xf32>
    %54 = arith.addf %48, %53 : vector<8x288xf32>
    %c0_48 = arith.constant 0 : index
    %c0_49 = arith.constant 0 : index
    %55 = vector.load %arg3[%c0_48, %c0_49] : memref<8x1xf32, #tpu.memory_space<vmem>>, vector<8x1xf32>
    %56 = vector.broadcast %55 : vector<8x1xf32> to vector<8x288xf32>
    %57 = arith.addf %54, %56 : vector<8x288xf32>
    %c0_50 = arith.constant 0 : index
    %c0_51 = arith.constant 0 : index
    %c0_52 = arith.constant 0 : index
    %58 = vector.load %arg4[%c0_50, %c0_51, %c0_52] : memref<1x8x288xbf16, #tpu.memory_space<vmem>>, vector<1x8x288xbf16>
    %59 = vector.shape_cast %58 : vector<1x8x288xbf16> to vector<8x288xbf16>
    %60 = arith.extf %59 : vector<8x288xbf16> to vector<8x288xf32>
    %61 = arith.addf %57, %60 : vector<8x288xf32>
    %62 = arith.truncf %61 : vector<8x288xf32> to vector<8x288xbf16>
    %c0_53 = arith.constant 0 : index
    %c0_54 = arith.constant 0 : index
    %c0_55 = arith.constant 0 : index
    %63 = vector.load %arg5[%c0_53, %c0_54, %c0_55] : memref<1x8x288xbf16, #tpu.memory_space<vmem>>, vector<1x8x288xbf16>
    %64 = vector.shape_cast %63 : vector<1x8x288xbf16> to vector<8x288xbf16>
    %65 = vector.shape_cast %62 : vector<8x288xbf16> to vector<1x8x288xbf16>
    tpu.vector_store %arg5[%c0_53, %c0_54, %c0_55], %65 {strides = array<i32>} : memref<1x8x288xbf16, #tpu.memory_space<vmem>>, vector<1x8x288xbf16>,
    return
  }
  func.func @transform_0(%arg0: i32) -> (i32, i32, i32) {
    %c0_i32 = arith.constant 0 : i32
    %c0_i32_0 = arith.constant 0 : i32
    %c0_i32_1 = arith.constant 0 : i32
    return %arg0, %c0_i32, %c0_i32_0 : i32, i32, i32
  }
  func.func @transform_1(%arg0: i32) -> (i32, i32, i32) {
    %c0_i32 = arith.constant 0 : i32
    %c0_i32_0 = arith.constant 0 : i32
    %c0_i32_1 = arith.constant 0 : i32
    %c0_i32_2 = arith.constant 0 : i32
    return %c0_i32, %c0_i32_0, %c0_i32_1 : i32, i32, i32
  }
  func.func @transform_2(%arg0: i32) -> (i32, i32) {
    %c0_i32 = arith.constant 0 : i32
    %c0_i32_0 = arith.constant 0 : i32
    %c0_i32_1 = arith.constant 0 : i32
    return %c0_i32, %c0_i32_0 : i32, i32
  }
  func.func @transform_3(%arg0: i32) -> (i32, i32, i32) {
    %c0_i32 = arith.constant 0 : i32
    %c0_i32_0 = arith.constant 0 : i32
    %c0_i32_1 = arith.constant 0 : i32
    return %arg0, %c0_i32, %c0_i32_0 : i32, i32, i32
  }
  func.func @transform_4(%arg0: i32) -> (i32, i32, i32) {
    %c0_i32 = arith.constant 0 : i32
    %c0_i32_0 = arith.constant 0 : i32
    %c0_i32_1 = arith.constant 0 : i32
    return %arg0, %c0_i32, %c0_i32_0 : i32, i32, i32
  }
}

module attributes {stable_mosaic.version = 11 : i64} {
  func.func @kern(%arg0: i32, %arg1: memref<1x32x102xbf16, #tpu.memory_space<vmem>>, %arg2: memref<9x8x32xbf16, #tpu.memory_space<vmem>>, %arg3: memref<8x1xf32, #tpu.memory_space<vmem>>, %arg4: memref<1x1xf32, #tpu.memory_space<vmem>>, %arg5: memref<1x8x80xbf16, #tpu.memory_space<vmem>>) attributes {dimension_semantics = [#tpu.dimension_semantics<parallel>], iteration_bounds = array<i64: 2>, scalar_prefetch = 0 : i64, scratch_operands = 0 : i64, tpu.core_type = #tpu.core_type<tc>, window_params = [{transform_indices = @transform_0, window_bounds = array<i64: 1, 32, 102>}, {pipeline_mode = #tpu.pipeline_mode<synchronous>, transform_indices = @transform_1, window_bounds = array<i64: 9, 8, 32>}, {pipeline_mode = #tpu.pipeline_mode<synchronous>, transform_indices = @transform_2, window_bounds = array<i64: 8, 1>}, {pipeline_mode = #tpu.pipeline_mode<synchronous>, transform_indices = @transform_3, window_bounds = array<i64: 1, 1>}, {transform_indices = @transform_4, window_bounds = array<i64: 1, 8, 80>}]} {
    %cst = arith.constant 0.000000e+00 : f32
    %0 = vector.broadcast %cst : f32 to vector<8x80xf32>
    %c0 = arith.constant 0 : index
    %c0_0 = arith.constant 0 : index
    %c0_1 = arith.constant 0 : index
    %1 = vector.load %arg1[%c0, %c0_0, %c0_1] : memref<1x32x102xbf16, #tpu.memory_space<vmem>>, vector<1x32x80xbf16>
    %2 = vector.shape_cast %1 : vector<1x32x80xbf16> to vector<32x80xbf16>
    %c0_2 = arith.constant 0 : index
    %c0_3 = arith.constant 0 : index
    %c0_4 = arith.constant 0 : index
    %3 = vector.load %arg2[%c0_2, %c0_3, %c0_4] : memref<9x8x32xbf16, #tpu.memory_space<vmem>>, vector<1x8x32xbf16>
    %4 = vector.shape_cast %3 : vector<1x8x32xbf16> to vector<8x32xbf16>
    %cst_5 = arith.constant dense<0.000000e+00> : vector<8x80xf32>
    %5 = tpu.matmul %4, %2, %cst_5 {dimension_numbers = #tpu.dot_dimension_numbers<[1], [0], [0], [1], [0, 0, 1, 1], [], []>} : vector<8x32xbf16>, vector<32x80xbf16>, vector<8x80xf32> -> vector<8x80xf32>
    %6 = arith.addf %0, %5 : vector<8x80xf32>
    %c0_6 = arith.constant 0 : index
    %c0_7 = arith.constant 0 : index
    %c1 = arith.constant 1 : index
    %7 = vector.load %arg1[%c0_6, %c0_7, %c1] : memref<1x32x102xbf16, #tpu.memory_space<vmem>>, vector<1x32x80xbf16>
    %8 = vector.shape_cast %7 : vector<1x32x80xbf16> to vector<32x80xbf16>
    %c1_8 = arith.constant 1 : index
    %c0_9 = arith.constant 0 : index
    %c0_10 = arith.constant 0 : index
    %9 = vector.load %arg2[%c1_8, %c0_9, %c0_10] : memref<9x8x32xbf16, #tpu.memory_space<vmem>>, vector<1x8x32xbf16>
    %10 = vector.shape_cast %9 : vector<1x8x32xbf16> to vector<8x32xbf16>
    %cst_11 = arith.constant dense<0.000000e+00> : vector<8x80xf32>
    %11 = tpu.matmul %10, %8, %cst_11 {dimension_numbers = #tpu.dot_dimension_numbers<[1], [0], [0], [1], [0, 0, 1, 1], [], []>} : vector<8x32xbf16>, vector<32x80xbf16>, vector<8x80xf32> -> vector<8x80xf32>
    %12 = arith.addf %6, %11 : vector<8x80xf32>
    %c0_12 = arith.constant 0 : index
    %c0_13 = arith.constant 0 : index
    %c2 = arith.constant 2 : index
    %13 = vector.load %arg1[%c0_12, %c0_13, %c2] : memref<1x32x102xbf16, #tpu.memory_space<vmem>>, vector<1x32x80xbf16>
    %14 = vector.shape_cast %13 : vector<1x32x80xbf16> to vector<32x80xbf16>
    %c2_14 = arith.constant 2 : index
    %c0_15 = arith.constant 0 : index
    %c0_16 = arith.constant 0 : index
    %15 = vector.load %arg2[%c2_14, %c0_15, %c0_16] : memref<9x8x32xbf16, #tpu.memory_space<vmem>>, vector<1x8x32xbf16>
    %16 = vector.shape_cast %15 : vector<1x8x32xbf16> to vector<8x32xbf16>
    %cst_17 = arith.constant dense<0.000000e+00> : vector<8x80xf32>
    %17 = tpu.matmul %16, %14, %cst_17 {dimension_numbers = #tpu.dot_dimension_numbers<[1], [0], [0], [1], [0, 0, 1, 1], [], []>} : vector<8x32xbf16>, vector<32x80xbf16>, vector<8x80xf32> -> vector<8x80xf32>
    %18 = arith.addf %12, %17 : vector<8x80xf32>
    %c0_18 = arith.constant 0 : index
    %c0_19 = arith.constant 0 : index
    %c10 = arith.constant 10 : index
    %19 = vector.load %arg1[%c0_18, %c0_19, %c10] : memref<1x32x102xbf16, #tpu.memory_space<vmem>>, vector<1x32x80xbf16>
    %20 = vector.shape_cast %19 : vector<1x32x80xbf16> to vector<32x80xbf16>
    %c3 = arith.constant 3 : index
    %c0_20 = arith.constant 0 : index
    %c0_21 = arith.constant 0 : index
    %21 = vector.load %arg2[%c3, %c0_20, %c0_21] : memref<9x8x32xbf16, #tpu.memory_space<vmem>>, vector<1x8x32xbf16>
    %22 = vector.shape_cast %21 : vector<1x8x32xbf16> to vector<8x32xbf16>
    %cst_22 = arith.constant dense<0.000000e+00> : vector<8x80xf32>
    %23 = tpu.matmul %22, %20, %cst_22 {dimension_numbers = #tpu.dot_dimension_numbers<[1], [0], [0], [1], [0, 0, 1, 1], [], []>} : vector<8x32xbf16>, vector<32x80xbf16>, vector<8x80xf32> -> vector<8x80xf32>
    %24 = arith.addf %18, %23 : vector<8x80xf32>
    %c0_23 = arith.constant 0 : index
    %c0_24 = arith.constant 0 : index
    %c11 = arith.constant 11 : index
    %25 = vector.load %arg1[%c0_23, %c0_24, %c11] : memref<1x32x102xbf16, #tpu.memory_space<vmem>>, vector<1x32x80xbf16>
    %26 = vector.shape_cast %25 : vector<1x32x80xbf16> to vector<32x80xbf16>
    %c4 = arith.constant 4 : index
    %c0_25 = arith.constant 0 : index
    %c0_26 = arith.constant 0 : index
    %27 = vector.load %arg2[%c4, %c0_25, %c0_26] : memref<9x8x32xbf16, #tpu.memory_space<vmem>>, vector<1x8x32xbf16>
    %28 = vector.shape_cast %27 : vector<1x8x32xbf16> to vector<8x32xbf16>
    %cst_27 = arith.constant dense<0.000000e+00> : vector<8x80xf32>
    %29 = tpu.matmul %28, %26, %cst_27 {dimension_numbers = #tpu.dot_dimension_numbers<[1], [0], [0], [1], [0, 0, 1, 1], [], []>} : vector<8x32xbf16>, vector<32x80xbf16>, vector<8x80xf32> -> vector<8x80xf32>
    %30 = arith.addf %24, %29 : vector<8x80xf32>
    %c0_28 = arith.constant 0 : index
    %c0_29 = arith.constant 0 : index
    %c12 = arith.constant 12 : index
    %31 = vector.load %arg1[%c0_28, %c0_29, %c12] : memref<1x32x102xbf16, #tpu.memory_space<vmem>>, vector<1x32x80xbf16>
    %32 = vector.shape_cast %31 : vector<1x32x80xbf16> to vector<32x80xbf16>
    %c5 = arith.constant 5 : index
    %c0_30 = arith.constant 0 : index
    %c0_31 = arith.constant 0 : index
    %33 = vector.load %arg2[%c5, %c0_30, %c0_31] : memref<9x8x32xbf16, #tpu.memory_space<vmem>>, vector<1x8x32xbf16>
    %34 = vector.shape_cast %33 : vector<1x8x32xbf16> to vector<8x32xbf16>
    %cst_32 = arith.constant dense<0.000000e+00> : vector<8x80xf32>
    %35 = tpu.matmul %34, %32, %cst_32 {dimension_numbers = #tpu.dot_dimension_numbers<[1], [0], [0], [1], [0, 0, 1, 1], [], []>} : vector<8x32xbf16>, vector<32x80xbf16>, vector<8x80xf32> -> vector<8x80xf32>
    %36 = arith.addf %30, %35 : vector<8x80xf32>
    %c0_33 = arith.constant 0 : index
    %c0_34 = arith.constant 0 : index
    %c20 = arith.constant 20 : index
    %37 = vector.load %arg1[%c0_33, %c0_34, %c20] : memref<1x32x102xbf16, #tpu.memory_space<vmem>>, vector<1x32x80xbf16>
    %38 = vector.shape_cast %37 : vector<1x32x80xbf16> to vector<32x80xbf16>
    %c6 = arith.constant 6 : index
    %c0_35 = arith.constant 0 : index
    %c0_36 = arith.constant 0 : index
    %39 = vector.load %arg2[%c6, %c0_35, %c0_36] : memref<9x8x32xbf16, #tpu.memory_space<vmem>>, vector<1x8x32xbf16>
    %40 = vector.shape_cast %39 : vector<1x8x32xbf16> to vector<8x32xbf16>
    %cst_37 = arith.constant dense<0.000000e+00> : vector<8x80xf32>
    %41 = tpu.matmul %40, %38, %cst_37 {dimension_numbers = #tpu.dot_dimension_numbers<[1], [0], [0], [1], [0, 0, 1, 1], [], []>} : vector<8x32xbf16>, vector<32x80xbf16>, vector<8x80xf32> -> vector<8x80xf32>
    %42 = arith.addf %36, %41 : vector<8x80xf32>
    %c0_38 = arith.constant 0 : index
    %c0_39 = arith.constant 0 : index
    %c21 = arith.constant 21 : index
    %43 = vector.load %arg1[%c0_38, %c0_39, %c21] : memref<1x32x102xbf16, #tpu.memory_space<vmem>>, vector<1x32x80xbf16>
    %44 = vector.shape_cast %43 : vector<1x32x80xbf16> to vector<32x80xbf16>
    %c7 = arith.constant 7 : index
    %c0_40 = arith.constant 0 : index
    %c0_41 = arith.constant 0 : index
    %45 = vector.load %arg2[%c7, %c0_40, %c0_41] : memref<9x8x32xbf16, #tpu.memory_space<vmem>>, vector<1x8x32xbf16>
    %46 = vector.shape_cast %45 : vector<1x8x32xbf16> to vector<8x32xbf16>
    %cst_42 = arith.constant dense<0.000000e+00> : vector<8x80xf32>
    %47 = tpu.matmul %46, %44, %cst_42 {dimension_numbers = #tpu.dot_dimension_numbers<[1], [0], [0], [1], [0, 0, 1, 1], [], []>} : vector<8x32xbf16>, vector<32x80xbf16>, vector<8x80xf32> -> vector<8x80xf32>
    %48 = arith.addf %42, %47 : vector<8x80xf32>
    %c0_43 = arith.constant 0 : index
    %c0_44 = arith.constant 0 : index
    %c22 = arith.constant 22 : index
    %49 = vector.load %arg1[%c0_43, %c0_44, %c22] : memref<1x32x102xbf16, #tpu.memory_space<vmem>>, vector<1x32x80xbf16>
    %50 = vector.shape_cast %49 : vector<1x32x80xbf16> to vector<32x80xbf16>
    %c8 = arith.constant 8 : index
    %c0_45 = arith.constant 0 : index
    %c0_46 = arith.constant 0 : index
    %51 = vector.load %arg2[%c8, %c0_45, %c0_46] : memref<9x8x32xbf16, #tpu.memory_space<vmem>>, vector<1x8x32xbf16>
    %52 = vector.shape_cast %51 : vector<1x8x32xbf16> to vector<8x32xbf16>
    %cst_47 = arith.constant dense<0.000000e+00> : vector<8x80xf32>
    %53 = tpu.matmul %52, %50, %cst_47 {dimension_numbers = #tpu.dot_dimension_numbers<[1], [0], [0], [1], [0, 0, 1, 1], [], []>} : vector<8x32xbf16>, vector<32x80xbf16>, vector<8x80xf32> -> vector<8x80xf32>
    %54 = arith.addf %48, %53 : vector<8x80xf32>
    %c0_48 = arith.constant 0 : index
    %c0_49 = arith.constant 0 : index
    %55 = vector.load %arg3[%c0_48, %c0_49] : memref<8x1xf32, #tpu.memory_space<vmem>>, vector<8x1xf32>
    %56 = vector.broadcast %55 : vector<8x1xf32> to vector<8x80xf32>
    %57 = arith.addf %54, %56 : vector<8x80xf32>
    %cst_50 = arith.constant 0.000000e+00 : f32
    %58 = vector.broadcast %cst_50 : f32 to vector<8x80xf32>
    %59 = arith.cmpf oge, %57, %58 : vector<8x80xf32>
    %c0_51 = arith.constant 0 : index
    %c0_52 = arith.constant 0 : index
    %60 = vector.load %arg4[%c0_51, %c0_52] : memref<1x1xf32, #tpu.memory_space<vmem>>, vector<1x1xf32>
    %61 = vector.broadcast %60 : vector<1x1xf32> to vector<8x80xf32>
    %62 = arith.mulf %61, %57 : vector<8x80xf32>
    %63 = arith.select %59, %57, %62 : vector<8x80xi1>, vector<8x80xf32>
    %64 = arith.truncf %63 : vector<8x80xf32> to vector<8x80xbf16>
    %c0_53 = arith.constant 0 : index
    %c0_54 = arith.constant 0 : index
    %c0_55 = arith.constant 0 : index
    %65 = vector.load %arg5[%c0_53, %c0_54, %c0_55] : memref<1x8x80xbf16, #tpu.memory_space<vmem>>, vector<1x8x80xbf16>
    %66 = vector.shape_cast %65 : vector<1x8x80xbf16> to vector<8x80xbf16>
    %67 = vector.shape_cast %64 : vector<8x80xbf16> to vector<1x8x80xbf16>
    tpu.vector_store %arg5[%c0_53, %c0_54, %c0_55], %67 {strides = array<i32>} : memref<1x8x80xbf16, #tpu.memory_space<vmem>>, vector<1x8x80xbf16>,
    return
  }
  func.func @transform_0(%arg0: i32) -> (i32, i32, i32) {
    %c0_i32 = arith.constant 0 : i32
    %c0_i32_0 = arith.constant 0 : i32
    %c0_i32_1 = arith.constant 0 : i32
    return %arg0, %c0_i32, %c0_i32_0 : i32, i32, i32
  }
  func.func @transform_1(%arg0: i32) -> (i32, i32, i32) {
    %c0_i32 = arith.constant 0 : i32
    %c0_i32_0 = arith.constant 0 : i32
    %c0_i32_1 = arith.constant 0 : i32
    %c0_i32_2 = arith.constant 0 : i32
    return %c0_i32, %c0_i32_0, %c0_i32_1 : i32, i32, i32
  }
  func.func @transform_2(%arg0: i32) -> (i32, i32) {
    %c0_i32 = arith.constant 0 : i32
    %c0_i32_0 = arith.constant 0 : i32
    %c0_i32_1 = arith.constant 0 : i32
    return %c0_i32, %c0_i32_0 : i32, i32
  }
  func.func @transform_3(%arg0: i32) -> (i32, i32) {
    %c0_i32 = arith.constant 0 : i32
    %c0_i32_0 = arith.constant 0 : i32
    %c0_i32_1 = arith.constant 0 : i32
    return %c0_i32, %c0_i32_0 : i32, i32
  }
  func.func @transform_4(%arg0: i32) -> (i32, i32, i32) {
    %c0_i32 = arith.constant 0 : i32
    %c0_i32_0 = arith.constant 0 : i32
    %c0_i32_1 = arith.constant 0 : i32
    return %arg0, %c0_i32, %c0_i32_0 : i32, i32, i32
  }
}

module attributes {stable_mosaic.version = 11 : i64} {
  func.func @kern(%arg0: i32, %arg1: memref<1x16x326xbf16, #tpu.memory_space<vmem>>, %arg2: memref<9x3x16xbf16, #tpu.memory_space<vmem>>, %arg3: memref<3x1xf32, #tpu.memory_space<vmem>>, %arg4: memref<1x3x288xf32, #tpu.memory_space<vmem>>) attributes {dimension_semantics = [#tpu.dimension_semantics<parallel>], iteration_bounds = array<i64: 2>, scalar_prefetch = 0 : i64, scratch_operands = 0 : i64, tpu.core_type = #tpu.core_type<tc>, window_params = [{transform_indices = @transform_0, window_bounds = array<i64: 1, 16, 326>}, {pipeline_mode = #tpu.pipeline_mode<synchronous>, transform_indices = @transform_1, window_bounds = array<i64: 9, 3, 16>}, {pipeline_mode = #tpu.pipeline_mode<synchronous>, transform_indices = @transform_2, window_bounds = array<i64: 3, 1>}, {transform_indices = @transform_3, window_bounds = array<i64: 1, 3, 288>}]} {
    %cst = arith.constant 0.000000e+00 : f32
    %0 = vector.broadcast %cst : f32 to vector<3x288xf32>
    %c0 = arith.constant 0 : index
    %c0_0 = arith.constant 0 : index
    %c0_1 = arith.constant 0 : index
    %1 = vector.load %arg1[%c0, %c0_0, %c0_1] : memref<1x16x326xbf16, #tpu.memory_space<vmem>>, vector<1x16x288xbf16>
    %2 = vector.shape_cast %1 : vector<1x16x288xbf16> to vector<16x288xbf16>
    %c0_2 = arith.constant 0 : index
    %c0_3 = arith.constant 0 : index
    %c0_4 = arith.constant 0 : index
    %3 = vector.load %arg2[%c0_2, %c0_3, %c0_4] : memref<9x3x16xbf16, #tpu.memory_space<vmem>>, vector<1x3x16xbf16>
    %4 = vector.shape_cast %3 : vector<1x3x16xbf16> to vector<3x16xbf16>
    %cst_5 = arith.constant dense<0.000000e+00> : vector<3x288xf32>
    %5 = tpu.matmul %4, %2, %cst_5 {dimension_numbers = #tpu.dot_dimension_numbers<[1], [0], [0], [1], [0, 0, 1, 1], [], []>} : vector<3x16xbf16>, vector<16x288xbf16>, vector<3x288xf32> -> vector<3x288xf32>
    %6 = arith.addf %0, %5 : vector<3x288xf32>
    %c0_6 = arith.constant 0 : index
    %c0_7 = arith.constant 0 : index
    %c1 = arith.constant 1 : index
    %7 = vector.load %arg1[%c0_6, %c0_7, %c1] : memref<1x16x326xbf16, #tpu.memory_space<vmem>>, vector<1x16x288xbf16>
    %8 = vector.shape_cast %7 : vector<1x16x288xbf16> to vector<16x288xbf16>
    %c1_8 = arith.constant 1 : index
    %c0_9 = arith.constant 0 : index
    %c0_10 = arith.constant 0 : index
    %9 = vector.load %arg2[%c1_8, %c0_9, %c0_10] : memref<9x3x16xbf16, #tpu.memory_space<vmem>>, vector<1x3x16xbf16>
    %10 = vector.shape_cast %9 : vector<1x3x16xbf16> to vector<3x16xbf16>
    %cst_11 = arith.constant dense<0.000000e+00> : vector<3x288xf32>
    %11 = tpu.matmul %10, %8, %cst_11 {dimension_numbers = #tpu.dot_dimension_numbers<[1], [0], [0], [1], [0, 0, 1, 1], [], []>} : vector<3x16xbf16>, vector<16x288xbf16>, vector<3x288xf32> -> vector<3x288xf32>
    %12 = arith.addf %6, %11 : vector<3x288xf32>
    %c0_12 = arith.constant 0 : index
    %c0_13 = arith.constant 0 : index
    %c2 = arith.constant 2 : index
    %13 = vector.load %arg1[%c0_12, %c0_13, %c2] : memref<1x16x326xbf16, #tpu.memory_space<vmem>>, vector<1x16x288xbf16>
    %14 = vector.shape_cast %13 : vector<1x16x288xbf16> to vector<16x288xbf16>
    %c2_14 = arith.constant 2 : index
    %c0_15 = arith.constant 0 : index
    %c0_16 = arith.constant 0 : index
    %15 = vector.load %arg2[%c2_14, %c0_15, %c0_16] : memref<9x3x16xbf16, #tpu.memory_space<vmem>>, vector<1x3x16xbf16>
    %16 = vector.shape_cast %15 : vector<1x3x16xbf16> to vector<3x16xbf16>
    %cst_17 = arith.constant dense<0.000000e+00> : vector<3x288xf32>
    %17 = tpu.matmul %16, %14, %cst_17 {dimension_numbers = #tpu.dot_dimension_numbers<[1], [0], [0], [1], [0, 0, 1, 1], [], []>} : vector<3x16xbf16>, vector<16x288xbf16>, vector<3x288xf32> -> vector<3x288xf32>
    %18 = arith.addf %12, %17 : vector<3x288xf32>
    %c0_18 = arith.constant 0 : index
    %c0_19 = arith.constant 0 : index
    %c18 = arith.constant 18 : index
    %19 = vector.load %arg1[%c0_18, %c0_19, %c18] : memref<1x16x326xbf16, #tpu.memory_space<vmem>>, vector<1x16x288xbf16>
    %20 = vector.shape_cast %19 : vector<1x16x288xbf16> to vector<16x288xbf16>
    %c3 = arith.constant 3 : index
    %c0_20 = arith.constant 0 : index
    %c0_21 = arith.constant 0 : index
    %21 = vector.load %arg2[%c3, %c0_20, %c0_21] : memref<9x3x16xbf16, #tpu.memory_space<vmem>>, vector<1x3x16xbf16>
    %22 = vector.shape_cast %21 : vector<1x3x16xbf16> to vector<3x16xbf16>
    %cst_22 = arith.constant dense<0.000000e+00> : vector<3x288xf32>
    %23 = tpu.matmul %22, %20, %cst_22 {dimension_numbers = #tpu.dot_dimension_numbers<[1], [0], [0], [1], [0, 0, 1, 1], [], []>} : vector<3x16xbf16>, vector<16x288xbf16>, vector<3x288xf32> -> vector<3x288xf32>
    %24 = arith.addf %18, %23 : vector<3x288xf32>
    %c0_23 = arith.constant 0 : index
    %c0_24 = arith.constant 0 : index
    %c19 = arith.constant 19 : index
    %25 = vector.load %arg1[%c0_23, %c0_24, %c19] : memref<1x16x326xbf16, #tpu.memory_space<vmem>>, vector<1x16x288xbf16>
    %26 = vector.shape_cast %25 : vector<1x16x288xbf16> to vector<16x288xbf16>
    %c4 = arith.constant 4 : index
    %c0_25 = arith.constant 0 : index
    %c0_26 = arith.constant 0 : index
    %27 = vector.load %arg2[%c4, %c0_25, %c0_26] : memref<9x3x16xbf16, #tpu.memory_space<vmem>>, vector<1x3x16xbf16>
    %28 = vector.shape_cast %27 : vector<1x3x16xbf16> to vector<3x16xbf16>
    %cst_27 = arith.constant dense<0.000000e+00> : vector<3x288xf32>
    %29 = tpu.matmul %28, %26, %cst_27 {dimension_numbers = #tpu.dot_dimension_numbers<[1], [0], [0], [1], [0, 0, 1, 1], [], []>} : vector<3x16xbf16>, vector<16x288xbf16>, vector<3x288xf32> -> vector<3x288xf32>
    %30 = arith.addf %24, %29 : vector<3x288xf32>
    %c0_28 = arith.constant 0 : index
    %c0_29 = arith.constant 0 : index
    %c20 = arith.constant 20 : index
    %31 = vector.load %arg1[%c0_28, %c0_29, %c20] : memref<1x16x326xbf16, #tpu.memory_space<vmem>>, vector<1x16x288xbf16>
    %32 = vector.shape_cast %31 : vector<1x16x288xbf16> to vector<16x288xbf16>
    %c5 = arith.constant 5 : index
    %c0_30 = arith.constant 0 : index
    %c0_31 = arith.constant 0 : index
    %33 = vector.load %arg2[%c5, %c0_30, %c0_31] : memref<9x3x16xbf16, #tpu.memory_space<vmem>>, vector<1x3x16xbf16>
    %34 = vector.shape_cast %33 : vector<1x3x16xbf16> to vector<3x16xbf16>
    %cst_32 = arith.constant dense<0.000000e+00> : vector<3x288xf32>
    %35 = tpu.matmul %34, %32, %cst_32 {dimension_numbers = #tpu.dot_dimension_numbers<[1], [0], [0], [1], [0, 0, 1, 1], [], []>} : vector<3x16xbf16>, vector<16x288xbf16>, vector<3x288xf32> -> vector<3x288xf32>
    %36 = arith.addf %30, %35 : vector<3x288xf32>
    %c0_33 = arith.constant 0 : index
    %c0_34 = arith.constant 0 : index
    %c36 = arith.constant 36 : index
    %37 = vector.load %arg1[%c0_33, %c0_34, %c36] : memref<1x16x326xbf16, #tpu.memory_space<vmem>>, vector<1x16x288xbf16>
    %38 = vector.shape_cast %37 : vector<1x16x288xbf16> to vector<16x288xbf16>
    %c6 = arith.constant 6 : index
    %c0_35 = arith.constant 0 : index
    %c0_36 = arith.constant 0 : index
    %39 = vector.load %arg2[%c6, %c0_35, %c0_36] : memref<9x3x16xbf16, #tpu.memory_space<vmem>>, vector<1x3x16xbf16>
    %40 = vector.shape_cast %39 : vector<1x3x16xbf16> to vector<3x16xbf16>
    %cst_37 = arith.constant dense<0.000000e+00> : vector<3x288xf32>
    %41 = tpu.matmul %40, %38, %cst_37 {dimension_numbers = #tpu.dot_dimension_numbers<[1], [0], [0], [1], [0, 0, 1, 1], [], []>} : vector<3x16xbf16>, vector<16x288xbf16>, vector<3x288xf32> -> vector<3x288xf32>
    %42 = arith.addf %36, %41 : vector<3x288xf32>
    %c0_38 = arith.constant 0 : index
    %c0_39 = arith.constant 0 : index
    %c37 = arith.constant 37 : index
    %43 = vector.load %arg1[%c0_38, %c0_39, %c37] : memref<1x16x326xbf16, #tpu.memory_space<vmem>>, vector<1x16x288xbf16>
    %44 = vector.shape_cast %43 : vector<1x16x288xbf16> to vector<16x288xbf16>
    %c7 = arith.constant 7 : index
    %c0_40 = arith.constant 0 : index
    %c0_41 = arith.constant 0 : index
    %45 = vector.load %arg2[%c7, %c0_40, %c0_41] : memref<9x3x16xbf16, #tpu.memory_space<vmem>>, vector<1x3x16xbf16>
    %46 = vector.shape_cast %45 : vector<1x3x16xbf16> to vector<3x16xbf16>
    %cst_42 = arith.constant dense<0.000000e+00> : vector<3x288xf32>
    %47 = tpu.matmul %46, %44, %cst_42 {dimension_numbers = #tpu.dot_dimension_numbers<[1], [0], [0], [1], [0, 0, 1, 1], [], []>} : vector<3x16xbf16>, vector<16x288xbf16>, vector<3x288xf32> -> vector<3x288xf32>
    %48 = arith.addf %42, %47 : vector<3x288xf32>
    %c0_43 = arith.constant 0 : index
    %c0_44 = arith.constant 0 : index
    %c38 = arith.constant 38 : index
    %49 = vector.load %arg1[%c0_43, %c0_44, %c38] : memref<1x16x326xbf16, #tpu.memory_space<vmem>>, vector<1x16x288xbf16>
    %50 = vector.shape_cast %49 : vector<1x16x288xbf16> to vector<16x288xbf16>
    %c8 = arith.constant 8 : index
    %c0_45 = arith.constant 0 : index
    %c0_46 = arith.constant 0 : index
    %51 = vector.load %arg2[%c8, %c0_45, %c0_46] : memref<9x3x16xbf16, #tpu.memory_space<vmem>>, vector<1x3x16xbf16>
    %52 = vector.shape_cast %51 : vector<1x3x16xbf16> to vector<3x16xbf16>
    %cst_47 = arith.constant dense<0.000000e+00> : vector<3x288xf32>
    %53 = tpu.matmul %52, %50, %cst_47 {dimension_numbers = #tpu.dot_dimension_numbers<[1], [0], [0], [1], [0, 0, 1, 1], [], []>} : vector<3x16xbf16>, vector<16x288xbf16>, vector<3x288xf32> -> vector<3x288xf32>
    %54 = arith.addf %48, %53 : vector<3x288xf32>
    %c0_48 = arith.constant 0 : index
    %c0_49 = arith.constant 0 : index
    %55 = vector.load %arg3[%c0_48, %c0_49] : memref<3x1xf32, #tpu.memory_space<vmem>>, vector<3x1xf32>
    %56 = vector.broadcast %55 : vector<3x1xf32> to vector<3x288xf32>
    %57 = arith.addf %54, %56 : vector<3x288xf32>
    %c0_50 = arith.constant 0 : index
    %c0_51 = arith.constant 0 : index
    %c0_52 = arith.constant 0 : index
    %58 = vector.load %arg4[%c0_50, %c0_51, %c0_52] : memref<1x3x288xf32, #tpu.memory_space<vmem>>, vector<1x3x288xf32>
    %59 = vector.shape_cast %58 : vector<1x3x288xf32> to vector<3x288xf32>
    %60 = vector.shape_cast %57 : vector<3x288xf32> to vector<1x3x288xf32>
    tpu.vector_store %arg4[%c0_50, %c0_51, %c0_52], %60 {strides = array<i32>} : memref<1x3x288xf32, #tpu.memory_space<vmem>>, vector<1x3x288xf32>,
    return
  }
  func.func @transform_0(%arg0: i32) -> (i32, i32, i32) {
    %c0_i32 = arith.constant 0 : i32
    %c0_i32_0 = arith.constant 0 : i32
    %c0_i32_1 = arith.constant 0 : i32
    return %arg0, %c0_i32, %c0_i32_0 : i32, i32, i32
  }
  func.func @transform_1(%arg0: i32) -> (i32, i32, i32) {
    %c0_i32 = arith.constant 0 : i32
    %c0_i32_0 = arith.constant 0 : i32
    %c0_i32_1 = arith.constant 0 : i32
    %c0_i32_2 = arith.constant 0 : i32
    return %c0_i32, %c0_i32_0, %c0_i32_1 : i32, i32, i32
  }
  func.func @transform_2(%arg0: i32) -> (i32, i32) {
    %c0_i32 = arith.constant 0 : i32
    %c0_i32_0 = arith.constant 0 : i32
    %c0_i32_1 = arith.constant 0 : i32
    return %c0_i32, %c0_i32_0 : i32, i32
  }
  func.func @transform_3(%arg0: i32) -> (i32, i32, i32) {
    %c0_i32 = arith.constant 0 : i32
    %c0_i32_0 = arith.constant 0 : i32
    %c0_i32_1 = arith.constant 0 : i32
    return %arg0, %c0_i32, %c0_i32_0 : i32, i32, i32
  }
}

</mosaic_0001>

<bundles_post_ra>
// kernel: _lambda_.26
= control target key start
LH: loop header
LB: loop body
LE: loop exit
PB: predicated region body
PF: predicated region fallthrough
CT: control target
= control target key end

     0   :  { %s901_s17 = smov 0   ;;  %s1000_s0 = inlined_call_operand.vmem [shape: bf16[2,8,102], index: 0, kind: input, shape index: {}]   ;;  %s1001_s1 = inlined_call_operand.vmem [shape: bf16[9,8,8], index: 1, kind: input, shape index: {}]   ;;  %s1002_s2 = inlined_call_operand.vmem [shape: f32[8,1], index: 2, kind: input, shape index: {}]   ;;  %s1003_s3 = inlined_call_operand.<no memory space> [shape: f32[1,1], index: 3, kind: input, shape index: {}]   ;;  %s1004_s4 = inlined_call_operand.vmem [shape: bf16[2,8,80], index: 4, kind: output, shape index: {}]  }
   0x1   :  { %v9_v0 = vstv %s1003_s3 }
   0x2   :  { %10 = vst [vmem:[#allocation2] sm:$0x1] %v9_v0 }
   0x3 LB: > { %s732_s18 = sadd.s32 4294967295, %s860_s17   ;;  %p736_p0 = scmp.ge.s32.totalorder %s860_s17, 1  ;;  %s860_s17 = sphi %s901_s17, %s16_s17  }
   0x4   : > { %p163_p1 = scmp.lt.s32.totalorder %s860_s17, 3 }
   0x6   : > { %p164_p2 = pnand %p736_p0, %p163_p1 }
   0x7   : > { %p187_p3 = scmp.lt.s32.totalorder (!%p164_p2), %s732_s18, 1  ;;  %s864_s24 = smov (!%p164_p2), 127  }
   0x8   : > { %167 = sbr.rel (%p164_p2) target bundleno = 373 (0x175), region = 36  ;;  %s865_s25 = smov (!%p164_p2), 118  }
   0x9   : > { %s866_s26 = smov (!%p164_p2), 126   ;;  %s867_s27 = smov (!%p164_p2), 117  }
   0xa   : > { %s868_s28 = smov (!%p164_p2), 116   ;;  %s869_s29 = smov (!%p164_p2), 108  }
   0xb   : > { %s870_s30 = smov (!%p164_p2), 107   ;;  %s871_s5 = smov (!%p164_p2), 106  }
   0xd   : > { %v862_v1 = vmov 0.0   ;;  %s1006_s18 = smov (!%p187_p3, %s732_s18), 1  ;;  %vm863_vm0 = vmmov 0   ;;  %vm209_vm1 = vcmask 1043456   ;;  %vm205_vm2 = vcmask 64512   ;;  %v656_v6 = vld [vmem:[%s1002_s2] sm:$0xff] }
   0xe   : > { %778 = vmatprep.subr.bf16.mxu0 %v862_v1  ;;  %784 = vmatprep.subr.bf16.mxu1 %v862_v1  ;;  %s737_s3 = sshll.u32 %s1006_s18, 2  ;;  %v197_v5 = vld [vmem:[%s1001_s1] sm:$0xf]  ;;  %v757_v7 = vld [vmem:[#allocation2] ss:$0 sm:$0xff]  ;;  %v872_v8 = vmov 0  }
   0xf   : > { %780 = vmatprep.mubr.msk.bf16.mxu0 %vm863_vm0, %v862_v1  ;;  %786 = vmatprep.mubr.msk.bf16.mxu1 %vm863_vm0, %v862_v1  ;;  %s190_s21 = scalar_lea.vmem %s1000_s0, %s737_s3  ;;  %v739_v13 = vld [vmem:[%s1001_s1 + $0x4] sm:$0xf]  ;;  %v745_v14 = vld [vmem:[%s1001_s1 + $0xc] sm:$0xf]  ;;  %v743_v20 = vld [vmem:[%s1001_s1 + $0x8] sm:$0xf] }
  0x10   : > { %v196_v2 = vld [vmem:[%s190_s21] sm:$0xf]  ;;  %851 = vset.pattern.permute.xlu0 %v872_v8  ;;  %852 = vset.pattern.permute.xlu1 %v872_v8  ;;  %v749_v21 = vld [vmem:[%s1001_s1 + $0x14] sm:$0xf]  ;;  %v747_v26 = vld [vmem:[%s1001_s1 + $0x10] sm:$0xf] }
  0x11   : > { %v740_v3 = vcombine.low %v196_v2, %v196_v2  ;;  %v257_v4 = vsel %vm209_vm1, %v196_v2, 0  ;;  %v753_v27 = vld [vmem:[%s1001_s1 + $0x1c] sm:$0xf]  ;;  %v751_v30 = vld [vmem:[%s1001_s1 + $0x18] sm:$0xf]  ;;  %vm677_vm4 = vcmask 650240  }
  0x12   : > { %785 = vmatpush3.bf16.msra.mxu1 %v257_v4  ;;  %v755_v32 = vld [vmem:[%s1001_s1 + $0x20] sm:$0xf] }
  0x13   : > { %203 = vrot.lane.b32.xlu0 %v740_v3, %s864_s24  ;;  %352 = vrot.lane.b32.xlu1 %v740_v3, %s865_s25 }
  0x14   : > { %796 = vmatprep.subr.bf16.mxu1 %v862_v1 }
  0x15   : > { %787 = vmatmul.mubr.msk.bf16.vlgmr.msra.gmra.mxu1 %vm205_vm2, %v197_v5 }
  0x16   : > { %798 = vmatprep.mubr.msk.bf16.mxu1 %vm863_vm0, %v862_v1 }
  0x17   : > { %301 = vrot.lane.b32.xlu0 %v740_v3, %s866_s26  ;;  %403 = vrot.lane.b32.xlu1 %v740_v3, %s867_s27 }
  0x1b   : > { %454 = vrot.lane.b32.xlu0 %v740_v3, %s868_s28  ;;  %505 = vrot.lane.b32.xlu1 %v740_v3, %s869_s29  ;;  %s194_s28 = scalar_lea.vmem %s1004_s4, %s737_s3 }
  0x1f   : > { %556 = vrot.lane.b32.xlu0 %v740_v3, %s870_s30  ;;  %607 = vrot.lane.b32.xlu1 %v740_v3, %s871_s5 }
  0x23   : > { %659 = vperm.xlu0 %851, %v656_v6   ;;  %671 = vperm.xlu1 %852, %v757_v7  }
  0x85   : > { %v204_v9 = vpop.permute.xlu0 %203  ;;  %v353_v10 = vpop.permute.xlu1 %352 }
  0x86   : > { %v211_v11 = vsel %vm209_vm1, %v204_v9, 0  ;;  %v358_v12 = vsel %vm209_vm1, %v353_v10, 0 }
  0x87   : > { %779 = vmatpush3.bf16.msra.mxu0 %v211_v11  ;;  %797 = vmatpush3.bf16.msra.mxu1 %v358_v12 }
  0x88   : > { %790 = vmatprep.subr.bf16.mxu0 %v862_v1  ;;  %808 = vmatprep.subr.bf16.mxu1 %v862_v1 }
  0x89   : > { %v302_v15 = vpop.permute.xlu0 %301  ;;  %v404_v17 = vpop.permute.xlu1 %403 }
  0x8a   : > { %v307_v16 = vsel %vm209_vm1, %v302_v15, 0  ;;  %781 = vmatmul.mubr.msk.bf16.vlgmr.msra.gmra.mxu0 %vm205_vm2, %v739_v13  ;;  %799 = vmatmul.mubr.msk.bf16.vlgmr.msra.gmra.mxu1 %vm205_vm2, %v745_v14  ;;  %v409_v22 = vsel %vm209_vm1, %v404_v17, 0 }
  0x8b   : > { %791 = vmatpush3.bf16.msra.mxu0 %v307_v16  ;;  %792 = vmatprep.mubr.msk.bf16.mxu0 %vm863_vm0, %v862_v1 }
  0x8c   : > { %802 = vmatprep.subr.bf16.mxu0 %v862_v1  ;;  %810 = vmatprep.mubr.msk.bf16.mxu1 %vm863_vm0, %v862_v1 }
  0x8d   : > { %v455_v18 = vpop.permute.xlu0 %454  ;;  %v506_v25 = vpop.permute.xlu1 %505 }
  0x8e   : > { %v460_v19 = vsel %vm209_vm1, %v455_v18, 0  ;;  %v511_v28 = vsel %vm209_vm1, %v506_v25, 0 }
  0x8f   : > { %809 = vmatpush3.bf16.msra.mxu1 %v460_v19 }
  0x90   : > { %820 = vmatprep.subr.bf16.mxu1 %v862_v1 }
  0x91   : > { %v557_v23 = vpop.permute.xlu0 %556  ;;  %v608_v29 = vpop.permute.xlu1 %607 }
  0x92   : > { %793 = vmatmul.mubr.msk.bf16.vlgmr.msra.gmra.mxu0 %vm205_vm2, %v743_v20  ;;  %811 = vmatmul.mubr.msk.bf16.vlgmr.msra.gmra.mxu1 %vm205_vm2, %v749_v21  ;;  %v562_v24 = vsel %vm209_vm1, %v557_v23, 0  ;;  %v613_v31 = vsel %vm209_vm1, %v608_v29, 0 }
  0x93   : > { %803 = vmatpush3.bf16.msra.mxu0 %v409_v22  ;;  %804 = vmatprep.mubr.msk.bf16.mxu0 %vm863_vm0, %v862_v1 }
  0x94   : > { %814 = vmatprep.subr.bf16.mxu0 %v862_v1  ;;  %821 = vmatpush3.bf16.msra.mxu1 %v562_v24 }
  0x95   : > { %822 = vmatprep.mubr.msk.bf16.mxu1 %vm863_vm0, %v862_v1 }
  0x9a   : > { %805 = vmatmul.mubr.msk.bf16.vlgmr.msra.gmra.mxu0 %vm205_vm2, %v747_v26  ;;  %823 = vmatmul.mubr.msk.bf16.vlgmr.msra.gmra.mxu1 %vm205_vm2, %v753_v27 }
  0x9b   : > { %815 = vmatpush3.bf16.msra.mxu0 %v511_v28  ;;  %816 = vmatprep.mubr.msk.bf16.mxu0 %vm863_vm0, %v862_v1 }
  0x9c   : > { %826 = vmatprep.subr.bf16.mxu0 %v862_v1 }
  0x9e   : > { %v660_v9 = vpop.permute.xlu0 %659  ;;  %v672_v12 = vpop.permute.xlu1 %671 }
  0xa2   : > { %817 = vmatmul.mubr.msk.bf16.vlgmr.msra.gmra.mxu0 %vm205_vm2, %v751_v30 }
  0xa3   : > { %827 = vmatpush3.bf16.msra.mxu0 %v613_v31  ;;  %828 = vmatprep.mubr.msk.bf16.mxu0 %vm863_vm0, %v862_v1 }
  0xaa   : > { %829 = vmatmul.mubr.msk.bf16.vlgmr.msra.gmra.mxu0 %vm205_vm2, %v755_v32 }
  0xd5   : > { %v293_v33 = vpop.f32.mrf.mxu1 }
  0xd7   : > { %v788_v34 = vpop.f32.mrf.mxu1 }
  0xd9   : > { %v296_v35 = vpop.f32.mrf.mxu1 }
  0xdb   : > { %v789_v36 = vpop.f32.mrf.mxu1 }
 0x14a   : > { %v247_v37 = vpop.f32.mrf.mxu0  ;;  %v394_v38 = vpop.f32.mrf.mxu1 }
 0x14b   : > { %v294_v51 = vadd.f32 %v293_v33, %v247_v37 }
 0x14c   : > { %v782_v39 = vpop.f32.mrf.mxu0  ;;  %v800_v40 = vpop.f32.mrf.mxu1 }
 0x14e   : > { %v250_v41 = vpop.f32.mrf.mxu0  ;;  %v397_v42 = vpop.f32.mrf.mxu1 }
 0x150   : > { %v783_v43 = vpop.f32.mrf.mxu0  ;;  %v801_v44 = vpop.f32.mrf.mxu1 }
 0x152   : > { %v343_v45 = vpop.f32.mrf.mxu0  ;;  %v496_v46 = vpop.f32.mrf.mxu1 }
 0x153   : > { %v349_v54 = vadd.f32 %v343_v45, %v294_v51 }
 0x154   : > { %v794_v47 = vpop.f32.mrf.mxu0  ;;  %v812_v48 = vpop.f32.mrf.mxu1 }
 0x155   : > { %v400_v59 = vadd.f32 %v394_v38, %v349_v54 }
 0x156   : > { %v346_v49 = vpop.f32.mrf.mxu0  ;;  %v499_v50 = vpop.f32.mrf.mxu1 }
 0x158   : > { %v795_v52 = vpop.f32.mrf.mxu0  ;;  %v813_v53 = vpop.f32.mrf.mxu1 }
 0x15a   : > { %v445_v55 = vpop.f32.mrf.mxu0  ;;  %v598_v56 = vpop.f32.mrf.mxu1 }
 0x15b   : > { %v451_v62 = vadd.f32 %v445_v55, %v400_v59 }
 0x15c   : > { %v806_v57 = vpop.f32.mrf.mxu0  ;;  %v824_v58 = vpop.f32.mrf.mxu1 }
 0x15d   : > { %v502_v2 = vadd.f32 %v496_v46, %v451_v62 }
 0x15e   : > { %v448_v60 = vpop.f32.mrf.mxu0  ;;  %v601_v61 = vpop.f32.mrf.mxu1 }
 0x160   : > { %v807_v63 = vpop.f32.mrf.mxu0  ;;  %v825_v0 = vpop.f32.mrf.mxu1 }
 0x162   : > { %v547_v1 = vpop.f32.mrf.mxu0 }
 0x163   : > { %v553_v4 = vadd.f32 %v547_v1, %v502_v2 }
 0x164   : > { %v818_v3 = vpop.f32.mrf.mxu0 }
 0x165   : > { %v604_v7 = vadd.f32 %v598_v56, %v553_v4 }
 0x166   : > { %v550_v5 = vpop.f32.mrf.mxu0 }
 0x168   : > { %v819_v6 = vpop.f32.mrf.mxu0 }
 0x16a   : > { %v649_v8 = vpop.f32.mrf.mxu0 }
 0x16b   : > { %v655_v10 = vadd.f32 %v649_v8, %v604_v7 }
 0x16c   : > { %v830_v11 = vpop.f32.mrf.mxu0 }
 0x16d   : > { %v662_v13 = vadd.f32 %v660_v9, %v655_v10 }
 0x16e   : > { %v652_v14 = vpop.f32.mrf.mxu0 }
 0x16f   : > { %vm663_vm3 = vcmp.ge.f32.partialorder %v662_v13, 0.0  ;;  %v674_v15 = vmul.f32 %v672_v12, %v662_v13 }
 0x170   : > { %v831_v16 = vpop.f32.mrf.mxu0 }
 0x171   : > { %v675_v17 = vsel %vm663_vm3, %v662_v13, %v674_v15 }
 0x172   : > { %v676_v18 = vpack.c.bf16 %v675_v17, %v675_v17 }
 0x174   : > { %678 = vst.msk [vmem:[%s194_s28] sm:$0xf] %vm677_vm4, %v676_v18 }
 0x175 PF: > { %s16_s17 = sadd.s32 1, %s860_s17  }
 0x176   : > { %p13_p4 = scmp.ge.s32.totalorder %s16_s17, 4  }
 0x178   :  { %15 = sbr.rel (!%p13_p4) target bundleno = 3 (0x3), region = 74 }

// kernel: _lambda_.25
= control target key start
LH: loop header
LB: loop body
LE: loop exit
PB: predicated region body
PF: predicated region fallthrough
CT: control target
= control target key end

     0   :  { %s981_s17 = smov 0   ;;  %s1079_s0 = inlined_call_operand.vmem [shape: bf16[2,3,102], index: 0, kind: input, shape index: {}]   ;;  %s1080_s1 = inlined_call_operand.vmem [shape: bf16[9,8,3], index: 1, kind: input, shape index: {}]   ;;  %s1081_s2 = inlined_call_operand.vmem [shape: f32[8,1], index: 2, kind: input, shape index: {}]   ;;  %s1082_s3 = inlined_call_operand.<no memory space> [shape: f32[1,1], index: 3, kind: input, shape index: {}]   ;;  %s1083_s4 = inlined_call_operand.vmem [shape: bf16[2,8,80], index: 4, kind: output, shape index: {}]  }
   0x1   :  { %v9_v0 = vstv %s1082_s3 }
   0x2   :  { %10 = vst [vmem:[#allocation2] sm:$0x1] %v9_v0 }
   0x3 LB: > { %s803_s18 = sadd.s32 4294967295, %s938_s17   ;;  %p807_p0 = scmp.ge.s32.totalorder %s938_s17, 1  ;;  %s938_s17 = sphi %s981_s17, %s16_s17  }
   0x4   : > { %p163_p1 = scmp.lt.s32.totalorder %s938_s17, 3 }
   0x6   : > { %p164_p2 = pnand %p807_p0, %p163_p1 }
   0x7   : > { %p187_p3 = scmp.lt.s32.totalorder (!%p164_p2), %s803_s18, 1  ;;  %s944_s22 = smov (!%p164_p2), 118  }
   0x8   : > { %167 = sbr.rel (%p164_p2) target bundleno = 377 (0x179), region = 36  ;;  %s945_s23 = smov (!%p164_p2), 127  }
   0x9   : > { %s946_s26 = smov (!%p164_p2), 117   ;;  %s947_s27 = smov (!%p164_p2), 126  }
   0xa   : > { %s948_s28 = smov (!%p164_p2), 108   ;;  %s949_s29 = smov (!%p164_p2), 116  }
   0xb   : > { %s950_s30 = smov (!%p164_p2), 106   ;;  %s951_s5 = smov (!%p164_p2), 107  }
   0xd   : > { %v204_v1 = vlaneseq  ;;  %vm214_vm0 = vcmask 1040384   ;;  %vm215_vm1 = vcmask 1041408   ;;  %v940_v2 = vmov 1983009808   ;;  %s1085_s18 = smov (!%p187_p3, %s803_s18), 1  ;;  %v727_v16 = vld [vmem:[%s1081_s2] sm:$0xff] }
   0xe   : > { %v202_v3 = vunpack.c.l.s4 %v940_v2  ;;  %v941_v5 = vmov 65535   ;;  %v942_v7 = vmov 0.0   ;;  %vm943_vm2 = vmmov 0   ;;  %s808_s3 = sshll.u32 %s1085_s18, 1  ;;  %v197_v15 = vld [vmem:[%s1080_s1] sm:$0xf] }
   0xf   : > { %v205_v4 = vshrl.u32 %v204_v1, 7  ;;  %v216_v6 = vsel %vm214_vm0, 4294967295, %v941_v5  ;;  %855 = vmatprep.subr.bf16.mxu0 %v942_v7  ;;  %861 = vmatprep.subr.bf16.mxu1 %v942_v7  ;;  %s190_s21 = scalar_lea.vmem %s1079_s0, %s808_s3  ;;  %vm210_vm3 = vcmask 23552   ;;  %v834_v17 = vld [vmem:[#allocation2] ss:$0 sm:$0xff]  ;;  %v952_v18 = vmov 0  }
  0x10   : > { %v203_v8 = vunpack.c.0.s8 %v202_v3  ;;  %857 = vmatprep.mubr.msk.bf16.mxu0 %vm943_vm2, %v942_v7  ;;  %863 = vmatprep.mubr.msk.bf16.mxu1 %vm943_vm2, %v942_v7  ;;  %v998_v9 = vsel %vm215_vm1, %v216_v6, 0  ;;  %v196_v11 = vld [vmem:[%s190_s21] sm:$0x3]  ;;  %v816_v23 = vld [vmem:[%s1080_s1 + $0xc] sm:$0xf]  ;;  %s809_s25 = sshll.u32 %s1085_s18, 2 }
  0x11   : > { %v814_v12 = vld.sshfl [vmem:[%s190_s21] sm:$0x3 pattern:$0x76325410]  ;;  %v265_v14 = vand.u32 %v998_v9, %v196_v11  ;;  %930 = vset.pattern.permute.xlu0 %v952_v18  ;;  %931 = vset.pattern.permute.xlu1 %v952_v18  ;;  %v810_v24 = vld [vmem:[%s1080_s1 + $0x4] sm:$0xf] }
  0x12   : > { %v206_v10 = vsub.s32 %v203_v8, %v205_v4  ;;  %378 = vrot.lane.b32.xlu1 %v814_v12, %s944_s22  ;;  %v813_v31 = vld [vmem:[%s1080_s1 + $0x8] sm:$0xf]  ;;  %v822_v32 = vld [vmem:[%s1080_s1 + $0x14] sm:$0xf]  ;;  %v819_v37 = vld [vmem:[%s1080_s1 + $0x10] sm:$0xf] }
  0x13   : > { %862 = vmatpush3.bf16.msra.mxu1 %v265_v14  ;;  %v828_v38 = vld [vmem:[%s1080_s1 + $0x1c] sm:$0xf]  ;;  %v825_v41 = vld [vmem:[%s1080_s1 + $0x18] sm:$0xf]  ;;  %v831_v42 = vld [vmem:[%s1080_s1 + $0x20] sm:$0xf] }
  0x14   : > { %v207_v13 = vrot.slane %v196_v11, %v206_v10  ;;  %873 = vmatprep.subr.bf16.mxu1 %v942_v7  ;;  %vm748_vm5 = vcmask 650240  }
  0x16   : > { %208 = vrot.lane.b32.xlu0 %v207_v13, %s945_s23  ;;  %438 = vrot.lane.b32.xlu1 %v814_v12, %s946_s26 }
  0x17   : > { %864 = vmatmul.mubr.msk.bf16.vlgmr.msra.gmra.mxu1 %vm210_vm3, %v197_v15 }
  0x18   : > { %875 = vmatprep.mubr.msk.bf16.mxu1 %vm943_vm2, %v942_v7 }
  0x1a   : > { %318 = vrot.lane.b32.xlu0 %v814_v12, %s947_s27  ;;  %558 = vrot.lane.b32.xlu1 %v814_v12, %s948_s28  ;;  %s194_s28 = scalar_lea.vmem %s1083_s4, %s809_s25 }
  0x1e   : > { %498 = vrot.lane.b32.xlu0 %v814_v12, %s949_s29  ;;  %678 = vrot.lane.b32.xlu1 %v814_v12, %s950_s30 }
  0x22   : > { %618 = vrot.lane.b32.xlu0 %v814_v12, %s951_s5  ;;  %742 = vperm.xlu1 %931, %v834_v17  }
  0x26   : > { %730 = vperm.xlu0 %930, %v727_v16  }
  0x84   : > { %v379_v19 = vpop.permute.xlu1 %378 }
  0x85   : > { %v384_v20 = vand.u32 %v379_v19, %v998_v9 }
  0x87   : > { %874 = vmatpush3.bf16.msra.mxu1 %v384_v20 }
  0x88   : > { %v209_v21 = vpop.permute.xlu0 %208  ;;  %885 = vmatprep.subr.bf16.mxu1 %v942_v7  ;;  %v439_v27 = vpop.permute.xlu1 %438 }
  0x89   : > { %v219_v22 = vand.u32 %v998_v9, %v209_v21  ;;  %v444_v30 = vand.u32 %v439_v27, %v998_v9 }
  0x8a   : > { %876 = vmatmul.mubr.msk.bf16.vlgmr.msra.gmra.mxu1 %vm210_vm3, %v816_v23 }
  0x8b   : > { %856 = vmatpush3.bf16.msra.mxu0 %v219_v22  ;;  %887 = vmatprep.mubr.msk.bf16.mxu1 %vm943_vm2, %v942_v7 }
  0x8c   : > { %v319_v25 = vpop.permute.xlu0 %318  ;;  %867 = vmatprep.subr.bf16.mxu0 %v942_v7  ;;  %v559_v35 = vpop.permute.xlu1 %558 }
  0x8d   : > { %v324_v26 = vand.u32 %v319_v25, %v998_v9  ;;  %v564_v36 = vand.u32 %v559_v35, %v998_v9 }
  0x8e   : > { %858 = vmatmul.mubr.msk.bf16.vlgmr.msra.gmra.mxu0 %vm210_vm3, %v810_v24 }
  0x8f   : > { %868 = vmatpush3.bf16.msra.mxu0 %v324_v26  ;;  %869 = vmatprep.mubr.msk.bf16.mxu0 %vm943_vm2, %v942_v7 }
  0x90   : > { %879 = vmatprep.subr.bf16.mxu0 %v942_v7  ;;  %v499_v28 = vpop.permute.xlu0 %498  ;;  %v679_v39 = vpop.permute.xlu1 %678 }
  0x91   : > { %v504_v29 = vand.u32 %v499_v28, %v998_v9  ;;  %v684_v40 = vand.u32 %v679_v39, %v998_v9 }
  0x93   : > { %886 = vmatpush3.bf16.msra.mxu1 %v504_v29 }
  0x94   : > { %v619_v33 = vpop.permute.xlu0 %618  ;;  %897 = vmatprep.subr.bf16.mxu1 %v942_v7 }
  0x95   : > { %v624_v34 = vand.u32 %v619_v33, %v998_v9 }
  0x96   : > { %870 = vmatmul.mubr.msk.bf16.vlgmr.msra.gmra.mxu0 %vm210_vm3, %v813_v31  ;;  %888 = vmatmul.mubr.msk.bf16.vlgmr.msra.gmra.mxu1 %vm210_vm3, %v822_v32 }
  0x97   : > { %880 = vmatpush3.bf16.msra.mxu0 %v444_v30  ;;  %881 = vmatprep.mubr.msk.bf16.mxu0 %vm943_vm2, %v942_v7 }
  0x98   : > { %891 = vmatprep.subr.bf16.mxu0 %v942_v7  ;;  %898 = vmatpush3.bf16.msra.mxu1 %v624_v34 }
  0x99   : > { %899 = vmatprep.mubr.msk.bf16.mxu1 %vm943_vm2, %v942_v7 }
  0x9d   : > { %v743_v22 = vpop.permute.xlu1 %742 }
  0x9e   : > { %882 = vmatmul.mubr.msk.bf16.vlgmr.msra.gmra.mxu0 %vm210_vm3, %v819_v37  ;;  %900 = vmatmul.mubr.msk.bf16.vlgmr.msra.gmra.mxu1 %vm210_vm3, %v828_v38 }
  0x9f   : > { %892 = vmatpush3.bf16.msra.mxu0 %v564_v36  ;;  %893 = vmatprep.mubr.msk.bf16.mxu0 %vm943_vm2, %v942_v7 }
  0xa0   : > { %903 = vmatprep.subr.bf16.mxu0 %v942_v7 }
  0xa1   : > { %v731_v19 = vpop.permute.xlu0 %730 }
  0xa6   : > { %894 = vmatmul.mubr.msk.bf16.vlgmr.msra.gmra.mxu0 %vm210_vm3, %v825_v41 }
  0xa7   : > { %904 = vmatpush3.bf16.msra.mxu0 %v684_v40  ;;  %905 = vmatprep.mubr.msk.bf16.mxu0 %vm943_vm2, %v942_v7 }
  0xae   : > { %906 = vmatmul.mubr.msk.bf16.vlgmr.msra.gmra.mxu0 %vm210_vm3, %v831_v42 }
  0xd7   : > { %v301_v43 = vpop.f32.mrf.mxu1 }
  0xd9   : > { %v865_v44 = vpop.f32.mrf.mxu1 }
  0xdb   : > { %v304_v45 = vpop.f32.mrf.mxu1 }
  0xdd   : > { %v866_v46 = vpop.f32.mrf.mxu1 }
 0x14a   : > { %v420_v47 = vpop.f32.mrf.mxu1 }
 0x14c   : > { %v877_v49 = vpop.f32.mrf.mxu1 }
 0x14e   : > { %v255_v48 = vpop.f32.mrf.mxu0  ;;  %v423_v51 = vpop.f32.mrf.mxu1 }
 0x14f   : > { %v302_v61 = vadd.f32 %v301_v43, %v255_v48 }
 0x150   : > { %v859_v50 = vpop.f32.mrf.mxu0  ;;  %v878_v53 = vpop.f32.mrf.mxu1 }
 0x152   : > { %v258_v52 = vpop.f32.mrf.mxu0 }
 0x154   : > { %v860_v54 = vpop.f32.mrf.mxu0 }
 0x156   : > { %v360_v55 = vpop.f32.mrf.mxu0  ;;  %v540_v56 = vpop.f32.mrf.mxu1 }
 0x157   : > { %v366_v0 = vadd.f32 %v360_v55, %v302_v61 }
 0x158   : > { %v871_v57 = vpop.f32.mrf.mxu0  ;;  %v889_v58 = vpop.f32.mrf.mxu1 }
 0x159   : > { %v426_v5 = vadd.f32 %v420_v47, %v366_v0 }
 0x15a   : > { %v363_v59 = vpop.f32.mrf.mxu0  ;;  %v543_v60 = vpop.f32.mrf.mxu1 }
 0x15c   : > { %v872_v62 = vpop.f32.mrf.mxu0  ;;  %v890_v63 = vpop.f32.mrf.mxu1 }
 0x15e   : > { %v480_v1 = vpop.f32.mrf.mxu0  ;;  %v660_v2 = vpop.f32.mrf.mxu1 }
 0x15f   : > { %v486_v8 = vadd.f32 %v480_v1, %v426_v5 }
 0x160   : > { %v883_v3 = vpop.f32.mrf.mxu0  ;;  %v901_v4 = vpop.f32.mrf.mxu1 }
 0x161   : > { %v546_v12 = vadd.f32 %v540_v56, %v486_v8 }
 0x162   : > { %v483_v6 = vpop.f32.mrf.mxu0  ;;  %v663_v7 = vpop.f32.mrf.mxu1 }
 0x164   : > { %v884_v9 = vpop.f32.mrf.mxu0  ;;  %v902_v10 = vpop.f32.mrf.mxu1 }
 0x166   : > { %v600_v11 = vpop.f32.mrf.mxu0 }
 0x167   : > { %v606_v14 = vadd.f32 %v600_v11, %v546_v12 }
 0x168   : > { %v895_v13 = vpop.f32.mrf.mxu0 }
 0x169   : > { %v666_v17 = vadd.f32 %v660_v2, %v606_v14 }
 0x16a   : > { %v603_v15 = vpop.f32.mrf.mxu0 }
 0x16c   : > { %v896_v16 = vpop.f32.mrf.mxu0 }
 0x16e   : > { %v720_v18 = vpop.f32.mrf.mxu0 }
 0x16f   : > { %v726_v20 = vadd.f32 %v720_v18, %v666_v17 }
 0x170   : > { %v907_v21 = vpop.f32.mrf.mxu0 }
 0x171   : > { %v733_v23 = vadd.f32 %v731_v19, %v726_v20 }
 0x172   : > { %v723_v24 = vpop.f32.mrf.mxu0 }
 0x173   : > { %vm734_vm4 = vcmp.ge.f32.partialorder %v733_v23, 0.0  ;;  %v745_v25 = vmul.f32 %v743_v22, %v733_v23 }
 0x174   : > { %v908_v26 = vpop.f32.mrf.mxu0 }
 0x175   : > { %v746_v27 = vsel %vm734_vm4, %v733_v23, %v745_v25 }
 0x176   : > { %v747_v28 = vpack.c.bf16 %v746_v27, %v746_v27 }
 0x178   : > { %749 = vst.msk [vmem:[%s194_s28] sm:$0xf] %vm748_vm5, %v747_v28 }
 0x179 PF: > { %s16_s17 = sadd.s32 1, %s938_s17  }
 0x17a   : > { %p13_p4 = scmp.ge.s32.totalorder %s16_s17, 4  }
 0x17c   :  { %15 = sbr.rel (!%p13_p4) target bundleno = 3 (0x3), region = 74 }

// kernel: _lambda_.29
= control target key start
LH: loop header
LB: loop body
LE: loop exit
PB: predicated region body
PF: predicated region fallthrough
CT: control target
= control target key end

     0   :  { %s374_s12 = smov 0   ;;  %s400_s0 = inlined_call_operand.vmem [shape: bf16[2,8,64], index: 0, kind: input, shape index: {}]   ;;  %s401_s1 = inlined_call_operand.vmem [shape: bf16[1,12,8], index: 1, kind: input, shape index: {}]   ;;  %s402_s2 = inlined_call_operand.vmem [shape: f32[12,1], index: 2, kind: input, shape index: {}]   ;;  %s403_s3 = inlined_call_operand.vmem [shape: bf16[2,12,64], index: 3, kind: output, shape index: {}]  }
   0x1 LB: > { %s305_s13 = sadd.s32 4294967295, %s349_s12   ;;  %p309_p0 = scmp.ge.s32.totalorder %s349_s12, 1  ;;  %s349_s12 = sphi %s374_s12, %s13_s12  }
   0x2   : > { %p136_p1 = scmp.lt.s32.totalorder %s349_s12, 3 }
   0x4   : > { %p137_p2 = pnand %p309_p0, %p136_p1 }
   0x5   : > { %p159_p3 = scmp.lt.s32.totalorder (!%p137_p2), %s305_s13, 1 }
   0x6   : > { %140 = sbr.rel (%p137_p2) target bundleno = 221 (0xdd), region = 32 }
   0xb   : > { %v351_v0 = vmov 0.0   ;;  %vm352_vm0 = vmmov 0   ;;  %s405_s13 = smov (!%p159_p3, %s305_s13), 1  ;;  %v353_v1 = vmov 0   ;;  %v172_v2 = vld [vmem:[%s402_s2] sm:$0xff]  ;;  %vm193_vm1 = vcmask 1043456  }
   0xc   : > { %324 = vmatprep.subr.bf16.mxu0 %v351_v0  ;;  %326 = vmatprep.mubr.msk.bf16.mxu0 %vm352_vm0, %v351_v0  ;;  %s310_s16 = sshll.u32 %s405_s13, 2  ;;  %v173_v3 = vld [vmem:[%s402_s2 + $0x8] sm:$0xf]  ;;  %v342_v6 = vld [vmem:[%s401_s1] sm:$0x3f]   ;;  %vm189_vm2 = vcmask 64512  }
   0xd   : > { %341 = vset.pattern.permute.xlu0 %v353_v1  ;;  %s162_s21 = scalar_lea.vmem %s400_s0, %s310_s16  ;;  %s319_s24 = sshll.u32 %s405_s13, 3  ;;  %vm246_vm3 = vcmask 519168   ;;  %vm248_vm4 = vcmask 517120  }
   0xe   : > { %176 = vperm.xlu0 %341, %v172_v2   ;;  %v169_v4 = vld [vmem:[%s162_s21] sm:$0xf]  ;;  %s167_s27 = scalar_lea.vmem %s403_s3, %s319_s24 }
   0xf   : > { %v195_v5 = vsel %vm193_vm1, %v169_v4, 0 }
  0x10   : > { %325 = vmatpush3.bf16.msra.mxu0 %v195_v5 }
  0x12   : > { %181 = vperm.xlu0 %341, %v173_v3  }
  0x13   : > { %327 = vmatmul.mubr.msk.bf16.vlgmr.msra.gmra.mxu0 %vm189_vm2, %v342_v6 }
  0x89   : > { %v177_v7 = vpop.permute.xlu0 %176 }
  0x8d   : > { %v182_v12 = vpop.permute.xlu0 %181 }
  0xd3   : > { %v231_v8 = vpop.f32.mrf.mxu0 }
  0xd4   : > { %v232_v9 = vadd.f32 %v231_v8, %v177_v7 }
  0xd5   : > { %v328_v10 = vpop.f32.mrf.mxu0 }
  0xd6   : > { %v320_v11 = vpack.c.bf16 %v232_v9, %v232_v9 }
  0xd7   : > { %v234_v13 = vpop.f32.mrf.mxu0 }
  0xd8   : > { %247 = vst.msk [vmem:[%s167_s27] sm:$0xf] %vm246_vm3, %v320_v11  ;;  %v235_v14 = vadd.f32 %v234_v13, %v182_v12 }
  0xd9   : > { %v329_v15 = vpop.f32.mrf.mxu0 }
  0xda   : > { %v321_v16 = vpack.c.bf16 %v235_v14, %v235_v14 }
  0xdc   : > { %249 = vst.msk [vmem:[%s167_s27 + $0x4] sm:$0x3] %vm248_vm4, %v321_v16 }
  0xdd PF: > { %s13_s12 = sadd.s32 1, %s349_s12  }
  0xde   : > { %p10_p4 = scmp.ge.s32.totalorder %s13_s12, 4  }
  0xe0   :  { %12 = sbr.rel (!%p10_p4) target bundleno = 1 (0x1), region = 62 }

// kernel: _lambda_.30
= control target key start
LH: loop header
LB: loop body
LE: loop exit
PB: predicated region body
PF: predicated region fallthrough
CT: control target
= control target key end

     0   :  { %s1283_s12 = smov 0   ;;  %s1285_s13 = smov 0   ;;  %s1562_s0 = inlined_call_operand.vmem [shape: bf16[2,64,4], index: 0, kind: input, shape index: {}]   ;;  %s1563_s1 = inlined_call_operand.vmem [shape: bf16[2,64,4], index: 1, kind: input, shape index: {}]   ;;  %s1564_s2 = inlined_call_operand.vmem [shape: bf16[2,64,4], index: 2, kind: input, shape index: {}]   ;;  %s1565_s3 = inlined_call_operand.vmem [shape: bf16[2,64,4], index: 3, kind: output, shape index: {}]  }
   0x1   :  { %s1287_s14 = smov 0  }
   0x2 LB: > { %s25_s15 = sadd.s32 1, %s1254_s13  ;;  %p1044_p0 = scmp.ge.s32.totalorder %s1258_s14, 1  ;;  %s1258_s14 = sphi %s1287_s14, %s13_s14   ;;  %s1254_s13 = sphi %s1285_s13, %s1567_s13   ;;  %s1250_s12 = sphi %s1283_s12, %s1566_s12  }
   0x3   : > { %p27_p1 = scmp.ge.s32.totalorder %s25_s15, 2  ;;  %p183_p2 = scmp.lt.s32.totalorder %s1258_s14, 3 }
   0x5   : > { %s1569_s15 = smov (%p27_p1, %s25_s15), 0  ;;  %p184_p3 = pnand %p1044_p0, %p183_p2 }
   0x6   : > { %p225_p4 = scmp.lt.s32.totalorder (!%p184_p3), %s1250_s12, 1 }
   0x7   : > { %187 = sbr.rel (%p184_p3) target bundleno = 844 (0x34c), region = 32 }
   0xc   : > { %s1571_s12 = smov (!%p225_p4, %s1250_s12), 1  ;;  %vm277_vm0 = vcmask 31744   ;;  %vm260_vm1 = vcmask 7168   ;;  %v1260_v12 = vmov -1e+30   ;;  %v440_v13 = vlaneseq }
   0xd   : > { %s1301_s16 = sshll.u32 %s1571_s12, 5  ;;  %263 = vst.msk [vmem:[#allocation2 + $0x10] sm:$0xff] %vm260_vm1, %v1260_v12  ;;  %261 = vst.msk [vmem:[#allocation2] sm:$0xff] %vm260_vm1, %v1260_v12  ;;  %vm462_vm3 = vcmask 523264   ;;  %v1261_v34 = vmov 0   ;;  %v1262_v40 = vmov 0.0  }
   0xe   : > { %s238_s19 = scalar_lea.vmem %s1563_s1, %s1301_s16  ;;  %s229_s22 = scalar_lea.vmem %s1562_s0, %s1301_s16  ;;  %262 = vst.msk [vmem:[#allocation2 + $0x8] sm:$0xff] %vm260_vm1, %v1260_v12  ;;  %264 = vst.msk [vmem:[#allocation2 + $0x18] sm:$0xff] %vm260_vm1, %v1260_v12  ;;  %v441_v14 = vand.u32 127, %v440_v13  ;;  %1175 = vset.pattern.permute.xlu1 %v1261_v34  ;;  %1174 = vset.pattern.permute.xlu0 %v1261_v34  ;;  %vm932_vm4 = vcmask 27648  }
   0xf   : > { %v1176_v0 = vld [vmem:[%s238_s19 + $0x18] sm:$0xff]   ;;  %v1177_v1 = vld [vmem:[%s238_s19 + $0x10] sm:$0xff]   ;;  %v1180_v3 = vld [vmem:[%s229_s22] sm:$0xff]   ;;  %265 = vst.msk [vmem:[#allocation2 + $0x20] sm:$0xff] %vm260_vm1, %v1260_v12  ;;  %s248_s25 = scalar_lea.vmem %s1564_s2, %s1301_s16  ;;  %s1535_s28 = scalar_lea.vmem %s1565_s3, %s1301_s16 }
  0x10   : > { %1143 = vmatprep.subr.msk.bf16.mxu0 %vm277_vm0, %v1176_v0  ;;  %v373_v2 = vsel %vm277_vm0, %v1176_v0, 0  ;;  %1119 = vmatprep.mubr.msk.bf16.mxu0 %vm277_vm0, %v1180_v3  ;;  %v370_v4 = vsel %vm277_vm0, %v1177_v1, 0  ;;  %v1178_v5 = vld [vmem:[%s238_s19 + $0x8] sm:$0xff]   ;;  %v1179_v7 = vld [vmem:[%s238_s19] sm:$0xff]   ;;  %v1182_v10 = vld [vmem:[%s229_s22 + $0x10] sm:$0xff]   ;;  %266 = vst.msk [vmem:[#allocation2 + $0x28] sm:$0xff] %vm260_vm1, %v1260_v12 }
  0x11   : > { %1112 = vmatpush3.bf16.xpose.msra.mxu0 %v373_v2  ;;  %v367_v6 = vsel %vm277_vm0, %v1178_v5, 0  ;;  %v364_v8 = vsel %vm277_vm0, %v1179_v7, 0  ;;  %v1181_v9 = vld [vmem:[%s229_s22 + $0x8] sm:$0xff]   ;;  %v1183_v11 = vld [vmem:[%s229_s22 + $0x18] sm:$0xff]   ;;  %267 = vst.msk [vmem:[#allocation2 + $0x30] sm:$0xff] %vm260_vm1, %v1260_v12  ;;  %268 = vst.msk [vmem:[#allocation2 + $0x38] sm:$0xff] %vm260_vm1, %v1260_v12 }
  0x12   : > { %1144 = vmatprep.subr.msk.bf16.mxu0 %vm277_vm0, %v1177_v1  ;;  %vm445_vm2 = vcmp.lt.s32.totalorder %v441_v14, 64  ;;  %271 = vst.msk [vmem:[#allocation3 + $0x10] sm:$0xff] %vm260_vm1, %v1262_v40  ;;  %269 = vst.msk [vmem:[#allocation3] sm:$0xff] %vm260_vm1, %v1262_v40  ;;  %v1184_v62 = vld [vmem:[%s248_s25 + $0x18] sm:$0xff]   ;;  %v1187_v12 = vld [vmem:[%s248_s25] sm:$0xff]  }
  0x13   : > { %270 = vst.msk [vmem:[#allocation3 + $0x8] sm:$0xff] %vm260_vm1, %v1262_v40  ;;  %272 = vst.msk [vmem:[#allocation3 + $0x18] sm:$0xff] %vm260_vm1, %v1262_v40  ;;  %1127 = vmatprep.subr.bf16.mxu1 %v1184_v62 }
  0x14   : > { %273 = vst.msk [vmem:[#allocation3 + $0x20] sm:$0xff] %vm260_vm1, %v1262_v40  ;;  %274 = vst.msk [vmem:[#allocation3 + $0x28] sm:$0xff] %vm260_vm1, %v1262_v40  ;;  %v1387_v41 = vld [vmem:[#allocation2 + $0x10] sm:$0xff]  ;;  %v1389_v43 = vld [vmem:[#allocation2] sm:$0xff]  ;;  %1128 = vmatpush3.bf16.msra.mxu1 %v1184_v62 }
  0x15   : > { %275 = vst.msk [vmem:[#allocation3 + $0x30] sm:$0xff] %vm260_vm1, %v1262_v40  ;;  %276 = vst.msk [vmem:[#allocation3 + $0x38] sm:$0xff] %vm260_vm1, %v1262_v40  ;;  %v1394_v46 = vld [vmem:[#allocation2 + $0x18] sm:$0xff]  ;;  %v1404_v50 = vld [vmem:[#allocation2 + $0x8] sm:$0xff] }
  0x16   : > { %278 = vst.msk [vmem:[#allocation4] sm:$0xff] %vm277_vm0, %v1262_v40  ;;  %279 = vst.msk [vmem:[#allocation4 + $0x8] sm:$0xff] %vm277_vm0, %v1262_v40  ;;  %v1422_v56 = vld [vmem:[#allocation2 + $0x20] sm:$0xff] }
  0x17   : > { %280 = vst.msk [vmem:[#allocation4 + $0x10] sm:$0xff] %vm277_vm0, %v1262_v40  ;;  %281 = vst.msk [vmem:[#allocation4 + $0x18] sm:$0xff] %vm277_vm0, %v1262_v40  ;;  %v1438_v61 = vld [vmem:[#allocation2 + $0x28] sm:$0xff] }
  0x18   : > { %282 = vst.msk [vmem:[#allocation4 + $0x20] sm:$0xff] %vm277_vm0, %v1262_v40  ;;  %283 = vst.msk [vmem:[#allocation4 + $0x28] sm:$0xff] %vm277_vm0, %v1262_v40  ;;  %v1428_v59 = vld [vmem:[#allocation2 + $0x30] sm:$0xff] }
  0x19   : > { %1114 = vmatpush3.bf16.xpose.msra.mxu0 %v370_v4  ;;  %284 = vst.msk [vmem:[#allocation4 + $0x30] sm:$0xff] %vm277_vm0, %v1262_v40  ;;  %285 = vst.msk [vmem:[#allocation4 + $0x38] sm:$0xff] %vm277_vm0, %v1262_v40  ;;  %v1185_v4 = vld [vmem:[%s248_s25 + $0x10] sm:$0xff]  }
  0x1a   : > { %1145 = vmatprep.subr.msk.bf16.mxu0 %vm277_vm0, %v1178_v5  ;;  %v1450_v5 = vld [vmem:[#allocation2 + $0x38] sm:$0xff]  ;;  %1129 = vmatprep.subr.bf16.mxu1 %v1185_v4 }
  0x1b   : > { %1130 = vmatpush3.bf16.msra.mxu1 %v1185_v4 }
  0x21   : > { %1116 = vmatpush3.bf16.xpose.msra.mxu0 %v367_v6 }
  0x22   : > { %1146 = vmatprep.subr.msk.bf16.mxu0 %vm277_vm0, %v1179_v7 }
  0x29   : > { %1118 = vmatpush3.bf16.xpose.msra.mxu0 %v364_v8 }
  0x30   : > { %1120 = vmatmul.mubr.msk.bf16.vlgmr.msra.gmra.mxu0 %vm277_vm0, %v1181_v9 }
  0x31   : > { %1123 = vmatprep.mubr.msk.bf16.mxu0 %vm277_vm0, %v1182_v10  ;;  %v1186_v10 = vld [vmem:[%s248_s25 + $0x8] sm:$0xff]  }
  0x32   : > { %1131 = vmatprep.subr.bf16.mxu1 %v1186_v10 }
  0x33   : > { %1132 = vmatpush3.bf16.msra.mxu1 %v1186_v10 }
  0x34   : > { %1133 = vmatprep.subr.bf16.mxu1 %v1187_v12 }
  0x37   : > { %1134 = vmatpush3.bf16.msra.mxu1 %v1187_v12 }
  0x38   : > { %1124 = vmatmul.mubr.msk.bf16.gmra.mxu0 %vm277_vm0, %v1183_v11 }
  0xf0   : > { %v1121_v15 = vpop.f32.mrf.mxu0 }
  0xf1   : > { %v1332_v16 = vsel %vm445_vm2, %v1121_v15, -1e+30 }
  0xf2   : > { %v409_v17 = vpop.f32.mrf.mxu0  ;;  %v469_v18 = vsel %vm462_vm3, %v1332_v16, -inf }
  0xf3   : > { %v1337_v19 = vsel %vm445_vm2, %v409_v17, -1e+30  ;;  %470 = vmax.xlane.f32.xlu1 %v469_v18 }
  0xf4   : > { %v1122_v20 = vpop.f32.mrf.mxu0  ;;  %v463_v21 = vsel %vm462_vm3, %v1337_v19, -inf }
  0xf5   : > { %v1342_v22 = vsel %vm445_vm2, %v1122_v20, -1e+30  ;;  %464 = vmax.xlane.f32.xlu0 %v463_v21 }
  0xf6   : > { %v412_v23 = vpop.f32.mrf.mxu0  ;;  %v472_v24 = vsel %vm462_vm3, %v1342_v22, -inf }
  0xf7   : > { %v1347_v25 = vsel %vm445_vm2, %v412_v23, -1e+30  ;;  %473 = vmax.xlane.f32.xlu1 %v472_v24 }
  0xf8   : > { %v1125_v26 = vpop.f32.mrf.mxu0  ;;  %v466_v27 = vsel %vm462_vm3, %v1347_v25, -inf }
  0xf9   : > { %467 = vmax.xlane.f32.xlu0 %v466_v27  ;;  %v1357_v32 = vsel %vm445_vm2, %v1125_v26, -1e+30 }
  0xfa   : > { %v425_v28 = vpop.f32.mrf.mxu0  ;;  %v481_v36 = vsel %vm462_vm3, %v1357_v32, -inf }
  0xfb   : > { %v1352_v29 = vsel %vm445_vm2, %v425_v28, -1e+30 }
  0xfc   : > { %v1126_v30 = vpop.f32.mrf.mxu0  ;;  %v475_v31 = vsel %vm462_vm3, %v1352_v29, -inf }
  0xfd   : > { %476 = vmax.xlane.f32.xlu0 %v475_v31  ;;  %v1367_v38 = vsel %vm445_vm2, %v1126_v30, -1e+30 }
  0xfe   : > { %v428_v33 = vpop.f32.mrf.mxu0  ;;  %v484_v39 = vsel %vm462_vm3, %v1367_v38, -inf }
  0xff   : > { %v1360_v35 = vsel %vm445_vm2, %v428_v33, -1e+30 }
 0x100   : > { %v478_v37 = vsel %vm462_vm3, %v1360_v35, -inf }
 0x101   : > { %482 = vmax.xlane.f32.xlu0 %v481_v36  ;;  %479 = vmax.xlane.f32.xlu1 %v478_v37 }
 0x105   : > { %485 = vmax.xlane.f32.xlu1 %v484_v39 }
 0x17c   : > { %v471_v42 = vpop.xlane.xlu1 %470 }
 0x17d   : > { %v1392_v44 = vmax.f32 %v1387_v41, %v471_v42 }
 0x17e   : > { %v465_v45 = vpop.xlane.xlu0 %464 }
 0x17f   : > { %v497_v47 = vsub.f32 %v1387_v41, %v1392_v44  ;;  %819 = vst.msk [vmem:[#allocation2 + $0x10] sm:$0xff] %vm260_vm1, %v1392_v44  ;;  %v1401_v48 = vmax.f32 %v1389_v43, %v465_v45  ;;  %531 = vperm.xlu1 %1175, %v1392_v44  }
 0x180   : > { %v474_v49 = vpop.xlane.xlu1 %473 }
 0x181   : > { %v495_v51 = vsub.f32 %v1389_v43, %v1401_v48  ;;  %817 = vst.msk [vmem:[#allocation2] sm:$0xff] %vm260_vm1, %v1401_v48  ;;  %v1411_v52 = vmax.f32 %v1394_v46, %v474_v49  ;;  %521 = vperm.xlu0 %1174, %v1401_v48  }
 0x182   : > { %v468_v53 = vpop.xlane.xlu0 %467 }
 0x183   : > { %v498_v54 = vsub.f32 %v1394_v46, %v1411_v52  ;;  %820 = vst.msk [vmem:[#allocation2 + $0x18] sm:$0xff] %vm260_vm1, %v1411_v52  ;;  %v1419_v55 = vmax.f32 %v1404_v50, %v468_v53  ;;  %536 = vperm.xlu1 %1175, %v1411_v52  }
 0x185   : > { %v496_v57 = vsub.f32 %v1404_v50, %v1419_v55  ;;  %818 = vst.msk [vmem:[#allocation2 + $0x8] sm:$0xff] %vm260_vm1, %v1419_v55  ;;  %v509_v50 = vmul.f32 1.442695, %v498_v54 }
 0x186   : > { %v477_v58 = vpop.xlane.xlu0 %476 }
 0x187   : > { %v1435_v60 = vmax.f32 %v1422_v56, %v477_v58  ;;  %526 = vperm.xlu1 %1175, %v1419_v55  }
 0x189   : > { %v499_v63 = vsub.f32 %v1422_v56, %v1435_v60  ;;  %821 = vst.msk [vmem:[#allocation2 + $0x20] sm:$0xff] %vm260_vm1, %v1435_v60 }
 0x18a   : > { %v483_v0 = vpop.xlane.xlu0 %482  ;;  %v480_v1 = vpop.xlane.xlu1 %479 }
 0x18b   : > { %v1445_v2 = vmax.f32 %v1428_v59, %v483_v0  ;;  %v1448_v3 = vmax.f32 %v1438_v61, %v480_v1  ;;  %v511_v55 = vmul.f32 1.442695, %v499_v63 }
 0x18d   : > { %v501_v6 = vsub.f32 %v1428_v59, %v1445_v2  ;;  %823 = vst.msk [vmem:[#allocation2 + $0x30] sm:$0xff] %vm260_vm1, %v1445_v2  ;;  %v500_v7 = vsub.f32 %v1438_v61, %v1448_v3  ;;  %822 = vst.msk [vmem:[#allocation2 + $0x28] sm:$0xff] %vm260_vm1, %v1448_v3  ;;  %551 = vperm.xlu1 %1175, %v1445_v2   ;;  %v585_v59 = vld [vmem:[#allocation3 + $0x10] sm:$0xff] }
 0x18e   : > { %v486_v8 = vpop.xlane.xlu1 %485 }
 0x18f   : > { %v1462_v9 = vmax.f32 %v1450_v5, %v486_v8  ;;  %v513_v43 = vmul.f32 1.442695, %v500_v7  ;;  %v515_v41 = vmul.f32 1.442695, %v501_v6  ;;  %v586_v6 = vld [vmem:[#allocation3 + $0x18] sm:$0xff] }
 0x191   : > { %v502_v11 = vsub.f32 %v1450_v5, %v1462_v9  ;;  %824 = vst.msk [vmem:[#allocation2 + $0x38] sm:$0xff] %vm260_vm1, %v1462_v9  ;;  %541 = vperm.xlu1 %1175, %v1435_v60   ;;  %v583_v60 = vld [vmem:[#allocation3] sm:$0xff] }
 0x193   : > { %v517_v44 = vmul.f32 1.442695, %v502_v11 }
 0x195   : > { %546 = vperm.xlu1 %1175, %v1448_v3  }
 0x199   : > { %556 = vperm.xlu1 %1175, %v1462_v9   ;;  %v584_v9 = vld [vmem:[#allocation3 + $0x8] sm:$0xff] }
 0x1fa   : > { %v532_v13 = vpop.permute.xlu1 %531 }
 0x1fb   : > { %v561_v14 = vsub.f32 %v1332_v16, %v532_v13 }
 0x1fc   : > { %v522_v15 = vpop.permute.xlu0 %521 }
 0x1fd   : > { %v571_v17 = vmul.f32 1.442695, %v561_v14  ;;  %v559_v18 = vsub.f32 %v1337_v19, %v522_v15  ;;  %v505_v15 = vmul.f32 1.442695, %v496_v57 }
 0x1fe   : > { %v537_v20 = vpop.permute.xlu1 %536 }
 0x1ff   : > { %1188 = vpow2.f32 %v571_v17  ;;  %v567_v21 = vmul.f32 1.442695, %v559_v18  ;;  %v562_v23 = vsub.f32 %v1342_v22, %v537_v20  ;;  %v503_v20 = vmul.f32 1.442695, %v495_v51 }
 0x201   : > { %1190 = vpow2.f32 %v567_v21  ;;  %v573_v24 = vmul.f32 1.442695, %v562_v23  ;;  %v507_v21 = vmul.f32 1.442695, %v497_v47 }
 0x202   : > { %v527_v26 = vpop.permute.xlu1 %526 }
 0x203   : > { %1192 = vpow2.f32 %v573_v24  ;;  %v560_v27 = vsub.f32 %v1347_v25, %v527_v26 }
 0x205   : > { %v569_v28 = vmul.f32 1.442695, %v560_v27 }
 0x207   : > { %1194 = vpow2.f32 %v569_v28 }
 0x208   : > { %v552_v30 = vpop.permute.xlu1 %551 }
 0x209   : > { %v565_v16 = vsub.f32 %v1357_v32, %v552_v30 }
 0x20b   : > { %v579_v22 = vmul.f32 1.442695, %v565_v16 }
 0x20c   : > { %v1189_v31 = vpop.eup %1188  ;;  %v542_v33 = vpop.permute.xlu1 %541 }
 0x20d   : > { %v563_v19 = vsub.f32 %v1352_v29, %v542_v33  ;;  %v605_v34 = vsel %vm462_vm3, %v1189_v31, 0.0 }
 0x20e   : > { %v1191_v36 = vpop.eup %1190  ;;  %606 = vadd.xlane.f32.xlu0 %v605_v34 }
 0x20f   : > { %v575_v37 = vmul.f32 1.442695, %v563_v19  ;;  %v599_v39 = vsel %vm462_vm3, %v1191_v36, 0.0 }
 0x210   : > { %v1193_v40 = vpop.eup %1192  ;;  %600 = vadd.xlane.f32.xlu1 %v599_v39  ;;  %v547_v25 = vpop.permute.xlu1 %546 }
 0x211   : > { %1196 = vpow2.f32 %v575_v37  ;;  %v564_v42 = vsub.f32 %v1360_v35, %v547_v25  ;;  %v608_v45 = vsel %vm462_vm3, %v1193_v40, 0.0  ;;  %v697_v0 = vpack.c.bf16 %v1193_v40, %v1189_v31  ;;  %v587_v31 = vld [vmem:[#allocation3 + $0x20] sm:$0xff] }
 0x212   : > { %1198 = vpow2.f32 %v579_v22  ;;  %v588_v22 = vld [vmem:[#allocation3 + $0x28] sm:$0xff] }
 0x213   : > { %v577_v32 = vmul.f32 1.442695, %v564_v42 }
 0x214   : > { %v1195_v49 = vpop.eup %1194  ;;  %609 = vadd.xlane.f32.xlu1 %v608_v45  ;;  %v557_v29 = vpop.permute.xlu1 %556  ;;  %v590_v45 = vld [vmem:[#allocation3 + $0x38] sm:$0xff] }
 0x215   : > { %1200 = vpow2.f32 %v577_v32  ;;  %v566_v53 = vsub.f32 %v1367_v38, %v557_v29  ;;  %v602_v58 = vsel %vm462_vm3, %v1195_v49, 0.0  ;;  %v696_v62 = vpack.c.bf16 %v1195_v49, %v1191_v36  ;;  %v589_v36 = vld [vmem:[#allocation3 + $0x30] sm:$0xff] }
 0x216   : > { %603 = vadd.xlane.f32.xlu0 %v602_v58 }
 0x217   : > { %v581_v1 = vmul.f32 1.442695, %v566_v53  ;;  %1135 = vmatprep.mubr.msk.bf16.mxu1 %vm462_vm3, %v696_v62 }
 0x218   : > { %1136 = vmatmul.mubr.msk.bf16.vlgmr.msra.gmra.mxu1 %vm462_vm3, %v697_v0 }
 0x219   : > { %1202 = vpow2.f32 %v581_v1 }
 0x21a   : > { %1204 = vpow2.f32 %v505_v15 }
 0x21b   : > { %1206 = vpow2.f32 %v503_v20 }
 0x21c   : > { %1208 = vpow2.f32 %v507_v21  ;;  %v642_v21 = vld [vmem:[#allocation4 + $0x10] sm:$0xff] }
 0x21d   : > { %1210 = vpow2.f32 %v509_v50 }
 0x21e   : > { %v1197_v35 = vpop.eup %1196  ;;  %1212 = vpow2.f32 %v511_v55  ;;  %v640_v55 = vld [vmem:[#allocation4] sm:$0xff] }
 0x21f   : > { %v611_v4 = vsel %vm462_vm3, %v1197_v35, 0.0  ;;  %v1199_v8 = vpop.eup %1198  ;;  %1214 = vpow2.f32 %v513_v43 }
 0x220   : > { %612 = vadd.xlane.f32.xlu0 %v611_v4  ;;  %v617_v12 = vsel %vm462_vm3, %v1199_v8, 0.0  ;;  %1216 = vpow2.f32 %v515_v41  ;;  %v643_v41 = vld [vmem:[#allocation4 + $0x18] sm:$0xff] }
 0x221   : > { %1218 = vpow2.f32 %v517_v44 }
 0x222   : > { %v1201_v10 = vpop.eup %1200 }
 0x223   : > { %v614_v38 = vsel %vm462_vm3, %v1201_v10, 0.0  ;;  %v698_v13 = vpack.c.bf16 %v1201_v10, %v1197_v35 }
 0x224   : > { %618 = vadd.xlane.f32.xlu0 %v617_v12  ;;  %615 = vadd.xlane.f32.xlu1 %v614_v38 }
 0x225   : > { %1139 = vmatprep.mubr.msk.bf16.mxu1 %vm462_vm3, %v698_v13 }
 0x226   : > { %v1203_v14 = vpop.eup %1202 }
 0x227   : > { %v620_v17 = vsel %vm462_vm3, %v1203_v14, 0.0  ;;  %v699_v18 = vpack.c.bf16 %v1203_v14, %v1199_v8  ;;  %v1205_v46 = vpop.eup %1204 }
 0x228   : > { %621 = vadd.xlane.f32.xlu1 %v620_v17  ;;  %v1207_v47 = vpop.eup %1206  ;;  %v592_v26 = vmul.f32 %v1205_v46, %v584_v9 }
 0x229   : > { %1140 = vmatmul.mubr.msk.bf16.gmra.mxu1 %vm462_vm3, %v699_v18  ;;  %v1209_v48 = vpop.eup %1208  ;;  %v591_v3 = vmul.f32 %v1207_v47, %v583_v60 }
 0x22a   : > { %v1211_v51 = vpop.eup %1210  ;;  %v593_v61 = vmul.f32 %v1209_v48, %v585_v59 }
 0x22b   : > { %v1213_v52 = vpop.eup %1212  ;;  %v594_v11 = vmul.f32 %v1211_v51, %v586_v6 }
 0x22c   : > { %v1215_v54 = vpop.eup %1214  ;;  %v595_v19 = vmul.f32 %v1213_v52, %v587_v31 }
 0x22d   : > { %v1217_v56 = vpop.eup %1216  ;;  %v596_v25 = vmul.f32 %v1215_v54, %v588_v22 }
 0x22e   : > { %v1219_v57 = vpop.eup %1218  ;;  %v597_v40 = vmul.f32 %v1217_v56, %v589_v36 }
 0x22f   : > { %v598_v58 = vmul.f32 %v1219_v57, %v590_v45 }
 0x239   : > { %655 = vperm.xlu1 %1175, %v1205_v46  }
 0x23a   : > { %650 = vperm.xlu0 %1174, %v1207_v47  }
 0x23d   : > { %660 = vperm.xlu1 %1175, %v1209_v48  }
 0x23e   : > { %665 = vperm.xlu0 %1174, %v1211_v51   ;;  %v641_v51 = vld [vmem:[#allocation4 + $0x8] sm:$0xff] }
 0x241   : > { %670 = vperm.xlu1 %1175, %v1213_v52  }
 0x242   : > { %675 = vperm.xlu0 %1174, %v1215_v54  }
 0x245   : > { %680 = vperm.xlu1 %1175, %v1217_v56  }
 0x246   : > { %685 = vperm.xlu0 %1174, %v1219_v57  }
 0x297   : > { %v607_v63 = vpop.xlane.xlu0 %606 }
 0x298   : > { %v625_v2 = vadd.f32 %v607_v63, %v593_v61 }
 0x299   : > { %v601_v5 = vpop.xlane.xlu1 %600 }
 0x29a   : > { %634 = vst.msk [vmem:[#allocation3 + $0x10] sm:$0xff] %vm260_vm1, %v625_v2  ;;  %v623_v7 = vadd.f32 %v601_v5, %v591_v3  ;;  %v646_v5 = vld [vmem:[#allocation4 + $0x30] sm:$0xff] }
 0x29c   : > { %632 = vst.msk [vmem:[#allocation3] sm:$0xff] %vm260_vm1, %v623_v7  ;;  %v644_v7 = vld [vmem:[#allocation4 + $0x20] sm:$0xff] }
 0x29d   : > { %v610_v23 = vpop.xlane.xlu1 %609 }
 0x29e   : > { %v626_v24 = vadd.f32 %v610_v23, %v594_v11  ;;  %v647_v11 = vld [vmem:[#allocation4 + $0x38] sm:$0xff] }
 0x29f   : > { %v604_v27 = vpop.xlane.xlu0 %603 }
 0x2a0   : > { %635 = vst.msk [vmem:[#allocation3 + $0x18] sm:$0xff] %vm260_vm1, %v626_v24  ;;  %v624_v28 = vadd.f32 %v604_v27, %v592_v26 }
 0x2a1   : > { %v830_v30 = vld [vmem:[#allocation3 + $0x10] sm:$0xff] }
 0x2a2   : > { %633 = vst.msk [vmem:[#allocation3 + $0x8] sm:$0xff] %vm260_vm1, %v624_v28  ;;  %1220 = vrcp.f32 %v830_v30  ;;  %v645_v28 = vld [vmem:[#allocation4 + $0x28] sm:$0xff] }
 0x2a3   : > { %v828_v16 = vld [vmem:[#allocation3] sm:$0xff] }
 0x2a4   : > { %1222 = vrcp.f32 %v828_v16 }
 0x2a7   : > { %v831_v33 = vld [vmem:[#allocation3 + $0x18] sm:$0xff] }
 0x2a8   : > { %1224 = vrcp.f32 %v831_v33 }
 0x2a9   : > { %v613_v34 = vpop.xlane.xlu0 %612  ;;  %v829_v37 = vld [vmem:[#allocation3 + $0x8] sm:$0xff] }
 0x2aa   : > { %v627_v39 = vadd.f32 %v613_v34, %v595_v19  ;;  %1226 = vrcp.f32 %v829_v37 }
 0x2ac   : > { %636 = vst.msk [vmem:[#allocation3 + $0x20] sm:$0xff] %vm260_vm1, %v627_v39 }
 0x2ad   : > { %v619_v42 = vpop.xlane.xlu0 %618  ;;  %v616_v32 = vpop.xlane.xlu1 %615 }
 0x2ae   : > { %v629_v49 = vadd.f32 %v619_v42, %v597_v40  ;;  %v628_v29 = vadd.f32 %v616_v32, %v596_v25 }
 0x2af   : > { %v1221_v53 = vpop.eup %1220 }
 0x2b0   : > { %638 = vst.msk [vmem:[#allocation3 + $0x30] sm:$0xff] %vm260_vm1, %v629_v49  ;;  %637 = vst.msk [vmem:[#allocation3 + $0x28] sm:$0xff] %vm260_vm1, %v628_v29  ;;  %864 = vperm.xlu1 %1175, %v1221_v53  }
 0x2b1   : > { %v622_v62 = vpop.xlane.xlu1 %621  ;;  %v1223_v1 = vpop.eup %1222 }
 0x2b2   : > { %v630_v0 = vadd.f32 %v622_v62, %v598_v58 }
 0x2b3   : > { %v832_v35 = vld [vmem:[#allocation3 + $0x20] sm:$0xff] }
 0x2b4   : > { %639 = vst.msk [vmem:[#allocation3 + $0x38] sm:$0xff] %vm260_vm1, %v630_v0  ;;  %854 = vperm.xlu1 %1175, %v1223_v1   ;;  %1228 = vrcp.f32 %v832_v35 }
 0x2b5   : > { %v1225_v4 = vpop.eup %1224  ;;  %v656_v18 = vpop.permute.xlu1 %655 }
 0x2b6   : > { %869 = vperm.xlu0 %1174, %v1225_v4   ;;  %v651_v20 = vpop.permute.xlu0 %650  ;;  %v689_v59 = vmul.f32 %v656_v18, %v641_v51 }
 0x2b7   : > { %v834_v8 = vld [vmem:[#allocation3 + $0x30] sm:$0xff]  ;;  %v833_v10 = vld [vmem:[#allocation3 + $0x28] sm:$0xff]  ;;  %v1227_v12 = vpop.eup %1226  ;;  %v688_v47 = vmul.f32 %v651_v20, %v640_v55 }
 0x2b8   : > { %1230 = vrcp.f32 %v834_v8 }
 0x2b9   : > { %1232 = vrcp.f32 %v833_v10  ;;  %v661_v50 = vpop.permute.xlu1 %660 }
 0x2ba   : > { %859 = vperm.xlu0 %1174, %v1227_v12   ;;  %v690_v43 = vmul.f32 %v661_v50, %v642_v21  ;;  %v666_v44 = vpop.permute.xlu0 %665 }
 0x2bb   : > { %v835_v38 = vld [vmem:[#allocation3 + $0x38] sm:$0xff]  ;;  %v691_v54 = vmul.f32 %v666_v44, %v643_v41 }
 0x2bc   : > { %1234 = vrcp.f32 %v835_v38 }
 0x2bd   : > { %v671_v63 = vpop.permute.xlu1 %670 }
 0x2be   : > { %v676_v3 = vpop.permute.xlu0 %675  ;;  %v692_v26 = vmul.f32 %v671_v63, %v644_v7 }
 0x2bf   : > { %v693_v19 = vmul.f32 %v676_v3, %v645_v28 }
 0x2c1   : > { %v1229_v13 = vpop.eup %1228  ;;  %v681_v6 = vpop.permute.xlu1 %680 }
 0x2c2   : > { %874 = vperm.xlu1 %1175, %v1229_v13   ;;  %v694_v9 = vmul.f32 %v681_v6, %v646_v5  ;;  %v686_v23 = vpop.permute.xlu0 %685 }
 0x2c3   : > { %v695_v16 = vmul.f32 %v686_v23, %v647_v11 }
 0x2c5   : > { %v1231_v14 = vpop.eup %1230 }
 0x2c6   : > { %v1233_v15 = vpop.eup %1232  ;;  %884 = vperm.xlu1 %1175, %v1231_v14  }
 0x2c7   : > { %879 = vperm.xlu0 %1174, %v1233_v15  }
 0x2c9   : > { %v1235_v17 = vpop.eup %1234 }
 0x2cb   : > { %889 = vperm.xlu0 %1174, %v1235_v17  }
 0x2d8   : > { %v1137_v46 = vpop.f32.mrf.mxu1 }
 0x2d9   : > { %v803_v48 = vadd.f32 %v1137_v46, %v690_v43 }
 0x2da   : > { %v770_v52 = vpop.f32.mrf.mxu1 }
 0x2db   : > { %811 = vst.msk [vmem:[#allocation4 + $0x10] sm:$0xff] %vm277_vm0, %v803_v48  ;;  %v801_v56 = vadd.f32 %v770_v52, %v688_v47 }
 0x2dc   : > { %v1138_v57 = vpop.f32.mrf.mxu1 }
 0x2dd   : > { %809 = vst.msk [vmem:[#allocation4] sm:$0xff] %vm277_vm0, %v801_v56  ;;  %v804_v60 = vadd.f32 %v1138_v57, %v691_v54 }
 0x2de   : > { %v773_v61 = vpop.f32.mrf.mxu1 }
 0x2df   : > { %812 = vst.msk [vmem:[#allocation4 + $0x18] sm:$0xff] %vm277_vm0, %v804_v60  ;;  %v802_v2 = vadd.f32 %v773_v61, %v689_v59 }
 0x2e1   : > { %810 = vst.msk [vmem:[#allocation4 + $0x8] sm:$0xff] %vm277_vm0, %v802_v2 }
 0x2e2   : > { %v846_v37 = vld [vmem:[#allocation4 + $0x10] sm:$0xff] }
 0x2e4   : > { %v844_v42 = vld [vmem:[#allocation4] sm:$0xff] }
 0x2e6   : > { %v847_v49 = vld [vmem:[#allocation4 + $0x18] sm:$0xff] }
 0x2e8   : > { %v845_v1 = vld [vmem:[#allocation4 + $0x8] sm:$0xff] }
 0x2e9   : > { %v1141_v24 = vpop.f32.mrf.mxu1 }
 0x2ea   : > { %v807_v27 = vadd.f32 %v1141_v24, %v694_v9 }
 0x2eb   : > { %v786_v30 = vpop.f32.mrf.mxu1 }
 0x2ec   : > { %815 = vst.msk [vmem:[#allocation4 + $0x30] sm:$0xff] %vm277_vm0, %v807_v27  ;;  %v805_v31 = vadd.f32 %v786_v30, %v692_v26 }
 0x2ed   : > { %v1142_v33 = vpop.f32.mrf.mxu1 }
 0x2ee   : > { %813 = vst.msk [vmem:[#allocation4 + $0x20] sm:$0xff] %vm277_vm0, %v805_v31  ;;  %v808_v34 = vadd.f32 %v1142_v33, %v695_v16 }
 0x2ef   : > { %v789_v36 = vpop.f32.mrf.mxu1 }
 0x2f0   : > { %816 = vst.msk [vmem:[#allocation4 + $0x38] sm:$0xff] %vm277_vm0, %v808_v34  ;;  %v806_v22 = vadd.f32 %v789_v36, %v693_v19 }
 0x2f2   : > { %814 = vst.msk [vmem:[#allocation4 + $0x28] sm:$0xff] %vm277_vm0, %v806_v22 }
 0x2f3   : > { %v850_v13 = vld [vmem:[#allocation4 + $0x30] sm:$0xff] }
 0x2f5   : > { %v848_v8 = vld [vmem:[#allocation4 + $0x20] sm:$0xff] }
 0x2f7   : > { %v851_v55 = vld [vmem:[#allocation4 + $0x38] sm:$0xff] }
 0x2f9   : > { %v849_v15 = vld [vmem:[#allocation4 + $0x28] sm:$0xff] }
 0x32b   : > { %v865_v39 = vpop.permute.xlu1 %864 }
 0x32c   : > { %v894_v40 = vmul.f32 %v865_v39, %v846_v37 }
 0x32e   : > { %v1089_v25 = vpack.c.bf16 %v894_v40, %v894_v40 }
 0x32f   : > { %v855_v32 = vpop.permute.xlu1 %854 }
 0x330   : > { %935 = vst.msk [vmem:[%s1535_s28 + $0x8] sm:$0xf] %vm932_vm4, %v1089_v25  ;;  %v892_v45 = vmul.f32 %v855_v32, %v844_v42 }
 0x331   : > { %v870_v29 = vpop.permute.xlu0 %869 }
 0x332   : > { %v1087_v53 = vpack.c.bf16 %v892_v45, %v892_v45  ;;  %v895_v58 = vmul.f32 %v870_v29, %v847_v49 }
 0x334   : > { %933 = vst.msk [vmem:[%s1535_s28] sm:$0xf] %vm932_vm4, %v1087_v53  ;;  %v1090_v62 = vpack.c.bf16 %v895_v58, %v895_v58 }
 0x335   : > { %v860_v0 = vpop.permute.xlu0 %859 }
 0x336   : > { %936 = vst.msk [vmem:[%s1535_s28 + $0xc] sm:$0xf] %vm932_vm4, %v1090_v62  ;;  %v893_v35 = vmul.f32 %v860_v0, %v845_v1 }
 0x338   : > { %v1088_v4 = vpack.c.bf16 %v893_v35, %v893_v35 }
 0x33a   : > { %934 = vst.msk [vmem:[%s1535_s28 + $0x4] sm:$0xf] %vm932_vm4, %v1088_v4 }
 0x33d   : > { %v875_v10 = vpop.permute.xlu1 %874 }
 0x33e   : > { %v896_v12 = vmul.f32 %v875_v10, %v848_v8 }
 0x340   : > { %v1091_v38 = vpack.c.bf16 %v896_v12, %v896_v12 }
 0x341   : > { %v885_v14 = vpop.permute.xlu1 %884 }
 0x342   : > { %937 = vst.msk [vmem:[%s1535_s28 + $0x10] sm:$0xf] %vm932_vm4, %v1091_v38  ;;  %v880_v17 = vpop.permute.xlu0 %879  ;;  %v898_v18 = vmul.f32 %v885_v14, %v850_v13 }
 0x343   : > { %v897_v20 = vmul.f32 %v880_v17, %v849_v15 }
 0x344   : > { %v1093_v21 = vpack.c.bf16 %v898_v18, %v898_v18 }
 0x345   : > { %v1092_v50 = vpack.c.bf16 %v897_v20, %v897_v20 }
 0x346   : > { %939 = vst.msk [vmem:[%s1535_s28 + $0x18] sm:$0xf] %vm932_vm4, %v1093_v21  ;;  %v890_v43 = vpop.permute.xlu0 %889 }
 0x347   : > { %938 = vst.msk [vmem:[%s1535_s28 + $0x14] sm:$0xf] %vm932_vm4, %v1092_v50  ;;  %v899_v41 = vmul.f32 %v890_v43, %v851_v55 }
 0x349   : > { %v1094_v44 = vpack.c.bf16 %v899_v41, %v899_v41 }
 0x34b   : > { %940 = vst.msk [vmem:[%s1535_s28 + $0x1c] sm:$0xf] %vm932_vm4, %v1094_v44 }
 0x34c PF: > { %s13_s14 = sadd.s32 1, %s1258_s14   ;;  %s1566_s12 = smov %s1254_s13 }
 0x34d   : > { %p10_p5 = scmp.ge.s32.totalorder %s13_s14, 4   ;;  %s1567_s13 = smov %s1569_s15 }
 0x34f   :  { %12 = sbr.rel (!%p10_p5) target bundleno = 2 (0x2), region = 76 }

// kernel: _lambda_.31
= control target key start
LH: loop header
LB: loop body
LE: loop exit
PB: predicated region body
PF: predicated region fallthrough
CT: control target
= control target key end

     0   :  { %s405_s15 = smov 0   ;;  %s431_s0 = inlined_call_operand.vmem [shape: bf16[2,4,64], index: 0, kind: input, shape index: {}]   ;;  %s432_s1 = inlined_call_operand.vmem [shape: bf16[1,8,4], index: 1, kind: input, shape index: {}]   ;;  %s433_s2 = inlined_call_operand.vmem [shape: f32[8,1], index: 2, kind: input, shape index: {}]   ;;  %s434_s3 = inlined_call_operand.vmem [shape: bf16[2,8,64], index: 3, kind: input, shape index: {}]   ;;  %s435_s4 = inlined_call_operand.vmem [shape: bf16[2,8,64], index: 4, kind: output, shape index: {}]  }
   0x1 LB: > { %s338_s16 = sadd.s32 4294967295, %s375_s15   ;;  %p342_p0 = scmp.ge.s32.totalorder %s375_s15, 1  ;;  %s375_s15 = sphi %s405_s15, %s14_s15  }
   0x2   : > { %p170_p1 = scmp.lt.s32.totalorder %s375_s15, 3 }
   0x4   : > { %p171_p2 = pnand %p342_p0, %p170_p1 }
   0x5   : > { %p198_p3 = scmp.lt.s32.totalorder (!%p171_p2), %s338_s16, 1 }
   0x6   : > { %174 = sbr.rel (%p171_p2) target bundleno = 219 (0xdb), region = 36 }
   0xb   : > { %v377_v0 = vmov 0.0   ;;  %vm378_vm0 = vmmov 0   ;;  %v213_v1 = vld [vmem:[%s433_s2] sm:$0xff]  ;;  %s437_s16 = smov (!%p198_p3, %s338_s16), 1  ;;  %v379_v2 = vmov 0   ;;  %vm223_vm1 = vcmask 1041408  }
   0xc   : > { %351 = vmatprep.subr.bf16.mxu0 %v377_v0  ;;  %353 = vmatprep.mubr.msk.bf16.mxu0 %vm378_vm0, %v377_v0  ;;  %s343_s19 = sshll.u32 %s437_s16, 1  ;;  %v212_v5 = vld [vmem:[%s432_s1] sm:$0xf]  ;;  %vm219_vm2 = vcmask 31744   ;;  %s344_s25 = sshll.u32 %s437_s16, 2  ;;  %vm271_vm3 = vcmask 519168  }
   0xd   : > { %368 = vset.pattern.permute.xlu0 %v379_v2  ;;  %s201_s22 = scalar_lea.vmem %s431_s0, %s343_s19  ;;  %s205_s28 = scalar_lea.vmem %s434_s3, %s344_s25 }
   0xe   : > { %216 = vperm.xlu0 %368, %v213_v1   ;;  %v211_v3 = vld [vmem:[%s201_s22] sm:$0x3]  ;;  %s209_s5 = scalar_lea.vmem %s435_s4, %s344_s25 }
   0xf   : > { %v225_v4 = vsel %vm223_vm1, %v211_v3, 0  ;;  %v267_v6 = vld [vmem:[%s205_s28] sm:$0xf] }
  0x10   : > { %352 = vmatpush3.bf16.msra.mxu0 %v225_v4  ;;  %v268_v8 = vunpack.c.l.bf16 %v267_v6 }
  0x13   : > { %354 = vmatmul.mubr.msk.bf16.vlgmr.msra.gmra.mxu0 %vm219_vm2, %v212_v5 }
  0x89   : > { %v217_v7 = vpop.permute.xlu0 %216 }
  0xd3   : > { %v261_v9 = vpop.f32.mrf.mxu0 }
  0xd4   : > { %v262_v10 = vadd.f32 %v261_v9, %v217_v7 }
  0xd5   : > { %v355_v11 = vpop.f32.mrf.mxu0 }
  0xd6   : > { %v269_v12 = vadd.f32 %v268_v8, %v262_v10 }
  0xd7   : > { %v264_v13 = vpop.f32.mrf.mxu0 }
  0xd8   : > { %v270_v14 = vpack.c.bf16 %v269_v12, %v269_v12 }
  0xd9   : > { %v356_v15 = vpop.f32.mrf.mxu0 }
  0xda   : > { %272 = vst.msk [vmem:[%s209_s5] sm:$0xf] %vm271_vm3, %v270_v14 }
  0xdb PF: > { %s14_s15 = sadd.s32 1, %s375_s15  }
  0xdc   : > { %p11_p4 = scmp.ge.s32.totalorder %s14_s15, 4  }
  0xde   :  { %13 = sbr.rel (!%p11_p4) target bundleno = 1 (0x1), region = 69 }

// kernel: _lambda_.32
= control target key start
LH: loop header
LB: loop body
LE: loop exit
PB: predicated region body
PF: predicated region fallthrough
CT: control target
= control target key end

     0   :  { %s1292_s17 = smov 0   ;;  %s1419_s0 = inlined_call_operand.vmem [shape: bf16[2,8,102], index: 0, kind: input, shape index: {}]   ;;  %s1420_s1 = inlined_call_operand.vmem [shape: bf16[9,32,8], index: 1, kind: input, shape index: {}]   ;;  %s1421_s2 = inlined_call_operand.vmem [shape: f32[32,1], index: 2, kind: input, shape index: {}]   ;;  %s1422_s3 = inlined_call_operand.<no memory space> [shape: f32[1,1], index: 3, kind: input, shape index: {}]   ;;  %s1423_s4 = inlined_call_operand.vmem [shape: bf16[2,32,80], index: 4, kind: output, shape index: {}]  }
   0x1   :  { %v9_v0 = vstv %s1422_s3 }
   0x2   :  { %10 = vst [vmem:[#allocation2] sm:$0x1] %v9_v0 }
   0x3 LB: > { %s1030_s18 = sadd.s32 4294967295, %s1253_s17   ;;  %p1034_p0 = scmp.ge.s32.totalorder %s1253_s17, 1  ;;  %s1253_s17 = sphi %s1292_s17, %s16_s17  }
   0x4   : > { %p163_p1 = scmp.lt.s32.totalorder %s1253_s17, 3 }
   0x6   : > { %p164_p2 = pnand %p1034_p0, %p163_p1 }
   0x7   : > { %p188_p3 = scmp.lt.s32.totalorder (!%p164_p2), %s1030_s18, 1  ;;  %s1255_s30 = smov (!%p164_p2), 127  }
   0x8   : > { %167 = sbr.rel (%p164_p2) target bundleno = 380 (0x17c), region = 36  ;;  %s1256_s5 = smov (!%p164_p2), 118  }
   0x9   : > { %s1257_s6 = smov (!%p164_p2), 126   ;;  %s1258_s7 = smov (!%p164_p2), 117  }
   0xa   : > { %s1259_s8 = smov (!%p164_p2), 116   ;;  %s1260_s9 = smov (!%p164_p2), 108  }
   0xb   : > { %s1261_s10 = smov (!%p164_p2), 107   ;;  %s1262_s11 = smov (!%p164_p2), 106  }
   0xd   : > { %v1229_v1 = vld [vmem:[%s1420_s1 + $0x10] sm:$0xff]   ;;  %vm223_vm0 = vcmask 64512   ;;  %v1230_v2 = vld [vmem:[%s1420_s1] sm:$0xff]   ;;  %s1425_s18 = smov (!%p188_p3, %s1030_s18), 1  ;;  %vm230_vm1 = vcmask 1043456   ;;  %v1232_v6 = vld [vmem:[%s1420_s1 + $0x8] sm:$0xff]  }
   0xe   : > { %1148 = vmatprep.mubr.msk.bf16.mxu0 %vm223_vm0, %v1229_v1  ;;  %1154 = vmatprep.mubr.msk.bf16.mxu1 %vm223_vm0, %v1230_v2  ;;  %s1035_s22 = sshll.u32 %s1425_s18, 2  ;;  %v1235_v7 = vld [vmem:[%s1420_s1 + $0x30] sm:$0xff]   ;;  %v905_v8 = vld [vmem:[%s1421_s2 + $0x8] sm:$0xff]  ;;  %v904_v9 = vld [vmem:[%s1421_s2] sm:$0xff]  ;;  %v1263_v10 = vmov 0   ;;  %s1114_s24 = sshll.u32 %s1425_s18, 4 }
   0xf   : > { %s191_s25 = scalar_lea.vmem %s1419_s0, %s1035_s22  ;;  %1227 = vset.pattern.permute.xlu1 %v1263_v10  ;;  %1226 = vset.pattern.permute.xlu0 %v1263_v10  ;;  %v906_v11 = vld [vmem:[%s1421_s2 + $0x10] sm:$0xff]  ;;  %v907_v12 = vld [vmem:[%s1421_s2 + $0x18] sm:$0xff]  ;;  %v1107_v13 = vld [vmem:[#allocation2] ss:$0 sm:$0xff]  ;;  %vm970_vm3 = vcmask 650240   ;;  %s196_s27 = scalar_lea.vmem %s1423_s4, %s1114_s24 }
  0x10   : > { %v198_v3 = vld [vmem:[%s191_s25] sm:$0xf]  ;;  %v1231_v17 = vld [vmem:[%s1420_s1 + $0x18] sm:$0xff]   ;;  %v1239_v23 = vld [vmem:[%s1420_s1 + $0x50] sm:$0xff]  }
  0x11   : > { %v1044_v4 = vcombine.low %v198_v3, %v198_v3  ;;  %1201 = vmatprep.subr.msk.bf16.mxu1 %vm230_vm1, %v198_v3  ;;  %v300_v5 = vsel %vm230_vm1, %v198_v3, 0  ;;  %v1233_v19 = vld [vmem:[%s1420_s1 + $0x20] sm:$0xff]   ;;  %v1236_v20 = vld [vmem:[%s1420_s1 + $0x38] sm:$0xff]   ;;  %v1234_v26 = vld [vmem:[%s1420_s1 + $0x28] sm:$0xff]  }
  0x12   : > { %1153 = vmatpush3.bf16.msra.mxu1 %v300_v5  ;;  %v1237_v28 = vld [vmem:[%s1420_s1 + $0x40] sm:$0xff]   ;;  %v1240_v30 = vld [vmem:[%s1420_s1 + $0x58] sm:$0xff]   ;;  %v1243_v33 = vld [vmem:[%s1420_s1 + $0x70] sm:$0xff]  }
  0x13   : > { %221 = vrot.lane.b32.xlu0 %v1044_v4, %s1255_s30  ;;  %445 = vrot.lane.b32.xlu1 %v1044_v4, %s1256_s5  ;;  %v1238_v35 = vld [vmem:[%s1420_s1 + $0x48] sm:$0xff]   ;;  %v1241_v36 = vld [vmem:[%s1420_s1 + $0x60] sm:$0xff]  }
  0x14   : > { %v1244_v38 = vld [vmem:[%s1420_s1 + $0x78] sm:$0xff]   ;;  %v1242_v40 = vld [vmem:[%s1420_s1 + $0x68] sm:$0xff]   ;;  %v1245_v41 = vld [vmem:[%s1420_s1 + $0x80] sm:$0xff]  }
  0x15   : > { %1155 = vmatmul.mubr.msk.bf16.vlgmr.msra.gmra.mxu1 %vm223_vm0, %v1232_v6  ;;  %v1246_v43 = vld [vmem:[%s1420_s1 + $0x88] sm:$0xff]  }
  0x16   : > { %1166 = vmatprep.mubr.msk.bf16.mxu1 %vm223_vm0, %v1235_v7 }
  0x17   : > { %366 = vrot.lane.b32.xlu0 %v1044_v4, %s1257_s6  ;;  %524 = vrot.lane.b32.xlu1 %v1044_v4, %s1258_s7 }
  0x1b   : > { %603 = vrot.lane.b32.xlu0 %v1044_v4, %s1259_s8  ;;  %682 = vrot.lane.b32.xlu1 %v1044_v4, %s1260_s9 }
  0x1f   : > { %761 = vrot.lane.b32.xlu0 %v1044_v4, %s1261_s10  ;;  %840 = vrot.lane.b32.xlu1 %v1044_v4, %s1262_s11 }
  0x23   : > { %915 = vperm.xlu1 %1227, %v905_v8   ;;  %910 = vperm.xlu0 %1226, %v904_v9  }
  0x27   : > { %920 = vperm.xlu1 %1227, %v906_v11   ;;  %925 = vperm.xlu0 %1226, %v907_v12  }
  0x2b   : > { %943 = vperm.xlu1 %1227, %v1107_v13  }
  0x85   : > { %v222_v14 = vpop.permute.xlu0 %221  ;;  %v446_v15 = vpop.permute.xlu1 %445 }
  0x86   : > { %1200 = vmatprep.subr.msk.bf16.mxu0 %vm230_vm1, %v222_v14  ;;  %v232_v16 = vsel %vm230_vm1, %v222_v14, 0  ;;  %v454_v18 = vsel %vm230_vm1, %v446_v15, 0  ;;  %1203 = vmatprep.subr.msk.bf16.mxu1 %vm230_vm1, %v446_v15 }
  0x87   : > { %1147 = vmatpush3.bf16.msra.mxu0 %v232_v16  ;;  %1165 = vmatpush3.bf16.msra.mxu1 %v454_v18 }
  0x89   : > { %v367_v21 = vpop.permute.xlu0 %366  ;;  %v525_v22 = vpop.permute.xlu1 %524 }
  0x8a   : > { %v375_v24 = vsel %vm230_vm1, %v367_v21, 0  ;;  %1149 = vmatmul.mubr.msk.bf16.vlgmr.msra.gmra.mxu0 %vm223_vm0, %v1231_v17  ;;  %1202 = vmatprep.subr.msk.bf16.mxu0 %vm230_vm1, %v367_v21  ;;  %v533_v29 = vsel %vm230_vm1, %v525_v22, 0 }
  0x8b   : > { %1159 = vmatpush3.bf16.msra.mxu0 %v375_v24  ;;  %1160 = vmatprep.mubr.msk.bf16.mxu0 %vm223_vm0, %v1233_v19 }
  0x8c   : > { %1204 = vmatprep.subr.msk.bf16.mxu0 %vm230_vm1, %v525_v22  ;;  %1167 = vmatmul.mubr.msk.bf16.vlgmr.msra.gmra.mxu1 %vm223_vm0, %v1236_v20 }
  0x8d   : > { %v604_v25 = vpop.permute.xlu0 %603  ;;  %1178 = vmatprep.mubr.msk.bf16.mxu1 %vm223_vm0, %v1239_v23  ;;  %v683_v31 = vpop.permute.xlu1 %682 }
  0x8e   : > { %v612_v27 = vsel %vm230_vm1, %v604_v25, 0  ;;  %1205 = vmatprep.subr.msk.bf16.mxu1 %vm230_vm1, %v604_v25  ;;  %v691_v37 = vsel %vm230_vm1, %v683_v31, 0 }
  0x8f   : > { %1177 = vmatpush3.bf16.msra.mxu1 %v612_v27 }
  0x91   : > { %v762_v32 = vpop.permute.xlu0 %761  ;;  %v841_v39 = vpop.permute.xlu1 %840 }
  0x92   : > { %1161 = vmatmul.mubr.msk.bf16.vlgmr.msra.gmra.mxu0 %vm223_vm0, %v1234_v26  ;;  %v770_v34 = vsel %vm230_vm1, %v762_v32, 0  ;;  %1207 = vmatprep.subr.msk.bf16.mxu1 %vm230_vm1, %v762_v32  ;;  %v849_v42 = vsel %vm230_vm1, %v841_v39, 0 }
  0x93   : > { %1171 = vmatpush3.bf16.msra.mxu0 %v533_v29  ;;  %1172 = vmatprep.mubr.msk.bf16.mxu0 %vm223_vm0, %v1237_v28 }
  0x94   : > { %1206 = vmatprep.subr.msk.bf16.mxu0 %vm230_vm1, %v683_v31  ;;  %1179 = vmatmul.mubr.msk.bf16.vlgmr.msra.gmra.mxu1 %vm223_vm0, %v1240_v30 }
  0x95   : > { %1189 = vmatpush3.bf16.msra.mxu1 %v770_v34  ;;  %1190 = vmatprep.mubr.msk.bf16.mxu1 %vm223_vm0, %v1243_v33 }
  0x9a   : > { %1173 = vmatmul.mubr.msk.bf16.vlgmr.msra.gmra.mxu0 %vm223_vm0, %v1238_v35 }
  0x9b   : > { %1183 = vmatpush3.bf16.msra.mxu0 %v691_v37  ;;  %1184 = vmatprep.mubr.msk.bf16.mxu0 %vm223_vm0, %v1241_v36 }
  0x9c   : > { %1208 = vmatprep.subr.msk.bf16.mxu0 %vm230_vm1, %v841_v39  ;;  %1191 = vmatmul.mubr.msk.bf16.vlgmr.msra.gmra.mxu1 %vm223_vm0, %v1244_v38 }
  0x9e   : > { %v916_v18 = vpop.permute.xlu1 %915  ;;  %v911_v37 = vpop.permute.xlu0 %910 }
  0xa2   : > { %1185 = vmatmul.mubr.msk.bf16.vlgmr.msra.gmra.mxu0 %vm223_vm0, %v1242_v40  ;;  %v921_v32 = vpop.permute.xlu1 %920 }
  0xa3   : > { %1195 = vmatpush3.bf16.msra.mxu0 %v849_v42  ;;  %1196 = vmatprep.mubr.msk.bf16.mxu0 %vm223_vm0, %v1245_v41 }
  0xaa   : > { %1197 = vmatmul.mubr.msk.bf16.vlgmr.msra.gmra.mxu0 %vm223_vm0, %v1246_v43 }
  0xd5   : > { %v1156_v44 = vpop.f32.mrf.mxu1 }
  0xd7   : > { %v336_v45 = vpop.f32.mrf.mxu1 }
  0xd9   : > { %v1157_v46 = vpop.f32.mrf.mxu1 }
  0xdb   : > { %v339_v47 = vpop.f32.mrf.mxu1 }
 0x14a   : > { %v1150_v48 = vpop.f32.mrf.mxu0 }
 0x14b   : > { %v345_v60 = vadd.f32 %v1156_v44, %v1150_v48 }
 0x14c   : > { %v268_v49 = vpop.f32.mrf.mxu0  ;;  %v1168_v50 = vpop.f32.mrf.mxu1 }
 0x14d   : > { %v337_v63 = vadd.f32 %v336_v45, %v268_v49 }
 0x14e   : > { %v1151_v51 = vpop.f32.mrf.mxu0  ;;  %v490_v52 = vpop.f32.mrf.mxu1 }
 0x14f   : > { %v348_v2 = vadd.f32 %v1157_v46, %v1151_v51  ;;  %v944_v46 = vpop.permute.xlu1 %943 }
 0x150   : > { %v271_v53 = vpop.f32.mrf.mxu0  ;;  %v1169_v54 = vpop.f32.mrf.mxu1 }
 0x151   : > { %v340_v8 = vadd.f32 %v339_v47, %v271_v53  ;;  %v926_v53 = vpop.permute.xlu0 %925 }
 0x152   : > { %v1162_v55 = vpop.f32.mrf.mxu0  ;;  %v493_v56 = vpop.f32.mrf.mxu1 }
 0x153   : > { %v428_v0 = vadd.f32 %v1162_v55, %v345_v60 }
 0x154   : > { %v411_v57 = vpop.f32.mrf.mxu0  ;;  %v1180_v58 = vpop.f32.mrf.mxu1 }
 0x155   : > { %v426_v3 = vadd.f32 %v411_v57, %v337_v63  ;;  %v507_v6 = vadd.f32 %v1168_v50, %v428_v0 }
 0x156   : > { %v1163_v59 = vpop.f32.mrf.mxu0  ;;  %v648_v61 = vpop.f32.mrf.mxu1 }
 0x157   : > { %v429_v7 = vadd.f32 %v1163_v59, %v348_v2  ;;  %v505_v10 = vadd.f32 %v490_v52, %v426_v3 }
 0x158   : > { %v414_v62 = vpop.f32.mrf.mxu0  ;;  %v1181_v4 = vpop.f32.mrf.mxu1 }
 0x159   : > { %v427_v13 = vadd.f32 %v414_v62, %v340_v8  ;;  %v508_v15 = vadd.f32 %v1169_v54, %v429_v7 }
 0x15a   : > { %v1174_v1 = vpop.f32.mrf.mxu0  ;;  %v651_v12 = vpop.f32.mrf.mxu1 }
 0x15b   : > { %v586_v11 = vadd.f32 %v1174_v1, %v507_v6  ;;  %v506_v22 = vadd.f32 %v493_v56, %v427_v13 }
 0x15c   : > { %v569_v5 = vpop.f32.mrf.mxu0  ;;  %v1192_v21 = vpop.f32.mrf.mxu1 }
 0x15d   : > { %v584_v16 = vadd.f32 %v569_v5, %v505_v10  ;;  %v665_v19 = vadd.f32 %v1180_v58, %v586_v11 }
 0x15e   : > { %v1175_v9 = vpop.f32.mrf.mxu0  ;;  %v806_v30 = vpop.f32.mrf.mxu1 }
 0x15f   : > { %v587_v20 = vadd.f32 %v1175_v9, %v508_v15  ;;  %v663_v24 = vadd.f32 %v648_v61, %v584_v16 }
 0x160   : > { %v572_v14 = vpop.f32.mrf.mxu0  ;;  %v1193_v39 = vpop.f32.mrf.mxu1 }
 0x161   : > { %v585_v26 = vadd.f32 %v572_v14, %v506_v22  ;;  %v666_v28 = vadd.f32 %v1181_v4, %v587_v20 }
 0x162   : > { %v1186_v17 = vpop.f32.mrf.mxu0  ;;  %v809_v48 = vpop.f32.mrf.mxu1 }
 0x163   : > { %v744_v25 = vadd.f32 %v1186_v17, %v665_v19  ;;  %v664_v35 = vadd.f32 %v651_v12, %v585_v26 }
 0x164   : > { %v727_v23 = vpop.f32.mrf.mxu0 }
 0x165   : > { %v742_v29 = vadd.f32 %v727_v23, %v663_v24  ;;  %v823_v33 = vadd.f32 %v1192_v21, %v744_v25 }
 0x166   : > { %v1187_v27 = vpop.f32.mrf.mxu0 }
 0x167   : > { %v745_v34 = vadd.f32 %v1187_v27, %v666_v28  ;;  %v821_v38 = vadd.f32 %v806_v30, %v742_v29 }
 0x168   : > { %v730_v31 = vpop.f32.mrf.mxu0 }
 0x169   : > { %v743_v41 = vadd.f32 %v730_v31, %v664_v35  ;;  %v824_v43 = vadd.f32 %v1193_v39, %v745_v34 }
 0x16a   : > { %v1198_v36 = vpop.f32.mrf.mxu0 }
 0x16b   : > { %v902_v40 = vadd.f32 %v1198_v36, %v823_v33  ;;  %v822_v52 = vadd.f32 %v809_v48, %v743_v41 }
 0x16c   : > { %v885_v42 = vpop.f32.mrf.mxu0 }
 0x16d   : > { %v930_v44 = vadd.f32 %v921_v32, %v902_v40  ;;  %v900_v45 = vadd.f32 %v885_v42, %v821_v38 }
 0x16e   : > { %v1199_v47 = vpop.f32.mrf.mxu0 }
 0x16f   : > { %vm934_vm2 = vcmp.ge.f32.partialorder %v930_v44, 0.0  ;;  %v928_v49 = vadd.f32 %v911_v37, %v900_v45  ;;  %v948_v50 = vmul.f32 %v944_v46, %v930_v44  ;;  %v903_v51 = vadd.f32 %v1199_v47, %v824_v43 }
 0x170   : > { %v888_v54 = vpop.f32.mrf.mxu0 }
 0x171   : > { %vm932_vm4 = vcmp.ge.f32.partialorder %v928_v49, 0.0  ;;  %v946_v55 = vmul.f32 %v944_v46, %v928_v49  ;;  %v952_v56 = vsel %vm934_vm2, %v930_v44, %v948_v50  ;;  %v931_v57 = vadd.f32 %v926_v53, %v903_v51 }
 0x172   : > { %v1117_v58 = vpack.c.bf16 %v952_v56, %v952_v56  ;;  %v901_v59 = vadd.f32 %v888_v54, %v822_v52 }
 0x173   : > { %v950_v60 = vsel %vm932_vm4, %v928_v49, %v946_v55  ;;  %vm935_vm5 = vcmp.ge.f32.partialorder %v931_v57, 0.0  ;;  %v949_v61 = vmul.f32 %v944_v46, %v931_v57 }
 0x174   : > { %v1115_v62 = vpack.c.bf16 %v950_v60, %v950_v60  ;;  %973 = vst.msk [vmem:[%s196_s27 + $0x8] sm:$0xf] %vm970_vm3, %v1117_v58  ;;  %v929_v63 = vadd.f32 %v916_v18, %v901_v59 }
 0x175   : > { %v953_v0 = vsel %vm935_vm5, %v931_v57, %v949_v61 }
 0x176   : > { %971 = vst.msk [vmem:[%s196_s27] sm:$0xf] %vm970_vm3, %v1115_v62  ;;  %v1118_v1 = vpack.c.bf16 %v953_v0, %v953_v0  ;;  %vm933_vm6 = vcmp.ge.f32.partialorder %v929_v63, 0.0  ;;  %v947_v2 = vmul.f32 %v944_v46, %v929_v63 }
 0x178   : > { %974 = vst.msk [vmem:[%s196_s27 + $0xc] sm:$0xf] %vm970_vm3, %v1118_v1  ;;  %v951_v3 = vsel %vm933_vm6, %v929_v63, %v947_v2 }
 0x179   : > { %v1116_v4 = vpack.c.bf16 %v951_v3, %v951_v3 }
 0x17b   : > { %972 = vst.msk [vmem:[%s196_s27 + $0x4] sm:$0xf] %vm970_vm3, %v1116_v4 }
 0x17c PF: > { %s16_s17 = sadd.s32 1, %s1253_s17  }
 0x17d   : > { %p13_p4 = scmp.ge.s32.totalorder %s16_s17, 4  }
 0x17f   :  { %15 = sbr.rel (!%p13_p4) target bundleno = 3 (0x3), region = 74 }

// kernel: _lambda_.27
= control target key start
LH: loop header
LB: loop body
LE: loop exit
PB: predicated region body
PF: predicated region fallthrough
CT: control target
= control target key end

     0   :  { %s391_s17 = smov 0   ;;  %s414_s0 = inlined_call_operand.vmem [shape: bf16[2,8,64], index: 0, kind: input, shape index: {}]   ;;  %s415_s1 = inlined_call_operand.vmem [shape: bf16[1,8,8], index: 1, kind: input, shape index: {}]   ;;  %s416_s2 = inlined_call_operand.vmem [shape: f32[8,1], index: 2, kind: input, shape index: {}]   ;;  %s417_s3 = inlined_call_operand.<no memory space> [shape: f32[1,1], index: 3, kind: input, shape index: {}]   ;;  %s418_s4 = inlined_call_operand.vmem [shape: bf16[2,8,64], index: 4, kind: output, shape index: {}]  }
   0x1   :  { %v9_v0 = vstv %s417_s3 }
   0x2   :  { %10 = vst [vmem:[#allocation2] sm:$0x1] %v9_v0 }
   0x3 LB: > { %s321_s18 = sadd.s32 4294967295, %s358_s17   ;;  %p325_p0 = scmp.ge.s32.totalorder %s358_s17, 1  ;;  %s358_s17 = sphi %s391_s17, %s16_s17  }
   0x4   : > { %p163_p1 = scmp.lt.s32.totalorder %s358_s17, 3 }
   0x6   : > { %p164_p2 = pnand %p325_p0, %p163_p1 }
   0x7   : > { %p187_p3 = scmp.lt.s32.totalorder (!%p164_p2), %s321_s18, 1 }
   0x8   : > { %167 = sbr.rel (%p164_p2) target bundleno = 222 (0xde), region = 36 }
   0xd   : > { %v360_v1 = vmov 0.0   ;;  %vm361_vm0 = vmmov 0   ;;  %v198_v2 = vld [vmem:[%s416_s2] sm:$0xff]  ;;  %s420_s18 = smov (!%p187_p3, %s321_s18), 1  ;;  %v362_v3 = vmov 0   ;;  %vm208_vm1 = vcmask 1043456  }
   0xe   : > { %334 = vmatprep.subr.bf16.mxu0 %v360_v1  ;;  %336 = vmatprep.mubr.msk.bf16.mxu0 %vm361_vm0, %v360_v1  ;;  %s326_s20 = sshll.u32 %s420_s18, 2  ;;  %v329_v4 = vld [vmem:[#allocation2] ss:$0 sm:$0xff]  ;;  %v197_v7 = vld [vmem:[%s415_s1] sm:$0xf]  ;;  %vm204_vm2 = vcmask 64512  }
   0xf   : > { %351 = vset.pattern.permute.xlu0 %v362_v3  ;;  %s190_s23 = scalar_lea.vmem %s414_s0, %s326_s20  ;;  %s194_s28 = scalar_lea.vmem %s418_s4, %s326_s20  ;;  %vm266_vm4 = vcmask 519168  }
  0x10   : > { %201 = vperm.xlu0 %351, %v198_v2   ;;  %v196_v5 = vld [vmem:[%s190_s23] sm:$0xf] }
  0x11   : > { %v210_v6 = vsel %vm208_vm1, %v196_v5, 0 }
  0x12   : > { %335 = vmatpush3.bf16.msra.mxu0 %v210_v6 }
  0x14   : > { %260 = vperm.xlu0 %351, %v329_v4  }
  0x15   : > { %337 = vmatmul.mubr.msk.bf16.vlgmr.msra.gmra.mxu0 %vm204_vm2, %v197_v7 }
  0x8b   : > { %v202_v8 = vpop.permute.xlu0 %201 }
  0x8f   : > { %v261_v11 = vpop.permute.xlu0 %260 }
  0xd5   : > { %v246_v9 = vpop.f32.mrf.mxu0 }
  0xd6   : > { %v247_v10 = vadd.f32 %v246_v9, %v202_v8 }
  0xd7   : > { %v338_v12 = vpop.f32.mrf.mxu0 }
  0xd8   : > { %vm252_vm3 = vcmp.ge.f32.partialorder %v247_v10, 0.0  ;;  %v263_v13 = vmul.f32 %v261_v11, %v247_v10 }
  0xd9   : > { %v249_v14 = vpop.f32.mrf.mxu0 }
  0xda   : > { %v264_v15 = vsel %vm252_vm3, %v247_v10, %v263_v13 }
  0xdb   : > { %v265_v16 = vpack.c.bf16 %v264_v15, %v264_v15  ;;  %v339_v17 = vpop.f32.mrf.mxu0 }
  0xdd   : > { %267 = vst.msk [vmem:[%s194_s28] sm:$0xf] %vm266_vm4, %v265_v16 }
  0xde PF: > { %s16_s17 = sadd.s32 1, %s358_s17  }
  0xdf   : > { %p13_p4 = scmp.ge.s32.totalorder %s16_s17, 4  }
  0xe1   :  { %15 = sbr.rel (!%p13_p4) target bundleno = 3 (0x3), region = 66 }

// kernel: _lambda_.28
= control target key start
LH: loop header
LB: loop body
LE: loop exit
PB: predicated region body
PF: predicated region fallthrough
CT: control target
= control target key end

     0   :  { %s1232_s12 = smov 0   ;;  %s1359_s0 = inlined_call_operand.vmem [shape: bf16[2,8,102], index: 0, kind: input, shape index: {}]   ;;  %s1360_s1 = inlined_call_operand.vmem [shape: bf16[9,32,8], index: 1, kind: input, shape index: {}]   ;;  %s1361_s2 = inlined_call_operand.vmem [shape: f32[32,1], index: 2, kind: input, shape index: {}]   ;;  %s1362_s3 = inlined_call_operand.vmem [shape: bf16[2,32,80], index: 3, kind: output, shape index: {}]  }
   0x1 LB: > { %s979_s13 = sadd.s32 4294967295, %s1201_s12   ;;  %p983_p0 = scmp.ge.s32.totalorder %s1201_s12, 1  ;;  %s1201_s12 = sphi %s1232_s12, %s13_s12  }
   0x2   : > { %p136_p1 = scmp.lt.s32.totalorder %s1201_s12, 3 }
   0x4   : > { %p137_p2 = pnand %p983_p0, %p136_p1 }
   0x5   : > { %p159_p3 = scmp.lt.s32.totalorder (!%p137_p2), %s979_s13, 1  ;;  %s1203_s26 = smov (!%p137_p2), 127  }
   0x6   : > { %140 = sbr.rel (%p137_p2) target bundleno = 374 (0x176), region = 32  ;;  %s1204_s27 = smov (!%p137_p2), 118  }
   0x7   : > { %s1205_s28 = smov (!%p137_p2), 126   ;;  %s1206_s29 = smov (!%p137_p2), 117  }
   0x8   : > { %s1207_s30 = smov (!%p137_p2), 116   ;;  %s1208_s4 = smov (!%p137_p2), 108  }
   0x9   : > { %s1209_s5 = smov (!%p137_p2), 107   ;;  %s1210_s6 = smov (!%p137_p2), 106  }
   0xb   : > { %v1177_v0 = vld [vmem:[%s1360_s1 + $0x10] sm:$0xff]   ;;  %vm194_vm0 = vcmask 64512   ;;  %v1178_v1 = vld [vmem:[%s1360_s1] sm:$0xff]   ;;  %s1364_s13 = smov (!%p159_p3, %s979_s13), 1  ;;  %vm201_vm1 = vcmask 1043456   ;;  %v1180_v5 = vld [vmem:[%s1360_s1 + $0x8] sm:$0xff]  }
   0xc   : > { %1096 = vmatprep.mubr.msk.bf16.mxu0 %vm194_vm0, %v1177_v0  ;;  %1102 = vmatprep.mubr.msk.bf16.mxu1 %vm194_vm0, %v1178_v1  ;;  %s984_s18 = sshll.u32 %s1364_s13, 2  ;;  %v1183_v6 = vld [vmem:[%s1360_s1 + $0x30] sm:$0xff]   ;;  %v876_v7 = vld [vmem:[%s1361_s2 + $0x8] sm:$0xff]  ;;  %v875_v8 = vld [vmem:[%s1361_s2] sm:$0xff]  ;;  %v1211_v9 = vmov 0   ;;  %s1062_s20 = sshll.u32 %s1364_s13, 4 }
   0xd   : > { %s162_s21 = scalar_lea.vmem %s1359_s0, %s984_s18  ;;  %1175 = vset.pattern.permute.xlu1 %v1211_v9  ;;  %1174 = vset.pattern.permute.xlu0 %v1211_v9  ;;  %v877_v10 = vld [vmem:[%s1361_s2 + $0x10] sm:$0xff]  ;;  %v878_v11 = vld [vmem:[%s1361_s2 + $0x18] sm:$0xff]  ;;  %v1181_v17 = vld [vmem:[%s1360_s1 + $0x20] sm:$0xff]   ;;  %s167_s23 = scalar_lea.vmem %s1362_s3, %s1062_s20  ;;  %vm919_vm2 = vcmask 650240  }
   0xe   : > { %v169_v2 = vld [vmem:[%s162_s21] sm:$0xf]  ;;  %v1179_v15 = vld [vmem:[%s1360_s1 + $0x18] sm:$0xff]   ;;  %v1187_v21 = vld [vmem:[%s1360_s1 + $0x50] sm:$0xff]  }
   0xf   : > { %v993_v3 = vcombine.low %v169_v2, %v169_v2  ;;  %1149 = vmatprep.subr.msk.bf16.mxu1 %vm201_vm1, %v169_v2  ;;  %v271_v4 = vsel %vm201_vm1, %v169_v2, 0  ;;  %v1184_v18 = vld [vmem:[%s1360_s1 + $0x38] sm:$0xff]   ;;  %v1182_v24 = vld [vmem:[%s1360_s1 + $0x28] sm:$0xff]   ;;  %v1185_v26 = vld [vmem:[%s1360_s1 + $0x40] sm:$0xff]  }
  0x10   : > { %1101 = vmatpush3.bf16.msra.mxu1 %v271_v4  ;;  %v1188_v28 = vld [vmem:[%s1360_s1 + $0x58] sm:$0xff]   ;;  %v1191_v31 = vld [vmem:[%s1360_s1 + $0x70] sm:$0xff]   ;;  %v1186_v33 = vld [vmem:[%s1360_s1 + $0x48] sm:$0xff]  }
  0x11   : > { %192 = vrot.lane.b32.xlu0 %v993_v3, %s1203_s26  ;;  %416 = vrot.lane.b32.xlu1 %v993_v3, %s1204_s27  ;;  %v1189_v34 = vld [vmem:[%s1360_s1 + $0x60] sm:$0xff]   ;;  %v1192_v36 = vld [vmem:[%s1360_s1 + $0x78] sm:$0xff]  }
  0x12   : > { %v1190_v38 = vld [vmem:[%s1360_s1 + $0x68] sm:$0xff]   ;;  %v1193_v39 = vld [vmem:[%s1360_s1 + $0x80] sm:$0xff]  }
  0x13   : > { %1103 = vmatmul.mubr.msk.bf16.vlgmr.msra.gmra.mxu1 %vm194_vm0, %v1180_v5  ;;  %v1194_v41 = vld [vmem:[%s1360_s1 + $0x88] sm:$0xff]  }
  0x14   : > { %1114 = vmatprep.mubr.msk.bf16.mxu1 %vm194_vm0, %v1183_v6 }
  0x15   : > { %337 = vrot.lane.b32.xlu0 %v993_v3, %s1205_s28  ;;  %495 = vrot.lane.b32.xlu1 %v993_v3, %s1206_s29 }
  0x19   : > { %574 = vrot.lane.b32.xlu0 %v993_v3, %s1207_s30  ;;  %653 = vrot.lane.b32.xlu1 %v993_v3, %s1208_s4 }
  0x1d   : > { %732 = vrot.lane.b32.xlu0 %v993_v3, %s1209_s5  ;;  %811 = vrot.lane.b32.xlu1 %v993_v3, %s1210_s6 }
  0x21   : > { %886 = vperm.xlu1 %1175, %v876_v7   ;;  %881 = vperm.xlu0 %1174, %v875_v8  }
  0x25   : > { %891 = vperm.xlu1 %1175, %v877_v10   ;;  %896 = vperm.xlu0 %1174, %v878_v11  }
  0x83   : > { %v193_v12 = vpop.permute.xlu0 %192  ;;  %v417_v13 = vpop.permute.xlu1 %416 }
  0x84   : > { %1148 = vmatprep.subr.msk.bf16.mxu0 %vm201_vm1, %v193_v12  ;;  %v203_v14 = vsel %vm201_vm1, %v193_v12, 0  ;;  %v425_v16 = vsel %vm201_vm1, %v417_v13, 0  ;;  %1151 = vmatprep.subr.msk.bf16.mxu1 %vm201_vm1, %v417_v13 }
  0x85   : > { %1095 = vmatpush3.bf16.msra.mxu0 %v203_v14  ;;  %1113 = vmatpush3.bf16.msra.mxu1 %v425_v16 }
  0x87   : > { %v338_v19 = vpop.permute.xlu0 %337  ;;  %v496_v20 = vpop.permute.xlu1 %495 }
  0x88   : > { %v346_v22 = vsel %vm201_vm1, %v338_v19, 0  ;;  %1097 = vmatmul.mubr.msk.bf16.vlgmr.msra.gmra.mxu0 %vm194_vm0, %v1179_v15  ;;  %1150 = vmatprep.subr.msk.bf16.mxu0 %vm201_vm1, %v338_v19  ;;  %v504_v27 = vsel %vm201_vm1, %v496_v20, 0 }
  0x89   : > { %1107 = vmatpush3.bf16.msra.mxu0 %v346_v22  ;;  %1108 = vmatprep.mubr.msk.bf16.mxu0 %vm194_vm0, %v1181_v17 }
  0x8a   : > { %1152 = vmatprep.subr.msk.bf16.mxu0 %vm201_vm1, %v496_v20  ;;  %1115 = vmatmul.mubr.msk.bf16.vlgmr.msra.gmra.mxu1 %vm194_vm0, %v1184_v18 }
  0x8b   : > { %v575_v23 = vpop.permute.xlu0 %574  ;;  %1126 = vmatprep.mubr.msk.bf16.mxu1 %vm194_vm0, %v1187_v21  ;;  %v654_v29 = vpop.permute.xlu1 %653 }
  0x8c   : > { %v583_v25 = vsel %vm201_vm1, %v575_v23, 0  ;;  %1153 = vmatprep.subr.msk.bf16.mxu1 %vm201_vm1, %v575_v23  ;;  %v662_v35 = vsel %vm201_vm1, %v654_v29, 0 }
  0x8d   : > { %1125 = vmatpush3.bf16.msra.mxu1 %v583_v25 }
  0x8f   : > { %v733_v30 = vpop.permute.xlu0 %732  ;;  %v812_v37 = vpop.permute.xlu1 %811 }
  0x90   : > { %1109 = vmatmul.mubr.msk.bf16.vlgmr.msra.gmra.mxu0 %vm194_vm0, %v1182_v24  ;;  %v741_v32 = vsel %vm201_vm1, %v733_v30, 0  ;;  %1155 = vmatprep.subr.msk.bf16.mxu1 %vm201_vm1, %v733_v30  ;;  %v820_v40 = vsel %vm201_vm1, %v812_v37, 0 }
  0x91   : > { %1119 = vmatpush3.bf16.msra.mxu0 %v504_v27  ;;  %1120 = vmatprep.mubr.msk.bf16.mxu0 %vm194_vm0, %v1185_v26 }
  0x92   : > { %1154 = vmatprep.subr.msk.bf16.mxu0 %vm201_vm1, %v654_v29  ;;  %1127 = vmatmul.mubr.msk.bf16.vlgmr.msra.gmra.mxu1 %vm194_vm0, %v1188_v28 }
  0x93   : > { %1137 = vmatpush3.bf16.msra.mxu1 %v741_v32  ;;  %1138 = vmatprep.mubr.msk.bf16.mxu1 %vm194_vm0, %v1191_v31 }
  0x98   : > { %1121 = vmatmul.mubr.msk.bf16.vlgmr.msra.gmra.mxu0 %vm194_vm0, %v1186_v33 }
  0x99   : > { %1131 = vmatpush3.bf16.msra.mxu0 %v662_v35  ;;  %1132 = vmatprep.mubr.msk.bf16.mxu0 %vm194_vm0, %v1189_v34 }
  0x9a   : > { %1156 = vmatprep.subr.msk.bf16.mxu0 %vm201_vm1, %v812_v37  ;;  %1139 = vmatmul.mubr.msk.bf16.vlgmr.msra.gmra.mxu1 %vm194_vm0, %v1192_v36 }
  0x9c   : > { %v887_v20 = vpop.permute.xlu1 %886  ;;  %v882_v33 = vpop.permute.xlu0 %881 }
  0xa0   : > { %1133 = vmatmul.mubr.msk.bf16.vlgmr.msra.gmra.mxu0 %vm194_vm0, %v1190_v38  ;;  %v892_v34 = vpop.permute.xlu1 %891 }
  0xa1   : > { %1143 = vmatpush3.bf16.msra.mxu0 %v820_v40  ;;  %1144 = vmatprep.mubr.msk.bf16.mxu0 %vm194_vm0, %v1193_v39 }
  0xa8   : > { %1145 = vmatmul.mubr.msk.bf16.vlgmr.msra.gmra.mxu0 %vm194_vm0, %v1194_v41 }
  0xd3   : > { %v1104_v42 = vpop.f32.mrf.mxu1 }
  0xd5   : > { %v307_v43 = vpop.f32.mrf.mxu1 }
  0xd7   : > { %v1105_v44 = vpop.f32.mrf.mxu1 }
  0xd9   : > { %v310_v45 = vpop.f32.mrf.mxu1 }
 0x148   : > { %v1098_v46 = vpop.f32.mrf.mxu0 }
 0x149   : > { %v316_v59 = vadd.f32 %v1104_v42, %v1098_v46 }
 0x14a   : > { %v239_v47 = vpop.f32.mrf.mxu0  ;;  %v1116_v48 = vpop.f32.mrf.mxu1 }
 0x14b   : > { %v308_v61 = vadd.f32 %v307_v43, %v239_v47 }
 0x14c   : > { %v1099_v49 = vpop.f32.mrf.mxu0  ;;  %v461_v50 = vpop.f32.mrf.mxu1 }
 0x14d   : > { %v319_v1 = vadd.f32 %v1105_v44, %v1099_v49 }
 0x14e   : > { %v242_v51 = vpop.f32.mrf.mxu0  ;;  %v1117_v52 = vpop.f32.mrf.mxu1 }
 0x14f   : > { %v311_v4 = vadd.f32 %v310_v45, %v242_v51 }
 0x150   : > { %v1110_v53 = vpop.f32.mrf.mxu0  ;;  %v464_v54 = vpop.f32.mrf.mxu1 }
 0x151   : > { %v399_v62 = vadd.f32 %v1110_v53, %v316_v59 }
 0x152   : > { %v382_v55 = vpop.f32.mrf.mxu0  ;;  %v1128_v56 = vpop.f32.mrf.mxu1 }
 0x153   : > { %v397_v2 = vadd.f32 %v382_v55, %v308_v61  ;;  %v478_v5 = vadd.f32 %v1116_v48, %v399_v62 }
 0x154   : > { %v1111_v57 = vpop.f32.mrf.mxu0  ;;  %v619_v58 = vpop.f32.mrf.mxu1 }
 0x155   : > { %v400_v6 = vadd.f32 %v1111_v57, %v319_v1  ;;  %v476_v9 = vadd.f32 %v461_v50, %v397_v2  ;;  %v897_v50 = vpop.permute.xlu0 %896 }
 0x156   : > { %v385_v60 = vpop.f32.mrf.mxu0  ;;  %v1129_v0 = vpop.f32.mrf.mxu1 }
 0x157   : > { %v398_v10 = vadd.f32 %v385_v60, %v311_v4  ;;  %v479_v13 = vadd.f32 %v1117_v52, %v400_v6 }
 0x158   : > { %v1122_v63 = vpop.f32.mrf.mxu0  ;;  %v622_v8 = vpop.f32.mrf.mxu1 }
 0x159   : > { %v557_v11 = vadd.f32 %v1122_v63, %v478_v5  ;;  %v477_v17 = vadd.f32 %v464_v54, %v398_v10 }
 0x15a   : > { %v540_v3 = vpop.f32.mrf.mxu0  ;;  %v1140_v16 = vpop.f32.mrf.mxu1 }
 0x15b   : > { %v555_v14 = vadd.f32 %v540_v3, %v476_v9  ;;  %v636_v18 = vadd.f32 %v1128_v56, %v557_v11 }
 0x15c   : > { %v1123_v7 = vpop.f32.mrf.mxu0  ;;  %v777_v25 = vpop.f32.mrf.mxu1 }
 0x15d   : > { %v558_v19 = vadd.f32 %v1123_v7, %v479_v13  ;;  %v634_v22 = vadd.f32 %v619_v58, %v555_v14 }
 0x15e   : > { %v543_v12 = vpop.f32.mrf.mxu0  ;;  %v1141_v35 = vpop.f32.mrf.mxu1 }
 0x15f   : > { %v556_v23 = vadd.f32 %v543_v12, %v477_v17  ;;  %v637_v27 = vadd.f32 %v1129_v0, %v558_v19 }
 0x160   : > { %v1134_v15 = vpop.f32.mrf.mxu0  ;;  %v780_v44 = vpop.f32.mrf.mxu1 }
 0x161   : > { %v715_v24 = vadd.f32 %v1134_v15, %v636_v18  ;;  %v635_v30 = vadd.f32 %v622_v8, %v556_v23 }
 0x162   : > { %v698_v21 = vpop.f32.mrf.mxu0 }
 0x163   : > { %v713_v28 = vadd.f32 %v698_v21, %v634_v22  ;;  %v794_v31 = vadd.f32 %v1140_v16, %v715_v24 }
 0x164   : > { %v1135_v26 = vpop.f32.mrf.mxu0 }
 0x165   : > { %v716_v32 = vadd.f32 %v1135_v26, %v637_v27  ;;  %v792_v37 = vadd.f32 %v777_v25, %v713_v28 }
 0x166   : > { %v701_v29 = vpop.f32.mrf.mxu0 }
 0x167   : > { %v714_v38 = vadd.f32 %v701_v29, %v635_v30  ;;  %v795_v41 = vadd.f32 %v1141_v35, %v716_v32 }
 0x168   : > { %v1146_v36 = vpop.f32.mrf.mxu0 }
 0x169   : > { %v873_v39 = vadd.f32 %v1146_v36, %v794_v31  ;;  %v793_v46 = vadd.f32 %v780_v44, %v714_v38 }
 0x16a   : > { %v856_v40 = vpop.f32.mrf.mxu0 }
 0x16b   : > { %v901_v42 = vadd.f32 %v892_v34, %v873_v39  ;;  %v871_v43 = vadd.f32 %v856_v40, %v792_v37 }
 0x16c   : > { %v1147_v45 = vpop.f32.mrf.mxu0 }
 0x16d   : > { %v1065_v47 = vpack.c.bf16 %v901_v42, %v901_v42  ;;  %v899_v48 = vadd.f32 %v882_v33, %v871_v43  ;;  %v874_v49 = vadd.f32 %v1147_v45, %v795_v41 }
 0x16e   : > { %v859_v51 = vpop.f32.mrf.mxu0 }
 0x16f   : > { %922 = vst.msk [vmem:[%s167_s23 + $0x8] sm:$0xf] %vm919_vm2, %v1065_v47  ;;  %v1063_v52 = vpack.c.bf16 %v899_v48, %v899_v48  ;;  %v902_v53 = vadd.f32 %v897_v50, %v874_v49  ;;  %v872_v54 = vadd.f32 %v859_v51, %v793_v46 }
 0x171   : > { %920 = vst.msk [vmem:[%s167_s23] sm:$0xf] %vm919_vm2, %v1063_v52  ;;  %v1066_v55 = vpack.c.bf16 %v902_v53, %v902_v53  ;;  %v900_v56 = vadd.f32 %v887_v20, %v872_v54 }
 0x173   : > { %923 = vst.msk [vmem:[%s167_s23 + $0xc] sm:$0xf] %vm919_vm2, %v1066_v55  ;;  %v1064_v57 = vpack.c.bf16 %v900_v56, %v900_v56 }
 0x175   : > { %921 = vst.msk [vmem:[%s167_s23 + $0x4] sm:$0xf] %vm919_vm2, %v1064_v57 }
 0x176 PF: > { %s13_s12 = sadd.s32 1, %s1201_s12  }
 0x177   : > { %p10_p4 = scmp.ge.s32.totalorder %s13_s12, 4  }
 0x179   :  { %12 = sbr.rel (!%p10_p4) target bundleno = 1 (0x1), region = 70 }

// kernel: _lambda_.33
= control target key start
LH: loop header
LB: loop body
LE: loop exit
PB: predicated region body
PF: predicated region fallthrough
CT: control target
= control target key end

     0   :  { %s1455_s17 = smov 0   ;;  %s1594_s0 = inlined_call_operand.vmem [shape: bf16[2,8,326], index: 0, kind: input, shape index: {}]   ;;  %s1595_s1 = inlined_call_operand.vmem [shape: bf16[9,8,8], index: 1, kind: input, shape index: {}]   ;;  %s1596_s2 = inlined_call_operand.vmem [shape: f32[8,1], index: 2, kind: input, shape index: {}]   ;;  %s1597_s3 = inlined_call_operand.<no memory space> [shape: f32[1,1], index: 3, kind: input, shape index: {}]   ;;  %s1598_s4 = inlined_call_operand.vmem [shape: bf16[2,8,288], index: 4, kind: output, shape index: {}]  }
   0x1   :  { %v9_v0 = vstv %s1597_s3 }
   0x2   :  { %10 = vst [vmem:[#allocation2] sm:$0x1] %v9_v0 }
   0x3 LB: > { %s1259_s18 = sadd.s32 4294967295, %s1414_s17   ;;  %p1263_p0 = scmp.ge.s32.totalorder %s1414_s17, 1  ;;  %s1414_s17 = sphi %s1455_s17, %s16_s17  }
   0x4   : > { %p164_p1 = scmp.lt.s32.totalorder %s1414_s17, 3 }
   0x6   : > { %p165_p2 = pnand %p1263_p0, %p164_p1 }
   0x7   : > { %p190_p3 = scmp.lt.s32.totalorder (!%p165_p2), %s1259_s18, 1  ;;  %s1419_s22 = smov (!%p165_p2), 127  }
   0x8   : > { %168 = sbr.rel (%p165_p2) target bundleno = 413 (0x19d), region = 36  ;;  %s1420_s23 = smov (!%p165_p2), 126  }
   0x9   : > { %s1421_s24 = smov (!%p165_p2), 110   ;;  %s1422_s25 = smov (!%p165_p2), 109  }
   0xa   : > { %s1423_s26 = smov (!%p165_p2), 108   ;;  %s1424_s27 = smov (!%p165_p2), 92  }
   0xb   : > { %s1425_s28 = smov (!%p165_p2), 91   ;;  %s1426_s29 = smov (!%p165_p2), 90  }
   0xd   : > { %v1416_v1 = vmov 0.0   ;;  %vm1417_vm0 = vmmov 0   ;;  %s1600_s18 = smov (!%p190_p3, %s1259_s18), 1  ;;  %v1418_v2 = vmov 0   ;;  %v1160_v7 = vld [vmem:[%s1596_s2] sm:$0xff]  ;;  %vm227_vm1 = vcmask 1043456  }
   0xe   : > { %1329 = vmatprep.subr.bf16.mxu1 %v1416_v1  ;;  %1331 = vmatprep.mubr.msk.bf16.mxu1 %vm1417_vm0, %v1416_v1  ;;  %s1383_s3 = smul.u32 12, %s1600_s18  ;;  %v1304_v8 = vld [vmem:[#allocation2] ss:$0 sm:$0xff]  ;;  %v1266_v12 = vld [vmem:[%s1595_s1 + $0x4] sm:$0xf]  ;;  %vm223_vm2 = vcmask 64512  }
   0xf   : > { %269 = vmatprep.mubr.bf16.mxu0 %v1418_v2  ;;  %1403 = vset.pattern.permute.xlu0 %v1418_v2  ;;  %vm220_vm3 = vcmask 1039360   ;;  %vm419_vm4 = vcmask 1031168   ;;  %v203_v22 = vld [vmem:[%s1595_s1] sm:$0xf]  ;;  %vm526_vm5 = vcmask 900096   ;;  %vm633_vm6 = vcmask 891904  }
  0x10   : > { %1404 = vset.pattern.permute.xlu1 %v1418_v2  ;;  %s194_s21 = scalar_lea.vmem %s1594_s0, %s1383_s3  ;;  %v1276_v31 = vld [vmem:[%s1595_s1 + $0x8] sm:$0xf]  ;;  %v1280_v39 = vld [vmem:[%s1595_s1 + $0xc] sm:$0xf]  ;;  %vm740_vm7 = vcmask 883712   ;;  %vm847_vm8 = vcmask 752640  }
  0x11   : > { %v1405_v3 = vld [vmem:[%s194_s21 + $0x8] ss:$0 sps:$4 sm:$0xff]   ;;  %v201_v4 = vld [vmem:[%s194_s21] sm:$0xff]  ;;  %v1284_v47 = vld [vmem:[%s1595_s1 + $0x10] sm:$0xf]  ;;  %vm954_vm9 = vcmask 744448  }
  0x12   : > { %v1267_v5 = vcombine.low %v201_v4, %v201_v4  ;;  %218 = vrot.lane.b32.xlu1 %v1405_v3, %s1419_s22  ;;  %v1268_v6 = vcombine.high %v201_v4, %v201_v4  ;;  %v328_v13 = vsel %vm227_vm1, %v1405_v3, 0  ;;  %v1288_v55 = vld [vmem:[%s1595_s1 + $0x14] sm:$0xf]  ;;  %v1292_v63 = vld [vmem:[%s1595_s1 + $0x18] sm:$0xf]  ;;  %vm1061_vm10 = vcmask 736256  }
  0x13   : > { %vm1202_vm12 = vcmask 257024  }
  0x14   : > { %214 = vrot.lane.b32.xlu0 %v1267_v5, %s1419_s22  ;;  %v322_v20 = vsel %vm227_vm1, %v1267_v5, 0 }
  0x16   : > { %413 = vrot.lane.b32.xlu1 %v1267_v5, %s1420_s23 }
  0x18   : > { %216 = vrot.lane.b32.xlu0 %v1268_v6, %s1419_s22 }
  0x1a   : > { %417 = vrot.lane.b32.xlu1 %v1405_v3, %s1420_s23 }
  0x1c   : > { %415 = vrot.lane.b32.xlu0 %v1268_v6, %s1420_s23 }
  0x1e   : > { %522 = vrot.lane.b32.xlu1 %v1268_v6, %s1421_s24 }
  0x20   : > { %520 = vrot.lane.b32.xlu0 %v1267_v5, %s1421_s24 }
  0x22   : > { %627 = vrot.lane.b32.xlu1 %v1267_v5, %s1422_s25 }
  0x24   : > { %524 = vrot.lane.b32.xlu0 %v1405_v3, %s1421_s24 }
  0x26   : > { %631 = vrot.lane.b32.xlu1 %v1405_v3, %s1422_s25 }
  0x28   : > { %629 = vrot.lane.b32.xlu0 %v1268_v6, %s1422_s25 }
  0x2a   : > { %736 = vrot.lane.b32.xlu1 %v1268_v6, %s1423_s26 }
  0x2c   : > { %734 = vrot.lane.b32.xlu0 %v1267_v5, %s1423_s26 }
  0x2e   : > { %841 = vrot.lane.b32.xlu1 %v1267_v5, %s1424_s27 }
  0x30   : > { %738 = vrot.lane.b32.xlu0 %v1405_v3, %s1423_s26 }
  0x32   : > { %845 = vrot.lane.b32.xlu1 %v1405_v3, %s1424_s27 }
  0x34   : > { %843 = vrot.lane.b32.xlu0 %v1268_v6, %s1424_s27 }
  0x36   : > { %950 = vrot.lane.b32.xlu1 %v1268_v6, %s1425_s28 }
  0x38   : > { %948 = vrot.lane.b32.xlu0 %v1267_v5, %s1425_s28 }
  0x3a   : > { %1055 = vrot.lane.b32.xlu1 %v1267_v5, %s1426_s29 }
  0x3c   : > { %952 = vrot.lane.b32.xlu0 %v1405_v3, %s1425_s28  ;;  %s199_s28 = scalar_lea.vmem %s1598_s4, %s1383_s3 }
  0x3e   : > { %1059 = vrot.lane.b32.xlu1 %v1405_v3, %s1426_s29 }
  0x40   : > { %1057 = vrot.lane.b32.xlu0 %v1268_v6, %s1426_s29 }
  0x42   : > { %1179 = vperm.xlu1 %1404, %v1304_v8   ;;  %v1296_v8 = vld [vmem:[%s1595_s1 + $0x1c] sm:$0xf] }
  0x44   : > { %1163 = vperm.xlu0 %1403, %v1160_v7  }
  0x84   : > { %v219_v9 = vpop.permute.xlu1 %218 }
  0x85   : > { %v235_v11 = vsel %vm227_vm1, %v219_v9, 0 }
  0x86   : > { %v215_v10 = vpop.permute.xlu0 %214  ;;  %1330 = vmatpush3.bf16.msra.mxu1 %v235_v11 }
  0x87   : > { %1335 = vmatprep.subr.bf16.mxu1 %v1416_v1 }
  0x88   : > { %v414_v14 = vpop.permute.xlu1 %413 }
  0x89   : > { %1332 = vmatmul.mubr.msk.bf16.vlgmr.msra.gmra.mxu1 %vm223_vm2, %v1266_v12 }
  0x8a   : > { %v217_v15 = vpop.permute.xlu0 %216  ;;  %1336 = vmatpush3.bf16.msra.mxu1 %v328_v13  ;;  %1337 = vmatprep.mubr.msk.bf16.mxu1 %vm1417_vm0, %v1416_v1  ;;  %v1300_v13 = vld [vmem:[%s1595_s1 + $0x20] sm:$0xf] }
  0x8b   : > { %v222_v16 = vsel %vm220_vm3, %v217_v15, %v219_v9  ;;  %v221_v17 = vsel %vm220_vm3, %v215_v10, %v217_v15  ;;  %1341 = vmatprep.subr.bf16.mxu1 %v1416_v1 }
  0x8c   : > { %1270 = vmatprep.subr.msk.bf16.mxu0 %vm227_vm1, %v222_v16  ;;  %v229_v18 = vsel %vm227_vm1, %v221_v17, 0  ;;  %v418_v19 = vpop.permute.xlu1 %417 }
  0x8d   : > { %252 = vmatpush1.bf16.msra.mxu0 %v229_v18  ;;  %v432_v24 = vsel %vm227_vm1, %v418_v19, 0 }
  0x8e   : > { %1273 = vmatprep.subr.msk.bf16.mxu0 %vm227_vm1, %v1268_v6  ;;  %v416_v21 = vpop.permute.xlu0 %415 }
  0x8f   : > { %v421_v23 = vsel %vm419_vm4, %v416_v21, %v418_v19  ;;  %v420_v27 = vsel %vm419_vm4, %v414_v14, %v416_v21 }
  0x90   : > { %1271 = vmatmul.mubr.msk.bf16.vlgmr.msra.gmra.mxu0 %vm223_vm2, %v1266_v12  ;;  %v523_v25 = vpop.permute.xlu1 %522  ;;  %v426_v28 = vsel %vm227_vm1, %v420_v27, 0 }
  0x91   : > { %345 = vmatpush1.bf16.msra.mxu0 %v322_v20  ;;  %362 = vmatprep.mubr.bf16.mxu0 %v1418_v2 }
  0x92   : > { %1338 = vmatmul.mubr.msk.bf16.vlgmr.msra.gmra.mxu1 %vm223_vm2, %v203_v22  ;;  %1277 = vmatprep.subr.msk.bf16.mxu0 %vm227_vm1, %v421_v23  ;;  %v521_v26 = vpop.permute.xlu0 %520 }
  0x93   : > { %1342 = vmatpush3.bf16.msra.mxu1 %v432_v24  ;;  %1343 = vmatprep.mubr.msk.bf16.mxu1 %vm1417_vm0, %v1416_v1  ;;  %v527_v35 = vsel %vm526_vm5, %v521_v26, %v523_v25 }
  0x94   : > { %1347 = vmatprep.subr.bf16.mxu1 %v1416_v1  ;;  %v628_v30 = vpop.permute.xlu1 %627  ;;  %v533_v37 = vsel %vm227_vm1, %v527_v35, 0 }
  0x96   : > { %v525_v29 = vpop.permute.xlu0 %524 }
  0x97   : > { %v528_v32 = vsel %vm526_vm5, %v523_v25, %v525_v29  ;;  %v539_v33 = vsel %vm227_vm1, %v525_v29, 0 }
  0x98   : > { %1274 = vmatmul.mubr.msk.bf16.vlgmr.msra.gmra.mxu0 %vm223_vm2, %v203_v22  ;;  %v632_v36 = vpop.permute.xlu1 %631 }
  0x99   : > { %449 = vmatpush1.bf16.msra.mxu0 %v426_v28  ;;  %466 = vmatprep.mubr.bf16.mxu0 %v1418_v2  ;;  %v646_v41 = vsel %vm227_vm1, %v632_v36, 0 }
  0x9a   : > { %1344 = vmatmul.mubr.msk.bf16.vlgmr.msra.gmra.mxu1 %vm223_vm2, %v1276_v31  ;;  %1281 = vmatprep.subr.msk.bf16.mxu0 %vm227_vm1, %v528_v32  ;;  %v630_v34 = vpop.permute.xlu0 %629 }
  0x9b   : > { %1348 = vmatpush3.bf16.msra.mxu1 %v539_v33  ;;  %1349 = vmatprep.mubr.msk.bf16.mxu1 %vm1417_vm0, %v1416_v1  ;;  %v635_v40 = vsel %vm633_vm6, %v630_v34, %v632_v36  ;;  %v634_v43 = vsel %vm633_vm6, %v628_v30, %v630_v34 }
  0x9c   : > { %1353 = vmatprep.subr.bf16.mxu1 %v1416_v1  ;;  %v737_v42 = vpop.permute.xlu1 %736  ;;  %v640_v45 = vsel %vm227_vm1, %v634_v43, 0 }
  0x9e   : > { %v735_v38 = vpop.permute.xlu0 %734 }
  0x9f   : > { %v741_v51 = vsel %vm740_vm7, %v735_v38, %v737_v42 }
  0xa0   : > { %1278 = vmatmul.mubr.msk.bf16.vlgmr.msra.gmra.mxu0 %vm223_vm2, %v1276_v31  ;;  %v842_v46 = vpop.permute.xlu1 %841  ;;  %v747_v53 = vsel %vm227_vm1, %v741_v51, 0 }
  0xa1   : > { %556 = vmatpush1.bf16.msra.mxu0 %v533_v37  ;;  %573 = vmatprep.mubr.bf16.mxu0 %v1418_v2 }
  0xa2   : > { %1350 = vmatmul.mubr.msk.bf16.vlgmr.msra.gmra.mxu1 %vm223_vm2, %v1280_v39  ;;  %1285 = vmatprep.subr.msk.bf16.mxu0 %vm227_vm1, %v635_v40  ;;  %v739_v44 = vpop.permute.xlu0 %738 }
  0xa3   : > { %1354 = vmatpush3.bf16.msra.mxu1 %v646_v41  ;;  %1355 = vmatprep.mubr.msk.bf16.mxu1 %vm1417_vm0, %v1416_v1  ;;  %v742_v48 = vsel %vm740_vm7, %v737_v42, %v739_v44  ;;  %v753_v49 = vsel %vm227_vm1, %v739_v44, 0 }
  0xa4   : > { %1359 = vmatprep.subr.bf16.mxu1 %v1416_v1  ;;  %v846_v52 = vpop.permute.xlu1 %845 }
  0xa5   : > { %v860_v57 = vsel %vm227_vm1, %v846_v52, 0 }
  0xa6   : > { %v844_v50 = vpop.permute.xlu0 %843 }
  0xa7   : > { %v849_v56 = vsel %vm847_vm8, %v844_v50, %v846_v52  ;;  %v848_v59 = vsel %vm847_vm8, %v842_v46, %v844_v50 }
  0xa8   : > { %1282 = vmatmul.mubr.msk.bf16.vlgmr.msra.gmra.mxu0 %vm223_vm2, %v1280_v39  ;;  %v951_v58 = vpop.permute.xlu1 %950  ;;  %v854_v61 = vsel %vm227_vm1, %v848_v59, 0 }
  0xa9   : > { %663 = vmatpush1.bf16.msra.mxu0 %v640_v45  ;;  %680 = vmatprep.mubr.bf16.mxu0 %v1418_v2 }
  0xaa   : > { %1356 = vmatmul.mubr.msk.bf16.vlgmr.msra.gmra.mxu1 %vm223_vm2, %v1284_v47  ;;  %1289 = vmatprep.subr.msk.bf16.mxu0 %vm227_vm1, %v742_v48  ;;  %v949_v54 = vpop.permute.xlu0 %948 }
  0xab   : > { %1360 = vmatpush3.bf16.msra.mxu1 %v753_v49  ;;  %1361 = vmatprep.mubr.msk.bf16.mxu1 %vm1417_vm0, %v1416_v1  ;;  %v955_v4 = vsel %vm954_vm9, %v949_v54, %v951_v58 }
  0xac   : > { %1365 = vmatprep.subr.bf16.mxu1 %v1416_v1  ;;  %v1056_v62 = vpop.permute.xlu1 %1055  ;;  %v961_v7 = vsel %vm227_vm1, %v955_v4, 0 }
  0xae   : > { %v953_v60 = vpop.permute.xlu0 %952 }
  0xaf   : > { %v956_v0 = vsel %vm954_vm9, %v951_v58, %v953_v60  ;;  %v967_v3 = vsel %vm227_vm1, %v953_v60, 0 }
  0xb0   : > { %1286 = vmatmul.mubr.msk.bf16.vlgmr.msra.gmra.mxu0 %vm223_vm2, %v1284_v47  ;;  %v1060_v6 = vpop.permute.xlu1 %1059 }
  0xb1   : > { %770 = vmatpush1.bf16.msra.mxu0 %v747_v53  ;;  %787 = vmatprep.mubr.bf16.mxu0 %v1418_v2  ;;  %v1074_v10 = vsel %vm227_vm1, %v1060_v6, 0 }
  0xb2   : > { %1362 = vmatmul.mubr.msk.bf16.vlgmr.msra.gmra.mxu1 %vm223_vm2, %v1288_v55  ;;  %1293 = vmatprep.subr.msk.bf16.mxu0 %vm227_vm1, %v849_v56  ;;  %v1058_v5 = vpop.permute.xlu0 %1057 }
  0xb3   : > { %1366 = vmatpush3.bf16.msra.mxu1 %v860_v57  ;;  %1367 = vmatprep.mubr.msk.bf16.mxu1 %vm1417_vm0, %v1416_v1  ;;  %v1063_v9 = vsel %vm1061_vm10, %v1058_v5, %v1060_v6  ;;  %v1062_v11 = vsel %vm1061_vm10, %v1056_v62, %v1058_v5 }
  0xb4   : > { %1371 = vmatprep.subr.bf16.mxu1 %v1416_v1  ;;  %v1068_v12 = vsel %vm227_vm1, %v1062_v11, 0 }
  0xb8   : > { %1290 = vmatmul.mubr.msk.bf16.vlgmr.msra.gmra.mxu0 %vm223_vm2, %v1288_v55 }
  0xb9   : > { %877 = vmatpush1.bf16.msra.mxu0 %v854_v61  ;;  %894 = vmatprep.mubr.bf16.mxu0 %v1418_v2 }
  0xba   : > { %1368 = vmatmul.mubr.msk.bf16.vlgmr.msra.gmra.mxu1 %vm223_vm2, %v1292_v63  ;;  %1297 = vmatprep.subr.msk.bf16.mxu0 %vm227_vm1, %v956_v0 }
  0xbb   : > { %1372 = vmatpush3.bf16.msra.mxu1 %v967_v3  ;;  %1373 = vmatprep.mubr.msk.bf16.mxu1 %vm1417_vm0, %v1416_v1 }
  0xbc   : > { %1377 = vmatprep.subr.bf16.mxu1 %v1416_v1 }
  0xc0   : > { %1294 = vmatmul.mubr.msk.bf16.vlgmr.msra.gmra.mxu0 %vm223_vm2, %v1292_v63 }
  0xc1   : > { %984 = vmatpush1.bf16.msra.mxu0 %v961_v7  ;;  %1001 = vmatprep.mubr.bf16.mxu0 %v1418_v2 }
  0xc2   : > { %1374 = vmatmul.mubr.msk.bf16.vlgmr.msra.gmra.mxu1 %vm223_vm2, %v1296_v8  ;;  %1301 = vmatprep.subr.msk.bf16.mxu0 %vm227_vm1, %v1063_v9 }
  0xc3   : > { %1378 = vmatpush3.bf16.msra.mxu1 %v1074_v10  ;;  %1379 = vmatprep.mubr.msk.bf16.mxu1 %vm1417_vm0, %v1416_v1 }
  0xc8   : > { %1298 = vmatmul.mubr.msk.bf16.vlgmr.msra.gmra.mxu0 %vm223_vm2, %v1296_v8 }
  0xc9   : > { %1091 = vmatpush1.bf16.msra.mxu0 %v1068_v12  ;;  %1108 = vmatprep.mubr.bf16.mxu0 %v1418_v2 }
  0xca   : > { %1380 = vmatmul.mubr.msk.bf16.vlgmr.msra.gmra.mxu1 %vm223_vm2, %v1300_v13 }
  0xd0   : > { %1302 = vmatmul.mubr.msk.bf16.vlgmr.msra.gmra.mxu0 %vm223_vm2, %v1300_v13 }
 0x149   : > { %v312_v14 = vpop.f32.mrf.mxu1 }
 0x14b   : > { %v1333_v15 = vpop.f32.mrf.mxu1 }
 0x14d   : > { %v315_v16 = vpop.f32.mrf.mxu1 }
 0x14f   : > { %v1334_v1 = vpop.f32.mrf.mxu1 }
 0x150   : > { %v271_v17 = vpop.f32.mrf.mxu0 }
 0x152   : > { %v273_v18 = vpop.f32.mrf.mxu0  ;;  %v405_v19 = vpop.f32.mrf.mxu1 }
 0x153   : > { %v406_v61 = vadd.f32 %v405_v19, %v312_v14 }
 0x154   : > { %v275_v20 = vpop.f32.mrf.mxu0  ;;  %v1339_v21 = vpop.f32.mrf.mxu1 }
 0x156   : > { %v276_v22 = vpop.f32.mrf.mxu0  ;;  %v408_v23 = vpop.f32.mrf.mxu1 }
 0x158   : > { %v364_v24 = vpop.f32.mrf.mxu0  ;;  %v1340_v25 = vpop.f32.mrf.mxu1 }
 0x159   : > { %v365_v8 = vadd.f32 %v364_v24, %v271_v17 }
 0x15a   : > { %v366_v26 = vpop.f32.mrf.mxu0  ;;  %v509_v27 = vpop.f32.mrf.mxu1 }
 0x15b   : > { %v517_v0 = vadd.f32 %v509_v27, %v406_v61  ;;  %v367_v12 = vadd.f32 %v366_v26, %v273_v18  ;;  %v1180_v18 = vpop.permute.xlu1 %1179 }
 0x15c   : > { %v368_v2 = vpop.f32.mrf.mxu0  ;;  %v1345_v28 = vpop.f32.mrf.mxu1 }
 0x15d   : > { %v1164_v2 = vpop.permute.xlu0 %1163 }
 0x15e   : > { %v369_v29 = vpop.f32.mrf.mxu0  ;;  %v512_v30 = vpop.f32.mrf.mxu1 }
 0x160   : > { %v468_v31 = vpop.f32.mrf.mxu0  ;;  %v1346_v32 = vpop.f32.mrf.mxu1 }
 0x161   : > { %v515_v13 = vadd.f32 %v468_v31, %v365_v8 }
 0x162   : > { %v470_v33 = vpop.f32.mrf.mxu0  ;;  %v616_v34 = vpop.f32.mrf.mxu1 }
 0x163   : > { %v624_v5 = vadd.f32 %v616_v34, %v517_v0  ;;  %v516_v20 = vadd.f32 %v470_v33, %v367_v12 }
 0x164   : > { %v472_v35 = vpop.f32.mrf.mxu0  ;;  %v1351_v36 = vpop.f32.mrf.mxu1 }
 0x166   : > { %v473_v37 = vpop.f32.mrf.mxu0  ;;  %v619_v38 = vpop.f32.mrf.mxu1 }
 0x168   : > { %v575_v39 = vpop.f32.mrf.mxu0  ;;  %v1352_v40 = vpop.f32.mrf.mxu1 }
 0x169   : > { %v622_v21 = vadd.f32 %v575_v39, %v515_v13 }
 0x16a   : > { %v577_v41 = vpop.f32.mrf.mxu0  ;;  %v723_v42 = vpop.f32.mrf.mxu1 }
 0x16b   : > { %v731_v9 = vadd.f32 %v723_v42, %v624_v5  ;;  %v623_v23 = vadd.f32 %v577_v41, %v516_v20 }
 0x16c   : > { %v579_v43 = vpop.f32.mrf.mxu0  ;;  %v1357_v44 = vpop.f32.mrf.mxu1 }
 0x16e   : > { %v580_v45 = vpop.f32.mrf.mxu0  ;;  %v726_v46 = vpop.f32.mrf.mxu1 }
 0x170   : > { %v682_v47 = vpop.f32.mrf.mxu0  ;;  %v1358_v48 = vpop.f32.mrf.mxu1 }
 0x171   : > { %v729_v25 = vadd.f32 %v682_v47, %v622_v21 }
 0x172   : > { %v684_v49 = vpop.f32.mrf.mxu0  ;;  %v830_v50 = vpop.f32.mrf.mxu1 }
 0x173   : > { %v838_v15 = vadd.f32 %v830_v50, %v731_v9  ;;  %v730_v17 = vadd.f32 %v684_v49, %v623_v23 }
 0x174   : > { %v686_v51 = vpop.f32.mrf.mxu0  ;;  %v1363_v52 = vpop.f32.mrf.mxu1 }
 0x176   : > { %v687_v53 = vpop.f32.mrf.mxu0  ;;  %v833_v54 = vpop.f32.mrf.mxu1 }
 0x178   : > { %v789_v55 = vpop.f32.mrf.mxu0  ;;  %v1364_v56 = vpop.f32.mrf.mxu1 }
 0x179   : > { %v836_v24 = vadd.f32 %v789_v55, %v729_v25 }
 0x17a   : > { %v791_v57 = vpop.f32.mrf.mxu0  ;;  %v937_v58 = vpop.f32.mrf.mxu1 }
 0x17b   : > { %v945_v14 = vadd.f32 %v937_v58, %v838_v15  ;;  %v837_v32 = vadd.f32 %v791_v57, %v730_v17 }
 0x17c   : > { %v793_v59 = vpop.f32.mrf.mxu0  ;;  %v1369_v60 = vpop.f32.mrf.mxu1 }
 0x17e   : > { %v794_v62 = vpop.f32.mrf.mxu0  ;;  %v940_v63 = vpop.f32.mrf.mxu1 }
 0x180   : > { %v896_v3 = vpop.f32.mrf.mxu0  ;;  %v1370_v4 = vpop.f32.mrf.mxu1 }
 0x181   : > { %v943_v34 = vadd.f32 %v896_v3, %v836_v24 }
 0x182   : > { %v898_v6 = vpop.f32.mrf.mxu0  ;;  %v1044_v7 = vpop.f32.mrf.mxu1 }
 0x183   : > { %v1052_v27 = vadd.f32 %v1044_v7, %v945_v14  ;;  %v944_v37 = vadd.f32 %v898_v6, %v837_v32 }
 0x184   : > { %v900_v10 = vpop.f32.mrf.mxu0  ;;  %v1375_v11 = vpop.f32.mrf.mxu1 }
 0x186   : > { %v901_v16 = vpop.f32.mrf.mxu0  ;;  %v1047_v1 = vpop.f32.mrf.mxu1 }
 0x188   : > { %v1003_v19 = vpop.f32.mrf.mxu0  ;;  %v1376_v22 = vpop.f32.mrf.mxu1 }
 0x189   : > { %v1050_v38 = vadd.f32 %v1003_v19, %v943_v34 }
 0x18a   : > { %v1005_v28 = vpop.f32.mrf.mxu0  ;;  %v1151_v29 = vpop.f32.mrf.mxu1 }
 0x18b   : > { %v1159_v30 = vadd.f32 %v1151_v29, %v1052_v27  ;;  %v1051_v42 = vadd.f32 %v1005_v28, %v944_v37 }
 0x18c   : > { %v1007_v26 = vpop.f32.mrf.mxu0  ;;  %v1381_v31 = vpop.f32.mrf.mxu1 }
 0x18d   : > { %v1168_v33 = vadd.f32 %v1164_v2, %v1159_v30 }
 0x18e   : > { %v1008_v35 = vpop.f32.mrf.mxu0  ;;  %v1154_v36 = vpop.f32.mrf.mxu1 }
 0x18f   : > { %vm1171_vm11 = vcmp.ge.f32.partialorder %v1168_v33, 0.0  ;;  %v1184_v39 = vmul.f32 %v1180_v18, %v1168_v33 }
 0x190   : > { %v1110_v40 = vpop.f32.mrf.mxu0  ;;  %v1382_v41 = vpop.f32.mrf.mxu1 }
 0x191   : > { %v1187_v43 = vsel %vm1171_vm11, %v1168_v33, %v1184_v39  ;;  %v1157_v44 = vadd.f32 %v1110_v40, %v1050_v38 }
 0x192   : > { %v1310_v45 = vpack.c.bf16 %v1187_v43, %v1187_v43  ;;  %v1112_v46 = vpop.f32.mrf.mxu0 }
 0x193   : > { %v1166_v47 = vadd.f32 %v1164_v2, %v1157_v44  ;;  %v1158_v48 = vadd.f32 %v1112_v46, %v1051_v42 }
 0x194   : > { %1203 = vst.msk [vmem:[%s199_s28 + $0x8] sm:$0xf] %vm1202_vm12, %v1310_v45  ;;  %v1114_v49 = vpop.f32.mrf.mxu0 }
 0x195   : > { %v1182_v50 = vmul.f32 %v1180_v18, %v1166_v47  ;;  %v1167_v51 = vadd.f32 %v1164_v2, %v1158_v48  ;;  %vm1169_vm13 = vcmp.ge.f32.partialorder %v1166_v47, 0.0 }
 0x196   : > { %v1115_v52 = vpop.f32.mrf.mxu0 }
 0x197   : > { %vm1170_vm14 = vcmp.ge.f32.partialorder %v1167_v51, 0.0  ;;  %v1183_v53 = vmul.f32 %v1180_v18, %v1167_v51  ;;  %v1185_v54 = vsel %vm1169_vm13, %v1166_v47, %v1182_v50 }
 0x199   : > { %v1186_v55 = vsel %vm1170_vm14, %v1167_v51, %v1183_v53 }
 0x19a   : > { %v1309_v56 = vpack.c.bf16 %v1186_v55, %v1185_v54 }
 0x19c   : > { %1201 = vst [vmem:[%s199_s28] sm:$0xff] %v1309_v56 }
 0x19d PF: > { %s16_s17 = sadd.s32 1, %s1414_s17  }
 0x19e   : > { %p13_p4 = scmp.ge.s32.totalorder %s16_s17, 4  }
 0x1a0   :  { %15 = sbr.rel (!%p13_p4) target bundleno = 3 (0x3), region = 74 }

// kernel: _lambda_.34
= control target key start
LH: loop header
LB: loop body
LE: loop exit
PB: predicated region body
PF: predicated region fallthrough
CT: control target
= control target key end

     0   :  { %s1470_s15 = smov 0   ;;  %s1613_s0 = inlined_call_operand.vmem [shape: bf16[2,8,326], index: 0, kind: input, shape index: {}]   ;;  %s1614_s1 = inlined_call_operand.vmem [shape: bf16[9,8,8], index: 1, kind: input, shape index: {}]   ;;  %s1615_s2 = inlined_call_operand.vmem [shape: f32[8,1], index: 2, kind: input, shape index: {}]   ;;  %s1616_s3 = inlined_call_operand.vmem [shape: bf16[2,8,288], index: 3, kind: input, shape index: {}]   ;;  %s1617_s4 = inlined_call_operand.vmem [shape: bf16[2,8,288], index: 4, kind: output, shape index: {}]  }
   0x1 LB: > { %s1278_s16 = sadd.s32 4294967295, %s1432_s15   ;;  %p1282_p0 = scmp.ge.s32.totalorder %s1432_s15, 1  ;;  %s1432_s15 = sphi %s1470_s15, %s14_s15  }
   0x2   : > { %p172_p1 = scmp.lt.s32.totalorder %s1432_s15, 3 }
   0x4   : > { %p173_p2 = pnand %p1282_p0, %p172_p1 }
   0x5   : > { %p203_p3 = scmp.lt.s32.totalorder (!%p173_p2), %s1278_s16, 1  ;;  %s1437_s21 = smov (!%p173_p2), 127  }
   0x6   : > { %176 = sbr.rel (%p173_p2) target bundleno = 410 (0x19a), region = 36  ;;  %s1438_s22 = smov (!%p173_p2), 126  }
   0x7   : > { %s1439_s23 = smov (!%p173_p2), 110   ;;  %s1440_s24 = smov (!%p173_p2), 109  }
   0x8   : > { %s1441_s25 = smov (!%p173_p2), 108   ;;  %s1442_s26 = smov (!%p173_p2), 92  }
   0x9   : > { %s1443_s27 = smov (!%p173_p2), 91   ;;  %s1444_s28 = smov (!%p173_p2), 90  }
   0xb   : > { %v1434_v0 = vmov 0.0   ;;  %vm1435_vm0 = vmmov 0   ;;  %s1619_s16 = smov (!%p203_p3, %s1278_s16), 1  ;;  %v1436_v1 = vmov 0   ;;  %v1178_v6 = vld [vmem:[%s1615_s2] sm:$0xff]  ;;  %vm245_vm1 = vcmask 1043456  }
   0xc   : > { %1348 = vmatprep.subr.bf16.mxu1 %v1434_v0  ;;  %1350 = vmatprep.mubr.msk.bf16.mxu1 %vm1435_vm0, %v1434_v0  ;;  %s1481_s17 = smul.u32 12, %s1619_s16  ;;  %v1286_v10 = vld [vmem:[%s1614_s1 + $0x4] sm:$0xf]  ;;  %vm241_vm2 = vcmask 64512   ;;  %vm238_vm3 = vcmask 1039360   ;;  %vm437_vm4 = vcmask 1031168  }
   0xd   : > { %287 = vmatprep.mubr.bf16.mxu0 %v1436_v1  ;;  %1422 = vset.pattern.permute.xlu0 %v1436_v1  ;;  %v221_v20 = vld [vmem:[%s1614_s1] sm:$0xf]  ;;  %vm544_vm5 = vcmask 900096   ;;  %v1296_v29 = vld [vmem:[%s1614_s1 + $0x8] sm:$0xf]  ;;  %vm651_vm6 = vcmask 891904  }
   0xe   : > { %s207_s20 = scalar_lea.vmem %s1613_s0, %s1481_s17  ;;  %v1300_v37 = vld [vmem:[%s1614_s1 + $0xc] sm:$0xf]  ;;  %vm758_vm7 = vcmask 883712   ;;  %v1304_v45 = vld [vmem:[%s1614_s1 + $0x10] sm:$0xf]  ;;  %vm865_vm8 = vcmask 752640   ;;  %s217_s30 = scalar_lea.vmem %s1617_s4, %s1481_s17 }
   0xf   : > { %v1423_v2 = vld [vmem:[%s207_s20 + $0x8] ss:$0 sps:$4 sm:$0xff]   ;;  %v219_v3 = vld [vmem:[%s207_s20] sm:$0xff]  ;;  %v1308_v53 = vld [vmem:[%s1614_s1 + $0x14] sm:$0xf]  ;;  %vm972_vm9 = vcmask 744448  }
  0x10   : > { %v1287_v4 = vcombine.low %v219_v3, %v219_v3  ;;  %236 = vrot.lane.b32.xlu1 %v1423_v2, %s1437_s21  ;;  %v1288_v5 = vcombine.high %v219_v3, %v219_v3  ;;  %v346_v11 = vsel %vm245_vm1, %v1423_v2, 0  ;;  %v1312_v61 = vld [vmem:[%s1614_s1 + $0x18] sm:$0xf]  ;;  %vm1079_vm10 = vcmask 736256  }
  0x11   : > { %vm1209_vm11 = vcmask 257024  }
  0x12   : > { %232 = vrot.lane.b32.xlu0 %v1287_v4, %s1437_s21  ;;  %v340_v18 = vsel %vm245_vm1, %v1287_v4, 0 }
  0x14   : > { %431 = vrot.lane.b32.xlu1 %v1287_v4, %s1438_s22 }
  0x16   : > { %234 = vrot.lane.b32.xlu0 %v1288_v5, %s1437_s21 }
  0x18   : > { %435 = vrot.lane.b32.xlu1 %v1423_v2, %s1438_s22 }
  0x1a   : > { %433 = vrot.lane.b32.xlu0 %v1288_v5, %s1438_s22 }
  0x1c   : > { %540 = vrot.lane.b32.xlu1 %v1288_v5, %s1439_s23 }
  0x1e   : > { %538 = vrot.lane.b32.xlu0 %v1287_v4, %s1439_s23 }
  0x20   : > { %645 = vrot.lane.b32.xlu1 %v1287_v4, %s1440_s24 }
  0x22   : > { %542 = vrot.lane.b32.xlu0 %v1423_v2, %s1439_s23 }
  0x24   : > { %649 = vrot.lane.b32.xlu1 %v1423_v2, %s1440_s24 }
  0x26   : > { %647 = vrot.lane.b32.xlu0 %v1288_v5, %s1440_s24 }
  0x28   : > { %754 = vrot.lane.b32.xlu1 %v1288_v5, %s1441_s25 }
  0x2a   : > { %752 = vrot.lane.b32.xlu0 %v1287_v4, %s1441_s25 }
  0x2c   : > { %859 = vrot.lane.b32.xlu1 %v1287_v4, %s1442_s26 }
  0x2e   : > { %756 = vrot.lane.b32.xlu0 %v1423_v2, %s1441_s25 }
  0x30   : > { %863 = vrot.lane.b32.xlu1 %v1423_v2, %s1442_s26 }
  0x32   : > { %861 = vrot.lane.b32.xlu0 %v1288_v5, %s1442_s26 }
  0x34   : > { %968 = vrot.lane.b32.xlu1 %v1288_v5, %s1443_s27 }
  0x36   : > { %966 = vrot.lane.b32.xlu0 %v1287_v4, %s1443_s27 }
  0x38   : > { %1073 = vrot.lane.b32.xlu1 %v1287_v4, %s1444_s28 }
  0x3a   : > { %970 = vrot.lane.b32.xlu0 %v1423_v2, %s1443_s27  ;;  %s1602_s27 = scalar_lea.vmem %s1616_s3, %s1481_s17 }
  0x3c   : > { %1077 = vrot.lane.b32.xlu1 %v1423_v2, %s1444_s28 }
  0x3e   : > { %1075 = vrot.lane.b32.xlu0 %v1288_v5, %s1444_s28 }
  0x42   : > { %1181 = vperm.xlu0 %1422, %v1178_v6   ;;  %v1316_v6 = vld [vmem:[%s1614_s1 + $0x1c] sm:$0xf] }
  0x82   : > { %v237_v7 = vpop.permute.xlu1 %236 }
  0x83   : > { %v253_v9 = vsel %vm245_vm1, %v237_v7, 0 }
  0x84   : > { %v233_v8 = vpop.permute.xlu0 %232  ;;  %1349 = vmatpush3.bf16.msra.mxu1 %v253_v9 }
  0x85   : > { %1354 = vmatprep.subr.bf16.mxu1 %v1434_v0 }
  0x86   : > { %v432_v12 = vpop.permute.xlu1 %431 }
  0x87   : > { %1351 = vmatmul.mubr.msk.bf16.vlgmr.msra.gmra.mxu1 %vm241_vm2, %v1286_v10 }
  0x88   : > { %v235_v13 = vpop.permute.xlu0 %234  ;;  %1355 = vmatpush3.bf16.msra.mxu1 %v346_v11  ;;  %1356 = vmatprep.mubr.msk.bf16.mxu1 %vm1435_vm0, %v1434_v0  ;;  %v1320_v11 = vld [vmem:[%s1614_s1 + $0x20] sm:$0xf] }
  0x89   : > { %v240_v14 = vsel %vm238_vm3, %v235_v13, %v237_v7  ;;  %v239_v15 = vsel %vm238_vm3, %v233_v8, %v235_v13  ;;  %1360 = vmatprep.subr.bf16.mxu1 %v1434_v0 }
  0x8a   : > { %1290 = vmatprep.subr.msk.bf16.mxu0 %vm245_vm1, %v240_v14  ;;  %v247_v16 = vsel %vm245_vm1, %v239_v15, 0  ;;  %v436_v17 = vpop.permute.xlu1 %435 }
  0x8b   : > { %270 = vmatpush1.bf16.msra.mxu0 %v247_v16  ;;  %v450_v22 = vsel %vm245_vm1, %v436_v17, 0 }
  0x8c   : > { %1293 = vmatprep.subr.msk.bf16.mxu0 %vm245_vm1, %v1288_v5  ;;  %v434_v19 = vpop.permute.xlu0 %433 }
  0x8d   : > { %v439_v21 = vsel %vm437_vm4, %v434_v19, %v436_v17  ;;  %v438_v25 = vsel %vm437_vm4, %v432_v12, %v434_v19 }
  0x8e   : > { %1291 = vmatmul.mubr.msk.bf16.vlgmr.msra.gmra.mxu0 %vm241_vm2, %v1286_v10  ;;  %v541_v23 = vpop.permute.xlu1 %540  ;;  %v444_v26 = vsel %vm245_vm1, %v438_v25, 0 }
  0x8f   : > { %363 = vmatpush1.bf16.msra.mxu0 %v340_v18  ;;  %380 = vmatprep.mubr.bf16.mxu0 %v1436_v1 }
  0x90   : > { %1357 = vmatmul.mubr.msk.bf16.vlgmr.msra.gmra.mxu1 %vm241_vm2, %v221_v20  ;;  %1297 = vmatprep.subr.msk.bf16.mxu0 %vm245_vm1, %v439_v21  ;;  %v539_v24 = vpop.permute.xlu0 %538 }
  0x91   : > { %1361 = vmatpush3.bf16.msra.mxu1 %v450_v22  ;;  %1362 = vmatprep.mubr.msk.bf16.mxu1 %vm1435_vm0, %v1434_v0  ;;  %v545_v33 = vsel %vm544_vm5, %v539_v24, %v541_v23 }
  0x92   : > { %1366 = vmatprep.subr.bf16.mxu1 %v1434_v0  ;;  %v646_v28 = vpop.permute.xlu1 %645  ;;  %v551_v35 = vsel %vm245_vm1, %v545_v33, 0 }
  0x94   : > { %v543_v27 = vpop.permute.xlu0 %542 }
  0x95   : > { %v546_v30 = vsel %vm544_vm5, %v541_v23, %v543_v27  ;;  %v557_v31 = vsel %vm245_vm1, %v543_v27, 0 }
  0x96   : > { %1294 = vmatmul.mubr.msk.bf16.vlgmr.msra.gmra.mxu0 %vm241_vm2, %v221_v20  ;;  %v650_v34 = vpop.permute.xlu1 %649 }
  0x97   : > { %467 = vmatpush1.bf16.msra.mxu0 %v444_v26  ;;  %484 = vmatprep.mubr.bf16.mxu0 %v1436_v1  ;;  %v664_v39 = vsel %vm245_vm1, %v650_v34, 0 }
  0x98   : > { %1363 = vmatmul.mubr.msk.bf16.vlgmr.msra.gmra.mxu1 %vm241_vm2, %v1296_v29  ;;  %1301 = vmatprep.subr.msk.bf16.mxu0 %vm245_vm1, %v546_v30  ;;  %v648_v32 = vpop.permute.xlu0 %647 }
  0x99   : > { %1367 = vmatpush3.bf16.msra.mxu1 %v557_v31  ;;  %1368 = vmatprep.mubr.msk.bf16.mxu1 %vm1435_vm0, %v1434_v0  ;;  %v653_v38 = vsel %vm651_vm6, %v648_v32, %v650_v34  ;;  %v652_v41 = vsel %vm651_vm6, %v646_v28, %v648_v32 }
  0x9a   : > { %1372 = vmatprep.subr.bf16.mxu1 %v1434_v0  ;;  %v755_v40 = vpop.permute.xlu1 %754  ;;  %v658_v43 = vsel %vm245_vm1, %v652_v41, 0 }
  0x9c   : > { %v753_v36 = vpop.permute.xlu0 %752 }
  0x9d   : > { %v759_v49 = vsel %vm758_vm7, %v753_v36, %v755_v40 }
  0x9e   : > { %1298 = vmatmul.mubr.msk.bf16.vlgmr.msra.gmra.mxu0 %vm241_vm2, %v1296_v29  ;;  %v860_v44 = vpop.permute.xlu1 %859  ;;  %v765_v51 = vsel %vm245_vm1, %v759_v49, 0 }
  0x9f   : > { %574 = vmatpush1.bf16.msra.mxu0 %v551_v35  ;;  %591 = vmatprep.mubr.bf16.mxu0 %v1436_v1 }
  0xa0   : > { %1369 = vmatmul.mubr.msk.bf16.vlgmr.msra.gmra.mxu1 %vm241_vm2, %v1300_v37  ;;  %1305 = vmatprep.subr.msk.bf16.mxu0 %vm245_vm1, %v653_v38  ;;  %v757_v42 = vpop.permute.xlu0 %756 }
  0xa1   : > { %1373 = vmatpush3.bf16.msra.mxu1 %v664_v39  ;;  %1374 = vmatprep.mubr.msk.bf16.mxu1 %vm1435_vm0, %v1434_v0  ;;  %v760_v46 = vsel %vm758_vm7, %v755_v40, %v757_v42  ;;  %v771_v47 = vsel %vm245_vm1, %v757_v42, 0 }
  0xa2   : > { %1378 = vmatprep.subr.bf16.mxu1 %v1434_v0  ;;  %v864_v50 = vpop.permute.xlu1 %863 }
  0xa3   : > { %v878_v55 = vsel %vm245_vm1, %v864_v50, 0 }
  0xa4   : > { %v862_v48 = vpop.permute.xlu0 %861 }
  0xa5   : > { %v867_v54 = vsel %vm865_vm8, %v862_v48, %v864_v50  ;;  %v866_v57 = vsel %vm865_vm8, %v860_v44, %v862_v48 }
  0xa6   : > { %1302 = vmatmul.mubr.msk.bf16.vlgmr.msra.gmra.mxu0 %vm241_vm2, %v1300_v37  ;;  %v969_v56 = vpop.permute.xlu1 %968  ;;  %v872_v59 = vsel %vm245_vm1, %v866_v57, 0 }
  0xa7   : > { %681 = vmatpush1.bf16.msra.mxu0 %v658_v43  ;;  %698 = vmatprep.mubr.bf16.mxu0 %v1436_v1 }
  0xa8   : > { %1375 = vmatmul.mubr.msk.bf16.vlgmr.msra.gmra.mxu1 %vm241_vm2, %v1304_v45  ;;  %1309 = vmatprep.subr.msk.bf16.mxu0 %vm245_vm1, %v760_v46  ;;  %v967_v52 = vpop.permute.xlu0 %966 }
  0xa9   : > { %1379 = vmatpush3.bf16.msra.mxu1 %v771_v47  ;;  %1380 = vmatprep.mubr.msk.bf16.mxu1 %vm1435_vm0, %v1434_v0  ;;  %v973_v2 = vsel %vm972_vm9, %v967_v52, %v969_v56 }
  0xaa   : > { %1384 = vmatprep.subr.bf16.mxu1 %v1434_v0  ;;  %v1074_v60 = vpop.permute.xlu1 %1073  ;;  %v979_v5 = vsel %vm245_vm1, %v973_v2, 0 }
  0xac   : > { %v971_v58 = vpop.permute.xlu0 %970 }
  0xad   : > { %v974_v62 = vsel %vm972_vm9, %v969_v56, %v971_v58  ;;  %v985_v63 = vsel %vm245_vm1, %v971_v58, 0 }
  0xae   : > { %1306 = vmatmul.mubr.msk.bf16.vlgmr.msra.gmra.mxu0 %vm241_vm2, %v1304_v45  ;;  %v1078_v4 = vpop.permute.xlu1 %1077 }
  0xaf   : > { %788 = vmatpush1.bf16.msra.mxu0 %v765_v51  ;;  %805 = vmatprep.mubr.bf16.mxu0 %v1436_v1  ;;  %v1092_v8 = vsel %vm245_vm1, %v1078_v4, 0 }
  0xb0   : > { %1381 = vmatmul.mubr.msk.bf16.vlgmr.msra.gmra.mxu1 %vm241_vm2, %v1308_v53  ;;  %1313 = vmatprep.subr.msk.bf16.mxu0 %vm245_vm1, %v867_v54  ;;  %v1076_v3 = vpop.permute.xlu0 %1075 }
  0xb1   : > { %1385 = vmatpush3.bf16.msra.mxu1 %v878_v55  ;;  %1386 = vmatprep.mubr.msk.bf16.mxu1 %vm1435_vm0, %v1434_v0  ;;  %v1081_v7 = vsel %vm1079_vm10, %v1076_v3, %v1078_v4  ;;  %v1080_v9 = vsel %vm1079_vm10, %v1074_v60, %v1076_v3 }
  0xb2   : > { %1390 = vmatprep.subr.bf16.mxu1 %v1434_v0  ;;  %v1086_v10 = vsel %vm245_vm1, %v1080_v9, 0 }
  0xb6   : > { %1310 = vmatmul.mubr.msk.bf16.vlgmr.msra.gmra.mxu0 %vm241_vm2, %v1308_v53 }
  0xb7   : > { %895 = vmatpush1.bf16.msra.mxu0 %v872_v59  ;;  %912 = vmatprep.mubr.bf16.mxu0 %v1436_v1 }
  0xb8   : > { %1387 = vmatmul.mubr.msk.bf16.vlgmr.msra.gmra.mxu1 %vm241_vm2, %v1312_v61  ;;  %1317 = vmatprep.subr.msk.bf16.mxu0 %vm245_vm1, %v974_v62 }
  0xb9   : > { %1391 = vmatpush3.bf16.msra.mxu1 %v985_v63  ;;  %1392 = vmatprep.mubr.msk.bf16.mxu1 %vm1435_vm0, %v1434_v0 }
  0xba   : > { %1396 = vmatprep.subr.bf16.mxu1 %v1434_v0 }
  0xbe   : > { %1314 = vmatmul.mubr.msk.bf16.vlgmr.msra.gmra.mxu0 %vm241_vm2, %v1312_v61 }
  0xbf   : > { %1002 = vmatpush1.bf16.msra.mxu0 %v979_v5  ;;  %1019 = vmatprep.mubr.bf16.mxu0 %v1436_v1 }
  0xc0   : > { %1393 = vmatmul.mubr.msk.bf16.vlgmr.msra.gmra.mxu1 %vm241_vm2, %v1316_v6  ;;  %1321 = vmatprep.subr.msk.bf16.mxu0 %vm245_vm1, %v1081_v7 }
  0xc1   : > { %1397 = vmatpush3.bf16.msra.mxu1 %v1092_v8  ;;  %1398 = vmatprep.mubr.msk.bf16.mxu1 %vm1435_vm0, %v1434_v0 }
  0xc6   : > { %1318 = vmatmul.mubr.msk.bf16.vlgmr.msra.gmra.mxu0 %vm241_vm2, %v1316_v6 }
  0xc7   : > { %1109 = vmatpush1.bf16.msra.mxu0 %v1086_v10  ;;  %1126 = vmatprep.mubr.bf16.mxu0 %v1436_v1 }
  0xc8   : > { %1399 = vmatmul.mubr.msk.bf16.vlgmr.msra.gmra.mxu1 %vm241_vm2, %v1320_v11 }
  0xce   : > { %1322 = vmatmul.mubr.msk.bf16.vlgmr.msra.gmra.mxu0 %vm241_vm2, %v1320_v11 }
 0x147   : > { %v330_v12 = vpop.f32.mrf.mxu1 }
 0x149   : > { %v1352_v13 = vpop.f32.mrf.mxu1 }
 0x14b   : > { %v333_v14 = vpop.f32.mrf.mxu1 }
 0x14d   : > { %v1353_v0 = vpop.f32.mrf.mxu1 }
 0x14e   : > { %v289_v15 = vpop.f32.mrf.mxu0 }
 0x150   : > { %v291_v16 = vpop.f32.mrf.mxu0  ;;  %v423_v17 = vpop.f32.mrf.mxu1 }
 0x151   : > { %v424_v59 = vadd.f32 %v423_v17, %v330_v12 }
 0x152   : > { %v293_v18 = vpop.f32.mrf.mxu0  ;;  %v1358_v19 = vpop.f32.mrf.mxu1 }
 0x154   : > { %v294_v20 = vpop.f32.mrf.mxu0  ;;  %v426_v21 = vpop.f32.mrf.mxu1 }
 0x156   : > { %v382_v22 = vpop.f32.mrf.mxu0  ;;  %v1359_v23 = vpop.f32.mrf.mxu1 }
 0x157   : > { %v383_v6 = vadd.f32 %v382_v22, %v289_v15  ;;  %v1188_v15 = vld [vmem:[%s1602_s27 + $0x8] sm:$0xf] }
 0x158   : > { %v384_v24 = vpop.f32.mrf.mxu0  ;;  %v527_v25 = vpop.f32.mrf.mxu1 }
 0x159   : > { %v535_v62 = vadd.f32 %v527_v25, %v424_v59  ;;  %v385_v10 = vadd.f32 %v384_v24, %v291_v16  ;;  %v1182_v16 = vpop.permute.xlu0 %1181 }
 0x15a   : > { %v386_v1 = vpop.f32.mrf.mxu0  ;;  %v1364_v26 = vpop.f32.mrf.mxu1 }
 0x15c   : > { %v387_v27 = vpop.f32.mrf.mxu0  ;;  %v530_v28 = vpop.f32.mrf.mxu1 }
 0x15d   : > { %v1191_v28 = vunpack.c.l.bf16 %v1188_v15 }
 0x15e   : > { %v486_v29 = vpop.f32.mrf.mxu0  ;;  %v1365_v30 = vpop.f32.mrf.mxu1 }
 0x15f   : > { %v533_v11 = vadd.f32 %v486_v29, %v383_v6 }
 0x160   : > { %v488_v31 = vpop.f32.mrf.mxu0  ;;  %v634_v32 = vpop.f32.mrf.mxu1 }
 0x161   : > { %v642_v3 = vadd.f32 %v634_v32, %v535_v62  ;;  %v534_v0 = vadd.f32 %v488_v31, %v385_v10 }
 0x162   : > { %v490_v33 = vpop.f32.mrf.mxu0  ;;  %v1370_v34 = vpop.f32.mrf.mxu1 }
 0x164   : > { %v491_v35 = vpop.f32.mrf.mxu0  ;;  %v637_v36 = vpop.f32.mrf.mxu1 }
 0x166   : > { %v593_v37 = vpop.f32.mrf.mxu0  ;;  %v1371_v38 = vpop.f32.mrf.mxu1 }
 0x167   : > { %v640_v17 = vadd.f32 %v593_v37, %v533_v11 }
 0x168   : > { %v595_v39 = vpop.f32.mrf.mxu0  ;;  %v741_v40 = vpop.f32.mrf.mxu1 }
 0x169   : > { %v749_v7 = vadd.f32 %v741_v40, %v642_v3  ;;  %v641_v21 = vadd.f32 %v595_v39, %v534_v0  ;;  %v1187_v40 = vld [vmem:[%s1602_s27] sm:$0xff] }
 0x16a   : > { %v597_v41 = vpop.f32.mrf.mxu0  ;;  %v1376_v42 = vpop.f32.mrf.mxu1 }
 0x16c   : > { %v598_v43 = vpop.f32.mrf.mxu0  ;;  %v744_v44 = vpop.f32.mrf.mxu1 }
 0x16e   : > { %v700_v45 = vpop.f32.mrf.mxu0  ;;  %v1377_v46 = vpop.f32.mrf.mxu1 }
 0x16f   : > { %v747_v22 = vadd.f32 %v700_v45, %v640_v17 }
 0x170   : > { %v702_v47 = vpop.f32.mrf.mxu0  ;;  %v848_v48 = vpop.f32.mrf.mxu1 }
 0x171   : > { %v856_v13 = vadd.f32 %v848_v48, %v749_v7  ;;  %v748_v1 = vadd.f32 %v702_v47, %v641_v21  ;;  %v1189_v47 = vunpack.c.l.bf16 %v1187_v40 }
 0x172   : > { %v704_v49 = vpop.f32.mrf.mxu0  ;;  %v1382_v50 = vpop.f32.mrf.mxu1 }
 0x173   : > { %v1190_v49 = vunpack.c.h.bf16 %v1187_v40 }
 0x174   : > { %v705_v51 = vpop.f32.mrf.mxu0  ;;  %v851_v52 = vpop.f32.mrf.mxu1 }
 0x176   : > { %v807_v53 = vpop.f32.mrf.mxu0  ;;  %v1383_v54 = vpop.f32.mrf.mxu1 }
 0x177   : > { %v854_v26 = vadd.f32 %v807_v53, %v747_v22 }
 0x178   : > { %v809_v55 = vpop.f32.mrf.mxu0  ;;  %v955_v56 = vpop.f32.mrf.mxu1 }
 0x179   : > { %v963_v18 = vadd.f32 %v955_v56, %v856_v13  ;;  %v855_v31 = vadd.f32 %v809_v55, %v748_v1 }
 0x17a   : > { %v811_v57 = vpop.f32.mrf.mxu0  ;;  %v1388_v58 = vpop.f32.mrf.mxu1 }
 0x17c   : > { %v812_v60 = vpop.f32.mrf.mxu0  ;;  %v958_v61 = vpop.f32.mrf.mxu1 }
 0x17e   : > { %v914_v63 = vpop.f32.mrf.mxu0  ;;  %v1389_v2 = vpop.f32.mrf.mxu1 }
 0x17f   : > { %v961_v32 = vadd.f32 %v914_v63, %v854_v26 }
 0x180   : > { %v916_v4 = vpop.f32.mrf.mxu0  ;;  %v1062_v5 = vpop.f32.mrf.mxu1 }
 0x181   : > { %v1070_v23 = vadd.f32 %v1062_v5, %v963_v18  ;;  %v962_v36 = vadd.f32 %v916_v4, %v855_v31 }
 0x182   : > { %v918_v8 = vpop.f32.mrf.mxu0  ;;  %v1394_v9 = vpop.f32.mrf.mxu1 }
 0x184   : > { %v919_v12 = vpop.f32.mrf.mxu0  ;;  %v1065_v14 = vpop.f32.mrf.mxu1 }
 0x186   : > { %v1021_v19 = vpop.f32.mrf.mxu0  ;;  %v1395_v20 = vpop.f32.mrf.mxu1 }
 0x187   : > { %v1068_v37 = vadd.f32 %v1021_v19, %v961_v32 }
 0x188   : > { %v1023_v24 = vpop.f32.mrf.mxu0  ;;  %v1169_v25 = vpop.f32.mrf.mxu1 }
 0x189   : > { %v1177_v27 = vadd.f32 %v1169_v25, %v1070_v23  ;;  %v1069_v42 = vadd.f32 %v1023_v24, %v962_v36 }
 0x18a   : > { %v1025_v29 = vpop.f32.mrf.mxu0  ;;  %v1400_v30 = vpop.f32.mrf.mxu1 }
 0x18b   : > { %v1186_v33 = vadd.f32 %v1182_v16, %v1177_v27 }
 0x18c   : > { %v1026_v34 = vpop.f32.mrf.mxu0  ;;  %v1172_v35 = vpop.f32.mrf.mxu1 }
 0x18d   : > { %v1194_v38 = vadd.f32 %v1191_v28, %v1186_v33 }
 0x18e   : > { %v1128_v39 = vpop.f32.mrf.mxu0  ;;  %v1401_v41 = vpop.f32.mrf.mxu1 }
 0x18f   : > { %v1329_v43 = vpack.c.bf16 %v1194_v38, %v1194_v38  ;;  %v1175_v44 = vadd.f32 %v1128_v39, %v1068_v37 }
 0x190   : > { %v1130_v45 = vpop.f32.mrf.mxu0 }
 0x191   : > { %1210 = vst.msk [vmem:[%s217_s30 + $0x8] sm:$0xf] %vm1209_vm11, %v1329_v43  ;;  %v1184_v46 = vadd.f32 %v1182_v16, %v1175_v44  ;;  %v1176_v48 = vadd.f32 %v1130_v45, %v1069_v42 }
 0x192   : > { %v1132_v50 = vpop.f32.mrf.mxu0 }
 0x193   : > { %v1185_v51 = vadd.f32 %v1182_v16, %v1176_v48  ;;  %v1192_v53 = vadd.f32 %v1189_v47, %v1184_v46 }
 0x194   : > { %v1133_v52 = vpop.f32.mrf.mxu0 }
 0x195   : > { %v1193_v54 = vadd.f32 %v1190_v49, %v1185_v51 }
 0x197   : > { %v1328_v55 = vpack.c.bf16 %v1193_v54, %v1192_v53 }
 0x199   : > { %1208 = vst [vmem:[%s217_s30] sm:$0xff] %v1328_v55 }
 0x19a PF: > { %s14_s15 = sadd.s32 1, %s1432_s15  }
 0x19b   : > { %p11_p4 = scmp.ge.s32.totalorder %s14_s15, 4  }
 0x19d   :  { %13 = sbr.rel (!%p11_p4) target bundleno = 1 (0x1), region = 77 }

// kernel: _lambda_.35
= control target key start
LH: loop header
LB: loop body
LE: loop exit
PB: predicated region body
PF: predicated region fallthrough
CT: control target
= control target key end

     0   :  { %s951_s17 = smov 0   ;;  %s1047_s0 = inlined_call_operand.vmem [shape: bf16[2,32,102], index: 0, kind: input, shape index: {}]   ;;  %s1048_s1 = inlined_call_operand.vmem [shape: bf16[9,8,32], index: 1, kind: input, shape index: {}]   ;;  %s1049_s2 = inlined_call_operand.vmem [shape: f32[8,1], index: 2, kind: input, shape index: {}]   ;;  %s1050_s3 = inlined_call_operand.<no memory space> [shape: f32[1,1], index: 3, kind: input, shape index: {}]   ;;  %s1051_s4 = inlined_call_operand.vmem [shape: bf16[2,8,80], index: 4, kind: output, shape index: {}]  }
   0x1   :  { %v9_v0 = vstv %s1050_s3 }
   0x2   :  { %10 = vst [vmem:[#allocation2] sm:$0x1] %v9_v0 }
   0x3 LB: > { %s751_s18 = sadd.s32 4294967295, %s910_s17   ;;  %p755_p0 = scmp.ge.s32.totalorder %s910_s17, 1  ;;  %s910_s17 = sphi %s951_s17, %s16_s17  }
   0x4   : > { %p164_p1 = scmp.lt.s32.totalorder %s910_s17, 3 }
   0x6   : > { %p165_p2 = pnand %p755_p0, %p164_p1 }
   0x7   : > { %p189_p3 = scmp.lt.s32.totalorder (!%p165_p2), %s751_s18, 1  ;;  %s914_s22 = smov (!%p165_p2), 127  }
   0x8   : > { %168 = sbr.rel (%p165_p2) target bundleno = 374 (0x176), region = 36  ;;  %s915_s23 = smov (!%p165_p2), 126  }
   0x9   : > { %s916_s26 = smov (!%p165_p2), 118   ;;  %s917_s27 = smov (!%p165_p2), 117  }
   0xa   : > { %s918_s28 = smov (!%p165_p2), 116   ;;  %s919_s29 = smov (!%p165_p2), 108  }
   0xb   : > { %s920_s30 = smov (!%p165_p2), 107   ;;  %s921_s5 = smov (!%p165_p2), 106  }
   0xd   : > { %v912_v1 = vmov 0.0   ;;  %s1053_s18 = smov (!%p189_p3, %s751_s18), 1  ;;  %vm913_vm0 = vmmov 0   ;;  %vm222_vm1 = vcmask 261120   ;;  %v203_v4 = vld [vmem:[%s1048_s1] sm:$0xf] }
   0xe   : > { %809 = vmatprep.subr.bf16.mxu0 %v912_v1  ;;  %817 = vmatprep.subr.bf16.mxu1 %v912_v1  ;;  %s781_s3 = sshll.u32 %s1053_s18, 4  ;;  %v922_v5 = vmov 0   ;;  %v675_v6 = vld [vmem:[%s1049_s2] sm:$0xff]  ;;  %v778_v7 = vld [vmem:[#allocation2] ss:$0 sm:$0xff]  ;;  %s758_s25 = sshll.u32 %s1053_s18, 2 }
   0xf   : > { %813 = vmatprep.mubr.msk.bf16.mxu0 %vm913_vm0, %v912_v1  ;;  %821 = vmatprep.mubr.msk.bf16.mxu1 %vm913_vm0, %v912_v1  ;;  %s193_s21 = scalar_lea.vmem %s1047_s0, %s781_s3  ;;  %v759_v12 = vld [vmem:[%s1048_s1 + $0x4] sm:$0xf]  ;;  %v764_v17 = vld [vmem:[%s1048_s1 + $0x8] sm:$0xf]  ;;  %v766_v18 = vld [vmem:[%s1048_s1 + $0xc] sm:$0xf] }
  0x10   : > { %v902_v2 = vld [vmem:[%s193_s21 + $0x8] sm:$0xff]   ;;  %v903_v3 = vld [vmem:[%s193_s21] sm:$0xff]   ;;  %900 = vset.pattern.permute.xlu0 %v922_v5  ;;  %901 = vset.pattern.permute.xlu1 %v922_v5  ;;  %v768_v22 = vld [vmem:[%s1048_s1 + $0x10] sm:$0xf]  ;;  %vm696_vm3 = vcmask 650240  }
  0x11   : > { %218 = vrot.lane.b32.xlu0 %v902_v2, %s914_s22  ;;  %315 = vrot.lane.b32.xlu1 %v902_v2, %s915_s23  ;;  %v770_v23 = vld [vmem:[%s1048_s1 + $0x14] sm:$0xf]  ;;  %v772_v28 = vld [vmem:[%s1048_s1 + $0x18] sm:$0xf] }
  0x12   : > { %818 = vmatpush3.bf16.msra.mxu1 %v902_v2  ;;  %v774_v29 = vld [vmem:[%s1048_s1 + $0x1c] sm:$0xf]  ;;  %v776_v31 = vld [vmem:[%s1048_s1 + $0x20] sm:$0xf] }
  0x13   : > { %819 = vmatprep.subr.bf16.mxu1 %v912_v1 }
  0x15   : > { %216 = vrot.lane.b32.xlu0 %v903_v3, %s914_s22  ;;  %313 = vrot.lane.b32.xlu1 %v903_v3, %s915_s23 }
  0x16   : > { %820 = vmatpush3.bf16.msra.mxu1 %v903_v3 }
  0x17   : > { %833 = vmatprep.subr.bf16.mxu1 %v912_v1 }
  0x19   : > { %367 = vrot.lane.b32.xlu0 %v902_v2, %s916_s26  ;;  %419 = vrot.lane.b32.xlu1 %v902_v2, %s917_s27 }
  0x1a   : > { %822 = vmatmul.mubr.msk.bf16.vlgmr.msra.gmra.mxu1 %vm222_vm1, %v203_v4 }
  0x1b   : > { %837 = vmatprep.mubr.msk.bf16.mxu1 %vm913_vm0, %v912_v1 }
  0x1d   : > { %365 = vrot.lane.b32.xlu0 %v903_v3, %s916_s26  ;;  %417 = vrot.lane.b32.xlu1 %v903_v3, %s917_s27 }
  0x21   : > { %471 = vrot.lane.b32.xlu0 %v902_v2, %s918_s28  ;;  %523 = vrot.lane.b32.xlu1 %v902_v2, %s919_s29 }
  0x25   : > { %469 = vrot.lane.b32.xlu0 %v903_v3, %s918_s28  ;;  %521 = vrot.lane.b32.xlu1 %v903_v3, %s919_s29  ;;  %s197_s28 = scalar_lea.vmem %s1051_s4, %s758_s25 }
  0x29   : > { %575 = vrot.lane.b32.xlu0 %v902_v2, %s920_s30  ;;  %627 = vrot.lane.b32.xlu1 %v902_v2, %s921_s5 }
  0x2d   : > { %573 = vrot.lane.b32.xlu0 %v903_v3, %s920_s30  ;;  %625 = vrot.lane.b32.xlu1 %v903_v3, %s921_s5 }
  0x31   : > { %678 = vperm.xlu0 %900, %v675_v6   ;;  %690 = vperm.xlu1 %901, %v778_v7  }
  0x83   : > { %v219_v8 = vpop.permute.xlu0 %218  ;;  %v316_v9 = vpop.permute.xlu1 %315 }
  0x84   : > { %810 = vmatpush3.bf16.msra.mxu0 %v219_v8 }
  0x85   : > { %811 = vmatprep.subr.bf16.mxu0 %v912_v1 }
  0x87   : > { %v217_v10 = vpop.permute.xlu0 %216  ;;  %v314_v11 = vpop.permute.xlu1 %313 }
  0x88   : > { %812 = vmatpush3.bf16.msra.mxu0 %v217_v10 }
  0x89   : > { %825 = vmatprep.subr.bf16.mxu0 %v912_v1 }
  0x8b   : > { %814 = vmatmul.mubr.msk.bf16.vlgmr.msra.gmra.mxu0 %vm222_vm1, %v759_v12  ;;  %v368_v13 = vpop.permute.xlu0 %367  ;;  %v420_v14 = vpop.permute.xlu1 %419 }
  0x8c   : > { %826 = vmatpush3.bf16.msra.mxu0 %v316_v9  ;;  %834 = vmatpush3.bf16.msra.mxu1 %v368_v13 }
  0x8d   : > { %827 = vmatprep.subr.bf16.mxu0 %v912_v1  ;;  %835 = vmatprep.subr.bf16.mxu1 %v912_v1 }
  0x8e   : > { %829 = vmatprep.mubr.msk.bf16.mxu0 %vm913_vm0, %v912_v1 }
  0x8f   : > { %v366_v15 = vpop.permute.xlu0 %365  ;;  %v418_v16 = vpop.permute.xlu1 %417 }
  0x90   : > { %828 = vmatpush3.bf16.msra.mxu0 %v314_v11  ;;  %836 = vmatpush3.bf16.msra.mxu1 %v366_v15 }
  0x91   : > { %841 = vmatprep.subr.bf16.mxu0 %v912_v1  ;;  %849 = vmatprep.subr.bf16.mxu1 %v912_v1 }
  0x93   : > { %830 = vmatmul.mubr.msk.bf16.vlgmr.msra.gmra.mxu0 %vm222_vm1, %v764_v17  ;;  %v472_v19 = vpop.permute.xlu0 %471  ;;  %838 = vmatmul.mubr.msk.bf16.vlgmr.msra.gmra.mxu1 %vm222_vm1, %v766_v18  ;;  %v524_v20 = vpop.permute.xlu1 %523 }
  0x94   : > { %842 = vmatpush3.bf16.msra.mxu0 %v420_v14  ;;  %850 = vmatpush3.bf16.msra.mxu1 %v472_v19 }
  0x95   : > { %843 = vmatprep.subr.bf16.mxu0 %v912_v1  ;;  %851 = vmatprep.subr.bf16.mxu1 %v912_v1 }
  0x96   : > { %845 = vmatprep.mubr.msk.bf16.mxu0 %vm913_vm0, %v912_v1  ;;  %853 = vmatprep.mubr.msk.bf16.mxu1 %vm913_vm0, %v912_v1 }
  0x97   : > { %v470_v21 = vpop.permute.xlu0 %469  ;;  %v522_v24 = vpop.permute.xlu1 %521 }
  0x98   : > { %844 = vmatpush3.bf16.msra.mxu0 %v418_v16  ;;  %852 = vmatpush3.bf16.msra.mxu1 %v470_v21 }
  0x99   : > { %857 = vmatprep.subr.bf16.mxu0 %v912_v1  ;;  %865 = vmatprep.subr.bf16.mxu1 %v912_v1 }
  0x9b   : > { %846 = vmatmul.mubr.msk.bf16.vlgmr.msra.gmra.mxu0 %vm222_vm1, %v768_v22  ;;  %v576_v25 = vpop.permute.xlu0 %575  ;;  %854 = vmatmul.mubr.msk.bf16.vlgmr.msra.gmra.mxu1 %vm222_vm1, %v770_v23  ;;  %v628_v27 = vpop.permute.xlu1 %627 }
  0x9c   : > { %858 = vmatpush3.bf16.msra.mxu0 %v524_v20  ;;  %866 = vmatpush3.bf16.msra.mxu1 %v576_v25 }
  0x9d   : > { %859 = vmatprep.subr.bf16.mxu0 %v912_v1  ;;  %867 = vmatprep.subr.bf16.mxu1 %v912_v1 }
  0x9e   : > { %861 = vmatprep.mubr.msk.bf16.mxu0 %vm913_vm0, %v912_v1  ;;  %869 = vmatprep.mubr.msk.bf16.mxu1 %vm913_vm0, %v912_v1 }
  0x9f   : > { %v574_v26 = vpop.permute.xlu0 %573  ;;  %v626_v30 = vpop.permute.xlu1 %625 }
  0xa0   : > { %860 = vmatpush3.bf16.msra.mxu0 %v522_v24  ;;  %868 = vmatpush3.bf16.msra.mxu1 %v574_v26 }
  0xa1   : > { %873 = vmatprep.subr.bf16.mxu0 %v912_v1 }
  0xa3   : > { %862 = vmatmul.mubr.msk.bf16.vlgmr.msra.gmra.mxu0 %vm222_vm1, %v772_v28  ;;  %870 = vmatmul.mubr.msk.bf16.vlgmr.msra.gmra.mxu1 %vm222_vm1, %v774_v29 }
  0xa4   : > { %874 = vmatpush3.bf16.msra.mxu0 %v628_v27  ;;  %877 = vmatprep.mubr.msk.bf16.mxu0 %vm913_vm0, %v912_v1 }
  0xa5   : > { %875 = vmatprep.subr.bf16.mxu0 %v912_v1 }
  0xa8   : > { %876 = vmatpush3.bf16.msra.mxu0 %v626_v30 }
  0xab   : > { %878 = vmatmul.mubr.msk.bf16.vlgmr.msra.gmra.mxu0 %vm222_vm1, %v776_v31 }
  0xac   : > { %v679_v8 = vpop.permute.xlu0 %678  ;;  %v691_v11 = vpop.permute.xlu1 %690 }
  0xda   : > { %v305_v32 = vpop.f32.mrf.mxu1 }
  0xdc   : > { %v823_v33 = vpop.f32.mrf.mxu1 }
  0xde   : > { %v308_v34 = vpop.f32.mrf.mxu1 }
  0xe0   : > { %v824_v35 = vpop.f32.mrf.mxu1 }
 0x14b   : > { %v260_v36 = vpop.f32.mrf.mxu0 }
 0x14c   : > { %v306_v46 = vadd.f32 %v305_v32, %v260_v36 }
 0x14d   : > { %v815_v37 = vpop.f32.mrf.mxu0 }
 0x14f   : > { %v263_v38 = vpop.f32.mrf.mxu0 }
 0x151   : > { %v816_v39 = vpop.f32.mrf.mxu0 }
 0x153   : > { %v356_v40 = vpop.f32.mrf.mxu0  ;;  %v408_v41 = vpop.f32.mrf.mxu1 }
 0x154   : > { %v362_v49 = vadd.f32 %v356_v40, %v306_v46 }
 0x155   : > { %v831_v42 = vpop.f32.mrf.mxu0  ;;  %v839_v43 = vpop.f32.mrf.mxu1 }
 0x156   : > { %v414_v54 = vadd.f32 %v408_v41, %v362_v49 }
 0x157   : > { %v359_v44 = vpop.f32.mrf.mxu0  ;;  %v411_v45 = vpop.f32.mrf.mxu1 }
 0x159   : > { %v832_v47 = vpop.f32.mrf.mxu0  ;;  %v840_v48 = vpop.f32.mrf.mxu1 }
 0x15b   : > { %v460_v50 = vpop.f32.mrf.mxu0  ;;  %v512_v51 = vpop.f32.mrf.mxu1 }
 0x15c   : > { %v466_v57 = vadd.f32 %v460_v50, %v414_v54 }
 0x15d   : > { %v847_v52 = vpop.f32.mrf.mxu0  ;;  %v855_v53 = vpop.f32.mrf.mxu1 }
 0x15e   : > { %v518_v62 = vadd.f32 %v512_v51, %v466_v57 }
 0x15f   : > { %v463_v55 = vpop.f32.mrf.mxu0  ;;  %v515_v56 = vpop.f32.mrf.mxu1 }
 0x161   : > { %v848_v58 = vpop.f32.mrf.mxu0  ;;  %v856_v59 = vpop.f32.mrf.mxu1 }
 0x163   : > { %v564_v60 = vpop.f32.mrf.mxu0  ;;  %v616_v61 = vpop.f32.mrf.mxu1 }
 0x164   : > { %v570_v1 = vadd.f32 %v564_v60, %v518_v62 }
 0x165   : > { %v863_v63 = vpop.f32.mrf.mxu0  ;;  %v871_v0 = vpop.f32.mrf.mxu1 }
 0x166   : > { %v622_v6 = vadd.f32 %v616_v61, %v570_v1 }
 0x167   : > { %v567_v2 = vpop.f32.mrf.mxu0  ;;  %v619_v3 = vpop.f32.mrf.mxu1 }
 0x169   : > { %v864_v4 = vpop.f32.mrf.mxu0  ;;  %v872_v5 = vpop.f32.mrf.mxu1 }
 0x16b   : > { %v668_v7 = vpop.f32.mrf.mxu0 }
 0x16c   : > { %v674_v9 = vadd.f32 %v668_v7, %v622_v6 }
 0x16d   : > { %v879_v10 = vpop.f32.mrf.mxu0 }
 0x16e   : > { %v681_v12 = vadd.f32 %v679_v8, %v674_v9 }
 0x16f   : > { %v671_v13 = vpop.f32.mrf.mxu0 }
 0x170   : > { %vm682_vm2 = vcmp.ge.f32.partialorder %v681_v12, 0.0  ;;  %v693_v14 = vmul.f32 %v691_v11, %v681_v12 }
 0x171   : > { %v880_v15 = vpop.f32.mrf.mxu0 }
 0x172   : > { %v694_v16 = vsel %vm682_vm2, %v681_v12, %v693_v14 }
 0x173   : > { %v695_v17 = vpack.c.bf16 %v694_v16, %v694_v16 }
 0x175   : > { %697 = vst.msk [vmem:[%s197_s28] sm:$0xf] %vm696_vm3, %v695_v17 }
 0x176 PF: > { %s16_s17 = sadd.s32 1, %s910_s17  }
 0x177   : > { %p13_p4 = scmp.ge.s32.totalorder %s16_s17, 4  }
 0x179   :  { %15 = sbr.rel (!%p13_p4) target bundleno = 3 (0x3), region = 74 }

// kernel: _lambda_.49
= control target key start
LH: loop header
LB: loop body
LE: loop exit
PB: predicated region body
PF: predicated region fallthrough
CT: control target
= control target key end

     0   :  { %s1329_s12 = smov 0   ;;  %s1447_s0 = inlined_call_operand.vmem [shape: bf16[2,16,326], index: 0, kind: input, shape index: {}]   ;;  %s1448_s1 = inlined_call_operand.vmem [shape: bf16[9,3,16], index: 1, kind: input, shape index: {}]   ;;  %s1449_s2 = inlined_call_operand.vmem [shape: f32[3,1], index: 2, kind: input, shape index: {}]   ;;  %s1450_s3 = inlined_call_operand.vmem [shape: f32[2,3,288], index: 3, kind: output, shape index: {}]  }
   0x1 LB: > { %s1154_s13 = sadd.s32 4294967295, %s1296_s12   ;;  %p1158_p0 = scmp.ge.s32.totalorder %s1296_s12, 1  ;;  %s1296_s12 = sphi %s1329_s12, %s13_s12  }
   0x2   : > { %p137_p1 = scmp.lt.s32.totalorder %s1296_s12, 3 }
   0x4   : > { %p138_p2 = pnand %p1158_p0, %p137_p1 }
   0x5   : > { %p161_p3 = scmp.lt.s32.totalorder (!%p138_p2), %s1154_s13, 1  ;;  %s1301_s18 = smov (!%p138_p2), 127  }
   0x6   : > { %141 = sbr.rel (%p138_p2) target bundleno = 406 (0x196), region = 32  ;;  %s1302_s19 = smov (!%p138_p2), 126  }
   0x7   : > { %s1303_s20 = smov (!%p138_p2), 110   ;;  %s1304_s21 = smov (!%p138_p2), 109  }
   0x8   : > { %s1305_s22 = smov (!%p138_p2), 108   ;;  %s1306_s23 = smov (!%p138_p2), 92  }
   0x9   : > { %s1307_s24 = smov (!%p138_p2), 91   ;;  %s1308_s25 = smov (!%p138_p2), 90  }
   0xb   : > { %v1298_v0 = vmov 0.0   ;;  %s1452_s13 = smov (!%p161_p3, %s1154_s13), 1  ;;  %vm1299_vm0 = vmmov 0   ;;  %v1300_v1 = vmov 0   ;;  %v1083_v5 = vld [vmem:[%s1449_s2] sm:$0x7] }
   0xc   : > { %1210 = vmatprep.subr.bf16.mxu1 %v1298_v0  ;;  %1212 = vmatprep.mubr.msk.bf16.mxu1 %vm1299_vm0, %v1298_v0  ;;  %s1264_s14 = smul.u32 24, %s1452_s13  ;;  %vm198_vm1 = vcmask 1039360   ;;  %v1161_v10 = vld [vmem:[%s1448_s1 + $0x2] sm:$0x3]  ;;  %vm204_vm2 = vcmask 130048   ;;  %vm384_vm3 = vcmask 1031168  }
   0xd   : > { %240 = vmatprep.mubr.bf16.mxu0 %v1300_v1  ;;  %1285 = vset.pattern.permute.xlu0 %v1300_v1  ;;  %v176_v17 = vld [vmem:[%s1448_s1] sm:$0x3]  ;;  %vm485_vm4 = vcmask 900096   ;;  %v1169_v23 = vld [vmem:[%s1448_s1 + $0x4] sm:$0x3]  ;;  %vm586_vm5 = vcmask 891904  }
   0xe   : > { %s165_s17 = scalar_lea.vmem %s1447_s0, %s1264_s14  ;;  %v1172_v29 = vld [vmem:[%s1448_s1 + $0x6] sm:$0x3]  ;;  %vm687_vm6 = vcmask 883712   ;;  %v1175_v35 = vld [vmem:[%s1448_s1 + $0x8] sm:$0x3]  ;;  %vm788_vm7 = vcmask 752640  }
   0xf   : > { %v1286_v2 = vld [vmem:[%s165_s17 + $0x4] ss:$12 sps:$4 sm:$0xff]   ;;  %v1288_v3 = vld [vmem:[%s165_s17] ss:$12 sps:$4 sm:$0xff]   ;;  %v1289_v4 = vld [vmem:[%s165_s17 + $0x8] ss:$12 sps:$4 sm:$0xff]  }
  0x10   : > { %194 = vrot.lane.b32.xlu0 %v1286_v2, %s1301_s18  ;;  %192 = vrot.lane.b32.xlu1 %v1288_v3, %s1301_s18  ;;  %v1178_v41 = vld [vmem:[%s1448_s1 + $0xa] sm:$0x3]  ;;  %vm889_vm8 = vcmask 744448   ;;  %v1181_v46 = vld [vmem:[%s1448_s1 + $0xc] sm:$0x3]  ;;  %vm990_vm9 = vcmask 736256  }
  0x11   : > { %v1184_v52 = vld [vmem:[%s1448_s1 + $0xe] sm:$0x3]  ;;  %v1187_v54 = vld [vmem:[%s1448_s1 + $0x10] sm:$0x3]  ;;  %vm1097_vm10 = vcmask 256000  }
  0x14   : > { %196 = vrot.lane.b32.xlu0 %v1289_v4, %s1301_s18  ;;  %380 = vrot.lane.b32.xlu1 %v1286_v2, %s1302_s19 }
  0x18   : > { %382 = vrot.lane.b32.xlu0 %v1289_v4, %s1302_s19  ;;  %378 = vrot.lane.b32.xlu1 %v1288_v3, %s1302_s19 }
  0x1c   : > { %481 = vrot.lane.b32.xlu0 %v1286_v2, %s1303_s20  ;;  %483 = vrot.lane.b32.xlu1 %v1289_v4, %s1303_s20 }
  0x20   : > { %479 = vrot.lane.b32.xlu0 %v1288_v3, %s1303_s20  ;;  %582 = vrot.lane.b32.xlu1 %v1286_v2, %s1304_s21 }
  0x24   : > { %584 = vrot.lane.b32.xlu0 %v1289_v4, %s1304_s21  ;;  %580 = vrot.lane.b32.xlu1 %v1288_v3, %s1304_s21  ;;  %s1265_s21 = smul.u32 12, %s1452_s13 }
  0x28   : > { %683 = vrot.lane.b32.xlu0 %v1286_v2, %s1305_s22  ;;  %685 = vrot.lane.b32.xlu1 %v1289_v4, %s1305_s22 }
  0x2c   : > { %681 = vrot.lane.b32.xlu0 %v1288_v3, %s1305_s22  ;;  %784 = vrot.lane.b32.xlu1 %v1286_v2, %s1306_s23 }
  0x30   : > { %786 = vrot.lane.b32.xlu0 %v1289_v4, %s1306_s23  ;;  %782 = vrot.lane.b32.xlu1 %v1288_v3, %s1306_s23 }
  0x34   : > { %885 = vrot.lane.b32.xlu0 %v1286_v2, %s1307_s24  ;;  %887 = vrot.lane.b32.xlu1 %v1289_v4, %s1307_s24 }
  0x38   : > { %883 = vrot.lane.b32.xlu0 %v1288_v3, %s1307_s24  ;;  %986 = vrot.lane.b32.xlu1 %v1286_v2, %s1308_s25  ;;  %s170_s24 = scalar_lea.vmem %s1450_s3, %s1265_s21 }
  0x3c   : > { %988 = vrot.lane.b32.xlu0 %v1289_v4, %s1308_s25  ;;  %984 = vrot.lane.b32.xlu1 %v1288_v3, %s1308_s25 }
  0x40   : > { %1086 = vperm.xlu0 %1285, %v1083_v5  }
  0x82   : > { %v195_v6 = vpop.permute.xlu0 %194  ;;  %v193_v7 = vpop.permute.xlu1 %192 }
  0x83   : > { %v199_v12 = vsel %vm198_vm1, %v193_v7, %v195_v6 }
  0x86   : > { %v197_v8 = vpop.permute.xlu0 %196  ;;  %v381_v11 = vpop.permute.xlu1 %380 }
  0x87   : > { %1211 = vmatpush3.bf16.msra.mxu1 %v197_v8  ;;  %v200_v9 = vsel %vm198_vm1, %v195_v6, %v197_v8 }
  0x88   : > { %222 = vmatprep.subr.bf16.mxu0 %v200_v9  ;;  %1216 = vmatprep.subr.bf16.mxu1 %v1298_v0 }
  0x89   : > { %223 = vmatpush1.bf16.msra.mxu0 %v199_v12 }
  0x8a   : > { %1213 = vmatmul.mubr.msk.bf16.vlgmr.msra.gmra.mxu1 %vm204_vm2, %v1161_v10  ;;  %309 = vmatprep.subr.bf16.mxu0 %v1286_v2  ;;  %v383_v13 = vpop.permute.xlu0 %382  ;;  %v379_v15 = vpop.permute.xlu1 %378 }
  0x8b   : > { %1217 = vmatpush3.bf16.msra.mxu1 %v1289_v4  ;;  %1218 = vmatprep.mubr.msk.bf16.mxu1 %vm1299_vm0, %v1298_v0  ;;  %v386_v14 = vsel %vm384_vm3, %v381_v11, %v383_v13  ;;  %v385_v19 = vsel %vm384_vm3, %v379_v15, %v381_v11 }
  0x8c   : > { %1165 = vmatmul.mubr.msk.bf16.vlgmr.msra.gmra.mxu0 %vm204_vm2, %v1161_v10  ;;  %1222 = vmatprep.subr.bf16.mxu1 %v1298_v0 }
  0x8d   : > { %310 = vmatpush1.bf16.msra.mxu0 %v1288_v3  ;;  %327 = vmatprep.mubr.bf16.mxu0 %v1300_v1 }
  0x8e   : > { %407 = vmatprep.subr.bf16.mxu0 %v386_v14  ;;  %v482_v16 = vpop.permute.xlu0 %481  ;;  %v484_v18 = vpop.permute.xlu1 %483 }
  0x8f   : > { %v487_v20 = vsel %vm485_vm4, %v482_v16, %v484_v18 }
  0x92   : > { %1219 = vmatmul.mubr.msk.bf16.vlgmr.msra.gmra.mxu1 %vm204_vm2, %v176_v17  ;;  %v480_v21 = vpop.permute.xlu0 %479  ;;  %v583_v22 = vpop.permute.xlu1 %582 }
  0x93   : > { %1223 = vmatpush3.bf16.msra.mxu1 %v383_v13  ;;  %1224 = vmatprep.mubr.msk.bf16.mxu1 %vm1299_vm0, %v1298_v0  ;;  %v486_v25 = vsel %vm485_vm4, %v480_v21, %v482_v16 }
  0x94   : > { %1167 = vmatmul.mubr.msk.bf16.vlgmr.msra.gmra.mxu0 %vm204_vm2, %v176_v17  ;;  %1228 = vmatprep.subr.bf16.mxu1 %v1298_v0 }
  0x95   : > { %408 = vmatpush1.bf16.msra.mxu0 %v385_v19  ;;  %425 = vmatprep.mubr.bf16.mxu0 %v1300_v1 }
  0x96   : > { %508 = vmatprep.subr.bf16.mxu0 %v487_v20  ;;  %v585_v24 = vpop.permute.xlu0 %584  ;;  %v581_v27 = vpop.permute.xlu1 %580 }
  0x97   : > { %v588_v26 = vsel %vm586_vm5, %v583_v22, %v585_v24  ;;  %v587_v31 = vsel %vm586_vm5, %v581_v27, %v583_v22 }
  0x9a   : > { %1225 = vmatmul.mubr.msk.bf16.vlgmr.msra.gmra.mxu1 %vm204_vm2, %v1169_v23  ;;  %v684_v28 = vpop.permute.xlu0 %683  ;;  %v686_v30 = vpop.permute.xlu1 %685 }
  0x9b   : > { %1229 = vmatpush3.bf16.msra.mxu1 %v484_v18  ;;  %1230 = vmatprep.mubr.msk.bf16.mxu1 %vm1299_vm0, %v1298_v0  ;;  %v689_v32 = vsel %vm687_vm6, %v684_v28, %v686_v30 }
  0x9c   : > { %1170 = vmatmul.mubr.msk.bf16.vlgmr.msra.gmra.mxu0 %vm204_vm2, %v1169_v23  ;;  %1234 = vmatprep.subr.bf16.mxu1 %v1298_v0 }
  0x9d   : > { %509 = vmatpush1.bf16.msra.mxu0 %v486_v25  ;;  %526 = vmatprep.mubr.bf16.mxu0 %v1300_v1 }
  0x9e   : > { %609 = vmatprep.subr.bf16.mxu0 %v588_v26  ;;  %v682_v33 = vpop.permute.xlu0 %681  ;;  %v785_v34 = vpop.permute.xlu1 %784 }
  0x9f   : > { %v688_v37 = vsel %vm687_vm6, %v682_v33, %v684_v28 }
  0xa2   : > { %1231 = vmatmul.mubr.msk.bf16.vlgmr.msra.gmra.mxu1 %vm204_vm2, %v1172_v29  ;;  %v787_v36 = vpop.permute.xlu0 %786  ;;  %v783_v39 = vpop.permute.xlu1 %782 }
  0xa3   : > { %1235 = vmatpush3.bf16.msra.mxu1 %v585_v24  ;;  %1236 = vmatprep.mubr.msk.bf16.mxu1 %vm1299_vm0, %v1298_v0  ;;  %v790_v38 = vsel %vm788_vm7, %v785_v34, %v787_v36  ;;  %v789_v43 = vsel %vm788_vm7, %v783_v39, %v785_v34 }
  0xa4   : > { %1173 = vmatmul.mubr.msk.bf16.vlgmr.msra.gmra.mxu0 %vm204_vm2, %v1172_v29  ;;  %1240 = vmatprep.subr.bf16.mxu1 %v1298_v0 }
  0xa5   : > { %610 = vmatpush1.bf16.msra.mxu0 %v587_v31  ;;  %627 = vmatprep.mubr.bf16.mxu0 %v1300_v1 }
  0xa6   : > { %710 = vmatprep.subr.bf16.mxu0 %v689_v32  ;;  %v886_v40 = vpop.permute.xlu0 %885  ;;  %v888_v42 = vpop.permute.xlu1 %887 }
  0xa7   : > { %v891_v44 = vsel %vm889_vm8, %v886_v40, %v888_v42 }
  0xaa   : > { %1237 = vmatmul.mubr.msk.bf16.vlgmr.msra.gmra.mxu1 %vm204_vm2, %v1175_v35  ;;  %v884_v45 = vpop.permute.xlu0 %883  ;;  %v987_v48 = vpop.permute.xlu1 %986 }
  0xab   : > { %1241 = vmatpush3.bf16.msra.mxu1 %v686_v30  ;;  %1242 = vmatprep.mubr.msk.bf16.mxu1 %vm1299_vm0, %v1298_v0  ;;  %v890_v49 = vsel %vm889_vm8, %v884_v45, %v886_v40 }
  0xac   : > { %1176 = vmatmul.mubr.msk.bf16.vlgmr.msra.gmra.mxu0 %vm204_vm2, %v1175_v35  ;;  %1246 = vmatprep.subr.bf16.mxu1 %v1298_v0 }
  0xad   : > { %711 = vmatpush1.bf16.msra.mxu0 %v688_v37  ;;  %728 = vmatprep.mubr.bf16.mxu0 %v1300_v1 }
  0xae   : > { %811 = vmatprep.subr.bf16.mxu0 %v790_v38  ;;  %v989_v47 = vpop.permute.xlu0 %988  ;;  %v985_v51 = vpop.permute.xlu1 %984 }
  0xaf   : > { %v992_v50 = vsel %vm990_vm9, %v987_v48, %v989_v47  ;;  %v991_v53 = vsel %vm990_vm9, %v985_v51, %v987_v48 }
  0xb2   : > { %1243 = vmatmul.mubr.msk.bf16.vlgmr.msra.gmra.mxu1 %vm204_vm2, %v1178_v41 }
  0xb3   : > { %1247 = vmatpush3.bf16.msra.mxu1 %v787_v36  ;;  %1248 = vmatprep.mubr.msk.bf16.mxu1 %vm1299_vm0, %v1298_v0 }
  0xb4   : > { %1179 = vmatmul.mubr.msk.bf16.vlgmr.msra.gmra.mxu0 %vm204_vm2, %v1178_v41  ;;  %1252 = vmatprep.subr.bf16.mxu1 %v1298_v0 }
  0xb5   : > { %812 = vmatpush1.bf16.msra.mxu0 %v789_v43  ;;  %829 = vmatprep.mubr.bf16.mxu0 %v1300_v1 }
  0xb6   : > { %912 = vmatprep.subr.bf16.mxu0 %v891_v44 }
  0xba   : > { %1249 = vmatmul.mubr.msk.bf16.vlgmr.msra.gmra.mxu1 %vm204_vm2, %v1181_v46 }
  0xbb   : > { %1253 = vmatpush3.bf16.msra.mxu1 %v888_v42  ;;  %1254 = vmatprep.mubr.msk.bf16.mxu1 %vm1299_vm0, %v1298_v0 }
  0xbc   : > { %1182 = vmatmul.mubr.msk.bf16.vlgmr.msra.gmra.mxu0 %vm204_vm2, %v1181_v46  ;;  %1258 = vmatprep.subr.bf16.mxu1 %v1298_v0 }
  0xbd   : > { %913 = vmatpush1.bf16.msra.mxu0 %v890_v49  ;;  %930 = vmatprep.mubr.bf16.mxu0 %v1300_v1 }
  0xbe   : > { %1013 = vmatprep.subr.bf16.mxu0 %v992_v50 }
  0xc2   : > { %1255 = vmatmul.mubr.msk.bf16.vlgmr.msra.gmra.mxu1 %vm204_vm2, %v1184_v52 }
  0xc3   : > { %1259 = vmatpush3.bf16.msra.mxu1 %v989_v47  ;;  %1260 = vmatprep.mubr.msk.bf16.mxu1 %vm1299_vm0, %v1298_v0 }
  0xc4   : > { %1185 = vmatmul.mubr.msk.bf16.vlgmr.msra.gmra.mxu0 %vm204_vm2, %v1184_v52 }
  0xc5   : > { %1014 = vmatpush1.bf16.msra.mxu0 %v991_v53  ;;  %1031 = vmatprep.mubr.bf16.mxu0 %v1300_v1 }
  0xca   : > { %1261 = vmatmul.mubr.msk.bf16.vlgmr.msra.gmra.mxu1 %vm204_vm2, %v1187_v54 }
  0xcc   : > { %1188 = vmatmul.mubr.msk.bf16.vlgmr.msra.gmra.mxu0 %vm204_vm2, %v1187_v54 }
 0x14a   : > { %v283_v55 = vpop.f32.mrf.mxu1 }
 0x14c   : > { %v242_v56 = vpop.f32.mrf.mxu0  ;;  %v1214_v57 = vpop.f32.mrf.mxu1 }
 0x14e   : > { %v244_v58 = vpop.f32.mrf.mxu0  ;;  %v286_v59 = vpop.f32.mrf.mxu1 }
 0x150   : > { %v246_v60 = vpop.f32.mrf.mxu0  ;;  %v1215_v61 = vpop.f32.mrf.mxu1 }
 0x152   : > { %v247_v62 = vpop.f32.mrf.mxu0  ;;  %v370_v63 = vpop.f32.mrf.mxu1 }
 0x153   : > { %v371_v42 = vadd.f32 %v370_v63, %v283_v55 }
 0x154   : > { %v329_v0 = vpop.f32.mrf.mxu0  ;;  %v1220_v2 = vpop.f32.mrf.mxu1 }
 0x155   : > { %v330_v45 = vadd.f32 %v329_v0, %v242_v56 }
 0x156   : > { %v331_v1 = vpop.f32.mrf.mxu0  ;;  %v373_v3 = vpop.f32.mrf.mxu1 }
 0x157   : > { %v332_v49 = vadd.f32 %v331_v1, %v244_v58 }
 0x158   : > { %v333_v4 = vpop.f32.mrf.mxu0  ;;  %v1221_v5 = vpop.f32.mrf.mxu1 }
 0x15a   : > { %v334_v6 = vpop.f32.mrf.mxu0  ;;  %v468_v7 = vpop.f32.mrf.mxu1 }
 0x15b   : > { %v476_v46 = vadd.f32 %v468_v7, %v371_v42 }
 0x15c   : > { %v427_v8 = vpop.f32.mrf.mxu0  ;;  %v1226_v9 = vpop.f32.mrf.mxu1 }
 0x15d   : > { %v474_v50 = vadd.f32 %v427_v8, %v330_v45  ;;  %v1087_v8 = vpop.permute.xlu0 %1086 }
 0x15e   : > { %v429_v10 = vpop.f32.mrf.mxu0  ;;  %v471_v11 = vpop.f32.mrf.mxu1 }
 0x15f   : > { %v475_v54 = vadd.f32 %v429_v10, %v332_v49 }
 0x160   : > { %v431_v12 = vpop.f32.mrf.mxu0  ;;  %v1227_v13 = vpop.f32.mrf.mxu1 }
 0x162   : > { %v432_v14 = vpop.f32.mrf.mxu0  ;;  %v569_v15 = vpop.f32.mrf.mxu1 }
 0x163   : > { %v577_v51 = vadd.f32 %v569_v15, %v476_v46 }
 0x164   : > { %v528_v16 = vpop.f32.mrf.mxu0  ;;  %v1232_v17 = vpop.f32.mrf.mxu1 }
 0x165   : > { %v575_v57 = vadd.f32 %v528_v16, %v474_v50 }
 0x166   : > { %v530_v18 = vpop.f32.mrf.mxu0  ;;  %v572_v19 = vpop.f32.mrf.mxu1 }
 0x167   : > { %v576_v62 = vadd.f32 %v530_v18, %v475_v54 }
 0x168   : > { %v532_v20 = vpop.f32.mrf.mxu0  ;;  %v1233_v21 = vpop.f32.mrf.mxu1 }
 0x16a   : > { %v533_v22 = vpop.f32.mrf.mxu0  ;;  %v670_v23 = vpop.f32.mrf.mxu1 }
 0x16b   : > { %v678_v59 = vadd.f32 %v670_v23, %v577_v51 }
 0x16c   : > { %v629_v24 = vpop.f32.mrf.mxu0  ;;  %v1238_v25 = vpop.f32.mrf.mxu1 }
 0x16d   : > { %v676_v2 = vadd.f32 %v629_v24, %v575_v57 }
 0x16e   : > { %v631_v26 = vpop.f32.mrf.mxu0  ;;  %v673_v27 = vpop.f32.mrf.mxu1 }
 0x16f   : > { %v677_v56 = vadd.f32 %v631_v26, %v576_v62 }
 0x170   : > { %v633_v28 = vpop.f32.mrf.mxu0  ;;  %v1239_v29 = vpop.f32.mrf.mxu1 }
 0x172   : > { %v634_v30 = vpop.f32.mrf.mxu0  ;;  %v771_v31 = vpop.f32.mrf.mxu1 }
 0x173   : > { %v779_v55 = vadd.f32 %v771_v31, %v678_v59 }
 0x174   : > { %v730_v32 = vpop.f32.mrf.mxu0  ;;  %v1244_v33 = vpop.f32.mrf.mxu1 }
 0x175   : > { %v777_v0 = vadd.f32 %v730_v32, %v676_v2 }
 0x176   : > { %v732_v34 = vpop.f32.mrf.mxu0  ;;  %v774_v35 = vpop.f32.mrf.mxu1 }
 0x177   : > { %v778_v1 = vadd.f32 %v732_v34, %v677_v56 }
 0x178   : > { %v734_v36 = vpop.f32.mrf.mxu0  ;;  %v1245_v37 = vpop.f32.mrf.mxu1 }
 0x17a   : > { %v735_v38 = vpop.f32.mrf.mxu0  ;;  %v872_v39 = vpop.f32.mrf.mxu1 }
 0x17b   : > { %v880_v4 = vadd.f32 %v872_v39, %v779_v55 }
 0x17c   : > { %v831_v40 = vpop.f32.mrf.mxu0  ;;  %v1250_v41 = vpop.f32.mrf.mxu1 }
 0x17d   : > { %v878_v6 = vadd.f32 %v831_v40, %v777_v0 }
 0x17e   : > { %v833_v43 = vpop.f32.mrf.mxu0  ;;  %v875_v44 = vpop.f32.mrf.mxu1 }
 0x17f   : > { %v879_v11 = vadd.f32 %v833_v43, %v778_v1 }
 0x180   : > { %v835_v47 = vpop.f32.mrf.mxu0  ;;  %v1251_v48 = vpop.f32.mrf.mxu1 }
 0x182   : > { %v836_v52 = vpop.f32.mrf.mxu0  ;;  %v973_v53 = vpop.f32.mrf.mxu1 }
 0x183   : > { %v981_v7 = vadd.f32 %v973_v53, %v880_v4 }
 0x184   : > { %v932_v60 = vpop.f32.mrf.mxu0  ;;  %v1256_v61 = vpop.f32.mrf.mxu1 }
 0x185   : > { %v979_v12 = vadd.f32 %v932_v60, %v878_v6 }
 0x186   : > { %v934_v63 = vpop.f32.mrf.mxu0  ;;  %v976_v3 = vpop.f32.mrf.mxu1 }
 0x187   : > { %v980_v16 = vadd.f32 %v934_v63, %v879_v11 }
 0x188   : > { %v936_v5 = vpop.f32.mrf.mxu0  ;;  %v1257_v58 = vpop.f32.mrf.mxu1 }
 0x18a   : > { %v937_v9 = vpop.f32.mrf.mxu0  ;;  %v1074_v10 = vpop.f32.mrf.mxu1 }
 0x18b   : > { %v1082_v13 = vadd.f32 %v1074_v10, %v981_v7 }
 0x18c   : > { %v1033_v14 = vpop.f32.mrf.mxu0  ;;  %v1262_v15 = vpop.f32.mrf.mxu1 }
 0x18d   : > { %v1091_v17 = vadd.f32 %v1087_v8, %v1082_v13  ;;  %v1080_v18 = vadd.f32 %v1033_v14, %v979_v12 }
 0x18e   : > { %v1035_v19 = vpop.f32.mrf.mxu0  ;;  %v1077_v20 = vpop.f32.mrf.mxu1 }
 0x18f   : > { %1098 = vst.msk [vmem:[%s170_s24 + $0x8] sm:$0x7] %vm1097_vm10, %v1091_v17  ;;  %v1081_v21 = vadd.f32 %v1035_v19, %v980_v16  ;;  %v1089_v24 = vadd.f32 %v1087_v8, %v1080_v18 }
 0x190   : > { %v1037_v22 = vpop.f32.mrf.mxu0  ;;  %v1263_v23 = vpop.f32.mrf.mxu1 }
 0x191   : > { %v1090_v25 = vadd.f32 %v1087_v8, %v1081_v21 }
 0x192   : > { %v1038_v26 = vpop.f32.mrf.mxu0 }
 0x193   : > { %v1094_v27 = vcombine.low %v1089_v24, %v1090_v25 }
 0x195   : > { %1096 = vst [vmem:[%s170_s24] sm:$0x77] %v1094_v27 }
 0x196 PF: > { %s13_s12 = sadd.s32 1, %s1296_s12  }
 0x197   : > { %p10_p4 = scmp.ge.s32.totalorder %s13_s12, 4  }
 0x199   :  { %12 = sbr.rel (!%p10_p4) target bundleno = 1 (0x1), region = 70 }

</bundles_post_ra>
